<compile_context>
chip_gen: v6e
topology: v6e:2x2x1
jax: 0.10.0
libtpu: 0.0.40
codegen_flags: <defaults>
</compile_context>

<pallas_src>
import functools
import math

import jax
import jax.numpy as jnp
from jax.experimental import pallas as pl
from jax.experimental.pallas import tpu as pltpu

BN_EPS = 1e-5


def _round_up(x, m):
    return (x + m - 1) // m * m


@functools.lru_cache(maxsize=None)
def _vmem_limit_bytes():
    # 32 MiB is safe everywhere (incl. v7x's 64 MiB physical VMEM); raise to
    # 64 MiB on the 128-MiB-VMEM generations (v5e / v6e) for deeper pipelining.
    try:
        kind = jax.devices()[0].device_kind.lower()
    except Exception:
        return 32 * 1024 * 1024
    if ("v5" in kind and "lite" in kind) or "v5e" in kind or "v6" in kind:
        return 64 * 1024 * 1024
    return 32 * 1024 * 1024


def _compiler_params(semantics):
    return pltpu.CompilerParams(dimension_semantics=semantics,
                                vmem_limit_bytes=_vmem_limit_bytes())


# --------------------- fused 3x3 conv kernel (no im2col) ----------------------
# Grid: one step per image (parallel -> megacore).  The whole padded image
# (phase-repacked for stride 2) lives in VMEM; the 9 taps are unrolled as
# shifted VMEM slices feeding bf16 MXU matmuls with an f32 accumulator.
# Per-image BN partial sums (sum y, sum y^2) are emitted from the f32
# accumulator, so no separate stats pass over the conv output is needed.

def _conv3x3_kernel(x_ref, w_ref, o_ref, s1_ref, s2_ref, *, taps, Ho, Wo):
    cin = x_ref.shape[-1]
    cout = o_ref.shape[-1]
    acc = jnp.zeros((Ho * Wo, cout), jnp.float32)
    for t, (p, ho, wo) in enumerate(taps):
        patch = x_ref[0, p, ho:ho + Ho, wo:wo + Wo, :].reshape(Ho * Wo, cin)
        acc = acc + jnp.dot(patch, w_ref[t], preferred_element_type=jnp.float32)
    s1_ref[0] = jnp.sum(acc, axis=0, keepdims=True)
    s2_ref[0] = jnp.sum(acc * acc, axis=0, keepdims=True)
    o_ref[0] = acc.astype(o_ref.dtype)


def _pallas_conv3x3_fused(xs, w9, Ho, Wo, taps):
    """xs: (N, P, Hx, Wx, Cin) bf16; w9: (9, Cin, Cout) bf16."""
    N, P, Hx, Wx, Cin = xs.shape
    Cout = w9.shape[-1]
    Mo = Ho * Wo
    kern = functools.partial(_conv3x3_kernel, taps=taps, Ho=Ho, Wo=Wo)
    y, s1, s2 = pl.pallas_call(
        kern,
        out_shape=(jax.ShapeDtypeStruct((N, Mo, Cout), jnp.bfloat16),
                   jax.ShapeDtypeStruct((N, 1, Cout), jnp.float32),
                   jax.ShapeDtypeStruct((N, 1, Cout), jnp.float32)),
        grid_spec=pltpu.PrefetchScalarGridSpec(
            num_scalar_prefetch=0,
            grid=(N,),
            in_specs=[pl.BlockSpec((1, P, Hx, Wx, Cin), lambda n: (n, 0, 0, 0, 0)),
                      pl.BlockSpec((9, Cin, Cout), lambda n: (0, 0, 0))],
            out_specs=[pl.BlockSpec((1, Mo, Cout), lambda n: (n, 0, 0)),
                       pl.BlockSpec((1, 1, Cout), lambda n: (n, 0, 0)),
                       pl.BlockSpec((1, 1, Cout), lambda n: (n, 0, 0))]),
        compiler_params=_compiler_params(("parallel",)),
    )(xs, w9)
    # tiny cross-image reduction of the per-image partial sums
    return y, jnp.sum(s1[:, 0, :], axis=0), jnp.sum(s2[:, 0, :], axis=0)


# --------------- matmul kernel with fused BN-stats epilogue (bf16 out) --------
# Used for 1x1 convs and the im2col fallback.  Single pass over K (full-K
# block), row-tiled over M, stats row-masked for partial trailing tiles.

def _mm_stats_kernel(a_ref, b_ref, o_ref, s1_ref, s2_ref, *, m_total, tm, need_mask):
    y = jnp.dot(a_ref[...], b_ref[...], preferred_element_type=jnp.float32)
    ys = y
    if need_mask:
        rows = pl.program_id(0) * tm + jax.lax.broadcasted_iota(jnp.int32, y.shape, 0)
        ys = jnp.where(rows < m_total, y, 0.0)
    s1_ref[0] = jnp.sum(ys, axis=0, keepdims=True)
    s2_ref[0] = jnp.sum(ys * ys, axis=0, keepdims=True)
    o_ref[...] = y.astype(o_ref.dtype)


def pallas_matmul_stats(a, b, out_dtype=jnp.bfloat16):
    """a: (M, K), b: (K, N) -> y (M, N), s1, s2 (N,) f32 column sums of y / y^2."""
    M, K = a.shape
    K2, N = b.shape
    assert K == K2 and N <= 512
    a = a.astype(jnp.bfloat16)
    b = b.astype(jnp.bfloat16)
    tm = M if M <= 512 else 512           # full-M block when small (always legal)
    n_tiles = pl.cdiv(M, tm)
    need_mask = (M % tm) != 0
    kern = functools.partial(_mm_stats_kernel, m_total=M, tm=tm, need_mask=need_mask)
    y, s1, s2 = pl.pallas_call(
        kern,
        out_shape=(jax.ShapeDtypeStruct((M, N), out_dtype),
                   jax.ShapeDtypeStruct((n_tiles, 1, N), jnp.float32),
                   jax.ShapeDtypeStruct((n_tiles, 1, N), jnp.float32)),
        grid_spec=pltpu.PrefetchScalarGridSpec(
            num_scalar_prefetch=0,
            grid=(n_tiles,),
            in_specs=[pl.BlockSpec((tm, K), lambda i: (i, 0)),
                      pl.BlockSpec((K, N), lambda i: (0, 0))],
            out_specs=[pl.BlockSpec((tm, N), lambda i: (i, 0)),
                       pl.BlockSpec((1, 1, N), lambda i: (i, 0, 0)),
                       pl.BlockSpec((1, 1, N), lambda i: (i, 0, 0))]),
        compiler_params=_compiler_params(("parallel",)),
    )(a, b)
    return y, jnp.sum(s1[:, 0, :], axis=0), jnp.sum(s2[:, 0, :], axis=0)


# --------------- fused scale/shift (+residual) (+ReLU) elementwise kernel -----

def _affine_kernel(x_ref, scale_ref, shift_ref, o_ref, *, relu):
    y = x_ref[...].astype(jnp.float32) * scale_ref[...] + shift_ref[...]
    if relu:
        y = jnp.maximum(y, 0.0)
    o_ref[...] = y.astype(o_ref.dtype)


def _affine_add_kernel(x_ref, add_ref, scale_ref, shift_ref, o_ref, *, relu):
    y = (x_ref[...].astype(jnp.float32) * scale_ref[...] + shift_ref[...]
         + add_ref[...].astype(jnp.float32))
    if relu:
        y = jnp.maximum(y, 0.0)
    o_ref[...] = y.astype(o_ref.dtype)


def pallas_affine(x2d, scale, shift, add=None, relu=False, out_dtype=jnp.bfloat16):
    """y = relu?(x2d * scale + shift [+ add]); scale/shift are per-column."""
    M, C = x2d.shape
    scale = scale.astype(jnp.float32)
    shift = shift.astype(jnp.float32)

    # Lane-dense repack for narrow channel counts (32/64): free HBM reshape to
    # (rows, 128) slabs so stores are not lane-masked.
    if C < 128 and 128 % C == 0 and (M * C) % 128 == 0:
        rep = 128 // C
        x2d = x2d.reshape(M * C // 128, 128)
        if add is not None:
            add = add.reshape(M * C // 128, 128)
        scale = jnp.tile(scale, rep)
        shift = jnp.tile(shift, rep)

    Mr, Cl = x2d.shape
    # Row-tiled grid; aim for >=2 tiles (keeps both v7x TCs busy) without
    # exceeding a few MB of VMEM per buffer.  No wrapper-side padding.
    row_tile = Mr if Mr <= 16 else min(2048, _round_up(pl.cdiv(Mr, 2), 8))
    n_tiles = pl.cdiv(Mr, row_tile)

    x_spec = pl.BlockSpec((row_tile, Cl), lambda i: (i, 0))
    s_spec = pl.BlockSpec((1, Cl), lambda i: (0, 0))

    if add is None:
        kern = functools.partial(_affine_kernel, relu=relu)
        in_specs = [x_spec, s_spec, s_spec]
        args = (x2d, scale.reshape(1, Cl), shift.reshape(1, Cl))
    else:
        kern = functools.partial(_affine_add_kernel, relu=relu)
        in_specs = [x_spec, x_spec, s_spec, s_spec]
        args = (x2d, add, scale.reshape(1, Cl), shift.reshape(1, Cl))

    y = pl.pallas_call(
        kern,
        out_shape=jax.ShapeDtypeStruct((Mr, Cl), out_dtype),
        grid_spec=pltpu.PrefetchScalarGridSpec(
            num_scalar_prefetch=0,
            grid=(n_tiles,),
            in_specs=in_specs,
            out_specs=x_spec),
        compiler_params=_compiler_params(("parallel",)),
    )(*args)
    return y.reshape(M, C)


# ------------------------------ layer wrappers --------------------------------

def _fused_conv_fits(Cin, Cout, Hx, Wx, P, Ho, Wo):
    in_bytes = P * Hx * Wx * Cin * 2
    w_bytes = 9 * Cin * Cout * 2
    out_bytes = Ho * Wo * Cout * 2
    scratch = Ho * Wo * (Cout * 4 + Cin * 4)     # f32 acc + patch temporaries
    total = 2 * (in_bytes + out_bytes) + 2 * w_bytes + scratch
    return total <= _vmem_limit_bytes() // 2


def conv3x3_nhwc(x, w9, stride):
    """x: (N,H,W,Cin); w9: (9,Cin,Cout) bf16.  Returns y bf16, s1, s2 (f32)."""
    N, H, W, Cin = x.shape
    Cout = w9.shape[-1]
    x = x.astype(jnp.bfloat16)
    Ho = (H - 1) // stride + 1
    Wo = (W - 1) // stride + 1

    if stride == 1:
        P, Hx, Wx = 1, H + 2, W + 2
    else:
        P, Hx, Wx = 4, Ho + 1, Wo + 1

    use_fused = (stride in (1, 2) and Cin % 8 == 0 and Wo % 8 == 0
                 and _fused_conv_fits(Cin, Cout, Hx, Wx, P, Ho, Wo))

    if use_fused:
        if stride == 1:
            xp = jnp.pad(x, ((0, 0), (1, 1), (1, 1), (0, 0)))
            xs = xp[:, None]                                   # (N,1,H+2,W+2,Cin)
            taps = [(0, di, dj) for di in range(3) for dj in range(3)]
        else:
            Hp, Wp = 2 * Ho + 2, 2 * Wo + 2                    # even, halo-safe
            xp = jnp.pad(x, ((0, 0), (1, Hp - 1 - H), (1, Wp - 1 - W), (0, 0)))
            # even/odd phase repack: every stride-2 tap becomes an unstrided slice
            xs = jnp.stack([xp[:, ph::2, pw::2, :] for ph in (0, 1) for pw in (0, 1)],
                           axis=1)                             # (N,4,Hp/2,Wp/2,Cin)
            taps = [((di % 2) * 2 + (dj % 2), di // 2, dj // 2)
                    for di in range(3) for dj in range(3)]
        y, s1, s2 = _pallas_conv3x3_fused(xs, w9, Ho, Wo, taps)
        return y.reshape(N, Ho, Wo, Cout), s1, s2

    # Fallback (tiny / lane-unfriendly maps): im2col into the matmul+stats kernel.
    xp = jnp.pad(x, ((0, 0), (1, 1), (1, 1), (0, 0)))
    cols = [xp[:, i:i + stride * Ho:stride, j:j + stride * Wo:stride, :]
            for i in range(3) for j in range(3)]
    patches = jnp.concatenate(cols, axis=-1).reshape(N * Ho * Wo, 9 * Cin)
    y2, s1, s2 = pallas_matmul_stats(patches, w9.reshape(9 * Cin, Cout))
    return y2.reshape(N, Ho, Wo, Cout), s1, s2


def conv1x1_nhwc(x, w, stride=1):
    """x: (N,H,W,Cin); w: (Cin,Cout) bf16.  Returns y bf16, s1, s2 (f32)."""
    if stride > 1:
        x = x[:, ::stride, ::stride, :]
    N, Ho, Wo, Cin = x.shape
    Cout = w.shape[-1]
    y2, s1, s2 = pallas_matmul_stats(x.reshape(-1, Cin).astype(jnp.bfloat16), w)
    return y2.reshape(N, Ho, Wo, Cout), s1, s2


def bn_apply(y, s1, s2, gamma, beta, relu=False, add=None, out_dtype=jnp.bfloat16):
    """Training-mode BatchNorm2d using fused conv stats + optional add + ReLU."""
    N, H, W, C = y.shape
    M = N * H * W
    mean = s1 / M
    var = jnp.maximum(s2 / M - mean * mean, 0.0)    # biased var, as BN normalization uses
    scale = gamma.astype(jnp.float32) * jax.lax.rsqrt(var + BN_EPS)
    shift = beta.astype(jnp.float32) - mean * scale
    add2 = add.reshape(M, C) if add is not None else None
    out = pallas_affine(y.reshape(M, C), scale, shift, add=add2, relu=relu,
                        out_dtype=out_dtype)
    return out.reshape(N, H, W, C)


def batchnorm_xla_stats(x, gamma, beta, relu=False, out_dtype=jnp.float32):
    """BN whose input is not a conv output (tail bn2): tiny XLA stats pass."""
    C = x.shape[-1]
    xf = x.reshape(-1, C).astype(jnp.float32)
    s1 = jnp.sum(xf, axis=0)
    s2 = jnp.sum(xf * xf, axis=0)
    return bn_apply(x, s1, s2, gamma, beta, relu=relu, out_dtype=out_dtype)


def get_shape(shape1, shape2):
    return [min(d1, d2) for d1, d2 in zip(shape1, shape2)]


# ------------------------------ parameter init --------------------------------
# Weights are pre-packed once: 3x3 -> (9, Cin, Cout) bf16, 1x1 -> (Cin, Cout) bf16.

def _conv3x3_init(key, cin, cout):
    n = 9 * cout
    w = jax.random.normal(key, (3, 3, cin, cout), jnp.float32) * math.sqrt(2.0 / n)
    return w.reshape(9, cin, cout).astype(jnp.bfloat16)


def _conv1x1_init(key, cin, cout):
    w = jax.random.normal(key, (cin, cout), jnp.float32) * math.sqrt(2.0 / cout)
    return w.astype(jnp.bfloat16)


def init_params(key, layers, num_class=10):
    factor = 1
    in_planes = int(32 * factor)
    keys = iter(jax.random.split(key, 64))
    params = {}
    params['conv1'] = _conv3x3_init(next(keys), 3, int(32 * factor))
    params['bn1'] = (jnp.ones(32, jnp.float32), jnp.zeros(32, jnp.float32))
    strides = [2, 2, 2]
    filt_sizes = [64, 128, 256]
    segments = []
    for filt, nb, stride in zip(filt_sizes, layers, strides):
        seg = {'blocks': []}
        if stride != 1 or in_planes != filt:          # BasicBlock.expansion == 1
            seg['ds'] = {'w': _conv1x1_init(next(keys), in_planes, filt),
                         'bn': (jnp.ones(filt, jnp.float32),
                                jnp.zeros(filt, jnp.float32))}
        else:
            seg['ds'] = None
        s, ip = stride, in_planes
        for _ in range(nb):
            blk = {'conv1': _conv3x3_init(next(keys), ip, filt),
                   'bn1': (jnp.ones(filt, jnp.float32), jnp.zeros(filt, jnp.float32)),
                   'conv2': _conv3x3_init(next(keys), filt, filt),
                   'bn2': (jnp.ones(filt, jnp.float32), jnp.zeros(filt, jnp.float32)),
                   'stride': s}
            seg['blocks'].append(blk)
            ip, s = filt, 1
        in_planes = filt
        segments.append(seg)
    params['segments'] = segments
    params['bn2'] = (jnp.ones(256, jnp.float32), jnp.zeros(256, jnp.float32))
    fan_in = int(256 * factor)
    bound = 1.0 / math.sqrt(fan_in)
    params['linear_w'] = jax.random.uniform(next(keys), (num_class, fan_in),
                                            jnp.float32, -bound, bound)
    params['linear_b'] = jax.random.uniform(next(keys), (num_class,),
                                            jnp.float32, -bound, bound)
    return params


# --------------------------------- forward ------------------------------------

def resnet_forward(params, x_nchw, layers):
    x = jnp.transpose(x_nchw, (0, 2, 3, 1)).astype(jnp.bfloat16)  # NCHW -> NHWC

    # seed: conv1 + bn1 (no relu)
    y, s1, s2 = conv3x3_nhwc(x, params['conv1'], stride=1)
    x = bn_apply(y, s1, s2, *params['bn1'], relu=False)

    for seg_idx, nb in enumerate(layers):
        seg = params['segments'][seg_idx]
        for b in range(nb):
            blk = seg['blocks'][b]
            if b == 0 and seg['ds'] is not None:
                r, rs1, rs2 = conv1x1_nhwc(x, seg['ds']['w'], stride=blk['stride'])
                residual = bn_apply(r, rs1, rs2, *seg['ds']['bn'], relu=False)
            else:
                residual = x
            # BasicBlock: conv3x3 -> bn -> relu -> conv3x3 -> bn; outer add + relu
            o, a1, a2 = conv3x3_nhwc(x, blk['conv1'], stride=blk['stride'])
            out = bn_apply(o, a1, a2, *blk['bn1'], relu=True)
            o, a1, a2 = conv3x3_nhwc(out, blk['conv2'], stride=1)
            if o.shape == residual.shape:
                # fused bn2 + residual add + relu: one elementwise HBM pass per block
                x = bn_apply(o, a1, a2, *blk['bn2'], relu=True, add=residual)
            else:
                # crop-to-min path (preserves get_shape semantics of the reference)
                out = bn_apply(o, a1, a2, *blk['bn2'], relu=False)
                ns = get_shape(residual.shape, out.shape)
                out = out[:ns[0], :ns[1], :ns[2], :ns[3]]
                residual = residual[:ns[0], :ns[1], :ns[2], :ns[3]]
                C = out.shape[-1]
                x = pallas_affine(out.reshape(-1, C),
                                  jnp.ones((C,), jnp.float32),
                                  jnp.zeros((C,), jnp.float32),
                                  add=residual.reshape(-1, C), relu=True,
                                  out_dtype=jnp.bfloat16).reshape(out.shape)

    # bn2 = BatchNorm2d(256) + ReLU (fused affine pass; stats via tiny XLA sum)
    x = batchnorm_xla_stats(x, *params['bn2'], relu=True, out_dtype=jnp.float32)
    # AdaptiveAvgPool2d(1) + flatten (tiny reduction, kept as JAX glue)
    x = jnp.mean(x, axis=(1, 2))
    # Linear(256 -> num_class): tiny (M=batch, N=10) -> plain dot avoids padding 10->128
    logits = jnp.dot(x, params['linear_w'].T) + params['linear_b']
    return logits


if __name__ == "__main__":
    key = jax.random.PRNGKey(0)
    kp, kx = jax.random.split(key)
    layers = [1, 1, 1]            # one BasicBlock per stage (small config)
    params = init_params(kp, layers, num_class=10)
    x = jax.random.normal(kx, (2, 3, 16, 16), jnp.float32)  # NCHW, like PyTorch

    fwd = jax.jit(lambda inp: resnet_forward(params, inp, layers))
    logits = fwd(x)
    jax.block_until_ready(logits)
    assert logits.shape == (2, 10)
    print("KERNEL_OK")
</pallas_src>

<mosaic_0001>
module attributes {stable_mosaic.version = 11 : i64} {
  func.func @_mm_stats_kernel(%arg0: i32, %arg1: memref<512x27xbf16, #tpu.memory_space<vmem>>, %arg2: memref<27x32xbf16, #tpu.memory_space<vmem>>, %arg3: memref<512x32xbf16, #tpu.memory_space<vmem>>, %arg4: memref<1x1x32xf32, #tpu.memory_space<vmem>>, %arg5: memref<1x1x32xf32, #tpu.memory_space<vmem>>) attributes {dimension_semantics = [#tpu.dimension_semantics<parallel>], iteration_bounds = array<i64: 1>, scalar_prefetch = 0 : i64, scratch_operands = 0 : i64, tpu.core_type = #tpu.core_type<tc>, window_params = [{transform_indices = @transform_0, window_bounds = array<i64: 512, 27>}, {pipeline_mode = #tpu.pipeline_mode<synchronous>, transform_indices = @transform_1, window_bounds = array<i64: 27, 32>}, {transform_indices = @transform_2, window_bounds = array<i64: 512, 32>}, {transform_indices = @transform_3, window_bounds = array<i64: 1, 1, 32>}, {transform_indices = @transform_4, window_bounds = array<i64: 1, 1, 32>}]} {
    %c0 = arith.constant 0 : index
    %c0_0 = arith.constant 0 : index
    %0 = vector.load %arg1[%c0, %c0_0] : memref<512x27xbf16, #tpu.memory_space<vmem>>, vector<512x27xbf16>
    %c0_1 = arith.constant 0 : index
    %c0_2 = arith.constant 0 : index
    %1 = vector.load %arg2[%c0_1, %c0_2] : memref<27x32xbf16, #tpu.memory_space<vmem>>, vector<27x32xbf16>
    %cst = arith.constant dense<0.000000e+00> : vector<512x32xf32>
    %2 = tpu.matmul %0, %1, %cst {dimension_numbers = #tpu.dot_dimension_numbers<[1], [0], [0], [1], [0, 0, 1, 1], [], []>} : vector<512x27xbf16>, vector<27x32xbf16>, vector<512x32xf32> -> vector<512x32xf32>
    %cst_3 = arith.constant dense<0.000000e+00> : vector<32xf32>
    %3 = vector.multi_reduction <add>, %2, %cst_3 [0] : vector<512x32xf32> to vector<32xf32>
    %4 = vector.shape_cast %3 : vector<32xf32> to vector<1x32xf32>
    %c0_4 = arith.constant 0 : index
    %c0_5 = arith.constant 0 : index
    %c0_6 = arith.constant 0 : index
    %5 = vector.load %arg4[%c0_4, %c0_5, %c0_6] : memref<1x1x32xf32, #tpu.memory_space<vmem>>, vector<1x1x32xf32>
    %6 = vector.shape_cast %5 : vector<1x1x32xf32> to vector<1x32xf32>
    %7 = vector.shape_cast %4 : vector<1x32xf32> to vector<1x1x32xf32>
    tpu.vector_store %arg4[%c0_4, %c0_5, %c0_6], %7 {strides = array<i32>} : memref<1x1x32xf32, #tpu.memory_space<vmem>>, vector<1x1x32xf32>,
    %8 = arith.mulf %2, %2 : vector<512x32xf32>
    %cst_7 = arith.constant dense<0.000000e+00> : vector<32xf32>
    %9 = vector.multi_reduction <add>, %8, %cst_7 [0] : vector<512x32xf32> to vector<32xf32>
    %10 = vector.shape_cast %9 : vector<32xf32> to vector<1x32xf32>
    %c0_8 = arith.constant 0 : index
    %c0_9 = arith.constant 0 : index
    %c0_10 = arith.constant 0 : index
    %11 = vector.load %arg5[%c0_8, %c0_9, %c0_10] : memref<1x1x32xf32, #tpu.memory_space<vmem>>, vector<1x1x32xf32>
    %12 = vector.shape_cast %11 : vector<1x1x32xf32> to vector<1x32xf32>
    %13 = vector.shape_cast %10 : vector<1x32xf32> to vector<1x1x32xf32>
    tpu.vector_store %arg5[%c0_8, %c0_9, %c0_10], %13 {strides = array<i32>} : memref<1x1x32xf32, #tpu.memory_space<vmem>>, vector<1x1x32xf32>,
    %14 = arith.truncf %2 : vector<512x32xf32> to vector<512x32xbf16>
    %c0_11 = arith.constant 0 : index
    %c0_12 = arith.constant 0 : index
    %15 = vector.load %arg3[%c0_11, %c0_12] : memref<512x32xbf16, #tpu.memory_space<vmem>>, vector<512x32xbf16>
    tpu.vector_store %arg3[%c0_11, %c0_12], %14 {strides = array<i32>} : memref<512x32xbf16, #tpu.memory_space<vmem>>, vector<512x32xbf16>,
    return
  }
  func.func @transform_0(%arg0: i32) -> (i32, i32) {
    %c0_i32 = arith.constant 0 : i32
    %c0_i32_0 = arith.constant 0 : i32
    return %arg0, %c0_i32 : i32, i32
  }
  func.func @transform_1(%arg0: i32) -> (i32, i32) {
    %c0_i32 = arith.constant 0 : i32
    %c0_i32_0 = arith.constant 0 : i32
    %c0_i32_1 = arith.constant 0 : i32
    return %c0_i32, %c0_i32_0 : i32, i32
  }
  func.func @transform_2(%arg0: i32) -> (i32, i32) {
    %c0_i32 = arith.constant 0 : i32
    %c0_i32_0 = arith.constant 0 : i32
    return %arg0, %c0_i32 : i32, i32
  }
  func.func @transform_3(%arg0: i32) -> (i32, i32, i32) {
    %c0_i32 = arith.constant 0 : i32
    %c0_i32_0 = arith.constant 0 : i32
    %c0_i32_1 = arith.constant 0 : i32
    return %arg0, %c0_i32, %c0_i32_0 : i32, i32, i32
  }
  func.func @transform_4(%arg0: i32) -> (i32, i32, i32) {
    %c0_i32 = arith.constant 0 : i32
    %c0_i32_0 = arith.constant 0 : i32
    %c0_i32_1 = arith.constant 0 : i32
    return %arg0, %c0_i32, %c0_i32_0 : i32, i32, i32
  }
}

module attributes {stable_mosaic.version = 11 : i64} {
  func.func @_affine_kernel(%arg0: i32, %arg1: memref<64x128xbf16, #tpu.memory_space<vmem>>, %arg2: memref<1x128xf32, #tpu.memory_space<vmem>>, %arg3: memref<1x128xf32, #tpu.memory_space<vmem>>, %arg4: memref<64x128xbf16, #tpu.memory_space<vmem>>) attributes {dimension_semantics = [#tpu.dimension_semantics<parallel>], iteration_bounds = array<i64: 2>, scalar_prefetch = 0 : i64, scratch_operands = 0 : i64, tpu.core_type = #tpu.core_type<tc>, window_params = [{transform_indices = @transform_0, window_bounds = array<i64: 64, 128>}, {pipeline_mode = #tpu.pipeline_mode<synchronous>, transform_indices = @transform_1, window_bounds = array<i64: 1, 128>}, {pipeline_mode = #tpu.pipeline_mode<synchronous>, transform_indices = @transform_2, window_bounds = array<i64: 1, 128>}, {transform_indices = @transform_3, window_bounds = array<i64: 64, 128>}]} {
    %c0 = arith.constant 0 : index
    %c0_0 = arith.constant 0 : index
    %0 = vector.load %arg1[%c0, %c0_0] : memref<64x128xbf16, #tpu.memory_space<vmem>>, vector<64x128xbf16>
    %1 = arith.extf %0 : vector<64x128xbf16> to vector<64x128xf32>
    %c0_1 = arith.constant 0 : index
    %c0_2 = arith.constant 0 : index
    %2 = vector.load %arg2[%c0_1, %c0_2] : memref<1x128xf32, #tpu.memory_space<vmem>>, vector<1x128xf32>
    %3 = vector.broadcast %2 : vector<1x128xf32> to vector<64x128xf32>
    %4 = arith.mulf %1, %3 : vector<64x128xf32>
    %c0_3 = arith.constant 0 : index
    %c0_4 = arith.constant 0 : index
    %5 = vector.load %arg3[%c0_3, %c0_4] : memref<1x128xf32, #tpu.memory_space<vmem>>, vector<1x128xf32>
    %6 = vector.broadcast %5 : vector<1x128xf32> to vector<64x128xf32>
    %7 = arith.addf %4, %6 : vector<64x128xf32>
    %8 = arith.truncf %7 : vector<64x128xf32> to vector<64x128xbf16>
    %c0_5 = arith.constant 0 : index
    %c0_6 = arith.constant 0 : index
    %9 = vector.load %arg4[%c0_5, %c0_6] : memref<64x128xbf16, #tpu.memory_space<vmem>>, vector<64x128xbf16>
    tpu.vector_store %arg4[%c0_5, %c0_6], %8 {strides = array<i32>} : memref<64x128xbf16, #tpu.memory_space<vmem>>, vector<64x128xbf16>,
    return
  }
  func.func @transform_0(%arg0: i32) -> (i32, i32) {
    %c0_i32 = arith.constant 0 : i32
    %c0_i32_0 = arith.constant 0 : i32
    return %arg0, %c0_i32 : i32, i32
  }
  func.func @transform_1(%arg0: i32) -> (i32, i32) {
    %c0_i32 = arith.constant 0 : i32
    %c0_i32_0 = arith.constant 0 : i32
    %c0_i32_1 = arith.constant 0 : i32
    return %c0_i32, %c0_i32_0 : i32, i32
  }
  func.func @transform_2(%arg0: i32) -> (i32, i32) {
    %c0_i32 = arith.constant 0 : i32
    %c0_i32_0 = arith.constant 0 : i32
    %c0_i32_1 = arith.constant 0 : i32
    return %c0_i32, %c0_i32_0 : i32, i32
  }
  func.func @transform_3(%arg0: i32) -> (i32, i32) {
    %c0_i32 = arith.constant 0 : i32
    %c0_i32_0 = arith.constant 0 : i32
    return %arg0, %c0_i32 : i32, i32
  }
}

module attributes {stable_mosaic.version = 11 : i64} {
  func.func @_mm_stats_kernel(%arg0: i32, %arg1: memref<128x32xbf16, #tpu.memory_space<vmem>>, %arg2: memref<32x64xbf16, #tpu.memory_space<vmem>>, %arg3: memref<128x64xbf16, #tpu.memory_space<vmem>>, %arg4: memref<1x1x64xf32, #tpu.memory_space<vmem>>, %arg5: memref<1x1x64xf32, #tpu.memory_space<vmem>>) attributes {dimension_semantics = [#tpu.dimension_semantics<parallel>], iteration_bounds = array<i64: 1>, scalar_prefetch = 0 : i64, scratch_operands = 0 : i64, tpu.core_type = #tpu.core_type<tc>, window_params = [{transform_indices = @transform_0, window_bounds = array<i64: 128, 32>}, {pipeline_mode = #tpu.pipeline_mode<synchronous>, transform_indices = @transform_1, window_bounds = array<i64: 32, 64>}, {transform_indices = @transform_2, window_bounds = array<i64: 128, 64>}, {transform_indices = @transform_3, window_bounds = array<i64: 1, 1, 64>}, {transform_indices = @transform_4, window_bounds = array<i64: 1, 1, 64>}]} {
    %c0 = arith.constant 0 : index
    %c0_0 = arith.constant 0 : index
    %0 = vector.load %arg1[%c0, %c0_0] : memref<128x32xbf16, #tpu.memory_space<vmem>>, vector<128x32xbf16>
    %c0_1 = arith.constant 0 : index
    %c0_2 = arith.constant 0 : index
    %1 = vector.load %arg2[%c0_1, %c0_2] : memref<32x64xbf16, #tpu.memory_space<vmem>>, vector<32x64xbf16>
    %cst = arith.constant dense<0.000000e+00> : vector<128x64xf32>
    %2 = tpu.matmul %0, %1, %cst {dimension_numbers = #tpu.dot_dimension_numbers<[1], [0], [0], [1], [0, 0, 1, 1], [], []>} : vector<128x32xbf16>, vector<32x64xbf16>, vector<128x64xf32> -> vector<128x64xf32>
    %cst_3 = arith.constant dense<0.000000e+00> : vector<64xf32>
    %3 = vector.multi_reduction <add>, %2, %cst_3 [0] : vector<128x64xf32> to vector<64xf32>
    %4 = vector.shape_cast %3 : vector<64xf32> to vector<1x64xf32>
    %c0_4 = arith.constant 0 : index
    %c0_5 = arith.constant 0 : index
    %c0_6 = arith.constant 0 : index
    %5 = vector.load %arg4[%c0_4, %c0_5, %c0_6] : memref<1x1x64xf32, #tpu.memory_space<vmem>>, vector<1x1x64xf32>
    %6 = vector.shape_cast %5 : vector<1x1x64xf32> to vector<1x64xf32>
    %7 = vector.shape_cast %4 : vector<1x64xf32> to vector<1x1x64xf32>
    tpu.vector_store %arg4[%c0_4, %c0_5, %c0_6], %7 {strides = array<i32>} : memref<1x1x64xf32, #tpu.memory_space<vmem>>, vector<1x1x64xf32>,
    %8 = arith.mulf %2, %2 : vector<128x64xf32>
    %cst_7 = arith.constant dense<0.000000e+00> : vector<64xf32>
    %9 = vector.multi_reduction <add>, %8, %cst_7 [0] : vector<128x64xf32> to vector<64xf32>
    %10 = vector.shape_cast %9 : vector<64xf32> to vector<1x64xf32>
    %c0_8 = arith.constant 0 : index
    %c0_9 = arith.constant 0 : index
    %c0_10 = arith.constant 0 : index
    %11 = vector.load %arg5[%c0_8, %c0_9, %c0_10] : memref<1x1x64xf32, #tpu.memory_space<vmem>>, vector<1x1x64xf32>
    %12 = vector.shape_cast %11 : vector<1x1x64xf32> to vector<1x64xf32>
    %13 = vector.shape_cast %10 : vector<1x64xf32> to vector<1x1x64xf32>
    tpu.vector_store %arg5[%c0_8, %c0_9, %c0_10], %13 {strides = array<i32>} : memref<1x1x64xf32, #tpu.memory_space<vmem>>, vector<1x1x64xf32>,
    %14 = arith.truncf %2 : vector<128x64xf32> to vector<128x64xbf16>
    %c0_11 = arith.constant 0 : index
    %c0_12 = arith.constant 0 : index
    %15 = vector.load %arg3[%c0_11, %c0_12] : memref<128x64xbf16, #tpu.memory_space<vmem>>, vector<128x64xbf16>
    tpu.vector_store %arg3[%c0_11, %c0_12], %14 {strides = array<i32>} : memref<128x64xbf16, #tpu.memory_space<vmem>>, vector<128x64xbf16>,
    return
  }
  func.func @transform_0(%arg0: i32) -> (i32, i32) {
    %c0_i32 = arith.constant 0 : i32
    %c0_i32_0 = arith.constant 0 : i32
    return %arg0, %c0_i32 : i32, i32
  }
  func.func @transform_1(%arg0: i32) -> (i32, i32) {
    %c0_i32 = arith.constant 0 : i32
    %c0_i32_0 = arith.constant 0 : i32
    %c0_i32_1 = arith.constant 0 : i32
    return %c0_i32, %c0_i32_0 : i32, i32
  }
  func.func @transform_2(%arg0: i32) -> (i32, i32) {
    %c0_i32 = arith.constant 0 : i32
    %c0_i32_0 = arith.constant 0 : i32
    return %arg0, %c0_i32 : i32, i32
  }
  func.func @transform_3(%arg0: i32) -> (i32, i32, i32) {
    %c0_i32 = arith.constant 0 : i32
    %c0_i32_0 = arith.constant 0 : i32
    %c0_i32_1 = arith.constant 0 : i32
    return %arg0, %c0_i32, %c0_i32_0 : i32, i32, i32
  }
  func.func @transform_4(%arg0: i32) -> (i32, i32, i32) {
    %c0_i32 = arith.constant 0 : i32
    %c0_i32_0 = arith.constant 0 : i32
    %c0_i32_1 = arith.constant 0 : i32
    return %arg0, %c0_i32, %c0_i32_0 : i32, i32, i32
  }
}

module attributes {stable_mosaic.version = 11 : i64} {
  func.func @_affine_kernel(%arg0: i32, %arg1: memref<32x128xbf16, #tpu.memory_space<vmem>>, %arg2: memref<1x128xf32, #tpu.memory_space<vmem>>, %arg3: memref<1x128xf32, #tpu.memory_space<vmem>>, %arg4: memref<32x128xbf16, #tpu.memory_space<vmem>>) attributes {dimension_semantics = [#tpu.dimension_semantics<parallel>], iteration_bounds = array<i64: 2>, scalar_prefetch = 0 : i64, scratch_operands = 0 : i64, tpu.core_type = #tpu.core_type<tc>, window_params = [{transform_indices = @transform_0, window_bounds = array<i64: 32, 128>}, {pipeline_mode = #tpu.pipeline_mode<synchronous>, transform_indices = @transform_1, window_bounds = array<i64: 1, 128>}, {pipeline_mode = #tpu.pipeline_mode<synchronous>, transform_indices = @transform_2, window_bounds = array<i64: 1, 128>}, {transform_indices = @transform_3, window_bounds = array<i64: 32, 128>}]} {
    %c0 = arith.constant 0 : index
    %c0_0 = arith.constant 0 : index
    %0 = vector.load %arg1[%c0, %c0_0] : memref<32x128xbf16, #tpu.memory_space<vmem>>, vector<32x128xbf16>
    %1 = arith.extf %0 : vector<32x128xbf16> to vector<32x128xf32>
    %c0_1 = arith.constant 0 : index
    %c0_2 = arith.constant 0 : index
    %2 = vector.load %arg2[%c0_1, %c0_2] : memref<1x128xf32, #tpu.memory_space<vmem>>, vector<1x128xf32>
    %3 = vector.broadcast %2 : vector<1x128xf32> to vector<32x128xf32>
    %4 = arith.mulf %1, %3 : vector<32x128xf32>
    %c0_3 = arith.constant 0 : index
    %c0_4 = arith.constant 0 : index
    %5 = vector.load %arg3[%c0_3, %c0_4] : memref<1x128xf32, #tpu.memory_space<vmem>>, vector<1x128xf32>
    %6 = vector.broadcast %5 : vector<1x128xf32> to vector<32x128xf32>
    %7 = arith.addf %4, %6 : vector<32x128xf32>
    %8 = arith.truncf %7 : vector<32x128xf32> to vector<32x128xbf16>
    %c0_5 = arith.constant 0 : index
    %c0_6 = arith.constant 0 : index
    %9 = vector.load %arg4[%c0_5, %c0_6] : memref<32x128xbf16, #tpu.memory_space<vmem>>, vector<32x128xbf16>
    tpu.vector_store %arg4[%c0_5, %c0_6], %8 {strides = array<i32>} : memref<32x128xbf16, #tpu.memory_space<vmem>>, vector<32x128xbf16>,
    return
  }
  func.func @transform_0(%arg0: i32) -> (i32, i32) {
    %c0_i32 = arith.constant 0 : i32
    %c0_i32_0 = arith.constant 0 : i32
    return %arg0, %c0_i32 : i32, i32
  }
  func.func @transform_1(%arg0: i32) -> (i32, i32) {
    %c0_i32 = arith.constant 0 : i32
    %c0_i32_0 = arith.constant 0 : i32
    %c0_i32_1 = arith.constant 0 : i32
    return %c0_i32, %c0_i32_0 : i32, i32
  }
  func.func @transform_2(%arg0: i32) -> (i32, i32) {
    %c0_i32 = arith.constant 0 : i32
    %c0_i32_0 = arith.constant 0 : i32
    %c0_i32_1 = arith.constant 0 : i32
    return %c0_i32, %c0_i32_0 : i32, i32
  }
  func.func @transform_3(%arg0: i32) -> (i32, i32) {
    %c0_i32 = arith.constant 0 : i32
    %c0_i32_0 = arith.constant 0 : i32
    return %arg0, %c0_i32 : i32, i32
  }
}

module attributes {stable_mosaic.version = 11 : i64} {
  func.func @_conv3x3_kernel(%arg0: i32, %arg1: memref<1x4x9x9x32xbf16, #tpu.memory_space<vmem>>, %arg2: memref<9x32x64xbf16, #tpu.memory_space<vmem>>, %arg3: memref<1x64x64xbf16, #tpu.memory_space<vmem>>, %arg4: memref<1x1x64xf32, #tpu.memory_space<vmem>>, %arg5: memref<1x1x64xf32, #tpu.memory_space<vmem>>) attributes {dimension_semantics = [#tpu.dimension_semantics<parallel>], iteration_bounds = array<i64: 2>, scalar_prefetch = 0 : i64, scratch_operands = 0 : i64, tpu.core_type = #tpu.core_type<tc>, window_params = [{transform_indices = @transform_0, window_bounds = array<i64: 1, 4, 9, 9, 32>}, {pipeline_mode = #tpu.pipeline_mode<synchronous>, transform_indices = @transform_1, window_bounds = array<i64: 9, 32, 64>}, {transform_indices = @transform_2, window_bounds = array<i64: 1, 64, 64>}, {transform_indices = @transform_3, window_bounds = array<i64: 1, 1, 64>}, {transform_indices = @transform_4, window_bounds = array<i64: 1, 1, 64>}]} {
    %cst = arith.constant 0.000000e+00 : f32
    %0 = vector.broadcast %cst : f32 to vector<64x64xf32>
    %c0 = arith.constant 0 : index
    %c0_0 = arith.constant 0 : index
    %c0_1 = arith.constant 0 : index
    %c0_2 = arith.constant 0 : index
    %c0_3 = arith.constant 0 : index
    %1 = vector.load %arg1[%c0, %c0_0, %c0_1, %c0_2, %c0_3] : memref<1x4x9x9x32xbf16, #tpu.memory_space<vmem>>, vector<1x1x8x8x32xbf16>
    %2 = vector.shape_cast %1 : vector<1x1x8x8x32xbf16> to vector<8x8x32xbf16>
    %3 = vector.shape_cast %2 : vector<8x8x32xbf16> to vector<64x32xbf16>
    %c0_4 = arith.constant 0 : index
    %c0_5 = arith.constant 0 : index
    %c0_6 = arith.constant 0 : index
    %4 = vector.load %arg2[%c0_4, %c0_5, %c0_6] : memref<9x32x64xbf16, #tpu.memory_space<vmem>>, vector<1x32x64xbf16>
    %5 = vector.shape_cast %4 : vector<1x32x64xbf16> to vector<32x64xbf16>
    %cst_7 = arith.constant dense<0.000000e+00> : vector<64x64xf32>
    %6 = tpu.matmul %3, %5, %cst_7 {dimension_numbers = #tpu.dot_dimension_numbers<[1], [0], [0], [1], [0, 0, 1, 1], [], []>} : vector<64x32xbf16>, vector<32x64xbf16>, vector<64x64xf32> -> vector<64x64xf32>
    %7 = arith.addf %0, %6 : vector<64x64xf32>
    %c0_8 = arith.constant 0 : index
    %c1 = arith.constant 1 : index
    %c0_9 = arith.constant 0 : index
    %c0_10 = arith.constant 0 : index
    %c0_11 = arith.constant 0 : index
    %8 = vector.load %arg1[%c0_8, %c1, %c0_9, %c0_10, %c0_11] : memref<1x4x9x9x32xbf16, #tpu.memory_space<vmem>>, vector<1x1x8x8x32xbf16>
    %9 = vector.shape_cast %8 : vector<1x1x8x8x32xbf16> to vector<8x8x32xbf16>
    %10 = vector.shape_cast %9 : vector<8x8x32xbf16> to vector<64x32xbf16>
    %c1_12 = arith.constant 1 : index
    %c0_13 = arith.constant 0 : index
    %c0_14 = arith.constant 0 : index
    %11 = vector.load %arg2[%c1_12, %c0_13, %c0_14] : memref<9x32x64xbf16, #tpu.memory_space<vmem>>, vector<1x32x64xbf16>
    %12 = vector.shape_cast %11 : vector<1x32x64xbf16> to vector<32x64xbf16>
    %cst_15 = arith.constant dense<0.000000e+00> : vector<64x64xf32>
    %13 = tpu.matmul %10, %12, %cst_15 {dimension_numbers = #tpu.dot_dimension_numbers<[1], [0], [0], [1], [0, 0, 1, 1], [], []>} : vector<64x32xbf16>, vector<32x64xbf16>, vector<64x64xf32> -> vector<64x64xf32>
    %14 = arith.addf %7, %13 : vector<64x64xf32>
    %c0_16 = arith.constant 0 : index
    %c0_17 = arith.constant 0 : index
    %c0_18 = arith.constant 0 : index
    %c1_19 = arith.constant 1 : index
    %c0_20 = arith.constant 0 : index
    %15 = vector.load %arg1[%c0_16, %c0_17, %c0_18, %c1_19, %c0_20] : memref<1x4x9x9x32xbf16, #tpu.memory_space<vmem>>, vector<1x1x8x8x32xbf16>
    %16 = vector.shape_cast %15 : vector<1x1x8x8x32xbf16> to vector<8x8x32xbf16>
    %17 = vector.shape_cast %16 : vector<8x8x32xbf16> to vector<64x32xbf16>
    %c2 = arith.constant 2 : index
    %c0_21 = arith.constant 0 : index
    %c0_22 = arith.constant 0 : index
    %18 = vector.load %arg2[%c2, %c0_21, %c0_22] : memref<9x32x64xbf16, #tpu.memory_space<vmem>>, vector<1x32x64xbf16>
    %19 = vector.shape_cast %18 : vector<1x32x64xbf16> to vector<32x64xbf16>
    %cst_23 = arith.constant dense<0.000000e+00> : vector<64x64xf32>
    %20 = tpu.matmul %17, %19, %cst_23 {dimension_numbers = #tpu.dot_dimension_numbers<[1], [0], [0], [1], [0, 0, 1, 1], [], []>} : vector<64x32xbf16>, vector<32x64xbf16>, vector<64x64xf32> -> vector<64x64xf32>
    %21 = arith.addf %14, %20 : vector<64x64xf32>
    %c0_24 = arith.constant 0 : index
    %c2_25 = arith.constant 2 : index
    %c0_26 = arith.constant 0 : index
    %c0_27 = arith.constant 0 : index
    %c0_28 = arith.constant 0 : index
    %22 = vector.load %arg1[%c0_24, %c2_25, %c0_26, %c0_27, %c0_28] : memref<1x4x9x9x32xbf16, #tpu.memory_space<vmem>>, vector<1x1x8x8x32xbf16>
    %23 = vector.shape_cast %22 : vector<1x1x8x8x32xbf16> to vector<8x8x32xbf16>
    %24 = vector.shape_cast %23 : vector<8x8x32xbf16> to vector<64x32xbf16>
    %c3 = arith.constant 3 : index
    %c0_29 = arith.constant 0 : index
    %c0_30 = arith.constant 0 : index
    %25 = vector.load %arg2[%c3, %c0_29, %c0_30] : memref<9x32x64xbf16, #tpu.memory_space<vmem>>, vector<1x32x64xbf16>
    %26 = vector.shape_cast %25 : vector<1x32x64xbf16> to vector<32x64xbf16>
    %cst_31 = arith.constant dense<0.000000e+00> : vector<64x64xf32>
    %27 = tpu.matmul %24, %26, %cst_31 {dimension_numbers = #tpu.dot_dimension_numbers<[1], [0], [0], [1], [0, 0, 1, 1], [], []>} : vector<64x32xbf16>, vector<32x64xbf16>, vector<64x64xf32> -> vector<64x64xf32>
    %28 = arith.addf %21, %27 : vector<64x64xf32>
    %c0_32 = arith.constant 0 : index
    %c3_33 = arith.constant 3 : index
    %c0_34 = arith.constant 0 : index
    %c0_35 = arith.constant 0 : index
    %c0_36 = arith.constant 0 : index
    %29 = vector.load %arg1[%c0_32, %c3_33, %c0_34, %c0_35, %c0_36] : memref<1x4x9x9x32xbf16, #tpu.memory_space<vmem>>, vector<1x1x8x8x32xbf16>
    %30 = vector.shape_cast %29 : vector<1x1x8x8x32xbf16> to vector<8x8x32xbf16>
    %31 = vector.shape_cast %30 : vector<8x8x32xbf16> to vector<64x32xbf16>
    %c4 = arith.constant 4 : index
    %c0_37 = arith.constant 0 : index
    %c0_38 = arith.constant 0 : index
    %32 = vector.load %arg2[%c4, %c0_37, %c0_38] : memref<9x32x64xbf16, #tpu.memory_space<vmem>>, vector<1x32x64xbf16>
    %33 = vector.shape_cast %32 : vector<1x32x64xbf16> to vector<32x64xbf16>
    %cst_39 = arith.constant dense<0.000000e+00> : vector<64x64xf32>
    %34 = tpu.matmul %31, %33, %cst_39 {dimension_numbers = #tpu.dot_dimension_numbers<[1], [0], [0], [1], [0, 0, 1, 1], [], []>} : vector<64x32xbf16>, vector<32x64xbf16>, vector<64x64xf32> -> vector<64x64xf32>
    %35 = arith.addf %28, %34 : vector<64x64xf32>
    %c0_40 = arith.constant 0 : index
    %c2_41 = arith.constant 2 : index
    %c0_42 = arith.constant 0 : index
    %c1_43 = arith.constant 1 : index
    %c0_44 = arith.constant 0 : index
    %36 = vector.load %arg1[%c0_40, %c2_41, %c0_42, %c1_43, %c0_44] : memref<1x4x9x9x32xbf16, #tpu.memory_space<vmem>>, vector<1x1x8x8x32xbf16>
    %37 = vector.shape_cast %36 : vector<1x1x8x8x32xbf16> to vector<8x8x32xbf16>
    %38 = vector.shape_cast %37 : vector<8x8x32xbf16> to vector<64x32xbf16>
    %c5 = arith.constant 5 : index
    %c0_45 = arith.constant 0 : index
    %c0_46 = arith.constant 0 : index
    %39 = vector.load %arg2[%c5, %c0_45, %c0_46] : memref<9x32x64xbf16, #tpu.memory_space<vmem>>, vector<1x32x64xbf16>
    %40 = vector.shape_cast %39 : vector<1x32x64xbf16> to vector<32x64xbf16>
    %cst_47 = arith.constant dense<0.000000e+00> : vector<64x64xf32>
    %41 = tpu.matmul %38, %40, %cst_47 {dimension_numbers = #tpu.dot_dimension_numbers<[1], [0], [0], [1], [0, 0, 1, 1], [], []>} : vector<64x32xbf16>, vector<32x64xbf16>, vector<64x64xf32> -> vector<64x64xf32>
    %42 = arith.addf %35, %41 : vector<64x64xf32>
    %c0_48 = arith.constant 0 : index
    %c0_49 = arith.constant 0 : index
    %c1_50 = arith.constant 1 : index
    %c0_51 = arith.constant 0 : index
    %c0_52 = arith.constant 0 : index
    %43 = vector.load %arg1[%c0_48, %c0_49, %c1_50, %c0_51, %c0_52] : memref<1x4x9x9x32xbf16, #tpu.memory_space<vmem>>, vector<1x1x8x8x32xbf16>
    %44 = vector.shape_cast %43 : vector<1x1x8x8x32xbf16> to vector<8x8x32xbf16>
    %45 = vector.shape_cast %44 : vector<8x8x32xbf16> to vector<64x32xbf16>
    %c6 = arith.constant 6 : index
    %c0_53 = arith.constant 0 : index
    %c0_54 = arith.constant 0 : index
    %46 = vector.load %arg2[%c6, %c0_53, %c0_54] : memref<9x32x64xbf16, #tpu.memory_space<vmem>>, vector<1x32x64xbf16>
    %47 = vector.shape_cast %46 : vector<1x32x64xbf16> to vector<32x64xbf16>
    %cst_55 = arith.constant dense<0.000000e+00> : vector<64x64xf32>
    %48 = tpu.matmul %45, %47, %cst_55 {dimension_numbers = #tpu.dot_dimension_numbers<[1], [0], [0], [1], [0, 0, 1, 1], [], []>} : vector<64x32xbf16>, vector<32x64xbf16>, vector<64x64xf32> -> vector<64x64xf32>
    %49 = arith.addf %42, %48 : vector<64x64xf32>
    %c0_56 = arith.constant 0 : index
    %c1_57 = arith.constant 1 : index
    %c1_58 = arith.constant 1 : index
    %c0_59 = arith.constant 0 : index
    %c0_60 = arith.constant 0 : index
    %50 = vector.load %arg1[%c0_56, %c1_57, %c1_58, %c0_59, %c0_60] : memref<1x4x9x9x32xbf16, #tpu.memory_space<vmem>>, vector<1x1x8x8x32xbf16>
    %51 = vector.shape_cast %50 : vector<1x1x8x8x32xbf16> to vector<8x8x32xbf16>
    %52 = vector.shape_cast %51 : vector<8x8x32xbf16> to vector<64x32xbf16>
    %c7 = arith.constant 7 : index
    %c0_61 = arith.constant 0 : index
    %c0_62 = arith.constant 0 : index
    %53 = vector.load %arg2[%c7, %c0_61, %c0_62] : memref<9x32x64xbf16, #tpu.memory_space<vmem>>, vector<1x32x64xbf16>
    %54 = vector.shape_cast %53 : vector<1x32x64xbf16> to vector<32x64xbf16>
    %cst_63 = arith.constant dense<0.000000e+00> : vector<64x64xf32>
    %55 = tpu.matmul %52, %54, %cst_63 {dimension_numbers = #tpu.dot_dimension_numbers<[1], [0], [0], [1], [0, 0, 1, 1], [], []>} : vector<64x32xbf16>, vector<32x64xbf16>, vector<64x64xf32> -> vector<64x64xf32>
    %56 = arith.addf %49, %55 : vector<64x64xf32>
    %c0_64 = arith.constant 0 : index
    %c0_65 = arith.constant 0 : index
    %c1_66 = arith.constant 1 : index
    %c1_67 = arith.constant 1 : index
    %c0_68 = arith.constant 0 : index
    %57 = vector.load %arg1[%c0_64, %c0_65, %c1_66, %c1_67, %c0_68] : memref<1x4x9x9x32xbf16, #tpu.memory_space<vmem>>, vector<1x1x8x8x32xbf16>
    %58 = vector.shape_cast %57 : vector<1x1x8x8x32xbf16> to vector<8x8x32xbf16>
    %59 = vector.shape_cast %58 : vector<8x8x32xbf16> to vector<64x32xbf16>
    %c8 = arith.constant 8 : index
    %c0_69 = arith.constant 0 : index
    %c0_70 = arith.constant 0 : index
    %60 = vector.load %arg2[%c8, %c0_69, %c0_70] : memref<9x32x64xbf16, #tpu.memory_space<vmem>>, vector<1x32x64xbf16>
    %61 = vector.shape_cast %60 : vector<1x32x64xbf16> to vector<32x64xbf16>
    %cst_71 = arith.constant dense<0.000000e+00> : vector<64x64xf32>
    %62 = tpu.matmul %59, %61, %cst_71 {dimension_numbers = #tpu.dot_dimension_numbers<[1], [0], [0], [1], [0, 0, 1, 1], [], []>} : vector<64x32xbf16>, vector<32x64xbf16>, vector<64x64xf32> -> vector<64x64xf32>
    %63 = arith.addf %56, %62 : vector<64x64xf32>
    %cst_72 = arith.constant dense<0.000000e+00> : vector<64xf32>
    %64 = vector.multi_reduction <add>, %63, %cst_72 [0] : vector<64x64xf32> to vector<64xf32>
    %65 = vector.shape_cast %64 : vector<64xf32> to vector<1x64xf32>
    %c0_73 = arith.constant 0 : index
    %c0_74 = arith.constant 0 : index
    %c0_75 = arith.constant 0 : index
    %66 = vector.load %arg4[%c0_73, %c0_74, %c0_75] : memref<1x1x64xf32, #tpu.memory_space<vmem>>, vector<1x1x64xf32>
    %67 = vector.shape_cast %66 : vector<1x1x64xf32> to vector<1x64xf32>
    %68 = vector.shape_cast %65 : vector<1x64xf32> to vector<1x1x64xf32>
    tpu.vector_store %arg4[%c0_73, %c0_74, %c0_75], %68 {strides = array<i32>} : memref<1x1x64xf32, #tpu.memory_space<vmem>>, vector<1x1x64xf32>,
    %69 = arith.mulf %63, %63 : vector<64x64xf32>
    %cst_76 = arith.constant dense<0.000000e+00> : vector<64xf32>
    %70 = vector.multi_reduction <add>, %69, %cst_76 [0] : vector<64x64xf32> to vector<64xf32>
    %71 = vector.shape_cast %70 : vector<64xf32> to vector<1x64xf32>
    %c0_77 = arith.constant 0 : index
    %c0_78 = arith.constant 0 : index
    %c0_79 = arith.constant 0 : index
    %72 = vector.load %arg5[%c0_77, %c0_78, %c0_79] : memref<1x1x64xf32, #tpu.memory_space<vmem>>, vector<1x1x64xf32>
    %73 = vector.shape_cast %72 : vector<1x1x64xf32> to vector<1x64xf32>
    %74 = vector.shape_cast %71 : vector<1x64xf32> to vector<1x1x64xf32>
    tpu.vector_store %arg5[%c0_77, %c0_78, %c0_79], %74 {strides = array<i32>} : memref<1x1x64xf32, #tpu.memory_space<vmem>>, vector<1x1x64xf32>,
    %75 = arith.truncf %63 : vector<64x64xf32> to vector<64x64xbf16>
    %c0_80 = arith.constant 0 : index
    %c0_81 = arith.constant 0 : index
    %c0_82 = arith.constant 0 : index
    %76 = vector.load %arg3[%c0_80, %c0_81, %c0_82] : memref<1x64x64xbf16, #tpu.memory_space<vmem>>, vector<1x64x64xbf16>
    %77 = vector.shape_cast %76 : vector<1x64x64xbf16> to vector<64x64xbf16>
    %78 = vector.shape_cast %75 : vector<64x64xbf16> to vector<1x64x64xbf16>
    tpu.vector_store %arg3[%c0_80, %c0_81, %c0_82], %78 {strides = array<i32>} : memref<1x64x64xbf16, #tpu.memory_space<vmem>>, vector<1x64x64xbf16>,
    return
  }
  func.func @transform_0(%arg0: i32) -> (i32, i32, i32, i32, i32) {
    %c0_i32 = arith.constant 0 : i32
    %c0_i32_0 = arith.constant 0 : i32
    %c0_i32_1 = arith.constant 0 : i32
    %c0_i32_2 = arith.constant 0 : i32
    %c0_i32_3 = arith.constant 0 : i32
    return %arg0, %c0_i32, %c0_i32_0, %c0_i32_1, %c0_i32_2 : i32, i32, i32, i32, i32
  }
  func.func @transform_1(%arg0: i32) -> (i32, i32, i32) {
    %c0_i32 = arith.constant 0 : i32
    %c0_i32_0 = arith.constant 0 : i32
    %c0_i32_1 = arith.constant 0 : i32
    %c0_i32_2 = arith.constant 0 : i32
    return %c0_i32, %c0_i32_0, %c0_i32_1 : i32, i32, i32
  }
  func.func @transform_2(%arg0: i32) -> (i32, i32, i32) {
    %c0_i32 = arith.constant 0 : i32
    %c0_i32_0 = arith.constant 0 : i32
    %c0_i32_1 = arith.constant 0 : i32
    return %arg0, %c0_i32, %c0_i32_0 : i32, i32, i32
  }
  func.func @transform_3(%arg0: i32) -> (i32, i32, i32) {
    %c0_i32 = arith.constant 0 : i32
    %c0_i32_0 = arith.constant 0 : i32
    %c0_i32_1 = arith.constant 0 : i32
    return %arg0, %c0_i32, %c0_i32_0 : i32, i32, i32
  }
  func.func @transform_4(%arg0: i32) -> (i32, i32, i32) {
    %c0_i32 = arith.constant 0 : i32
    %c0_i32_0 = arith.constant 0 : i32
    %c0_i32_1 = arith.constant 0 : i32
    return %arg0, %c0_i32, %c0_i32_0 : i32, i32, i32
  }
}

module attributes {stable_mosaic.version = 11 : i64} {
  func.func @_affine_kernel(%arg0: i32, %arg1: memref<32x128xbf16, #tpu.memory_space<vmem>>, %arg2: memref<1x128xf32, #tpu.memory_space<vmem>>, %arg3: memref<1x128xf32, #tpu.memory_space<vmem>>, %arg4: memref<32x128xbf16, #tpu.memory_space<vmem>>) attributes {dimension_semantics = [#tpu.dimension_semantics<parallel>], iteration_bounds = array<i64: 2>, scalar_prefetch = 0 : i64, scratch_operands = 0 : i64, tpu.core_type = #tpu.core_type<tc>, window_params = [{transform_indices = @transform_0, window_bounds = array<i64: 32, 128>}, {pipeline_mode = #tpu.pipeline_mode<synchronous>, transform_indices = @transform_1, window_bounds = array<i64: 1, 128>}, {pipeline_mode = #tpu.pipeline_mode<synchronous>, transform_indices = @transform_2, window_bounds = array<i64: 1, 128>}, {transform_indices = @transform_3, window_bounds = array<i64: 32, 128>}]} {
    %c0 = arith.constant 0 : index
    %c0_0 = arith.constant 0 : index
    %0 = vector.load %arg1[%c0, %c0_0] : memref<32x128xbf16, #tpu.memory_space<vmem>>, vector<32x128xbf16>
    %1 = arith.extf %0 : vector<32x128xbf16> to vector<32x128xf32>
    %c0_1 = arith.constant 0 : index
    %c0_2 = arith.constant 0 : index
    %2 = vector.load %arg2[%c0_1, %c0_2] : memref<1x128xf32, #tpu.memory_space<vmem>>, vector<1x128xf32>
    %3 = vector.broadcast %2 : vector<1x128xf32> to vector<32x128xf32>
    %4 = arith.mulf %1, %3 : vector<32x128xf32>
    %c0_3 = arith.constant 0 : index
    %c0_4 = arith.constant 0 : index
    %5 = vector.load %arg3[%c0_3, %c0_4] : memref<1x128xf32, #tpu.memory_space<vmem>>, vector<1x128xf32>
    %6 = vector.broadcast %5 : vector<1x128xf32> to vector<32x128xf32>
    %7 = arith.addf %4, %6 : vector<32x128xf32>
    %cst = arith.constant 0.000000e+00 : f32
    %8 = vector.broadcast %cst : f32 to vector<32x128xf32>
    %9 = arith.maximumf %7, %8 : vector<32x128xf32>
    %10 = arith.truncf %9 : vector<32x128xf32> to vector<32x128xbf16>
    %c0_5 = arith.constant 0 : index
    %c0_6 = arith.constant 0 : index
    %11 = vector.load %arg4[%c0_5, %c0_6] : memref<32x128xbf16, #tpu.memory_space<vmem>>, vector<32x128xbf16>
    tpu.vector_store %arg4[%c0_5, %c0_6], %10 {strides = array<i32>} : memref<32x128xbf16, #tpu.memory_space<vmem>>, vector<32x128xbf16>,
    return
  }
  func.func @transform_0(%arg0: i32) -> (i32, i32) {
    %c0_i32 = arith.constant 0 : i32
    %c0_i32_0 = arith.constant 0 : i32
    return %arg0, %c0_i32 : i32, i32
  }
  func.func @transform_1(%arg0: i32) -> (i32, i32) {
    %c0_i32 = arith.constant 0 : i32
    %c0_i32_0 = arith.constant 0 : i32
    %c0_i32_1 = arith.constant 0 : i32
    return %c0_i32, %c0_i32_0 : i32, i32
  }
  func.func @transform_2(%arg0: i32) -> (i32, i32) {
    %c0_i32 = arith.constant 0 : i32
    %c0_i32_0 = arith.constant 0 : i32
    %c0_i32_1 = arith.constant 0 : i32
    return %c0_i32, %c0_i32_0 : i32, i32
  }
  func.func @transform_3(%arg0: i32) -> (i32, i32) {
    %c0_i32 = arith.constant 0 : i32
    %c0_i32_0 = arith.constant 0 : i32
    return %arg0, %c0_i32 : i32, i32
  }
}

module attributes {stable_mosaic.version = 11 : i64} {
  func.func @_conv3x3_kernel(%arg0: i32, %arg1: memref<1x1x10x10x64xbf16, #tpu.memory_space<vmem>>, %arg2: memref<9x64x64xbf16, #tpu.memory_space<vmem>>, %arg3: memref<1x64x64xbf16, #tpu.memory_space<vmem>>, %arg4: memref<1x1x64xf32, #tpu.memory_space<vmem>>, %arg5: memref<1x1x64xf32, #tpu.memory_space<vmem>>) attributes {dimension_semantics = [#tpu.dimension_semantics<parallel>], iteration_bounds = array<i64: 2>, scalar_prefetch = 0 : i64, scratch_operands = 0 : i64, tpu.core_type = #tpu.core_type<tc>, window_params = [{transform_indices = @transform_0, window_bounds = array<i64: 1, 1, 10, 10, 64>}, {pipeline_mode = #tpu.pipeline_mode<synchronous>, transform_indices = @transform_1, window_bounds = array<i64: 9, 64, 64>}, {transform_indices = @transform_2, window_bounds = array<i64: 1, 64, 64>}, {transform_indices = @transform_3, window_bounds = array<i64: 1, 1, 64>}, {transform_indices = @transform_4, window_bounds = array<i64: 1, 1, 64>}]} {
    %cst = arith.constant 0.000000e+00 : f32
    %0 = vector.broadcast %cst : f32 to vector<64x64xf32>
    %c0 = arith.constant 0 : index
    %c0_0 = arith.constant 0 : index
    %c0_1 = arith.constant 0 : index
    %c0_2 = arith.constant 0 : index
    %c0_3 = arith.constant 0 : index
    %1 = vector.load %arg1[%c0, %c0_0, %c0_1, %c0_2, %c0_3] : memref<1x1x10x10x64xbf16, #tpu.memory_space<vmem>>, vector<1x1x8x8x64xbf16>
    %2 = vector.shape_cast %1 : vector<1x1x8x8x64xbf16> to vector<8x8x64xbf16>
    %3 = vector.shape_cast %2 : vector<8x8x64xbf16> to vector<64x64xbf16>
    %c0_4 = arith.constant 0 : index
    %c0_5 = arith.constant 0 : index
    %c0_6 = arith.constant 0 : index
    %4 = vector.load %arg2[%c0_4, %c0_5, %c0_6] : memref<9x64x64xbf16, #tpu.memory_space<vmem>>, vector<1x64x64xbf16>
    %5 = vector.shape_cast %4 : vector<1x64x64xbf16> to vector<64x64xbf16>
    %cst_7 = arith.constant dense<0.000000e+00> : vector<64x64xf32>
    %6 = tpu.matmul %3, %5, %cst_7 {dimension_numbers = #tpu.dot_dimension_numbers<[1], [0], [0], [1], [0, 0, 1, 1], [], []>} : vector<64x64xbf16>, vector<64x64xbf16>, vector<64x64xf32> -> vector<64x64xf32>
    %7 = arith.addf %0, %6 : vector<64x64xf32>
    %c0_8 = arith.constant 0 : index
    %c0_9 = arith.constant 0 : index
    %c0_10 = arith.constant 0 : index
    %c1 = arith.constant 1 : index
    %c0_11 = arith.constant 0 : index
    %8 = vector.load %arg1[%c0_8, %c0_9, %c0_10, %c1, %c0_11] : memref<1x1x10x10x64xbf16, #tpu.memory_space<vmem>>, vector<1x1x8x8x64xbf16>
    %9 = vector.shape_cast %8 : vector<1x1x8x8x64xbf16> to vector<8x8x64xbf16>
    %10 = vector.shape_cast %9 : vector<8x8x64xbf16> to vector<64x64xbf16>
    %c1_12 = arith.constant 1 : index
    %c0_13 = arith.constant 0 : index
    %c0_14 = arith.constant 0 : index
    %11 = vector.load %arg2[%c1_12, %c0_13, %c0_14] : memref<9x64x64xbf16, #tpu.memory_space<vmem>>, vector<1x64x64xbf16>
    %12 = vector.shape_cast %11 : vector<1x64x64xbf16> to vector<64x64xbf16>
    %cst_15 = arith.constant dense<0.000000e+00> : vector<64x64xf32>
    %13 = tpu.matmul %10, %12, %cst_15 {dimension_numbers = #tpu.dot_dimension_numbers<[1], [0], [0], [1], [0, 0, 1, 1], [], []>} : vector<64x64xbf16>, vector<64x64xbf16>, vector<64x64xf32> -> vector<64x64xf32>
    %14 = arith.addf %7, %13 : vector<64x64xf32>
    %c0_16 = arith.constant 0 : index
    %c0_17 = arith.constant 0 : index
    %c0_18 = arith.constant 0 : index
    %c2 = arith.constant 2 : index
    %c0_19 = arith.constant 0 : index
    %15 = vector.load %arg1[%c0_16, %c0_17, %c0_18, %c2, %c0_19] : memref<1x1x10x10x64xbf16, #tpu.memory_space<vmem>>, vector<1x1x8x8x64xbf16>
    %16 = vector.shape_cast %15 : vector<1x1x8x8x64xbf16> to vector<8x8x64xbf16>
    %17 = vector.shape_cast %16 : vector<8x8x64xbf16> to vector<64x64xbf16>
    %c2_20 = arith.constant 2 : index
    %c0_21 = arith.constant 0 : index
    %c0_22 = arith.constant 0 : index
    %18 = vector.load %arg2[%c2_20, %c0_21, %c0_22] : memref<9x64x64xbf16, #tpu.memory_space<vmem>>, vector<1x64x64xbf16>
    %19 = vector.shape_cast %18 : vector<1x64x64xbf16> to vector<64x64xbf16>
    %cst_23 = arith.constant dense<0.000000e+00> : vector<64x64xf32>
    %20 = tpu.matmul %17, %19, %cst_23 {dimension_numbers = #tpu.dot_dimension_numbers<[1], [0], [0], [1], [0, 0, 1, 1], [], []>} : vector<64x64xbf16>, vector<64x64xbf16>, vector<64x64xf32> -> vector<64x64xf32>
    %21 = arith.addf %14, %20 : vector<64x64xf32>
    %c0_24 = arith.constant 0 : index
    %c0_25 = arith.constant 0 : index
    %c1_26 = arith.constant 1 : index
    %c0_27 = arith.constant 0 : index
    %c0_28 = arith.constant 0 : index
    %22 = vector.load %arg1[%c0_24, %c0_25, %c1_26, %c0_27, %c0_28] : memref<1x1x10x10x64xbf16, #tpu.memory_space<vmem>>, vector<1x1x8x8x64xbf16>
    %23 = vector.shape_cast %22 : vector<1x1x8x8x64xbf16> to vector<8x8x64xbf16>
    %24 = vector.shape_cast %23 : vector<8x8x64xbf16> to vector<64x64xbf16>
    %c3 = arith.constant 3 : index
    %c0_29 = arith.constant 0 : index
    %c0_30 = arith.constant 0 : index
    %25 = vector.load %arg2[%c3, %c0_29, %c0_30] : memref<9x64x64xbf16, #tpu.memory_space<vmem>>, vector<1x64x64xbf16>
    %26 = vector.shape_cast %25 : vector<1x64x64xbf16> to vector<64x64xbf16>
    %cst_31 = arith.constant dense<0.000000e+00> : vector<64x64xf32>
    %27 = tpu.matmul %24, %26, %cst_31 {dimension_numbers = #tpu.dot_dimension_numbers<[1], [0], [0], [1], [0, 0, 1, 1], [], []>} : vector<64x64xbf16>, vector<64x64xbf16>, vector<64x64xf32> -> vector<64x64xf32>
    %28 = arith.addf %21, %27 : vector<64x64xf32>
    %c0_32 = arith.constant 0 : index
    %c0_33 = arith.constant 0 : index
    %c1_34 = arith.constant 1 : index
    %c1_35 = arith.constant 1 : index
    %c0_36 = arith.constant 0 : index
    %29 = vector.load %arg1[%c0_32, %c0_33, %c1_34, %c1_35, %c0_36] : memref<1x1x10x10x64xbf16, #tpu.memory_space<vmem>>, vector<1x1x8x8x64xbf16>
    %30 = vector.shape_cast %29 : vector<1x1x8x8x64xbf16> to vector<8x8x64xbf16>
    %31 = vector.shape_cast %30 : vector<8x8x64xbf16> to vector<64x64xbf16>
    %c4 = arith.constant 4 : index
    %c0_37 = arith.constant 0 : index
    %c0_38 = arith.constant 0 : index
    %32 = vector.load %arg2[%c4, %c0_37, %c0_38] : memref<9x64x64xbf16, #tpu.memory_space<vmem>>, vector<1x64x64xbf16>
    %33 = vector.shape_cast %32 : vector<1x64x64xbf16> to vector<64x64xbf16>
    %cst_39 = arith.constant dense<0.000000e+00> : vector<64x64xf32>
    %34 = tpu.matmul %31, %33, %cst_39 {dimension_numbers = #tpu.dot_dimension_numbers<[1], [0], [0], [1], [0, 0, 1, 1], [], []>} : vector<64x64xbf16>, vector<64x64xbf16>, vector<64x64xf32> -> vector<64x64xf32>
    %35 = arith.addf %28, %34 : vector<64x64xf32>
    %c0_40 = arith.constant 0 : index
    %c0_41 = arith.constant 0 : index
    %c1_42 = arith.constant 1 : index
    %c2_43 = arith.constant 2 : index
    %c0_44 = arith.constant 0 : index
    %36 = vector.load %arg1[%c0_40, %c0_41, %c1_42, %c2_43, %c0_44] : memref<1x1x10x10x64xbf16, #tpu.memory_space<vmem>>, vector<1x1x8x8x64xbf16>
    %37 = vector.shape_cast %36 : vector<1x1x8x8x64xbf16> to vector<8x8x64xbf16>
    %38 = vector.shape_cast %37 : vector<8x8x64xbf16> to vector<64x64xbf16>
    %c5 = arith.constant 5 : index
    %c0_45 = arith.constant 0 : index
    %c0_46 = arith.constant 0 : index
    %39 = vector.load %arg2[%c5, %c0_45, %c0_46] : memref<9x64x64xbf16, #tpu.memory_space<vmem>>, vector<1x64x64xbf16>
    %40 = vector.shape_cast %39 : vector<1x64x64xbf16> to vector<64x64xbf16>
    %cst_47 = arith.constant dense<0.000000e+00> : vector<64x64xf32>
    %41 = tpu.matmul %38, %40, %cst_47 {dimension_numbers = #tpu.dot_dimension_numbers<[1], [0], [0], [1], [0, 0, 1, 1], [], []>} : vector<64x64xbf16>, vector<64x64xbf16>, vector<64x64xf32> -> vector<64x64xf32>
    %42 = arith.addf %35, %41 : vector<64x64xf32>
    %c0_48 = arith.constant 0 : index
    %c0_49 = arith.constant 0 : index
    %c2_50 = arith.constant 2 : index
    %c0_51 = arith.constant 0 : index
    %c0_52 = arith.constant 0 : index
    %43 = vector.load %arg1[%c0_48, %c0_49, %c2_50, %c0_51, %c0_52] : memref<1x1x10x10x64xbf16, #tpu.memory_space<vmem>>, vector<1x1x8x8x64xbf16>
    %44 = vector.shape_cast %43 : vector<1x1x8x8x64xbf16> to vector<8x8x64xbf16>
    %45 = vector.shape_cast %44 : vector<8x8x64xbf16> to vector<64x64xbf16>
    %c6 = arith.constant 6 : index
    %c0_53 = arith.constant 0 : index
    %c0_54 = arith.constant 0 : index
    %46 = vector.load %arg2[%c6, %c0_53, %c0_54] : memref<9x64x64xbf16, #tpu.memory_space<vmem>>, vector<1x64x64xbf16>
    %47 = vector.shape_cast %46 : vector<1x64x64xbf16> to vector<64x64xbf16>
    %cst_55 = arith.constant dense<0.000000e+00> : vector<64x64xf32>
    %48 = tpu.matmul %45, %47, %cst_55 {dimension_numbers = #tpu.dot_dimension_numbers<[1], [0], [0], [1], [0, 0, 1, 1], [], []>} : vector<64x64xbf16>, vector<64x64xbf16>, vector<64x64xf32> -> vector<64x64xf32>
    %49 = arith.addf %42, %48 : vector<64x64xf32>
    %c0_56 = arith.constant 0 : index
    %c0_57 = arith.constant 0 : index
    %c2_58 = arith.constant 2 : index
    %c1_59 = arith.constant 1 : index
    %c0_60 = arith.constant 0 : index
    %50 = vector.load %arg1[%c0_56, %c0_57, %c2_58, %c1_59, %c0_60] : memref<1x1x10x10x64xbf16, #tpu.memory_space<vmem>>, vector<1x1x8x8x64xbf16>
    %51 = vector.shape_cast %50 : vector<1x1x8x8x64xbf16> to vector<8x8x64xbf16>
    %52 = vector.shape_cast %51 : vector<8x8x64xbf16> to vector<64x64xbf16>
    %c7 = arith.constant 7 : index
    %c0_61 = arith.constant 0 : index
    %c0_62 = arith.constant 0 : index
    %53 = vector.load %arg2[%c7, %c0_61, %c0_62] : memref<9x64x64xbf16, #tpu.memory_space<vmem>>, vector<1x64x64xbf16>
    %54 = vector.shape_cast %53 : vector<1x64x64xbf16> to vector<64x64xbf16>
    %cst_63 = arith.constant dense<0.000000e+00> : vector<64x64xf32>
    %55 = tpu.matmul %52, %54, %cst_63 {dimension_numbers = #tpu.dot_dimension_numbers<[1], [0], [0], [1], [0, 0, 1, 1], [], []>} : vector<64x64xbf16>, vector<64x64xbf16>, vector<64x64xf32> -> vector<64x64xf32>
    %56 = arith.addf %49, %55 : vector<64x64xf32>
    %c0_64 = arith.constant 0 : index
    %c0_65 = arith.constant 0 : index
    %c2_66 = arith.constant 2 : index
    %c2_67 = arith.constant 2 : index
    %c0_68 = arith.constant 0 : index
    %57 = vector.load %arg1[%c0_64, %c0_65, %c2_66, %c2_67, %c0_68] : memref<1x1x10x10x64xbf16, #tpu.memory_space<vmem>>, vector<1x1x8x8x64xbf16>
    %58 = vector.shape_cast %57 : vector<1x1x8x8x64xbf16> to vector<8x8x64xbf16>
    %59 = vector.shape_cast %58 : vector<8x8x64xbf16> to vector<64x64xbf16>
    %c8 = arith.constant 8 : index
    %c0_69 = arith.constant 0 : index
    %c0_70 = arith.constant 0 : index
    %60 = vector.load %arg2[%c8, %c0_69, %c0_70] : memref<9x64x64xbf16, #tpu.memory_space<vmem>>, vector<1x64x64xbf16>
    %61 = vector.shape_cast %60 : vector<1x64x64xbf16> to vector<64x64xbf16>
    %cst_71 = arith.constant dense<0.000000e+00> : vector<64x64xf32>
    %62 = tpu.matmul %59, %61, %cst_71 {dimension_numbers = #tpu.dot_dimension_numbers<[1], [0], [0], [1], [0, 0, 1, 1], [], []>} : vector<64x64xbf16>, vector<64x64xbf16>, vector<64x64xf32> -> vector<64x64xf32>
    %63 = arith.addf %56, %62 : vector<64x64xf32>
    %cst_72 = arith.constant dense<0.000000e+00> : vector<64xf32>
    %64 = vector.multi_reduction <add>, %63, %cst_72 [0] : vector<64x64xf32> to vector<64xf32>
    %65 = vector.shape_cast %64 : vector<64xf32> to vector<1x64xf32>
    %c0_73 = arith.constant 0 : index
    %c0_74 = arith.constant 0 : index
    %c0_75 = arith.constant 0 : index
    %66 = vector.load %arg4[%c0_73, %c0_74, %c0_75] : memref<1x1x64xf32, #tpu.memory_space<vmem>>, vector<1x1x64xf32>
    %67 = vector.shape_cast %66 : vector<1x1x64xf32> to vector<1x64xf32>
    %68 = vector.shape_cast %65 : vector<1x64xf32> to vector<1x1x64xf32>
    tpu.vector_store %arg4[%c0_73, %c0_74, %c0_75], %68 {strides = array<i32>} : memref<1x1x64xf32, #tpu.memory_space<vmem>>, vector<1x1x64xf32>,
    %69 = arith.mulf %63, %63 : vector<64x64xf32>
    %cst_76 = arith.constant dense<0.000000e+00> : vector<64xf32>
    %70 = vector.multi_reduction <add>, %69, %cst_76 [0] : vector<64x64xf32> to vector<64xf32>
    %71 = vector.shape_cast %70 : vector<64xf32> to vector<1x64xf32>
    %c0_77 = arith.constant 0 : index
    %c0_78 = arith.constant 0 : index
    %c0_79 = arith.constant 0 : index
    %72 = vector.load %arg5[%c0_77, %c0_78, %c0_79] : memref<1x1x64xf32, #tpu.memory_space<vmem>>, vector<1x1x64xf32>
    %73 = vector.shape_cast %72 : vector<1x1x64xf32> to vector<1x64xf32>
    %74 = vector.shape_cast %71 : vector<1x64xf32> to vector<1x1x64xf32>
    tpu.vector_store %arg5[%c0_77, %c0_78, %c0_79], %74 {strides = array<i32>} : memref<1x1x64xf32, #tpu.memory_space<vmem>>, vector<1x1x64xf32>,
    %75 = arith.truncf %63 : vector<64x64xf32> to vector<64x64xbf16>
    %c0_80 = arith.constant 0 : index
    %c0_81 = arith.constant 0 : index
    %c0_82 = arith.constant 0 : index
    %76 = vector.load %arg3[%c0_80, %c0_81, %c0_82] : memref<1x64x64xbf16, #tpu.memory_space<vmem>>, vector<1x64x64xbf16>
    %77 = vector.shape_cast %76 : vector<1x64x64xbf16> to vector<64x64xbf16>
    %78 = vector.shape_cast %75 : vector<64x64xbf16> to vector<1x64x64xbf16>
    tpu.vector_store %arg3[%c0_80, %c0_81, %c0_82], %78 {strides = array<i32>} : memref<1x64x64xbf16, #tpu.memory_space<vmem>>, vector<1x64x64xbf16>,
    return
  }
  func.func @transform_0(%arg0: i32) -> (i32, i32, i32, i32, i32) {
    %c0_i32 = arith.constant 0 : i32
    %c0_i32_0 = arith.constant 0 : i32
    %c0_i32_1 = arith.constant 0 : i32
    %c0_i32_2 = arith.constant 0 : i32
    %c0_i32_3 = arith.constant 0 : i32
    return %arg0, %c0_i32, %c0_i32_0, %c0_i32_1, %c0_i32_2 : i32, i32, i32, i32, i32
  }
  func.func @transform_1(%arg0: i32) -> (i32, i32, i32) {
    %c0_i32 = arith.constant 0 : i32
    %c0_i32_0 = arith.constant 0 : i32
    %c0_i32_1 = arith.constant 0 : i32
    %c0_i32_2 = arith.constant 0 : i32
    return %c0_i32, %c0_i32_0, %c0_i32_1 : i32, i32, i32
  }
  func.func @transform_2(%arg0: i32) -> (i32, i32, i32) {
    %c0_i32 = arith.constant 0 : i32
    %c0_i32_0 = arith.constant 0 : i32
    %c0_i32_1 = arith.constant 0 : i32
    return %arg0, %c0_i32, %c0_i32_0 : i32, i32, i32
  }
  func.func @transform_3(%arg0: i32) -> (i32, i32, i32) {
    %c0_i32 = arith.constant 0 : i32
    %c0_i32_0 = arith.constant 0 : i32
    %c0_i32_1 = arith.constant 0 : i32
    return %arg0, %c0_i32, %c0_i32_0 : i32, i32, i32
  }
  func.func @transform_4(%arg0: i32) -> (i32, i32, i32) {
    %c0_i32 = arith.constant 0 : i32
    %c0_i32_0 = arith.constant 0 : i32
    %c0_i32_1 = arith.constant 0 : i32
    return %arg0, %c0_i32, %c0_i32_0 : i32, i32, i32
  }
}

module attributes {stable_mosaic.version = 11 : i64} {
  func.func @_affine_add_kernel(%arg0: i32, %arg1: memref<32x128xbf16, #tpu.memory_space<vmem>>, %arg2: memref<32x128xbf16, #tpu.memory_space<vmem>>, %arg3: memref<1x128xf32, #tpu.memory_space<vmem>>, %arg4: memref<1x128xf32, #tpu.memory_space<vmem>>, %arg5: memref<32x128xbf16, #tpu.memory_space<vmem>>) attributes {dimension_semantics = [#tpu.dimension_semantics<parallel>], iteration_bounds = array<i64: 2>, scalar_prefetch = 0 : i64, scratch_operands = 0 : i64, tpu.core_type = #tpu.core_type<tc>, window_params = [{transform_indices = @transform_0, window_bounds = array<i64: 32, 128>}, {transform_indices = @transform_1, window_bounds = array<i64: 32, 128>}, {pipeline_mode = #tpu.pipeline_mode<synchronous>, transform_indices = @transform_2, window_bounds = array<i64: 1, 128>}, {pipeline_mode = #tpu.pipeline_mode<synchronous>, transform_indices = @transform_3, window_bounds = array<i64: 1, 128>}, {transform_indices = @transform_4, window_bounds = array<i64: 32, 128>}]} {
    %c0 = arith.constant 0 : index
    %c0_0 = arith.constant 0 : index
    %0 = vector.load %arg1[%c0, %c0_0] : memref<32x128xbf16, #tpu.memory_space<vmem>>, vector<32x128xbf16>
    %1 = arith.extf %0 : vector<32x128xbf16> to vector<32x128xf32>
    %c0_1 = arith.constant 0 : index
    %c0_2 = arith.constant 0 : index
    %2 = vector.load %arg3[%c0_1, %c0_2] : memref<1x128xf32, #tpu.memory_space<vmem>>, vector<1x128xf32>
    %3 = vector.broadcast %2 : vector<1x128xf32> to vector<32x128xf32>
    %4 = arith.mulf %1, %3 : vector<32x128xf32>
    %c0_3 = arith.constant 0 : index
    %c0_4 = arith.constant 0 : index
    %5 = vector.load %arg4[%c0_3, %c0_4] : memref<1x128xf32, #tpu.memory_space<vmem>>, vector<1x128xf32>
    %6 = vector.broadcast %5 : vector<1x128xf32> to vector<32x128xf32>
    %7 = arith.addf %4, %6 : vector<32x128xf32>
    %c0_5 = arith.constant 0 : index
    %c0_6 = arith.constant 0 : index
    %8 = vector.load %arg2[%c0_5, %c0_6] : memref<32x128xbf16, #tpu.memory_space<vmem>>, vector<32x128xbf16>
    %9 = arith.extf %8 : vector<32x128xbf16> to vector<32x128xf32>
    %10 = arith.addf %7, %9 : vector<32x128xf32>
    %cst = arith.constant 0.000000e+00 : f32
    %11 = vector.broadcast %cst : f32 to vector<32x128xf32>
    %12 = arith.maximumf %10, %11 : vector<32x128xf32>
    %13 = arith.truncf %12 : vector<32x128xf32> to vector<32x128xbf16>
    %c0_7 = arith.constant 0 : index
    %c0_8 = arith.constant 0 : index
    %14 = vector.load %arg5[%c0_7, %c0_8] : memref<32x128xbf16, #tpu.memory_space<vmem>>, vector<32x128xbf16>
    tpu.vector_store %arg5[%c0_7, %c0_8], %13 {strides = array<i32>} : memref<32x128xbf16, #tpu.memory_space<vmem>>, vector<32x128xbf16>,
    return
  }
  func.func @transform_0(%arg0: i32) -> (i32, i32) {
    %c0_i32 = arith.constant 0 : i32
    %c0_i32_0 = arith.constant 0 : i32
    return %arg0, %c0_i32 : i32, i32
  }
  func.func @transform_1(%arg0: i32) -> (i32, i32) {
    %c0_i32 = arith.constant 0 : i32
    %c0_i32_0 = arith.constant 0 : i32
    return %arg0, %c0_i32 : i32, i32
  }
  func.func @transform_2(%arg0: i32) -> (i32, i32) {
    %c0_i32 = arith.constant 0 : i32
    %c0_i32_0 = arith.constant 0 : i32
    %c0_i32_1 = arith.constant 0 : i32
    return %c0_i32, %c0_i32_0 : i32, i32
  }
  func.func @transform_3(%arg0: i32) -> (i32, i32) {
    %c0_i32 = arith.constant 0 : i32
    %c0_i32_0 = arith.constant 0 : i32
    %c0_i32_1 = arith.constant 0 : i32
    return %c0_i32, %c0_i32_0 : i32, i32
  }
  func.func @transform_4(%arg0: i32) -> (i32, i32) {
    %c0_i32 = arith.constant 0 : i32
    %c0_i32_0 = arith.constant 0 : i32
    return %arg0, %c0_i32 : i32, i32
  }
}

module attributes {stable_mosaic.version = 11 : i64} {
  func.func @_mm_stats_kernel(%arg0: i32, %arg1: memref<32x64xbf16, #tpu.memory_space<vmem>>, %arg2: memref<64x128xbf16, #tpu.memory_space<vmem>>, %arg3: memref<32x128xbf16, #tpu.memory_space<vmem>>, %arg4: memref<1x1x128xf32, #tpu.memory_space<vmem>>, %arg5: memref<1x1x128xf32, #tpu.memory_space<vmem>>) attributes {dimension_semantics = [#tpu.dimension_semantics<parallel>], iteration_bounds = array<i64: 1>, scalar_prefetch = 0 : i64, scratch_operands = 0 : i64, tpu.core_type = #tpu.core_type<tc>, window_params = [{transform_indices = @transform_0, window_bounds = array<i64: 32, 64>}, {pipeline_mode = #tpu.pipeline_mode<synchronous>, transform_indices = @transform_1, window_bounds = array<i64: 64, 128>}, {transform_indices = @transform_2, window_bounds = array<i64: 32, 128>}, {transform_indices = @transform_3, window_bounds = array<i64: 1, 1, 128>}, {transform_indices = @transform_4, window_bounds = array<i64: 1, 1, 128>}]} {
    %c0 = arith.constant 0 : index
    %c0_0 = arith.constant 0 : index
    %0 = vector.load %arg1[%c0, %c0_0] : memref<32x64xbf16, #tpu.memory_space<vmem>>, vector<32x64xbf16>
    %c0_1 = arith.constant 0 : index
    %c0_2 = arith.constant 0 : index
    %1 = vector.load %arg2[%c0_1, %c0_2] : memref<64x128xbf16, #tpu.memory_space<vmem>>, vector<64x128xbf16>
    %cst = arith.constant dense<0.000000e+00> : vector<32x128xf32>
    %2 = tpu.matmul %0, %1, %cst {dimension_numbers = #tpu.dot_dimension_numbers<[1], [0], [0], [1], [0, 0, 1, 1], [], []>} : vector<32x64xbf16>, vector<64x128xbf16>, vector<32x128xf32> -> vector<32x128xf32>
    %cst_3 = arith.constant dense<0.000000e+00> : vector<128xf32>
    %3 = vector.multi_reduction <add>, %2, %cst_3 [0] : vector<32x128xf32> to vector<128xf32>
    %4 = vector.shape_cast %3 : vector<128xf32> to vector<1x128xf32>
    %c0_4 = arith.constant 0 : index
    %c0_5 = arith.constant 0 : index
    %c0_6 = arith.constant 0 : index
    %5 = vector.load %arg4[%c0_4, %c0_5, %c0_6] : memref<1x1x128xf32, #tpu.memory_space<vmem>>, vector<1x1x128xf32>
    %6 = vector.shape_cast %5 : vector<1x1x128xf32> to vector<1x128xf32>
    %7 = vector.shape_cast %4 : vector<1x128xf32> to vector<1x1x128xf32>
    tpu.vector_store %arg4[%c0_4, %c0_5, %c0_6], %7 {strides = array<i32>} : memref<1x1x128xf32, #tpu.memory_space<vmem>>, vector<1x1x128xf32>,
    %8 = arith.mulf %2, %2 : vector<32x128xf32>
    %cst_7 = arith.constant dense<0.000000e+00> : vector<128xf32>
    %9 = vector.multi_reduction <add>, %8, %cst_7 [0] : vector<32x128xf32> to vector<128xf32>
    %10 = vector.shape_cast %9 : vector<128xf32> to vector<1x128xf32>
    %c0_8 = arith.constant 0 : index
    %c0_9 = arith.constant 0 : index
    %c0_10 = arith.constant 0 : index
    %11 = vector.load %arg5[%c0_8, %c0_9, %c0_10] : memref<1x1x128xf32, #tpu.memory_space<vmem>>, vector<1x1x128xf32>
    %12 = vector.shape_cast %11 : vector<1x1x128xf32> to vector<1x128xf32>
    %13 = vector.shape_cast %10 : vector<1x128xf32> to vector<1x1x128xf32>
    tpu.vector_store %arg5[%c0_8, %c0_9, %c0_10], %13 {strides = array<i32>} : memref<1x1x128xf32, #tpu.memory_space<vmem>>, vector<1x1x128xf32>,
    %14 = arith.truncf %2 : vector<32x128xf32> to vector<32x128xbf16>
    %c0_11 = arith.constant 0 : index
    %c0_12 = arith.constant 0 : index
    %15 = vector.load %arg3[%c0_11, %c0_12] : memref<32x128xbf16, #tpu.memory_space<vmem>>, vector<32x128xbf16>
    tpu.vector_store %arg3[%c0_11, %c0_12], %14 {strides = array<i32>} : memref<32x128xbf16, #tpu.memory_space<vmem>>, vector<32x128xbf16>,
    return
  }
  func.func @transform_0(%arg0: i32) -> (i32, i32) {
    %c0_i32 = arith.constant 0 : i32
    %c0_i32_0 = arith.constant 0 : i32
    return %arg0, %c0_i32 : i32, i32
  }
  func.func @transform_1(%arg0: i32) -> (i32, i32) {
    %c0_i32 = arith.constant 0 : i32
    %c0_i32_0 = arith.constant 0 : i32
    %c0_i32_1 = arith.constant 0 : i32
    return %c0_i32, %c0_i32_0 : i32, i32
  }
  func.func @transform_2(%arg0: i32) -> (i32, i32) {
    %c0_i32 = arith.constant 0 : i32
    %c0_i32_0 = arith.constant 0 : i32
    return %arg0, %c0_i32 : i32, i32
  }
  func.func @transform_3(%arg0: i32) -> (i32, i32, i32) {
    %c0_i32 = arith.constant 0 : i32
    %c0_i32_0 = arith.constant 0 : i32
    %c0_i32_1 = arith.constant 0 : i32
    return %arg0, %c0_i32, %c0_i32_0 : i32, i32, i32
  }
  func.func @transform_4(%arg0: i32) -> (i32, i32, i32) {
    %c0_i32 = arith.constant 0 : i32
    %c0_i32_0 = arith.constant 0 : i32
    %c0_i32_1 = arith.constant 0 : i32
    return %arg0, %c0_i32, %c0_i32_0 : i32, i32, i32
  }
}

module attributes {stable_mosaic.version = 11 : i64} {
  func.func @_affine_kernel(%arg0: i32, %arg1: memref<16x128xbf16, #tpu.memory_space<vmem>>, %arg2: memref<1x128xf32, #tpu.memory_space<vmem>>, %arg3: memref<1x128xf32, #tpu.memory_space<vmem>>, %arg4: memref<16x128xbf16, #tpu.memory_space<vmem>>) attributes {dimension_semantics = [#tpu.dimension_semantics<parallel>], iteration_bounds = array<i64: 2>, scalar_prefetch = 0 : i64, scratch_operands = 0 : i64, tpu.core_type = #tpu.core_type<tc>, window_params = [{transform_indices = @transform_0, window_bounds = array<i64: 16, 128>}, {pipeline_mode = #tpu.pipeline_mode<synchronous>, transform_indices = @transform_1, window_bounds = array<i64: 1, 128>}, {pipeline_mode = #tpu.pipeline_mode<synchronous>, transform_indices = @transform_2, window_bounds = array<i64: 1, 128>}, {transform_indices = @transform_3, window_bounds = array<i64: 16, 128>}]} {
    %c0 = arith.constant 0 : index
    %c0_0 = arith.constant 0 : index
    %0 = vector.load %arg1[%c0, %c0_0] : memref<16x128xbf16, #tpu.memory_space<vmem>>, vector<16x128xbf16>
    %1 = arith.extf %0 : vector<16x128xbf16> to vector<16x128xf32>
    %c0_1 = arith.constant 0 : index
    %c0_2 = arith.constant 0 : index
    %2 = vector.load %arg2[%c0_1, %c0_2] : memref<1x128xf32, #tpu.memory_space<vmem>>, vector<1x128xf32>
    %3 = vector.broadcast %2 : vector<1x128xf32> to vector<16x128xf32>
    %4 = arith.mulf %1, %3 : vector<16x128xf32>
    %c0_3 = arith.constant 0 : index
    %c0_4 = arith.constant 0 : index
    %5 = vector.load %arg3[%c0_3, %c0_4] : memref<1x128xf32, #tpu.memory_space<vmem>>, vector<1x128xf32>
    %6 = vector.broadcast %5 : vector<1x128xf32> to vector<16x128xf32>
    %7 = arith.addf %4, %6 : vector<16x128xf32>
    %8 = arith.truncf %7 : vector<16x128xf32> to vector<16x128xbf16>
    %c0_5 = arith.constant 0 : index
    %c0_6 = arith.constant 0 : index
    %9 = vector.load %arg4[%c0_5, %c0_6] : memref<16x128xbf16, #tpu.memory_space<vmem>>, vector<16x128xbf16>
    tpu.vector_store %arg4[%c0_5, %c0_6], %8 {strides = array<i32>} : memref<16x128xbf16, #tpu.memory_space<vmem>>, vector<16x128xbf16>,
    return
  }
  func.func @transform_0(%arg0: i32) -> (i32, i32) {
    %c0_i32 = arith.constant 0 : i32
    %c0_i32_0 = arith.constant 0 : i32
    return %arg0, %c0_i32 : i32, i32
  }
  func.func @transform_1(%arg0: i32) -> (i32, i32) {
    %c0_i32 = arith.constant 0 : i32
    %c0_i32_0 = arith.constant 0 : i32
    %c0_i32_1 = arith.constant 0 : i32
    return %c0_i32, %c0_i32_0 : i32, i32
  }
  func.func @transform_2(%arg0: i32) -> (i32, i32) {
    %c0_i32 = arith.constant 0 : i32
    %c0_i32_0 = arith.constant 0 : i32
    %c0_i32_1 = arith.constant 0 : i32
    return %c0_i32, %c0_i32_0 : i32, i32
  }
  func.func @transform_3(%arg0: i32) -> (i32, i32) {
    %c0_i32 = arith.constant 0 : i32
    %c0_i32_0 = arith.constant 0 : i32
    return %arg0, %c0_i32 : i32, i32
  }
}

module attributes {stable_mosaic.version = 11 : i64} {
  func.func @_mm_stats_kernel(%arg0: i32, %arg1: memref<32x576xbf16, #tpu.memory_space<vmem>>, %arg2: memref<576x128xbf16, #tpu.memory_space<vmem>>, %arg3: memref<32x128xbf16, #tpu.memory_space<vmem>>, %arg4: memref<1x1x128xf32, #tpu.memory_space<vmem>>, %arg5: memref<1x1x128xf32, #tpu.memory_space<vmem>>) attributes {dimension_semantics = [#tpu.dimension_semantics<parallel>], iteration_bounds = array<i64: 1>, scalar_prefetch = 0 : i64, scratch_operands = 0 : i64, tpu.core_type = #tpu.core_type<tc>, window_params = [{transform_indices = @transform_0, window_bounds = array<i64: 32, 576>}, {pipeline_mode = #tpu.pipeline_mode<synchronous>, transform_indices = @transform_1, window_bounds = array<i64: 576, 128>}, {transform_indices = @transform_2, window_bounds = array<i64: 32, 128>}, {transform_indices = @transform_3, window_bounds = array<i64: 1, 1, 128>}, {transform_indices = @transform_4, window_bounds = array<i64: 1, 1, 128>}]} {
    %c0 = arith.constant 0 : index
    %c0_0 = arith.constant 0 : index
    %0 = vector.load %arg1[%c0, %c0_0] : memref<32x576xbf16, #tpu.memory_space<vmem>>, vector<32x576xbf16>
    %c0_1 = arith.constant 0 : index
    %c0_2 = arith.constant 0 : index
    %1 = vector.load %arg2[%c0_1, %c0_2] : memref<576x128xbf16, #tpu.memory_space<vmem>>, vector<576x128xbf16>
    %cst = arith.constant dense<0.000000e+00> : vector<32x128xf32>
    %2 = tpu.matmul %0, %1, %cst {dimension_numbers = #tpu.dot_dimension_numbers<[1], [0], [0], [1], [0, 0, 1, 1], [], []>} : vector<32x576xbf16>, vector<576x128xbf16>, vector<32x128xf32> -> vector<32x128xf32>
    %cst_3 = arith.constant dense<0.000000e+00> : vector<128xf32>
    %3 = vector.multi_reduction <add>, %2, %cst_3 [0] : vector<32x128xf32> to vector<128xf32>
    %4 = vector.shape_cast %3 : vector<128xf32> to vector<1x128xf32>
    %c0_4 = arith.constant 0 : index
    %c0_5 = arith.constant 0 : index
    %c0_6 = arith.constant 0 : index
    %5 = vector.load %arg4[%c0_4, %c0_5, %c0_6] : memref<1x1x128xf32, #tpu.memory_space<vmem>>, vector<1x1x128xf32>
    %6 = vector.shape_cast %5 : vector<1x1x128xf32> to vector<1x128xf32>
    %7 = vector.shape_cast %4 : vector<1x128xf32> to vector<1x1x128xf32>
    tpu.vector_store %arg4[%c0_4, %c0_5, %c0_6], %7 {strides = array<i32>} : memref<1x1x128xf32, #tpu.memory_space<vmem>>, vector<1x1x128xf32>,
    %8 = arith.mulf %2, %2 : vector<32x128xf32>
    %cst_7 = arith.constant dense<0.000000e+00> : vector<128xf32>
    %9 = vector.multi_reduction <add>, %8, %cst_7 [0] : vector<32x128xf32> to vector<128xf32>
    %10 = vector.shape_cast %9 : vector<128xf32> to vector<1x128xf32>
    %c0_8 = arith.constant 0 : index
    %c0_9 = arith.constant 0 : index
    %c0_10 = arith.constant 0 : index
    %11 = vector.load %arg5[%c0_8, %c0_9, %c0_10] : memref<1x1x128xf32, #tpu.memory_space<vmem>>, vector<1x1x128xf32>
    %12 = vector.shape_cast %11 : vector<1x1x128xf32> to vector<1x128xf32>
    %13 = vector.shape_cast %10 : vector<1x128xf32> to vector<1x1x128xf32>
    tpu.vector_store %arg5[%c0_8, %c0_9, %c0_10], %13 {strides = array<i32>} : memref<1x1x128xf32, #tpu.memory_space<vmem>>, vector<1x1x128xf32>,
    %14 = arith.truncf %2 : vector<32x128xf32> to vector<32x128xbf16>
    %c0_11 = arith.constant 0 : index
    %c0_12 = arith.constant 0 : index
    %15 = vector.load %arg3[%c0_11, %c0_12] : memref<32x128xbf16, #tpu.memory_space<vmem>>, vector<32x128xbf16>
    tpu.vector_store %arg3[%c0_11, %c0_12], %14 {strides = array<i32>} : memref<32x128xbf16, #tpu.memory_space<vmem>>, vector<32x128xbf16>,
    return
  }
  func.func @transform_0(%arg0: i32) -> (i32, i32) {
    %c0_i32 = arith.constant 0 : i32
    %c0_i32_0 = arith.constant 0 : i32
    return %arg0, %c0_i32 : i32, i32
  }
  func.func @transform_1(%arg0: i32) -> (i32, i32) {
    %c0_i32 = arith.constant 0 : i32
    %c0_i32_0 = arith.constant 0 : i32
    %c0_i32_1 = arith.constant 0 : i32
    return %c0_i32, %c0_i32_0 : i32, i32
  }
  func.func @transform_2(%arg0: i32) -> (i32, i32) {
    %c0_i32 = arith.constant 0 : i32
    %c0_i32_0 = arith.constant 0 : i32
    return %arg0, %c0_i32 : i32, i32
  }
  func.func @transform_3(%arg0: i32) -> (i32, i32, i32) {
    %c0_i32 = arith.constant 0 : i32
    %c0_i32_0 = arith.constant 0 : i32
    %c0_i32_1 = arith.constant 0 : i32
    return %arg0, %c0_i32, %c0_i32_0 : i32, i32, i32
  }
  func.func @transform_4(%arg0: i32) -> (i32, i32, i32) {
    %c0_i32 = arith.constant 0 : i32
    %c0_i32_0 = arith.constant 0 : i32
    %c0_i32_1 = arith.constant 0 : i32
    return %arg0, %c0_i32, %c0_i32_0 : i32, i32, i32
  }
}

module attributes {stable_mosaic.version = 11 : i64} {
  func.func @_affine_kernel(%arg0: i32, %arg1: memref<16x128xbf16, #tpu.memory_space<vmem>>, %arg2: memref<1x128xf32, #tpu.memory_space<vmem>>, %arg3: memref<1x128xf32, #tpu.memory_space<vmem>>, %arg4: memref<16x128xbf16, #tpu.memory_space<vmem>>) attributes {dimension_semantics = [#tpu.dimension_semantics<parallel>], iteration_bounds = array<i64: 2>, scalar_prefetch = 0 : i64, scratch_operands = 0 : i64, tpu.core_type = #tpu.core_type<tc>, window_params = [{transform_indices = @transform_0, window_bounds = array<i64: 16, 128>}, {pipeline_mode = #tpu.pipeline_mode<synchronous>, transform_indices = @transform_1, window_bounds = array<i64: 1, 128>}, {pipeline_mode = #tpu.pipeline_mode<synchronous>, transform_indices = @transform_2, window_bounds = array<i64: 1, 128>}, {transform_indices = @transform_3, window_bounds = array<i64: 16, 128>}]} {
    %c0 = arith.constant 0 : index
    %c0_0 = arith.constant 0 : index
    %0 = vector.load %arg1[%c0, %c0_0] : memref<16x128xbf16, #tpu.memory_space<vmem>>, vector<16x128xbf16>
    %1 = arith.extf %0 : vector<16x128xbf16> to vector<16x128xf32>
    %c0_1 = arith.constant 0 : index
    %c0_2 = arith.constant 0 : index
    %2 = vector.load %arg2[%c0_1, %c0_2] : memref<1x128xf32, #tpu.memory_space<vmem>>, vector<1x128xf32>
    %3 = vector.broadcast %2 : vector<1x128xf32> to vector<16x128xf32>
    %4 = arith.mulf %1, %3 : vector<16x128xf32>
    %c0_3 = arith.constant 0 : index
    %c0_4 = arith.constant 0 : index
    %5 = vector.load %arg3[%c0_3, %c0_4] : memref<1x128xf32, #tpu.memory_space<vmem>>, vector<1x128xf32>
    %6 = vector.broadcast %5 : vector<1x128xf32> to vector<16x128xf32>
    %7 = arith.addf %4, %6 : vector<16x128xf32>
    %cst = arith.constant 0.000000e+00 : f32
    %8 = vector.broadcast %cst : f32 to vector<16x128xf32>
    %9 = arith.maximumf %7, %8 : vector<16x128xf32>
    %10 = arith.truncf %9 : vector<16x128xf32> to vector<16x128xbf16>
    %c0_5 = arith.constant 0 : index
    %c0_6 = arith.constant 0 : index
    %11 = vector.load %arg4[%c0_5, %c0_6] : memref<16x128xbf16, #tpu.memory_space<vmem>>, vector<16x128xbf16>
    tpu.vector_store %arg4[%c0_5, %c0_6], %10 {strides = array<i32>} : memref<16x128xbf16, #tpu.memory_space<vmem>>, vector<16x128xbf16>,
    return
  }
  func.func @transform_0(%arg0: i32) -> (i32, i32) {
    %c0_i32 = arith.constant 0 : i32
    %c0_i32_0 = arith.constant 0 : i32
    return %arg0, %c0_i32 : i32, i32
  }
  func.func @transform_1(%arg0: i32) -> (i32, i32) {
    %c0_i32 = arith.constant 0 : i32
    %c0_i32_0 = arith.constant 0 : i32
    %c0_i32_1 = arith.constant 0 : i32
    return %c0_i32, %c0_i32_0 : i32, i32
  }
  func.func @transform_2(%arg0: i32) -> (i32, i32) {
    %c0_i32 = arith.constant 0 : i32
    %c0_i32_0 = arith.constant 0 : i32
    %c0_i32_1 = arith.constant 0 : i32
    return %c0_i32, %c0_i32_0 : i32, i32
  }
  func.func @transform_3(%arg0: i32) -> (i32, i32) {
    %c0_i32 = arith.constant 0 : i32
    %c0_i32_0 = arith.constant 0 : i32
    return %arg0, %c0_i32 : i32, i32
  }
}

module attributes {stable_mosaic.version = 11 : i64} {
  func.func @_affine_add_kernel(%arg0: i32, %arg1: memref<16x128xbf16, #tpu.memory_space<vmem>>, %arg2: memref<16x128xbf16, #tpu.memory_space<vmem>>, %arg3: memref<1x128xf32, #tpu.memory_space<vmem>>, %arg4: memref<1x128xf32, #tpu.memory_space<vmem>>, %arg5: memref<16x128xbf16, #tpu.memory_space<vmem>>) attributes {dimension_semantics = [#tpu.dimension_semantics<parallel>], iteration_bounds = array<i64: 2>, scalar_prefetch = 0 : i64, scratch_operands = 0 : i64, tpu.core_type = #tpu.core_type<tc>, window_params = [{transform_indices = @transform_0, window_bounds = array<i64: 16, 128>}, {transform_indices = @transform_1, window_bounds = array<i64: 16, 128>}, {pipeline_mode = #tpu.pipeline_mode<synchronous>, transform_indices = @transform_2, window_bounds = array<i64: 1, 128>}, {pipeline_mode = #tpu.pipeline_mode<synchronous>, transform_indices = @transform_3, window_bounds = array<i64: 1, 128>}, {transform_indices = @transform_4, window_bounds = array<i64: 16, 128>}]} {
    %c0 = arith.constant 0 : index
    %c0_0 = arith.constant 0 : index
    %0 = vector.load %arg1[%c0, %c0_0] : memref<16x128xbf16, #tpu.memory_space<vmem>>, vector<16x128xbf16>
    %1 = arith.extf %0 : vector<16x128xbf16> to vector<16x128xf32>
    %c0_1 = arith.constant 0 : index
    %c0_2 = arith.constant 0 : index
    %2 = vector.load %arg3[%c0_1, %c0_2] : memref<1x128xf32, #tpu.memory_space<vmem>>, vector<1x128xf32>
    %3 = vector.broadcast %2 : vector<1x128xf32> to vector<16x128xf32>
    %4 = arith.mulf %1, %3 : vector<16x128xf32>
    %c0_3 = arith.constant 0 : index
    %c0_4 = arith.constant 0 : index
    %5 = vector.load %arg4[%c0_3, %c0_4] : memref<1x128xf32, #tpu.memory_space<vmem>>, vector<1x128xf32>
    %6 = vector.broadcast %5 : vector<1x128xf32> to vector<16x128xf32>
    %7 = arith.addf %4, %6 : vector<16x128xf32>
    %c0_5 = arith.constant 0 : index
    %c0_6 = arith.constant 0 : index
    %8 = vector.load %arg2[%c0_5, %c0_6] : memref<16x128xbf16, #tpu.memory_space<vmem>>, vector<16x128xbf16>
    %9 = arith.extf %8 : vector<16x128xbf16> to vector<16x128xf32>
    %10 = arith.addf %7, %9 : vector<16x128xf32>
    %cst = arith.constant 0.000000e+00 : f32
    %11 = vector.broadcast %cst : f32 to vector<16x128xf32>
    %12 = arith.maximumf %10, %11 : vector<16x128xf32>
    %13 = arith.truncf %12 : vector<16x128xf32> to vector<16x128xbf16>
    %c0_7 = arith.constant 0 : index
    %c0_8 = arith.constant 0 : index
    %14 = vector.load %arg5[%c0_7, %c0_8] : memref<16x128xbf16, #tpu.memory_space<vmem>>, vector<16x128xbf16>
    tpu.vector_store %arg5[%c0_7, %c0_8], %13 {strides = array<i32>} : memref<16x128xbf16, #tpu.memory_space<vmem>>, vector<16x128xbf16>,
    return
  }
  func.func @transform_0(%arg0: i32) -> (i32, i32) {
    %c0_i32 = arith.constant 0 : i32
    %c0_i32_0 = arith.constant 0 : i32
    return %arg0, %c0_i32 : i32, i32
  }
  func.func @transform_1(%arg0: i32) -> (i32, i32) {
    %c0_i32 = arith.constant 0 : i32
    %c0_i32_0 = arith.constant 0 : i32
    return %arg0, %c0_i32 : i32, i32
  }
  func.func @transform_2(%arg0: i32) -> (i32, i32) {
    %c0_i32 = arith.constant 0 : i32
    %c0_i32_0 = arith.constant 0 : i32
    %c0_i32_1 = arith.constant 0 : i32
    return %c0_i32, %c0_i32_0 : i32, i32
  }
  func.func @transform_3(%arg0: i32) -> (i32, i32) {
    %c0_i32 = arith.constant 0 : i32
    %c0_i32_0 = arith.constant 0 : i32
    %c0_i32_1 = arith.constant 0 : i32
    return %c0_i32, %c0_i32_0 : i32, i32
  }
  func.func @transform_4(%arg0: i32) -> (i32, i32) {
    %c0_i32 = arith.constant 0 : i32
    %c0_i32_0 = arith.constant 0 : i32
    return %arg0, %c0_i32 : i32, i32
  }
}

module attributes {stable_mosaic.version = 11 : i64} {
  func.func @_mm_stats_kernel(%arg0: i32, %arg1: memref<8x128xbf16, #tpu.memory_space<vmem>>, %arg2: memref<128x256xbf16, #tpu.memory_space<vmem>>, %arg3: memref<8x256xbf16, #tpu.memory_space<vmem>>, %arg4: memref<1x1x256xf32, #tpu.memory_space<vmem>>, %arg5: memref<1x1x256xf32, #tpu.memory_space<vmem>>) attributes {dimension_semantics = [#tpu.dimension_semantics<parallel>], iteration_bounds = array<i64: 1>, scalar_prefetch = 0 : i64, scratch_operands = 0 : i64, tpu.core_type = #tpu.core_type<tc>, window_params = [{transform_indices = @transform_0, window_bounds = array<i64: 8, 128>}, {pipeline_mode = #tpu.pipeline_mode<synchronous>, transform_indices = @transform_1, window_bounds = array<i64: 128, 256>}, {transform_indices = @transform_2, window_bounds = array<i64: 8, 256>}, {transform_indices = @transform_3, window_bounds = array<i64: 1, 1, 256>}, {transform_indices = @transform_4, window_bounds = array<i64: 1, 1, 256>}]} {
    %c0 = arith.constant 0 : index
    %c0_0 = arith.constant 0 : index
    %0 = vector.load %arg1[%c0, %c0_0] : memref<8x128xbf16, #tpu.memory_space<vmem>>, vector<8x128xbf16>
    %c0_1 = arith.constant 0 : index
    %c0_2 = arith.constant 0 : index
    %1 = vector.load %arg2[%c0_1, %c0_2] : memref<128x256xbf16, #tpu.memory_space<vmem>>, vector<128x256xbf16>
    %cst = arith.constant dense<0.000000e+00> : vector<8x256xf32>
    %2 = tpu.matmul %0, %1, %cst {dimension_numbers = #tpu.dot_dimension_numbers<[1], [0], [0], [1], [0, 0, 1, 1], [], []>} : vector<8x128xbf16>, vector<128x256xbf16>, vector<8x256xf32> -> vector<8x256xf32>
    %cst_3 = arith.constant dense<0.000000e+00> : vector<256xf32>
    %3 = vector.multi_reduction <add>, %2, %cst_3 [0] : vector<8x256xf32> to vector<256xf32>
    %4 = vector.shape_cast %3 : vector<256xf32> to vector<1x256xf32>
    %c0_4 = arith.constant 0 : index
    %c0_5 = arith.constant 0 : index
    %c0_6 = arith.constant 0 : index
    %5 = vector.load %arg4[%c0_4, %c0_5, %c0_6] : memref<1x1x256xf32, #tpu.memory_space<vmem>>, vector<1x1x256xf32>
    %6 = vector.shape_cast %5 : vector<1x1x256xf32> to vector<1x256xf32>
    %7 = vector.shape_cast %4 : vector<1x256xf32> to vector<1x1x256xf32>
    tpu.vector_store %arg4[%c0_4, %c0_5, %c0_6], %7 {strides = array<i32>} : memref<1x1x256xf32, #tpu.memory_space<vmem>>, vector<1x1x256xf32>,
    %8 = arith.mulf %2, %2 : vector<8x256xf32>
    %cst_7 = arith.constant dense<0.000000e+00> : vector<256xf32>
    %9 = vector.multi_reduction <add>, %8, %cst_7 [0] : vector<8x256xf32> to vector<256xf32>
    %10 = vector.shape_cast %9 : vector<256xf32> to vector<1x256xf32>
    %c0_8 = arith.constant 0 : index
    %c0_9 = arith.constant 0 : index
    %c0_10 = arith.constant 0 : index
    %11 = vector.load %arg5[%c0_8, %c0_9, %c0_10] : memref<1x1x256xf32, #tpu.memory_space<vmem>>, vector<1x1x256xf32>
    %12 = vector.shape_cast %11 : vector<1x1x256xf32> to vector<1x256xf32>
    %13 = vector.shape_cast %10 : vector<1x256xf32> to vector<1x1x256xf32>
    tpu.vector_store %arg5[%c0_8, %c0_9, %c0_10], %13 {strides = array<i32>} : memref<1x1x256xf32, #tpu.memory_space<vmem>>, vector<1x1x256xf32>,
    %14 = arith.truncf %2 : vector<8x256xf32> to vector<8x256xbf16>
    %c0_11 = arith.constant 0 : index
    %c0_12 = arith.constant 0 : index
    %15 = vector.load %arg3[%c0_11, %c0_12] : memref<8x256xbf16, #tpu.memory_space<vmem>>, vector<8x256xbf16>
    tpu.vector_store %arg3[%c0_11, %c0_12], %14 {strides = array<i32>} : memref<8x256xbf16, #tpu.memory_space<vmem>>, vector<8x256xbf16>,
    return
  }
  func.func @transform_0(%arg0: i32) -> (i32, i32) {
    %c0_i32 = arith.constant 0 : i32
    %c0_i32_0 = arith.constant 0 : i32
    return %arg0, %c0_i32 : i32, i32
  }
  func.func @transform_1(%arg0: i32) -> (i32, i32) {
    %c0_i32 = arith.constant 0 : i32
    %c0_i32_0 = arith.constant 0 : i32
    %c0_i32_1 = arith.constant 0 : i32
    return %c0_i32, %c0_i32_0 : i32, i32
  }
  func.func @transform_2(%arg0: i32) -> (i32, i32) {
    %c0_i32 = arith.constant 0 : i32
    %c0_i32_0 = arith.constant 0 : i32
    return %arg0, %c0_i32 : i32, i32
  }
  func.func @transform_3(%arg0: i32) -> (i32, i32, i32) {
    %c0_i32 = arith.constant 0 : i32
    %c0_i32_0 = arith.constant 0 : i32
    %c0_i32_1 = arith.constant 0 : i32
    return %arg0, %c0_i32, %c0_i32_0 : i32, i32, i32
  }
  func.func @transform_4(%arg0: i32) -> (i32, i32, i32) {
    %c0_i32 = arith.constant 0 : i32
    %c0_i32_0 = arith.constant 0 : i32
    %c0_i32_1 = arith.constant 0 : i32
    return %arg0, %c0_i32, %c0_i32_0 : i32, i32, i32
  }
}

module attributes {stable_mosaic.version = 11 : i64} {
  func.func @_mm_stats_kernel(%arg0: i32, %arg1: memref<32x1152xbf16, #tpu.memory_space<vmem>>, %arg2: memref<1152x128xbf16, #tpu.memory_space<vmem>>, %arg3: memref<32x128xbf16, #tpu.memory_space<vmem>>, %arg4: memref<1x1x128xf32, #tpu.memory_space<vmem>>, %arg5: memref<1x1x128xf32, #tpu.memory_space<vmem>>) attributes {dimension_semantics = [#tpu.dimension_semantics<parallel>], iteration_bounds = array<i64: 1>, scalar_prefetch = 0 : i64, scratch_operands = 0 : i64, tpu.core_type = #tpu.core_type<tc>, window_params = [{transform_indices = @transform_0, window_bounds = array<i64: 32, 1152>}, {pipeline_mode = #tpu.pipeline_mode<synchronous>, transform_indices = @transform_1, window_bounds = array<i64: 1152, 128>}, {transform_indices = @transform_2, window_bounds = array<i64: 32, 128>}, {transform_indices = @transform_3, window_bounds = array<i64: 1, 1, 128>}, {transform_indices = @transform_4, window_bounds = array<i64: 1, 1, 128>}]} {
    %c0 = arith.constant 0 : index
    %c0_0 = arith.constant 0 : index
    %0 = vector.load %arg1[%c0, %c0_0] : memref<32x1152xbf16, #tpu.memory_space<vmem>>, vector<32x1152xbf16>
    %c0_1 = arith.constant 0 : index
    %c0_2 = arith.constant 0 : index
    %1 = vector.load %arg2[%c0_1, %c0_2] : memref<1152x128xbf16, #tpu.memory_space<vmem>>, vector<1152x128xbf16>
    %cst = arith.constant dense<0.000000e+00> : vector<32x128xf32>
    %2 = tpu.matmul %0, %1, %cst {dimension_numbers = #tpu.dot_dimension_numbers<[1], [0], [0], [1], [0, 0, 1, 1], [], []>} : vector<32x1152xbf16>, vector<1152x128xbf16>, vector<32x128xf32> -> vector<32x128xf32>
    %cst_3 = arith.constant dense<0.000000e+00> : vector<128xf32>
    %3 = vector.multi_reduction <add>, %2, %cst_3 [0] : vector<32x128xf32> to vector<128xf32>
    %4 = vector.shape_cast %3 : vector<128xf32> to vector<1x128xf32>
    %c0_4 = arith.constant 0 : index
    %c0_5 = arith.constant 0 : index
    %c0_6 = arith.constant 0 : index
    %5 = vector.load %arg4[%c0_4, %c0_5, %c0_6] : memref<1x1x128xf32, #tpu.memory_space<vmem>>, vector<1x1x128xf32>
    %6 = vector.shape_cast %5 : vector<1x1x128xf32> to vector<1x128xf32>
    %7 = vector.shape_cast %4 : vector<1x128xf32> to vector<1x1x128xf32>
    tpu.vector_store %arg4[%c0_4, %c0_5, %c0_6], %7 {strides = array<i32>} : memref<1x1x128xf32, #tpu.memory_space<vmem>>, vector<1x1x128xf32>,
    %8 = arith.mulf %2, %2 : vector<32x128xf32>
    %cst_7 = arith.constant dense<0.000000e+00> : vector<128xf32>
    %9 = vector.multi_reduction <add>, %8, %cst_7 [0] : vector<32x128xf32> to vector<128xf32>
    %10 = vector.shape_cast %9 : vector<128xf32> to vector<1x128xf32>
    %c0_8 = arith.constant 0 : index
    %c0_9 = arith.constant 0 : index
    %c0_10 = arith.constant 0 : index
    %11 = vector.load %arg5[%c0_8, %c0_9, %c0_10] : memref<1x1x128xf32, #tpu.memory_space<vmem>>, vector<1x1x128xf32>
    %12 = vector.shape_cast %11 : vector<1x1x128xf32> to vector<1x128xf32>
    %13 = vector.shape_cast %10 : vector<1x128xf32> to vector<1x1x128xf32>
    tpu.vector_store %arg5[%c0_8, %c0_9, %c0_10], %13 {strides = array<i32>} : memref<1x1x128xf32, #tpu.memory_space<vmem>>, vector<1x1x128xf32>,
    %14 = arith.truncf %2 : vector<32x128xf32> to vector<32x128xbf16>
    %c0_11 = arith.constant 0 : index
    %c0_12 = arith.constant 0 : index
    %15 = vector.load %arg3[%c0_11, %c0_12] : memref<32x128xbf16, #tpu.memory_space<vmem>>, vector<32x128xbf16>
    tpu.vector_store %arg3[%c0_11, %c0_12], %14 {strides = array<i32>} : memref<32x128xbf16, #tpu.memory_space<vmem>>, vector<32x128xbf16>,
    return
  }
  func.func @transform_0(%arg0: i32) -> (i32, i32) {
    %c0_i32 = arith.constant 0 : i32
    %c0_i32_0 = arith.constant 0 : i32
    return %arg0, %c0_i32 : i32, i32
  }
  func.func @transform_1(%arg0: i32) -> (i32, i32) {
    %c0_i32 = arith.constant 0 : i32
    %c0_i32_0 = arith.constant 0 : i32
    %c0_i32_1 = arith.constant 0 : i32
    return %c0_i32, %c0_i32_0 : i32, i32
  }
  func.func @transform_2(%arg0: i32) -> (i32, i32) {
    %c0_i32 = arith.constant 0 : i32
    %c0_i32_0 = arith.constant 0 : i32
    return %arg0, %c0_i32 : i32, i32
  }
  func.func @transform_3(%arg0: i32) -> (i32, i32, i32) {
    %c0_i32 = arith.constant 0 : i32
    %c0_i32_0 = arith.constant 0 : i32
    %c0_i32_1 = arith.constant 0 : i32
    return %arg0, %c0_i32, %c0_i32_0 : i32, i32, i32
  }
  func.func @transform_4(%arg0: i32) -> (i32, i32, i32) {
    %c0_i32 = arith.constant 0 : i32
    %c0_i32_0 = arith.constant 0 : i32
    %c0_i32_1 = arith.constant 0 : i32
    return %arg0, %c0_i32, %c0_i32_0 : i32, i32, i32
  }
}

module attributes {stable_mosaic.version = 11 : i64} {
  func.func @_affine_kernel(%arg0: i32, %arg1: memref<8x256xbf16, #tpu.memory_space<vmem>>, %arg2: memref<1x256xf32, #tpu.memory_space<vmem>>, %arg3: memref<1x256xf32, #tpu.memory_space<vmem>>, %arg4: memref<8x256xbf16, #tpu.memory_space<vmem>>) attributes {dimension_semantics = [#tpu.dimension_semantics<parallel>], iteration_bounds = array<i64: 1>, scalar_prefetch = 0 : i64, scratch_operands = 0 : i64, tpu.core_type = #tpu.core_type<tc>, window_params = [{transform_indices = @transform_0, window_bounds = array<i64: 8, 256>}, {pipeline_mode = #tpu.pipeline_mode<synchronous>, transform_indices = @transform_1, window_bounds = array<i64: 1, 256>}, {pipeline_mode = #tpu.pipeline_mode<synchronous>, transform_indices = @transform_2, window_bounds = array<i64: 1, 256>}, {transform_indices = @transform_3, window_bounds = array<i64: 8, 256>}]} {
    %c0 = arith.constant 0 : index
    %c0_0 = arith.constant 0 : index
    %0 = vector.load %arg1[%c0, %c0_0] : memref<8x256xbf16, #tpu.memory_space<vmem>>, vector<8x256xbf16>
    %1 = arith.extf %0 : vector<8x256xbf16> to vector<8x256xf32>
    %c0_1 = arith.constant 0 : index
    %c0_2 = arith.constant 0 : index
    %2 = vector.load %arg2[%c0_1, %c0_2] : memref<1x256xf32, #tpu.memory_space<vmem>>, vector<1x256xf32>
    %3 = vector.broadcast %2 : vector<1x256xf32> to vector<8x256xf32>
    %4 = arith.mulf %1, %3 : vector<8x256xf32>
    %c0_3 = arith.constant 0 : index
    %c0_4 = arith.constant 0 : index
    %5 = vector.load %arg3[%c0_3, %c0_4] : memref<1x256xf32, #tpu.memory_space<vmem>>, vector<1x256xf32>
    %6 = vector.broadcast %5 : vector<1x256xf32> to vector<8x256xf32>
    %7 = arith.addf %4, %6 : vector<8x256xf32>
    %8 = arith.truncf %7 : vector<8x256xf32> to vector<8x256xbf16>
    %c0_5 = arith.constant 0 : index
    %c0_6 = arith.constant 0 : index
    %9 = vector.load %arg4[%c0_5, %c0_6] : memref<8x256xbf16, #tpu.memory_space<vmem>>, vector<8x256xbf16>
    tpu.vector_store %arg4[%c0_5, %c0_6], %8 {strides = array<i32>} : memref<8x256xbf16, #tpu.memory_space<vmem>>, vector<8x256xbf16>,
    return
  }
  func.func @transform_0(%arg0: i32) -> (i32, i32) {
    %c0_i32 = arith.constant 0 : i32
    %c0_i32_0 = arith.constant 0 : i32
    return %arg0, %c0_i32 : i32, i32
  }
  func.func @transform_1(%arg0: i32) -> (i32, i32) {
    %c0_i32 = arith.constant 0 : i32
    %c0_i32_0 = arith.constant 0 : i32
    %c0_i32_1 = arith.constant 0 : i32
    return %c0_i32, %c0_i32_0 : i32, i32
  }
  func.func @transform_2(%arg0: i32) -> (i32, i32) {
    %c0_i32 = arith.constant 0 : i32
    %c0_i32_0 = arith.constant 0 : i32
    %c0_i32_1 = arith.constant 0 : i32
    return %c0_i32, %c0_i32_0 : i32, i32
  }
  func.func @transform_3(%arg0: i32) -> (i32, i32) {
    %c0_i32 = arith.constant 0 : i32
    %c0_i32_0 = arith.constant 0 : i32
    return %arg0, %c0_i32 : i32, i32
  }
}

module attributes {stable_mosaic.version = 11 : i64} {
  func.func @_mm_stats_kernel(%arg0: i32, %arg1: memref<8x1152xbf16, #tpu.memory_space<vmem>>, %arg2: memref<1152x256xbf16, #tpu.memory_space<vmem>>, %arg3: memref<8x256xbf16, #tpu.memory_space<vmem>>, %arg4: memref<1x1x256xf32, #tpu.memory_space<vmem>>, %arg5: memref<1x1x256xf32, #tpu.memory_space<vmem>>) attributes {dimension_semantics = [#tpu.dimension_semantics<parallel>], iteration_bounds = array<i64: 1>, scalar_prefetch = 0 : i64, scratch_operands = 0 : i64, tpu.core_type = #tpu.core_type<tc>, window_params = [{transform_indices = @transform_0, window_bounds = array<i64: 8, 1152>}, {pipeline_mode = #tpu.pipeline_mode<synchronous>, transform_indices = @transform_1, window_bounds = array<i64: 1152, 256>}, {transform_indices = @transform_2, window_bounds = array<i64: 8, 256>}, {transform_indices = @transform_3, window_bounds = array<i64: 1, 1, 256>}, {transform_indices = @transform_4, window_bounds = array<i64: 1, 1, 256>}]} {
    %c0 = arith.constant 0 : index
    %c0_0 = arith.constant 0 : index
    %0 = vector.load %arg1[%c0, %c0_0] : memref<8x1152xbf16, #tpu.memory_space<vmem>>, vector<8x1152xbf16>
    %c0_1 = arith.constant 0 : index
    %c0_2 = arith.constant 0 : index
    %1 = vector.load %arg2[%c0_1, %c0_2] : memref<1152x256xbf16, #tpu.memory_space<vmem>>, vector<1152x256xbf16>
    %cst = arith.constant dense<0.000000e+00> : vector<8x256xf32>
    %2 = tpu.matmul %0, %1, %cst {dimension_numbers = #tpu.dot_dimension_numbers<[1], [0], [0], [1], [0, 0, 1, 1], [], []>} : vector<8x1152xbf16>, vector<1152x256xbf16>, vector<8x256xf32> -> vector<8x256xf32>
    %cst_3 = arith.constant dense<0.000000e+00> : vector<256xf32>
    %3 = vector.multi_reduction <add>, %2, %cst_3 [0] : vector<8x256xf32> to vector<256xf32>
    %4 = vector.shape_cast %3 : vector<256xf32> to vector<1x256xf32>
    %c0_4 = arith.constant 0 : index
    %c0_5 = arith.constant 0 : index
    %c0_6 = arith.constant 0 : index
    %5 = vector.load %arg4[%c0_4, %c0_5, %c0_6] : memref<1x1x256xf32, #tpu.memory_space<vmem>>, vector<1x1x256xf32>
    %6 = vector.shape_cast %5 : vector<1x1x256xf32> to vector<1x256xf32>
    %7 = vector.shape_cast %4 : vector<1x256xf32> to vector<1x1x256xf32>
    tpu.vector_store %arg4[%c0_4, %c0_5, %c0_6], %7 {strides = array<i32>} : memref<1x1x256xf32, #tpu.memory_space<vmem>>, vector<1x1x256xf32>,
    %8 = arith.mulf %2, %2 : vector<8x256xf32>
    %cst_7 = arith.constant dense<0.000000e+00> : vector<256xf32>
    %9 = vector.multi_reduction <add>, %8, %cst_7 [0] : vector<8x256xf32> to vector<256xf32>
    %10 = vector.shape_cast %9 : vector<256xf32> to vector<1x256xf32>
    %c0_8 = arith.constant 0 : index
    %c0_9 = arith.constant 0 : index
    %c0_10 = arith.constant 0 : index
    %11 = vector.load %arg5[%c0_8, %c0_9, %c0_10] : memref<1x1x256xf32, #tpu.memory_space<vmem>>, vector<1x1x256xf32>
    %12 = vector.shape_cast %11 : vector<1x1x256xf32> to vector<1x256xf32>
    %13 = vector.shape_cast %10 : vector<1x256xf32> to vector<1x1x256xf32>
    tpu.vector_store %arg5[%c0_8, %c0_9, %c0_10], %13 {strides = array<i32>} : memref<1x1x256xf32, #tpu.memory_space<vmem>>, vector<1x1x256xf32>,
    %14 = arith.truncf %2 : vector<8x256xf32> to vector<8x256xbf16>
    %c0_11 = arith.constant 0 : index
    %c0_12 = arith.constant 0 : index
    %15 = vector.load %arg3[%c0_11, %c0_12] : memref<8x256xbf16, #tpu.memory_space<vmem>>, vector<8x256xbf16>
    tpu.vector_store %arg3[%c0_11, %c0_12], %14 {strides = array<i32>} : memref<8x256xbf16, #tpu.memory_space<vmem>>, vector<8x256xbf16>,
    return
  }
  func.func @transform_0(%arg0: i32) -> (i32, i32) {
    %c0_i32 = arith.constant 0 : i32
    %c0_i32_0 = arith.constant 0 : i32
    return %arg0, %c0_i32 : i32, i32
  }
  func.func @transform_1(%arg0: i32) -> (i32, i32) {
    %c0_i32 = arith.constant 0 : i32
    %c0_i32_0 = arith.constant 0 : i32
    %c0_i32_1 = arith.constant 0 : i32
    return %c0_i32, %c0_i32_0 : i32, i32
  }
  func.func @transform_2(%arg0: i32) -> (i32, i32) {
    %c0_i32 = arith.constant 0 : i32
    %c0_i32_0 = arith.constant 0 : i32
    return %arg0, %c0_i32 : i32, i32
  }
  func.func @transform_3(%arg0: i32) -> (i32, i32, i32) {
    %c0_i32 = arith.constant 0 : i32
    %c0_i32_0 = arith.constant 0 : i32
    %c0_i32_1 = arith.constant 0 : i32
    return %arg0, %c0_i32, %c0_i32_0 : i32, i32, i32
  }
  func.func @transform_4(%arg0: i32) -> (i32, i32, i32) {
    %c0_i32 = arith.constant 0 : i32
    %c0_i32_0 = arith.constant 0 : i32
    %c0_i32_1 = arith.constant 0 : i32
    return %arg0, %c0_i32, %c0_i32_0 : i32, i32, i32
  }
}

module attributes {stable_mosaic.version = 11 : i64} {
  func.func @_affine_kernel(%arg0: i32, %arg1: memref<8x256xbf16, #tpu.memory_space<vmem>>, %arg2: memref<1x256xf32, #tpu.memory_space<vmem>>, %arg3: memref<1x256xf32, #tpu.memory_space<vmem>>, %arg4: memref<8x256xbf16, #tpu.memory_space<vmem>>) attributes {dimension_semantics = [#tpu.dimension_semantics<parallel>], iteration_bounds = array<i64: 1>, scalar_prefetch = 0 : i64, scratch_operands = 0 : i64, tpu.core_type = #tpu.core_type<tc>, window_params = [{transform_indices = @transform_0, window_bounds = array<i64: 8, 256>}, {pipeline_mode = #tpu.pipeline_mode<synchronous>, transform_indices = @transform_1, window_bounds = array<i64: 1, 256>}, {pipeline_mode = #tpu.pipeline_mode<synchronous>, transform_indices = @transform_2, window_bounds = array<i64: 1, 256>}, {transform_indices = @transform_3, window_bounds = array<i64: 8, 256>}]} {
    %c0 = arith.constant 0 : index
    %c0_0 = arith.constant 0 : index
    %0 = vector.load %arg1[%c0, %c0_0] : memref<8x256xbf16, #tpu.memory_space<vmem>>, vector<8x256xbf16>
    %1 = arith.extf %0 : vector<8x256xbf16> to vector<8x256xf32>
    %c0_1 = arith.constant 0 : index
    %c0_2 = arith.constant 0 : index
    %2 = vector.load %arg2[%c0_1, %c0_2] : memref<1x256xf32, #tpu.memory_space<vmem>>, vector<1x256xf32>
    %3 = vector.broadcast %2 : vector<1x256xf32> to vector<8x256xf32>
    %4 = arith.mulf %1, %3 : vector<8x256xf32>
    %c0_3 = arith.constant 0 : index
    %c0_4 = arith.constant 0 : index
    %5 = vector.load %arg3[%c0_3, %c0_4] : memref<1x256xf32, #tpu.memory_space<vmem>>, vector<1x256xf32>
    %6 = vector.broadcast %5 : vector<1x256xf32> to vector<8x256xf32>
    %7 = arith.addf %4, %6 : vector<8x256xf32>
    %cst = arith.constant 0.000000e+00 : f32
    %8 = vector.broadcast %cst : f32 to vector<8x256xf32>
    %9 = arith.maximumf %7, %8 : vector<8x256xf32>
    %10 = arith.truncf %9 : vector<8x256xf32> to vector<8x256xbf16>
    %c0_5 = arith.constant 0 : index
    %c0_6 = arith.constant 0 : index
    %11 = vector.load %arg4[%c0_5, %c0_6] : memref<8x256xbf16, #tpu.memory_space<vmem>>, vector<8x256xbf16>
    tpu.vector_store %arg4[%c0_5, %c0_6], %10 {strides = array<i32>} : memref<8x256xbf16, #tpu.memory_space<vmem>>, vector<8x256xbf16>,
    return
  }
  func.func @transform_0(%arg0: i32) -> (i32, i32) {
    %c0_i32 = arith.constant 0 : i32
    %c0_i32_0 = arith.constant 0 : i32
    return %arg0, %c0_i32 : i32, i32
  }
  func.func @transform_1(%arg0: i32) -> (i32, i32) {
    %c0_i32 = arith.constant 0 : i32
    %c0_i32_0 = arith.constant 0 : i32
    %c0_i32_1 = arith.constant 0 : i32
    return %c0_i32, %c0_i32_0 : i32, i32
  }
  func.func @transform_2(%arg0: i32) -> (i32, i32) {
    %c0_i32 = arith.constant 0 : i32
    %c0_i32_0 = arith.constant 0 : i32
    %c0_i32_1 = arith.constant 0 : i32
    return %c0_i32, %c0_i32_0 : i32, i32
  }
  func.func @transform_3(%arg0: i32) -> (i32, i32) {
    %c0_i32 = arith.constant 0 : i32
    %c0_i32_0 = arith.constant 0 : i32
    return %arg0, %c0_i32 : i32, i32
  }
}

module attributes {stable_mosaic.version = 11 : i64} {
  func.func @_affine_add_kernel(%arg0: i32, %arg1: memref<8x256xbf16, #tpu.memory_space<vmem>>, %arg2: memref<8x256xbf16, #tpu.memory_space<vmem>>, %arg3: memref<1x256xf32, #tpu.memory_space<vmem>>, %arg4: memref<1x256xf32, #tpu.memory_space<vmem>>, %arg5: memref<8x256xbf16, #tpu.memory_space<vmem>>) attributes {dimension_semantics = [#tpu.dimension_semantics<parallel>], iteration_bounds = array<i64: 1>, scalar_prefetch = 0 : i64, scratch_operands = 0 : i64, tpu.core_type = #tpu.core_type<tc>, window_params = [{transform_indices = @transform_0, window_bounds = array<i64: 8, 256>}, {transform_indices = @transform_1, window_bounds = array<i64: 8, 256>}, {pipeline_mode = #tpu.pipeline_mode<synchronous>, transform_indices = @transform_2, window_bounds = array<i64: 1, 256>}, {pipeline_mode = #tpu.pipeline_mode<synchronous>, transform_indices = @transform_3, window_bounds = array<i64: 1, 256>}, {transform_indices = @transform_4, window_bounds = array<i64: 8, 256>}]} {
    %c0 = arith.constant 0 : index
    %c0_0 = arith.constant 0 : index
    %0 = vector.load %arg1[%c0, %c0_0] : memref<8x256xbf16, #tpu.memory_space<vmem>>, vector<8x256xbf16>
    %1 = arith.extf %0 : vector<8x256xbf16> to vector<8x256xf32>
    %c0_1 = arith.constant 0 : index
    %c0_2 = arith.constant 0 : index
    %2 = vector.load %arg3[%c0_1, %c0_2] : memref<1x256xf32, #tpu.memory_space<vmem>>, vector<1x256xf32>
    %3 = vector.broadcast %2 : vector<1x256xf32> to vector<8x256xf32>
    %4 = arith.mulf %1, %3 : vector<8x256xf32>
    %c0_3 = arith.constant 0 : index
    %c0_4 = arith.constant 0 : index
    %5 = vector.load %arg4[%c0_3, %c0_4] : memref<1x256xf32, #tpu.memory_space<vmem>>, vector<1x256xf32>
    %6 = vector.broadcast %5 : vector<1x256xf32> to vector<8x256xf32>
    %7 = arith.addf %4, %6 : vector<8x256xf32>
    %c0_5 = arith.constant 0 : index
    %c0_6 = arith.constant 0 : index
    %8 = vector.load %arg2[%c0_5, %c0_6] : memref<8x256xbf16, #tpu.memory_space<vmem>>, vector<8x256xbf16>
    %9 = arith.extf %8 : vector<8x256xbf16> to vector<8x256xf32>
    %10 = arith.addf %7, %9 : vector<8x256xf32>
    %cst = arith.constant 0.000000e+00 : f32
    %11 = vector.broadcast %cst : f32 to vector<8x256xf32>
    %12 = arith.maximumf %10, %11 : vector<8x256xf32>
    %13 = arith.truncf %12 : vector<8x256xf32> to vector<8x256xbf16>
    %c0_7 = arith.constant 0 : index
    %c0_8 = arith.constant 0 : index
    %14 = vector.load %arg5[%c0_7, %c0_8] : memref<8x256xbf16, #tpu.memory_space<vmem>>, vector<8x256xbf16>
    tpu.vector_store %arg5[%c0_7, %c0_8], %13 {strides = array<i32>} : memref<8x256xbf16, #tpu.memory_space<vmem>>, vector<8x256xbf16>,
    return
  }
  func.func @transform_0(%arg0: i32) -> (i32, i32) {
    %c0_i32 = arith.constant 0 : i32
    %c0_i32_0 = arith.constant 0 : i32
    return %arg0, %c0_i32 : i32, i32
  }
  func.func @transform_1(%arg0: i32) -> (i32, i32) {
    %c0_i32 = arith.constant 0 : i32
    %c0_i32_0 = arith.constant 0 : i32
    return %arg0, %c0_i32 : i32, i32
  }
  func.func @transform_2(%arg0: i32) -> (i32, i32) {
    %c0_i32 = arith.constant 0 : i32
    %c0_i32_0 = arith.constant 0 : i32
    %c0_i32_1 = arith.constant 0 : i32
    return %c0_i32, %c0_i32_0 : i32, i32
  }
  func.func @transform_3(%arg0: i32) -> (i32, i32) {
    %c0_i32 = arith.constant 0 : i32
    %c0_i32_0 = arith.constant 0 : i32
    %c0_i32_1 = arith.constant 0 : i32
    return %c0_i32, %c0_i32_0 : i32, i32
  }
  func.func @transform_4(%arg0: i32) -> (i32, i32) {
    %c0_i32 = arith.constant 0 : i32
    %c0_i32_0 = arith.constant 0 : i32
    return %arg0, %c0_i32 : i32, i32
  }
}

module attributes {stable_mosaic.version = 11 : i64} {
  func.func @_mm_stats_kernel(%arg0: i32, %arg1: memref<8x2304xbf16, #tpu.memory_space<vmem>>, %arg2: memref<2304x256xbf16, #tpu.memory_space<vmem>>, %arg3: memref<8x256xbf16, #tpu.memory_space<vmem>>, %arg4: memref<1x1x256xf32, #tpu.memory_space<vmem>>, %arg5: memref<1x1x256xf32, #tpu.memory_space<vmem>>) attributes {dimension_semantics = [#tpu.dimension_semantics<parallel>], iteration_bounds = array<i64: 1>, scalar_prefetch = 0 : i64, scratch_operands = 0 : i64, tpu.core_type = #tpu.core_type<tc>, window_params = [{transform_indices = @transform_0, window_bounds = array<i64: 8, 2304>}, {pipeline_mode = #tpu.pipeline_mode<synchronous>, transform_indices = @transform_1, window_bounds = array<i64: 2304, 256>}, {transform_indices = @transform_2, window_bounds = array<i64: 8, 256>}, {transform_indices = @transform_3, window_bounds = array<i64: 1, 1, 256>}, {transform_indices = @transform_4, window_bounds = array<i64: 1, 1, 256>}]} {
    %c0 = arith.constant 0 : index
    %c0_0 = arith.constant 0 : index
    %0 = vector.load %arg1[%c0, %c0_0] : memref<8x2304xbf16, #tpu.memory_space<vmem>>, vector<8x2304xbf16>
    %c0_1 = arith.constant 0 : index
    %c0_2 = arith.constant 0 : index
    %1 = vector.load %arg2[%c0_1, %c0_2] : memref<2304x256xbf16, #tpu.memory_space<vmem>>, vector<2304x256xbf16>
    %cst = arith.constant dense<0.000000e+00> : vector<8x256xf32>
    %2 = tpu.matmul %0, %1, %cst {dimension_numbers = #tpu.dot_dimension_numbers<[1], [0], [0], [1], [0, 0, 1, 1], [], []>} : vector<8x2304xbf16>, vector<2304x256xbf16>, vector<8x256xf32> -> vector<8x256xf32>
    %cst_3 = arith.constant dense<0.000000e+00> : vector<256xf32>
    %3 = vector.multi_reduction <add>, %2, %cst_3 [0] : vector<8x256xf32> to vector<256xf32>
    %4 = vector.shape_cast %3 : vector<256xf32> to vector<1x256xf32>
    %c0_4 = arith.constant 0 : index
    %c0_5 = arith.constant 0 : index
    %c0_6 = arith.constant 0 : index
    %5 = vector.load %arg4[%c0_4, %c0_5, %c0_6] : memref<1x1x256xf32, #tpu.memory_space<vmem>>, vector<1x1x256xf32>
    %6 = vector.shape_cast %5 : vector<1x1x256xf32> to vector<1x256xf32>
    %7 = vector.shape_cast %4 : vector<1x256xf32> to vector<1x1x256xf32>
    tpu.vector_store %arg4[%c0_4, %c0_5, %c0_6], %7 {strides = array<i32>} : memref<1x1x256xf32, #tpu.memory_space<vmem>>, vector<1x1x256xf32>,
    %8 = arith.mulf %2, %2 : vector<8x256xf32>
    %cst_7 = arith.constant dense<0.000000e+00> : vector<256xf32>
    %9 = vector.multi_reduction <add>, %8, %cst_7 [0] : vector<8x256xf32> to vector<256xf32>
    %10 = vector.shape_cast %9 : vector<256xf32> to vector<1x256xf32>
    %c0_8 = arith.constant 0 : index
    %c0_9 = arith.constant 0 : index
    %c0_10 = arith.constant 0 : index
    %11 = vector.load %arg5[%c0_8, %c0_9, %c0_10] : memref<1x1x256xf32, #tpu.memory_space<vmem>>, vector<1x1x256xf32>
    %12 = vector.shape_cast %11 : vector<1x1x256xf32> to vector<1x256xf32>
    %13 = vector.shape_cast %10 : vector<1x256xf32> to vector<1x1x256xf32>
    tpu.vector_store %arg5[%c0_8, %c0_9, %c0_10], %13 {strides = array<i32>} : memref<1x1x256xf32, #tpu.memory_space<vmem>>, vector<1x1x256xf32>,
    %14 = arith.truncf %2 : vector<8x256xf32> to vector<8x256xbf16>
    %c0_11 = arith.constant 0 : index
    %c0_12 = arith.constant 0 : index
    %15 = vector.load %arg3[%c0_11, %c0_12] : memref<8x256xbf16, #tpu.memory_space<vmem>>, vector<8x256xbf16>
    tpu.vector_store %arg3[%c0_11, %c0_12], %14 {strides = array<i32>} : memref<8x256xbf16, #tpu.memory_space<vmem>>, vector<8x256xbf16>,
    return
  }
  func.func @transform_0(%arg0: i32) -> (i32, i32) {
    %c0_i32 = arith.constant 0 : i32
    %c0_i32_0 = arith.constant 0 : i32
    return %arg0, %c0_i32 : i32, i32
  }
  func.func @transform_1(%arg0: i32) -> (i32, i32) {
    %c0_i32 = arith.constant 0 : i32
    %c0_i32_0 = arith.constant 0 : i32
    %c0_i32_1 = arith.constant 0 : i32
    return %c0_i32, %c0_i32_0 : i32, i32
  }
  func.func @transform_2(%arg0: i32) -> (i32, i32) {
    %c0_i32 = arith.constant 0 : i32
    %c0_i32_0 = arith.constant 0 : i32
    return %arg0, %c0_i32 : i32, i32
  }
  func.func @transform_3(%arg0: i32) -> (i32, i32, i32) {
    %c0_i32 = arith.constant 0 : i32
    %c0_i32_0 = arith.constant 0 : i32
    %c0_i32_1 = arith.constant 0 : i32
    return %arg0, %c0_i32, %c0_i32_0 : i32, i32, i32
  }
  func.func @transform_4(%arg0: i32) -> (i32, i32, i32) {
    %c0_i32 = arith.constant 0 : i32
    %c0_i32_0 = arith.constant 0 : i32
    %c0_i32_1 = arith.constant 0 : i32
    return %arg0, %c0_i32, %c0_i32_0 : i32, i32, i32
  }
}

module attributes {stable_mosaic.version = 11 : i64} {
  func.func @_affine_kernel(%arg0: i32, %arg1: memref<8x256xbf16, #tpu.memory_space<vmem>>, %arg2: memref<1x256xf32, #tpu.memory_space<vmem>>, %arg3: memref<1x256xf32, #tpu.memory_space<vmem>>, %arg4: memref<8x256xf32, #tpu.memory_space<vmem>>) attributes {dimension_semantics = [#tpu.dimension_semantics<parallel>], iteration_bounds = array<i64: 1>, scalar_prefetch = 0 : i64, scratch_operands = 0 : i64, tpu.core_type = #tpu.core_type<tc>, window_params = [{transform_indices = @transform_0, window_bounds = array<i64: 8, 256>}, {pipeline_mode = #tpu.pipeline_mode<synchronous>, transform_indices = @transform_1, window_bounds = array<i64: 1, 256>}, {pipeline_mode = #tpu.pipeline_mode<synchronous>, transform_indices = @transform_2, window_bounds = array<i64: 1, 256>}, {transform_indices = @transform_3, window_bounds = array<i64: 8, 256>}]} {
    %c0 = arith.constant 0 : index
    %c0_0 = arith.constant 0 : index
    %0 = vector.load %arg1[%c0, %c0_0] : memref<8x256xbf16, #tpu.memory_space<vmem>>, vector<8x256xbf16>
    %1 = arith.extf %0 : vector<8x256xbf16> to vector<8x256xf32>
    %c0_1 = arith.constant 0 : index
    %c0_2 = arith.constant 0 : index
    %2 = vector.load %arg2[%c0_1, %c0_2] : memref<1x256xf32, #tpu.memory_space<vmem>>, vector<1x256xf32>
    %3 = vector.broadcast %2 : vector<1x256xf32> to vector<8x256xf32>
    %4 = arith.mulf %1, %3 : vector<8x256xf32>
    %c0_3 = arith.constant 0 : index
    %c0_4 = arith.constant 0 : index
    %5 = vector.load %arg3[%c0_3, %c0_4] : memref<1x256xf32, #tpu.memory_space<vmem>>, vector<1x256xf32>
    %6 = vector.broadcast %5 : vector<1x256xf32> to vector<8x256xf32>
    %7 = arith.addf %4, %6 : vector<8x256xf32>
    %cst = arith.constant 0.000000e+00 : f32
    %8 = vector.broadcast %cst : f32 to vector<8x256xf32>
    %9 = arith.maximumf %7, %8 : vector<8x256xf32>
    %c0_5 = arith.constant 0 : index
    %c0_6 = arith.constant 0 : index
    %10 = vector.load %arg4[%c0_5, %c0_6] : memref<8x256xf32, #tpu.memory_space<vmem>>, vector<8x256xf32>
    tpu.vector_store %arg4[%c0_5, %c0_6], %9 {strides = array<i32>} : memref<8x256xf32, #tpu.memory_space<vmem>>, vector<8x256xf32>,
    return
  }
  func.func @transform_0(%arg0: i32) -> (i32, i32) {
    %c0_i32 = arith.constant 0 : i32
    %c0_i32_0 = arith.constant 0 : i32
    return %arg0, %c0_i32 : i32, i32
  }
  func.func @transform_1(%arg0: i32) -> (i32, i32) {
    %c0_i32 = arith.constant 0 : i32
    %c0_i32_0 = arith.constant 0 : i32
    %c0_i32_1 = arith.constant 0 : i32
    return %c0_i32, %c0_i32_0 : i32, i32
  }
  func.func @transform_2(%arg0: i32) -> (i32, i32) {
    %c0_i32 = arith.constant 0 : i32
    %c0_i32_0 = arith.constant 0 : i32
    %c0_i32_1 = arith.constant 0 : i32
    return %c0_i32, %c0_i32_0 : i32, i32
  }
  func.func @transform_3(%arg0: i32) -> (i32, i32) {
    %c0_i32 = arith.constant 0 : i32
    %c0_i32_0 = arith.constant 0 : i32
    return %arg0, %c0_i32 : i32, i32
  }
}

</mosaic_0001>

<bundles_post_ra>
// kernel: tile.47
= control target key start
LH: loop header
LB: loop body
LE: loop exit
PB: predicated region body
PF: predicated region fallthrough
CT: control target
= control target key end

     0   :  { %s22_s0 = inlined_call_operand.vmem [shape: f32[32], index: 0, kind: input, shape index: {}]   ;;  %s23_s1 = inlined_call_operand.vmem [shape: f32[4,32], index: 1, kind: output, shape index: {}]  }
   0x1   :  { %v4_v0 = vld [vmem:[%s22_s0] ss:$0 sm:$0xff] }
   0x2   :  { %5 = vst [vmem:[%s23_s1] sm:$0xf] %v4_v0 }

// kernel: tile.49
= control target key start
LH: loop header
LB: loop body
LE: loop exit
PB: predicated region body
PF: predicated region fallthrough
CT: control target
= control target key end

     0   :  { %vm8_vm0 = vcmask 261120   ;;  %s40_s8 = smov 32   ;;  %s41_s9 = smov 64   ;;  %vm14_vm1 = vcmask 1048320   ;;  %vm20_vm2 = vcmask 785920   ;;  %vm26_vm3 = vcmask 523520   ;;  %s58_s0 = inlined_call_operand.vmem [shape: f32[4,32], index: 0, kind: input, shape index: {}]   ;;  %s59_s1 = inlined_call_operand.vmem [shape: f32[1,128], index: 1, kind: output, shape index: {}]  }
   0x1   :  { %v5_v0 = vld [vmem:[%s58_s0] sm:$0xf]  ;;  %s39_s0 = smov 96  }
   0x2   :  { %6 = vst [vmem:[#allocation1] sm:$0xf] %v5_v0 }
   0x9   :  { %v11_v1 = vld [vmem:[#allocation1 + $0x3] sm:$0x1]   ;;  %v23_v2 = vld [vmem:[#allocation1 + $0x1] sm:$0x1]   ;;  %v7_v3 = vld [vmem:[#allocation1] sm:$0x1]  }
   0xa   :  { %12 = vrot.lane.b32.xlu0 %v11_v1, %s39_s0  ;;  %24 = vrot.lane.b32.xlu1 %v23_v2, %s40_s8  ;;  %v17_v4 = vld [vmem:[#allocation1 + $0x2] sm:$0x1]   ;;  %9 = vst.msk [vmem:[#allocation0] sm:$0x1] %vm8_vm0, %v7_v3  }
   0xe   :  { %18 = vrot.lane.b32.xlu0 %v17_v4, %s41_s9 }
  0x7c   :  { %v13_v5 = vpop.permute.xlu0 %12   ;;  %v25_v6 = vpop.permute.xlu1 %24  }
  0x7d   :  { %15 = vst.msk [vmem:[#allocation0] sm:$0x1] %vm14_vm1, %v13_v5  }
  0x80   :  { %v19_v7 = vpop.permute.xlu0 %18  }
  0x81   :  { %21 = vst.msk [vmem:[#allocation0] sm:$0x1] %vm20_vm2, %v19_v7  }
  0x82   :  { %27 = vst.msk [vmem:[#allocation0] sm:$0x1] %vm26_vm3, %v25_v6  }
  0x89   :  { %v32_v8 = vld [vmem:[#allocation0] sm:$0x1] }
  0x8a   :  { %35 = vst [vmem:[%s59_s1] sm:$0x1] %v32_v8 }

// kernel: _lambda_.22
= control target key start
LH: loop header
LB: loop body
LE: loop exit
PB: predicated region body
PF: predicated region fallthrough
CT: control target
= control target key end

     0   :  { %s423_s12 = smov 0   ;;  %s449_s0 = inlined_call_operand.vmem [shape: bf16[128,128], index: 0, kind: input, shape index: {}]   ;;  %s450_s1 = inlined_call_operand.vmem [shape: f32[1,128], index: 1, kind: input, shape index: {}]   ;;  %s451_s2 = inlined_call_operand.vmem [shape: f32[1,128], index: 2, kind: input, shape index: {}]   ;;  %s452_s3 = inlined_call_operand.vmem [shape: bf16[128,128], index: 3, kind: output, shape index: {}]  }
   0x1 LB: > { %s316_s13 = sadd.s32 4294967295, %s401_s12   ;;  %p320_p0 = scmp.ge.s32.totalorder %s401_s12, 1  ;;  %s401_s12 = sphi %s423_s12, %s13_s12  }
   0x2   : > { %p138_p1 = scmp.lt.s32.totalorder %s401_s12, 3 }
   0x4   : > { %p139_p2 = pnand %p320_p0, %p138_p1 }
   0x5   : > { %s321_s14 = sshll.u32 (!%p139_p2), %s316_s13, 3 }
   0x6   : > { %142 = sbr.rel (%p139_p2) target bundleno = 25 (0x19), region = 32  ;;  %p163_p3 = scmp.lt.s32.totalorder (!%p139_p2), %s321_s14, 15 }
   0xb   : > { %s454_s14 = smov (!%p163_p3, %s321_s14), 15  ;;  %v325_v0 = vld [vmem:[%s450_s1] ss:$0 sm:$0xff] }
   0xc   : > { %s322_s15 = sshll.u32 %s454_s14, 2  ;;  %v326_v9 = vld [vmem:[%s451_s2] ss:$0 sm:$0xff] }
   0xd   : > { %s166_s18 = scalar_lea.vmem %s449_s0, %s322_s15  ;;  %s172_s25 = scalar_lea.vmem %s452_s3, %s322_s15 }
   0xe   : > { %v346_v1 = vld [vmem:[%s166_s18] sm:$0xff]   ;;  %v381_v2 = vld [vmem:[%s166_s18 + $0x8] sm:$0xff]   ;;  %v382_v3 = vld [vmem:[%s166_s18 + $0x10] sm:$0xff]  }
   0xf   : > { %v347_v4 = vunpack.c.l.bf16 %v346_v1  ;;  %v348_v5 = vunpack.c.h.bf16 %v346_v1  ;;  %v351_v6 = vunpack.c.l.bf16 %v381_v2  ;;  %v352_v7 = vunpack.c.h.bf16 %v381_v2  ;;  %v383_v8 = vld [vmem:[%s166_s18 + $0x18] sm:$0xff]  }
  0x10   : > { %v355_v10 = vunpack.c.l.bf16 %v382_v3  ;;  %v356_v11 = vunpack.c.h.bf16 %v382_v3  ;;  %v359_v12 = vunpack.c.l.bf16 %v383_v8  ;;  %v360_v13 = vunpack.c.h.bf16 %v383_v8 }
  0x11   : > { %v197_v14 = vmul.f32 %v347_v4, %v325_v0  ;;  %v198_v15 = vmul.f32 %v348_v5, %v325_v0  ;;  %v199_v16 = vmul.f32 %v351_v6, %v325_v0  ;;  %v200_v17 = vmul.f32 %v352_v7, %v325_v0 }
  0x12   : > { %v201_v18 = vmul.f32 %v355_v10, %v325_v0  ;;  %v202_v19 = vmul.f32 %v356_v11, %v325_v0  ;;  %v203_v20 = vmul.f32 %v359_v12, %v325_v0  ;;  %v204_v21 = vmul.f32 %v360_v13, %v325_v0 }
  0x13   : > { %v212_v22 = vadd.f32 %v326_v9, %v197_v14  ;;  %v213_v23 = vadd.f32 %v326_v9, %v198_v15  ;;  %v214_v24 = vadd.f32 %v326_v9, %v199_v16  ;;  %v215_v25 = vadd.f32 %v326_v9, %v200_v17 }
  0x14   : > { %v216_v26 = vadd.f32 %v326_v9, %v201_v18  ;;  %v217_v27 = vadd.f32 %v326_v9, %v202_v19  ;;  %v218_v28 = vadd.f32 %v326_v9, %v203_v20  ;;  %v219_v29 = vadd.f32 %v326_v9, %v204_v21 }
  0x15   : > { %v364_v30 = vpack.c.bf16 %v213_v23, %v212_v22  ;;  %v369_v31 = vpack.c.bf16 %v215_v25, %v214_v24 }
  0x16   : > { %v374_v32 = vpack.c.bf16 %v217_v27, %v216_v26  ;;  %v379_v33 = vpack.c.bf16 %v219_v29, %v218_v28 }
  0x17   : > { %365 = vst [vmem:[%s172_s25] sm:$0xff] %v364_v30   ;;  %384 = vst [vmem:[%s172_s25 + $0x8] sm:$0xff] %v369_v31  }
  0x18   : > { %385 = vst [vmem:[%s172_s25 + $0x10] sm:$0xff] %v374_v32   ;;  %386 = vst [vmem:[%s172_s25 + $0x18] sm:$0xff] %v379_v33  }
  0x19 PF: > { %s13_s12 = sadd.s32 1, %s401_s12  }
  0x1a   : > { %p10_p4 = scmp.ge.s32.totalorder %s13_s12, 4  }
  0x1c   :  { %12 = sbr.rel (!%p10_p4) target bundleno = 1 (0x1), region = 62 }

// kernel: tile.57
= control target key start
LH: loop header
LB: loop body
LE: loop exit
PB: predicated region body
PF: predicated region fallthrough
CT: control target
= control target key end

     0   :  { %s22_s0 = inlined_call_operand.vmem [shape: f32[64], index: 0, kind: input, shape index: {}]   ;;  %s23_s1 = inlined_call_operand.vmem [shape: f32[2,64], index: 1, kind: output, shape index: {}]  }
   0x1   :  { %v4_v0 = vld [vmem:[%s22_s0] ss:$0 sm:$0xff] }
   0x2   :  { %5 = vst [vmem:[%s23_s1] sm:$0x3] %v4_v0 }

// kernel: tile.59
= control target key start
LH: loop header
LB: loop body
LE: loop exit
PB: predicated region body
PF: predicated region fallthrough
CT: control target
= control target key end

     0   :  { %vm8_vm0 = vcmask 523264   ;;  %vm14_vm1 = vcmask 1048064   ;;  %s42_s0 = inlined_call_operand.vmem [shape: f32[2,64], index: 0, kind: input, shape index: {}]   ;;  %s43_s1 = inlined_call_operand.vmem [shape: f32[1,128], index: 1, kind: output, shape index: {}]  }
   0x1   :  { %v5_v0 = vld [vmem:[%s42_s0] sm:$0x3]  ;;  %s25_s0 = smov 64  }
   0x2   :  { %6 = vst [vmem:[#allocation1] sm:$0x3] %v5_v0 }
   0x9   :  { %v11_v1 = vld [vmem:[#allocation1 + $0x1] sm:$0x1]   ;;  %v7_v2 = vld [vmem:[#allocation1] sm:$0x1]  }
   0xa   :  { %12 = vrot.lane.b32.xlu0 %v11_v1, %s25_s0  ;;  %9 = vst.msk [vmem:[#allocation0] sm:$0x1] %vm8_vm0, %v7_v2  }
  0x7c   :  { %v13_v3 = vpop.permute.xlu0 %12  }
  0x7d   :  { %15 = vst.msk [vmem:[#allocation0] sm:$0x1] %vm14_vm1, %v13_v3  }
  0x84   :  { %v20_v4 = vld [vmem:[#allocation0] sm:$0x1] }
  0x85   :  { %23 = vst [vmem:[%s43_s1] sm:$0x1] %v20_v4 }

// kernel: _lambda_.21
= control target key start
LH: loop header
LB: loop body
LE: loop exit
PB: predicated region body
PF: predicated region fallthrough
CT: control target
= control target key end

     0   :  { %10 = vsyncpa [#allocation3], 0  ;;  %s1689_s15 = smov [#allocation2]   ;;  %s2463_s0 = inlined_call_operand.vmem [shape: bf16[512,27], index: 0, kind: input, shape index: {}]   ;;  %s2464_s1 = inlined_call_operand.hbm [shape: bf16[27,32], index: 1, kind: input, shape index: {}]   ;;  %s2465_s2 = inlined_call_operand.vmem [shape: bf16[512,32], index: 2, kind: output, shape index: {0}]   ;;  %s2466_s3 = inlined_call_operand.vmem [shape: f32[1,1,32], index: 3, kind: output, shape index: {1}]   ;;  %s2467_s4 = inlined_call_operand.vmem [shape: f32[1,1,32], index: 4, kind: output, shape index: {2}]  }
   0x1   :  { %s18_s16 = sshll.u32 %s1689_s15, 4  ;;  %s19_s16 = int_to_ptr.vmem [resolvable:$true] %s18_s16 }
   0x2   :  { %s1675_s17 = scalar_lea.vmem %s19_s16, 256  ;;  %p1680_p1 = scmp.lt.s32.totalorder %s19_s16, %s19_s16 }
   0x3   :  { %p1676_p0 = scmp.ne.s32.totalorder %s19_s16, %s1675_s17  ;;  %p1681_p2 = scmp.lt.s32.totalorder %s1675_s17, %s1675_s17 }
   0x5   :  { %p1682_p3 = por %p1681_p2, %p1680_p1 }
   0x7   :  { %p1683_p4 = pnand %p1682_p3, %p1676_p0 }
   0x9   :  { %1686 = shalt.err (!%p1683_p4)
}
   0xa   :  { %s1690_s18 = smov 64   ;;  %s1691_s19 = smov 4  }
   0xb   :  { %24 = dma.hbm_to_vmem [thread:$0]  %s2464_s1, 256, %s19_s16, [#allocation3], %s1690_s18, %s1690_s18, %s1691_s19  }
   0xc   :  { %1687 = dma.done.wait [#allocation3], 256  }
   0xd   :  { %1688 = vsyncadd [#allocation3], 4294967040  ;;  %vm365_vm0 = vcmask 1044480   ;;  %vm366_vm1 = vcmask 1045504   ;;  %v1692_v0 = vmov 65535   ;;  %v1634_v4 = vld [vmem:[#allocation2] sm:$0xff]  }
   0xe   :  { %v367_v1 = vsel %vm365_vm0, 4294967295, %v1692_v0  ;;  %v1633_v3 = vld [vmem:[#allocation2 + $0x8] sm:$0x3f]   ;;  %vm268_vm2 = vcmask 220160   ;;  %v1635_v6 = vld [vmem:[%s2463_s0] sm:$0xff]   ;;  %v1637_v8 = vld [vmem:[%s2463_s0 + $0x10] sm:$0xff]  }
   0xf   :  { %v368_v2 = vsel %vm366_vm1, %v367_v1, 0  ;;  %1561 = vmatprep.mubr.msk.bf16.mxu0 %vm268_vm2, %v1635_v6  ;;  %v1636_v7 = vld [vmem:[%s2463_s0 + $0x8] sm:$0xff]   ;;  %v1638_v9 = vld [vmem:[%s2463_s0 + $0x18] sm:$0xff]   ;;  %v1639_v10 = vld [vmem:[%s2463_s0 + $0x20] sm:$0xff]   ;;  %vm1251_vm3 = vcmask 257024   ;;  %vm661_vm4 = vcmask 261120  }
  0x10   :  { %v370_v5 = vand.u32 %v1633_v3, %v368_v2  ;;  %v1651_v11 = vld [vmem:[%s2463_s0 + $0x80] sm:$0xff]   ;;  %v1652_v12 = vld [vmem:[%s2463_s0 + $0x88] sm:$0xff]   ;;  %v1653_v13 = vld [vmem:[%s2463_s0 + $0x90] sm:$0xff]   ;;  %vm795_vm5 = vcmask 253952  }
  0x11   :  { %1593 = vmatprep.mubr.msk.bf16.mxu1 %vm268_vm2, %v1651_v11  ;;  %v1640_v14 = vld [vmem:[%s2463_s0 + $0x28] sm:$0xff]   ;;  %v1641_v15 = vld [vmem:[%s2463_s0 + $0x30] sm:$0xff]   ;;  %v1654_v16 = vld [vmem:[%s2463_s0 + $0x98] sm:$0xff]  }
  0x12   :  { %1557 = vmatprep.subr.bf16.mxu0 %v370_v5  ;;  %1625 = vmatprep.subr.bf16.mxu1 %v370_v5  ;;  %v1655_v17 = vld [vmem:[%s2463_s0 + $0xa0] sm:$0xff]   ;;  %v1642_v18 = vld [vmem:[%s2463_s0 + $0x38] sm:$0xff]   ;;  %v1656_v20 = vld [vmem:[%s2463_s0 + $0xa8] sm:$0xff]  }
  0x13   :  { %1558 = vmatpush3.bf16.msra.mxu0 %v370_v5  ;;  %1627 = vmatpush3.bf16.msra.mxu1 %v370_v5  ;;  %v1643_v19 = vld [vmem:[%s2463_s0 + $0x40] sm:$0xff]   ;;  %v1657_v21 = vld [vmem:[%s2463_s0 + $0xb0] sm:$0xff]   ;;  %v1644_v22 = vld [vmem:[%s2463_s0 + $0x48] sm:$0xff]  }
  0x14   :  { %1559 = vmatprep.subr.bf16.mxu0 %v1634_v4  ;;  %1626 = vmatprep.subr.bf16.mxu1 %v1634_v4  ;;  %v1645_v23 = vld [vmem:[%s2463_s0 + $0x50] sm:$0xff]   ;;  %v1658_v24 = vld [vmem:[%s2463_s0 + $0xb8] sm:$0xff]   ;;  %v1659_v25 = vld [vmem:[%s2463_s0 + $0xc0] sm:$0xff]  }
  0x15   :  { %v1646_v26 = vld [vmem:[%s2463_s0 + $0x58] sm:$0xff]   ;;  %v1647_v27 = vld [vmem:[%s2463_s0 + $0x60] sm:$0xff]   ;;  %v1660_v28 = vld [vmem:[%s2463_s0 + $0xc8] sm:$0xff]  }
  0x16   :  { %v1661_v29 = vld [vmem:[%s2463_s0 + $0xd0] sm:$0xff]   ;;  %v1648_v30 = vld [vmem:[%s2463_s0 + $0x68] sm:$0xff]   ;;  %v1662_v32 = vld [vmem:[%s2463_s0 + $0xd8] sm:$0xff]  }
  0x17   :  { %1560 = vmatpush3.bf16.msra.mxu0 %v1634_v4  ;;  %1628 = vmatpush3.bf16.msra.mxu1 %v1634_v4  ;;  %v1649_v31 = vld [vmem:[%s2463_s0 + $0x70] sm:$0xff]   ;;  %v1663_v33 = vld [vmem:[%s2463_s0 + $0xe0] sm:$0xff]   ;;  %v1650_v34 = vld [vmem:[%s2463_s0 + $0x78] sm:$0xff]  }
  0x18   :  { %v1664_v35 = vld [vmem:[%s2463_s0 + $0xe8] sm:$0xff]   ;;  %v1665_v36 = vld [vmem:[%s2463_s0 + $0xf0] sm:$0xff]   ;;  %v1666_v37 = vld [vmem:[%s2463_s0 + $0xf8] sm:$0xff]  }
  0x1a   :  { %1562 = vmatmul.mubr.msk.bf16.vlgmr.msra.gmra.mxu0 %vm268_vm2, %v1636_v7  ;;  %1594 = vmatmul.mubr.msk.bf16.vlgmr.msra.gmra.mxu1 %vm268_vm2, %v1652_v12 }
  0x1b   :  { %1565 = vmatprep.mubr.msk.bf16.mxu0 %vm268_vm2, %v1637_v8  ;;  %1597 = vmatprep.mubr.msk.bf16.mxu1 %vm268_vm2, %v1653_v13 }
  0x22   :  { %1566 = vmatmul.mubr.msk.bf16.gmra.mxu0 %vm268_vm2, %v1638_v9  ;;  %1598 = vmatmul.mubr.msk.bf16.gmra.mxu1 %vm268_vm2, %v1654_v16 }
  0x23   :  { %1569 = vmatprep.mubr.msk.bf16.mxu0 %vm268_vm2, %v1639_v10  ;;  %1601 = vmatprep.mubr.msk.bf16.mxu1 %vm268_vm2, %v1655_v17 }
  0x2a   :  { %1570 = vmatmul.mubr.msk.bf16.gmra.mxu0 %vm268_vm2, %v1640_v14  ;;  %1602 = vmatmul.mubr.msk.bf16.gmra.mxu1 %vm268_vm2, %v1656_v20 }
  0x2b   :  { %1573 = vmatprep.mubr.msk.bf16.mxu0 %vm268_vm2, %v1641_v15  ;;  %1605 = vmatprep.mubr.msk.bf16.mxu1 %vm268_vm2, %v1657_v21 }
  0x32   :  { %1574 = vmatmul.mubr.msk.bf16.gmra.mxu0 %vm268_vm2, %v1642_v18  ;;  %1606 = vmatmul.mubr.msk.bf16.gmra.mxu1 %vm268_vm2, %v1658_v24 }
  0x33   :  { %1577 = vmatprep.mubr.msk.bf16.mxu0 %vm268_vm2, %v1643_v19  ;;  %1609 = vmatprep.mubr.msk.bf16.mxu1 %vm268_vm2, %v1659_v25 }
  0x3a   :  { %1578 = vmatmul.mubr.msk.bf16.gmra.mxu0 %vm268_vm2, %v1644_v22  ;;  %1610 = vmatmul.mubr.msk.bf16.gmra.mxu1 %vm268_vm2, %v1660_v28 }
  0x3b   :  { %1581 = vmatprep.mubr.msk.bf16.mxu0 %vm268_vm2, %v1645_v23  ;;  %1613 = vmatprep.mubr.msk.bf16.mxu1 %vm268_vm2, %v1661_v29 }
  0x42   :  { %1582 = vmatmul.mubr.msk.bf16.gmra.mxu0 %vm268_vm2, %v1646_v26  ;;  %1614 = vmatmul.mubr.msk.bf16.gmra.mxu1 %vm268_vm2, %v1662_v32 }
  0x43   :  { %1585 = vmatprep.mubr.msk.bf16.mxu0 %vm268_vm2, %v1647_v27  ;;  %1617 = vmatprep.mubr.msk.bf16.mxu1 %vm268_vm2, %v1663_v33 }
  0x4a   :  { %1586 = vmatmul.mubr.msk.bf16.gmra.mxu0 %vm268_vm2, %v1648_v30  ;;  %1618 = vmatmul.mubr.msk.bf16.gmra.mxu1 %vm268_vm2, %v1664_v35 }
  0x4b   :  { %1589 = vmatprep.mubr.msk.bf16.mxu0 %vm268_vm2, %v1649_v31  ;;  %1621 = vmatprep.mubr.msk.bf16.mxu1 %vm268_vm2, %v1665_v36 }
  0x52   :  { %1590 = vmatmul.mubr.msk.bf16.gmra.mxu0 %vm268_vm2, %v1650_v34  ;;  %1622 = vmatmul.mubr.msk.bf16.gmra.mxu1 %vm268_vm2, %v1666_v37 }
  0xda   :  { %v1563_v38 = vpop.f32.mrf.mxu0  ;;  %v1870_v58 = vpop.f32.mrf.mxu1 }
  0xdb   :  { %v1461_v39 = vpack.c.bf16 %v1563_v38, %v1563_v38  ;;  %v799_v45 = vmul.f32 %v1563_v38, %v1563_v38  ;;  %v665_v51 = vsel %vm661_vm4, %v1563_v38, 0.0  ;;  %v1493_v6 = vpack.c.bf16 %v1870_v58, %v1870_v58 }
  0xdc   :  { %v406_v40 = vpop.f32.mrf.mxu0  ;;  %v1878_v2 = vpop.f32.mrf.mxu1 }
  0xdd   :  { %1254 = vst.msk [vmem:[%s2465_s2 + $0x8] sm:$0xf] %vm1251_vm3, %v1461_v39  ;;  %v1459_v41 = vpack.c.bf16 %v406_v40, %v406_v40  ;;  %v797_v43 = vmul.f32 %v406_v40, %v406_v40  ;;  %v662_v47 = vsel %vm661_vm4, %v406_v40, 0.0  ;;  %v864_v62 = vsel %vm661_vm4, %v799_v45, 0.0  ;;  %1286 = vst.msk [vmem:[%s2465_s2 + $0x88] sm:$0xf] %vm1251_vm3, %v1493_v6 }
  0xde   :  { %v1564_v42 = vpop.f32.mrf.mxu0  ;;  %v1888_v10 = vpop.f32.mrf.mxu1  ;;  %v1491_v23 = vpack.c.bf16 %v1878_v2, %v1878_v2 }
  0xdf   :  { %1252 = vst.msk [vmem:[%s2465_s2] sm:$0xf] %vm1251_vm3, %v1459_v41  ;;  %v1462_v44 = vpack.c.bf16 %v1564_v42, %v1564_v42  ;;  %v861_v54 = vsel %vm661_vm4, %v797_v43, 0.0  ;;  %v800_v55 = vmul.f32 %v1564_v42, %v1564_v42  ;;  %v667_v63 = vsel %vm661_vm4, %v1564_v42, 0.0 }
  0xe0   :  { %v409_v46 = vpop.f32.mrf.mxu0  ;;  %v1900_v19 = vpop.f32.mrf.mxu1  ;;  %1284 = vst.msk [vmem:[%s2465_s2 + $0x80] sm:$0xf] %vm1251_vm3, %v1491_v23  ;;  %v1494_v40 = vpack.c.bf16 %v1888_v10, %v1888_v10 }
  0xe1   :  { %1255 = vst.msk [vmem:[%s2465_s2 + $0xc] sm:$0xf] %vm1251_vm3, %v1462_v44  ;;  %v663_v48 = vsel %vm661_vm4, %v409_v46, 0.0  ;;  %v798_v49 = vmul.f32 %v409_v46, %v409_v46  ;;  %v1460_v50 = vpack.c.bf16 %v409_v46, %v409_v46  ;;  %v866_v7 = vsel %vm661_vm4, %v800_v55, 0.0 }
  0xe2   :  { %v664_v52 = vadd.f32 %v663_v48, %v662_v47  ;;  %v1567_v53 = vpop.f32.mrf.mxu0  ;;  %v1910_v28 = vpop.f32.mrf.mxu1  ;;  %1287 = vst.msk [vmem:[%s2465_s2 + $0x8c] sm:$0xf] %vm1251_vm3, %v1494_v40 }
  0xe3   :  { %v862_v56 = vsel %vm661_vm4, %v798_v49, 0.0  ;;  %1253 = vst.msk [vmem:[%s2465_s2 + $0x4] sm:$0xf] %vm1251_vm3, %v1460_v50  ;;  %v1465_v57 = vpack.c.bf16 %v1567_v53, %v1567_v53  ;;  %v803_v11 = vmul.f32 %v1567_v53, %v1567_v53  ;;  %v673_v24 = vsel %vm661_vm4, %v1567_v53, 0.0 }
  0xe4   :  { %v666_v59 = vadd.f32 %v665_v51, %v664_v52  ;;  %v863_v60 = vadd.f32 %v862_v56, %v861_v54  ;;  %v422_v61 = vpop.f32.mrf.mxu0  ;;  %v1922_v36 = vpop.f32.mrf.mxu1 }
  0xe5   :  { %1258 = vst.msk [vmem:[%s2465_s2 + $0x18] sm:$0xf] %vm1251_vm3, %v1465_v57  ;;  %v801_v0 = vmul.f32 %v422_v61, %v422_v61  ;;  %v1463_v1 = vpack.c.bf16 %v422_v61, %v422_v61  ;;  %v669_v8 = vsel %vm661_vm4, %v422_v61, 0.0  ;;  %v872_v32 = vsel %vm661_vm4, %v803_v11, 0.0 }
  0xe6   :  { %v865_v3 = vadd.f32 %v864_v62, %v863_v60  ;;  %v668_v4 = vadd.f32 %v667_v63, %v666_v59  ;;  %v1568_v5 = vpop.f32.mrf.mxu0  ;;  %v1932_v44 = vpop.f32.mrf.mxu1  ;;  %v1492_v57 = vpack.c.bf16 %v1900_v19, %v1900_v19 }
  0xe7   :  { %1256 = vst.msk [vmem:[%s2465_s2 + $0x10] sm:$0xf] %vm1251_vm3, %v1463_v1  ;;  %v1466_v9 = vpack.c.bf16 %v1568_v5, %v1568_v5  ;;  %v868_v15 = vsel %vm661_vm4, %v801_v0, 0.0  ;;  %v804_v25 = vmul.f32 %v1568_v5, %v1568_v5  ;;  %v675_v33 = vsel %vm661_vm4, %v1568_v5, 0.0 }
  0xe8   :  { %v670_v12 = vadd.f32 %v669_v8, %v668_v4  ;;  %v867_v13 = vadd.f32 %v866_v7, %v865_v3  ;;  %v425_v14 = vpop.f32.mrf.mxu0  ;;  %v1944_v53 = vpop.f32.mrf.mxu1  ;;  %1285 = vst.msk [vmem:[%s2465_s2 + $0x84] sm:$0xf] %vm1251_vm3, %v1492_v57 }
  0xe9   :  { %1259 = vst.msk [vmem:[%s2465_s2 + $0x1c] sm:$0xf] %vm1251_vm3, %v1466_v9  ;;  %v671_v16 = vsel %vm661_vm4, %v425_v14, 0.0  ;;  %v802_v17 = vmul.f32 %v425_v14, %v425_v14  ;;  %v1464_v18 = vpack.c.bf16 %v425_v14, %v425_v14  ;;  %v874_v41 = vsel %vm661_vm4, %v804_v25, 0.0 }
  0xea   :  { %v869_v20 = vadd.f32 %v868_v15, %v867_v13  ;;  %v672_v21 = vadd.f32 %v671_v16, %v670_v12  ;;  %v1571_v22 = vpop.f32.mrf.mxu0  ;;  %v1954_v63 = vpop.f32.mrf.mxu1  ;;  %v1497_v13 = vpack.c.bf16 %v1910_v28, %v1910_v28 }
  0xeb   :  { %v870_v26 = vsel %vm661_vm4, %v802_v17, 0.0  ;;  %1257 = vst.msk [vmem:[%s2465_s2 + $0x14] sm:$0xf] %vm1251_vm3, %v1464_v18  ;;  %v1469_v27 = vpack.c.bf16 %v1571_v22, %v1571_v22  ;;  %v807_v45 = vmul.f32 %v1571_v22, %v1571_v22  ;;  %v681_v59 = vsel %vm661_vm4, %v1571_v22, 0.0 }
  0xec   :  { %v674_v29 = vadd.f32 %v673_v24, %v672_v21  ;;  %v871_v30 = vadd.f32 %v870_v26, %v869_v20  ;;  %v438_v31 = vpop.f32.mrf.mxu0  ;;  %v1966_v8 = vpop.f32.mrf.mxu1  ;;  %1290 = vst.msk [vmem:[%s2465_s2 + $0x98] sm:$0xf] %vm1251_vm3, %v1497_v13 }
  0xed   :  { %1262 = vst.msk [vmem:[%s2465_s2 + $0x28] sm:$0xf] %vm1251_vm3, %v1469_v27  ;;  %v805_v34 = vmul.f32 %v438_v31, %v438_v31  ;;  %v1467_v35 = vpack.c.bf16 %v438_v31, %v438_v31  ;;  %v677_v42 = vsel %vm661_vm4, %v438_v31, 0.0  ;;  %v880_v4 = vsel %vm661_vm4, %v807_v45, 0.0 }
  0xee   :  { %v873_v37 = vadd.f32 %v872_v32, %v871_v30  ;;  %v676_v38 = vadd.f32 %v675_v33, %v674_v29  ;;  %v1572_v39 = vpop.f32.mrf.mxu0  ;;  %v1976_v17 = vpop.f32.mrf.mxu1  ;;  %v1495_v32 = vpack.c.bf16 %v1922_v36, %v1922_v36 }
  0xef   :  { %1260 = vst.msk [vmem:[%s2465_s2 + $0x20] sm:$0xf] %vm1251_vm3, %v1467_v35  ;;  %v1470_v43 = vpack.c.bf16 %v1572_v39, %v1572_v39  ;;  %v876_v49 = vsel %vm661_vm4, %v805_v34, 0.0  ;;  %v808_v60 = vmul.f32 %v1572_v39, %v1572_v39  ;;  %v683_v5 = vsel %vm661_vm4, %v1572_v39, 0.0 }
  0xf0   :  { %v678_v46 = vadd.f32 %v677_v42, %v676_v38  ;;  %v875_v47 = vadd.f32 %v874_v41, %v873_v37  ;;  %v441_v48 = vpop.f32.mrf.mxu0  ;;  %v1988_v27 = vpop.f32.mrf.mxu1  ;;  %1288 = vst.msk [vmem:[%s2465_s2 + $0x90] sm:$0xf] %vm1251_vm3, %v1495_v32 }
  0xf1   :  { %1263 = vst.msk [vmem:[%s2465_s2 + $0x2c] sm:$0xf] %vm1251_vm3, %v1470_v43  ;;  %v679_v50 = vsel %vm661_vm4, %v441_v48, 0.0  ;;  %v806_v51 = vmul.f32 %v441_v48, %v441_v48  ;;  %v1468_v52 = vpack.c.bf16 %v441_v48, %v441_v48  ;;  %v882_v14 = vsel %vm661_vm4, %v808_v60, 0.0 }
  0xf2   :  { %v877_v54 = vadd.f32 %v876_v49, %v875_v47  ;;  %v680_v55 = vadd.f32 %v679_v50, %v678_v46  ;;  %v1575_v56 = vpop.f32.mrf.mxu0  ;;  %v1998_v38 = vpop.f32.mrf.mxu1 }
  0xf3   :  { %v878_v61 = vsel %vm661_vm4, %v806_v51, 0.0  ;;  %1261 = vst.msk [vmem:[%s2465_s2 + $0x24] sm:$0xf] %vm1251_vm3, %v1468_v52  ;;  %v1473_v62 = vpack.c.bf16 %v1575_v56, %v1575_v56  ;;  %v811_v18 = vmul.f32 %v1575_v56, %v1575_v56  ;;  %v689_v33 = vsel %vm661_vm4, %v1575_v56, 0.0 }
  0xf4   :  { %v682_v0 = vadd.f32 %v681_v59, %v680_v55  ;;  %v879_v1 = vadd.f32 %v878_v61, %v877_v54  ;;  %v454_v3 = vpop.f32.mrf.mxu0  ;;  %v2010_v47 = vpop.f32.mrf.mxu1  ;;  %v1498_v51 = vpack.c.bf16 %v1932_v44, %v1932_v44 }
  0xf5   :  { %1266 = vst.msk [vmem:[%s2465_s2 + $0x38] sm:$0xf] %vm1251_vm3, %v1473_v62  ;;  %v809_v6 = vmul.f32 %v454_v3, %v454_v3  ;;  %v1471_v7 = vpack.c.bf16 %v454_v3, %v454_v3  ;;  %v685_v15 = vsel %vm661_vm4, %v454_v3, 0.0  ;;  %v888_v42 = vsel %vm661_vm4, %v811_v18, 0.0 }
  0xf6   :  { %v881_v9 = vadd.f32 %v880_v4, %v879_v1  ;;  %v684_v11 = vadd.f32 %v683_v5, %v682_v0  ;;  %v1576_v12 = vpop.f32.mrf.mxu0  ;;  %v2020_v56 = vpop.f32.mrf.mxu1  ;;  %1291 = vst.msk [vmem:[%s2465_s2 + $0x9c] sm:$0xf] %vm1251_vm3, %v1498_v51 }
  0xf7   :  { %1264 = vst.msk [vmem:[%s2465_s2 + $0x30] sm:$0xf] %vm1251_vm3, %v1471_v7  ;;  %v1474_v16 = vpack.c.bf16 %v1576_v12, %v1576_v12  ;;  %v884_v23 = vsel %vm661_vm4, %v809_v6, 0.0  ;;  %v812_v34 = vmul.f32 %v1576_v12, %v1576_v12  ;;  %v691_v43 = vsel %vm661_vm4, %v1576_v12, 0.0 }
  0xf8   :  { %v686_v20 = vadd.f32 %v685_v15, %v684_v11  ;;  %v883_v21 = vadd.f32 %v882_v14, %v881_v9  ;;  %v457_v22 = vpop.f32.mrf.mxu0  ;;  %v2032_v4 = vpop.f32.mrf.mxu1  ;;  %v1496_v9 = vpack.c.bf16 %v1944_v53, %v1944_v53 }
  0xf9   :  { %1267 = vst.msk [vmem:[%s2465_s2 + $0x3c] sm:$0xf] %vm1251_vm3, %v1474_v16  ;;  %v687_v24 = vsel %vm661_vm4, %v457_v22, 0.0  ;;  %v810_v25 = vmul.f32 %v457_v22, %v457_v22  ;;  %v1472_v26 = vpack.c.bf16 %v457_v22, %v457_v22  ;;  %v890_v52 = vsel %vm661_vm4, %v812_v34, 0.0 }
  0xfa   :  { %v885_v29 = vadd.f32 %v884_v23, %v883_v21  ;;  %v688_v30 = vadd.f32 %v687_v24, %v686_v20  ;;  %v1579_v31 = vpop.f32.mrf.mxu0  ;;  %v2042_v15 = vpop.f32.mrf.mxu1  ;;  %1289 = vst.msk [vmem:[%s2465_s2 + $0x94] sm:$0xf] %vm1251_vm3, %v1496_v9 }
  0xfb   :  { %v886_v35 = vsel %vm661_vm4, %v810_v25, 0.0  ;;  %1265 = vst.msk [vmem:[%s2465_s2 + $0x34] sm:$0xf] %vm1251_vm3, %v1472_v26  ;;  %v1477_v37 = vpack.c.bf16 %v1579_v31, %v1579_v31  ;;  %v815_v57 = vmul.f32 %v1579_v31, %v1579_v31  ;;  %v697_v11 = vsel %vm661_vm4, %v1579_v31, 0.0 }
  0xfc   :  { %v690_v39 = vadd.f32 %v689_v33, %v688_v30  ;;  %v887_v40 = vadd.f32 %v886_v35, %v885_v29  ;;  %v470_v41 = vpop.f32.mrf.mxu0  ;;  %v2054_v25 = vpop.f32.mrf.mxu1  ;;  %v1501_v31 = vpack.c.bf16 %v1954_v63, %v1954_v63 }
  0xfd   :  { %1270 = vst.msk [vmem:[%s2465_s2 + $0x48] sm:$0xf] %vm1251_vm3, %v1477_v37  ;;  %v813_v45 = vmul.f32 %v470_v41, %v470_v41  ;;  %v1475_v46 = vpack.c.bf16 %v470_v41, %v470_v41  ;;  %v693_v54 = vsel %vm661_vm4, %v470_v41, 0.0  ;;  %v896_v21 = vsel %vm661_vm4, %v815_v57, 0.0 }
  0xfe   :  { %v889_v48 = vadd.f32 %v888_v42, %v887_v40  ;;  %v692_v49 = vadd.f32 %v691_v43, %v690_v39  ;;  %v1580_v50 = vpop.f32.mrf.mxu0  ;;  %v2064_v35 = vpop.f32.mrf.mxu1  ;;  %1294 = vst.msk [vmem:[%s2465_s2 + $0xa8] sm:$0xf] %vm1251_vm3, %v1501_v31 }
  0xff   :  { %1268 = vst.msk [vmem:[%s2465_s2 + $0x40] sm:$0xf] %vm1251_vm3, %v1475_v46  ;;  %v1478_v55 = vpack.c.bf16 %v1580_v50, %v1580_v50  ;;  %v892_v62 = vsel %vm661_vm4, %v813_v45, 0.0  ;;  %v816_v12 = vmul.f32 %v1580_v50, %v1580_v50  ;;  %v699_v22 = vsel %vm661_vm4, %v1580_v50, 0.0 }
 0x100   :  { %v694_v59 = vadd.f32 %v693_v54, %v692_v49  ;;  %v891_v60 = vadd.f32 %v890_v52, %v889_v48  ;;  %v473_v61 = vpop.f32.mrf.mxu0  ;;  %v2076_v48 = vpop.f32.mrf.mxu1  ;;  %v1499_v52 = vpack.c.bf16 %v1966_v8, %v1966_v8 }
 0x101   :  { %1271 = vst.msk [vmem:[%s2465_s2 + $0x4c] sm:$0xf] %vm1251_vm3, %v1478_v55  ;;  %v695_v0 = vsel %vm661_vm4, %v473_v61, 0.0  ;;  %v814_v1 = vmul.f32 %v473_v61, %v473_v61  ;;  %v1476_v3 = vpack.c.bf16 %v473_v61, %v473_v61  ;;  %v898_v32 = vsel %vm661_vm4, %v816_v12, 0.0 }
 0x102   :  { %v893_v5 = vadd.f32 %v892_v62, %v891_v60  ;;  %v696_v6 = vadd.f32 %v695_v0, %v694_v59  ;;  %v1583_v7 = vpop.f32.mrf.mxu0  ;;  %v2086_v60 = vpop.f32.mrf.mxu1  ;;  %1292 = vst.msk [vmem:[%s2465_s2 + $0xa0] sm:$0xf] %vm1251_vm3, %v1499_v52 }
 0x103   :  { %v894_v13 = vsel %vm661_vm4, %v814_v1, 0.0  ;;  %1269 = vst.msk [vmem:[%s2465_s2 + $0x44] sm:$0xf] %vm1251_vm3, %v1476_v3  ;;  %v1481_v14 = vpack.c.bf16 %v1583_v7, %v1583_v7  ;;  %v819_v37 = vmul.f32 %v1583_v7, %v1583_v7  ;;  %v705_v54 = vsel %vm661_vm4, %v1583_v7, 0.0 }
 0x104   :  { %v698_v16 = vadd.f32 %v697_v11, %v696_v6  ;;  %v895_v18 = vadd.f32 %v894_v13, %v893_v5  ;;  %v486_v20 = vpop.f32.mrf.mxu0  ;;  %v2098_v7 = vpop.f32.mrf.mxu1  ;;  %v1502_v13 = vpack.c.bf16 %v1976_v17, %v1976_v17 }
 0x105   :  { %1274 = vst.msk [vmem:[%s2465_s2 + $0x58] sm:$0xf] %vm1251_vm3, %v1481_v14  ;;  %v817_v23 = vmul.f32 %v486_v20, %v486_v20  ;;  %v1479_v24 = vpack.c.bf16 %v486_v20, %v486_v20  ;;  %v701_v33 = vsel %vm661_vm4, %v486_v20, 0.0  ;;  %v904_v1 = vsel %vm661_vm4, %v819_v37, 0.0 }
 0x106   :  { %v897_v26 = vadd.f32 %v896_v21, %v895_v18  ;;  %v700_v29 = vadd.f32 %v699_v22, %v698_v16  ;;  %v1584_v30 = vpop.f32.mrf.mxu0  ;;  %v2108_v20 = vpop.f32.mrf.mxu1  ;;  %1295 = vst.msk [vmem:[%s2465_s2 + $0xac] sm:$0xf] %vm1251_vm3, %v1502_v13 }
 0x107   :  { %1272 = vst.msk [vmem:[%s2465_s2 + $0x50] sm:$0xf] %vm1251_vm3, %v1479_v24  ;;  %v1482_v34 = vpack.c.bf16 %v1584_v30, %v1584_v30  ;;  %v900_v42 = vsel %vm661_vm4, %v817_v23, 0.0  ;;  %v820_v55 = vmul.f32 %v1584_v30, %v1584_v30  ;;  %v707_v3 = vsel %vm661_vm4, %v1584_v30, 0.0 }
 0x108   :  { %v702_v39 = vadd.f32 %v701_v33, %v700_v29  ;;  %v899_v40 = vadd.f32 %v898_v32, %v897_v26  ;;  %v489_v41 = vpop.f32.mrf.mxu0  ;;  %v2120_v32 = vpop.f32.mrf.mxu1 }
 0x109   :  { %1275 = vst.msk [vmem:[%s2465_s2 + $0x5c] sm:$0xf] %vm1251_vm3, %v1482_v34  ;;  %v703_v43 = vsel %vm661_vm4, %v489_v41, 0.0  ;;  %v818_v45 = vmul.f32 %v489_v41, %v489_v41  ;;  %v1480_v46 = vpack.c.bf16 %v489_v41, %v489_v41  ;;  %v906_v14 = vsel %vm661_vm4, %v820_v55, 0.0 }
 0x10a   :  { %v901_v49 = vadd.f32 %v900_v42, %v899_v40  ;;  %v704_v50 = vadd.f32 %v703_v43, %v702_v39  ;;  %v1587_v51 = vpop.f32.mrf.mxu0  ;;  %v1500_v39 = vpack.c.bf16 %v1988_v27, %v1988_v27 }
 0x10b   :  { %v902_v57 = vsel %vm661_vm4, %v818_v45, 0.0  ;;  %1273 = vst.msk [vmem:[%s2465_s2 + $0x54] sm:$0xf] %vm1251_vm3, %v1480_v46  ;;  %v1485_v59 = vpack.c.bf16 %v1587_v51, %v1587_v51  ;;  %v823_v21 = vmul.f32 %v1587_v51, %v1587_v51  ;;  %v713_v40 = vsel %vm661_vm4, %v1587_v51, 0.0 }
 0x10c   :  { %v706_v61 = vadd.f32 %v705_v54, %v704_v50  ;;  %v903_v62 = vadd.f32 %v902_v57, %v901_v49  ;;  %v502_v0 = vpop.f32.mrf.mxu0  ;;  %1293 = vst.msk [vmem:[%s2465_s2 + $0xa4] sm:$0xf] %vm1251_vm3, %v1500_v39  ;;  %v2134_v50 = vpop.f32.mrf.mxu1 }
 0x10d   :  { %1278 = vst.msk [vmem:[%s2465_s2 + $0x68] sm:$0xf] %vm1251_vm3, %v1485_v59  ;;  %v821_v5 = vmul.f32 %v502_v0, %v502_v0  ;;  %v1483_v6 = vpack.c.bf16 %v502_v0, %v502_v0  ;;  %v709_v16 = vsel %vm661_vm4, %v502_v0, 0.0  ;;  %v912_v51 = vsel %vm661_vm4, %v823_v21, 0.0 }
 0x10e   :  { %v905_v9 = vadd.f32 %v904_v1, %v903_v62  ;;  %v708_v11 = vadd.f32 %v707_v3, %v706_v61  ;;  %v1588_v12 = vpop.f32.mrf.mxu0  ;;  %v1505_v62 = vpack.c.bf16 %v1998_v38, %v1998_v38 }
 0x10f   :  { %1276 = vst.msk [vmem:[%s2465_s2 + $0x60] sm:$0xf] %vm1251_vm3, %v1483_v6  ;;  %v1486_v18 = vpack.c.bf16 %v1588_v12, %v1588_v12  ;;  %v908_v26 = vsel %vm661_vm4, %v821_v5, 0.0  ;;  %v824_v41 = vmul.f32 %v1588_v12, %v1588_v12  ;;  %v715_v52 = vsel %vm661_vm4, %v1588_v12, 0.0  ;;  %v2154_v12 = vpop.f32.mrf.mxu1 }
 0x110   :  { %v710_v22 = vadd.f32 %v709_v16, %v708_v11  ;;  %v907_v23 = vadd.f32 %v906_v14, %v905_v9  ;;  %v505_v24 = vpop.f32.mrf.mxu0  ;;  %1298 = vst.msk [vmem:[%s2465_s2 + $0xb8] sm:$0xf] %vm1251_vm3, %v1505_v62  ;;  %v1510_v62 = vpack.c.bf16 %v2064_v35, %v2064_v35 }
 0x111   :  { %1279 = vst.msk [vmem:[%s2465_s2 + $0x6c] sm:$0xf] %vm1251_vm3, %v1486_v18  ;;  %v711_v29 = vsel %vm661_vm4, %v505_v24, 0.0  ;;  %v822_v30 = vmul.f32 %v505_v24, %v505_v24  ;;  %v1484_v31 = vpack.c.bf16 %v505_v24, %v505_v24  ;;  %v914_v0 = vsel %vm661_vm4, %v824_v41, 0.0 }
 0x112   :  { %v909_v33 = vadd.f32 %v908_v26, %v907_v23  ;;  %v712_v34 = vadd.f32 %v711_v29, %v710_v22  ;;  %v1591_v37 = vpop.f32.mrf.mxu0  ;;  %v1503_v23 = vpack.c.bf16 %v2010_v47, %v2010_v47  ;;  %v1504_v41 = vpack.c.bf16 %v2032_v4, %v2032_v4  ;;  %1303 = vst.msk [vmem:[%s2465_s2 + $0xcc] sm:$0xf] %vm1251_vm3, %v1510_v62 }
 0x113   :  { %v910_v42 = vsel %vm661_vm4, %v822_v30, 0.0  ;;  %1277 = vst.msk [vmem:[%s2465_s2 + $0x64] sm:$0xf] %vm1251_vm3, %v1484_v31  ;;  %v1489_v43 = vpack.c.bf16 %v1591_v37, %v1591_v37  ;;  %v827_v5 = vmul.f32 %v1591_v37, %v1591_v37  ;;  %v721_v24 = vsel %vm661_vm4, %v1591_v37, 0.0 }
 0x114   :  { %v714_v45 = vadd.f32 %v713_v40, %v712_v34  ;;  %v911_v46 = vadd.f32 %v910_v42, %v909_v33  ;;  %v518_v49 = vpop.f32.mrf.mxu0  ;;  %v1506_v30 = vpack.c.bf16 %v2020_v56, %v2020_v56  ;;  %1296 = vst.msk [vmem:[%s2465_s2 + $0xb0] sm:$0xf] %vm1251_vm3, %v1503_v23  ;;  %v2176_v34 = vpop.f32.mrf.mxu1  ;;  %v829_v40 = vmul.f32 %v1878_v2, %v1878_v2 }
 0x115   :  { %1282 = vst.msk [vmem:[%s2465_s2 + $0x78] sm:$0xf] %vm1251_vm3, %v1489_v43  ;;  %v825_v54 = vmul.f32 %v518_v49, %v518_v49  ;;  %v1487_v55 = vpack.c.bf16 %v518_v49, %v518_v49  ;;  %v717_v1 = vsel %vm661_vm4, %v518_v49, 0.0  ;;  %v920_v37 = vsel %vm661_vm4, %v827_v5, 0.0  ;;  %1297 = vst.msk [vmem:[%s2465_s2 + $0xb4] sm:$0xf] %vm1251_vm3, %v1504_v41 }
 0x116   :  { %v913_v57 = vadd.f32 %v912_v51, %v911_v46  ;;  %v716_v59 = vadd.f32 %v715_v52, %v714_v45  ;;  %v1592_v61 = vpop.f32.mrf.mxu0  ;;  %1299 = vst.msk [vmem:[%s2465_s2 + $0xbc] sm:$0xf] %vm1251_vm3, %v1506_v30  ;;  %v1509_v45 = vpack.c.bf16 %v2042_v15, %v2042_v15  ;;  %v725_v49 = vsel %vm661_vm4, %v1878_v2, 0.0 }
 0x117   :  { %1280 = vst.msk [vmem:[%s2465_s2 + $0x70] sm:$0xf] %vm1251_vm3, %v1487_v55  ;;  %v1490_v3 = vpack.c.bf16 %v1592_v61, %v1592_v61  ;;  %v916_v13 = vsel %vm661_vm4, %v825_v54, 0.0  ;;  %v828_v26 = vmul.f32 %v1592_v61, %v1592_v61  ;;  %v723_v39 = vsel %vm661_vm4, %v1592_v61, 0.0 }
 0x118   :  { %v718_v6 = vadd.f32 %v717_v1, %v716_v59  ;;  %v915_v9 = vadd.f32 %v914_v0, %v913_v57  ;;  %v521_v11 = vpop.f32.mrf.mxu0  ;;  %v830_v51 = vmul.f32 %v1900_v19, %v1900_v19  ;;  %v1507_v52 = vpack.c.bf16 %v2054_v25, %v2054_v25  ;;  %1302 = vst.msk [vmem:[%s2465_s2 + $0xc8] sm:$0xf] %vm1251_vm3, %v1509_v45  ;;  %v2205_v57 = vpop.f32.mrf.mxu1 }
 0x119   :  { %1283 = vst.msk [vmem:[%s2465_s2 + $0x7c] sm:$0xf] %vm1251_vm3, %v1490_v3  ;;  %v719_v14 = vsel %vm661_vm4, %v521_v11, 0.0  ;;  %v826_v16 = vmul.f32 %v521_v11, %v521_v11  ;;  %v1488_v18 = vpack.c.bf16 %v521_v11, %v521_v11  ;;  %v922_v46 = vsel %vm661_vm4, %v828_v26, 0.0 }
 0x11a   :  { %v917_v21 = vadd.f32 %v916_v13, %v915_v9  ;;  %v720_v22 = vadd.f32 %v719_v14, %v718_v6  ;;  %v831_v2 = vmul.f32 %v1870_v58, %v1870_v58  ;;  %v924_v59 = vsel %vm661_vm4, %v829_v40, 0.0  ;;  %1300 = vst.msk [vmem:[%s2465_s2 + $0xc0] sm:$0xf] %vm1251_vm3, %v1507_v52 }
 0x11b   :  { %v918_v29 = vsel %vm661_vm4, %v826_v16, 0.0  ;;  %1281 = vst.msk [vmem:[%s2465_s2 + $0x74] sm:$0xf] %vm1251_vm3, %v1488_v18  ;;  %v727_v61 = vsel %vm661_vm4, %v1900_v19, 0.0  ;;  %v1508_v3 = vpack.c.bf16 %v2076_v48, %v2076_v48  ;;  %v729_v5 = vsel %vm661_vm4, %v1870_v58, 0.0  ;;  %v2235_v58 = vpop.f32.mrf.mxu1 }
 0x11c   :  { %v722_v31 = vadd.f32 %v721_v24, %v720_v22  ;;  %v919_v33 = vadd.f32 %v918_v29, %v917_v21  ;;  %v832_v6 = vmul.f32 %v1888_v10, %v1888_v10  ;;  %v926_v19 = vsel %vm661_vm4, %v830_v51, 0.0 }
 0x11d   :  { %v1513_v9 = vpack.c.bf16 %v2086_v60, %v2086_v60  ;;  %1301 = vst.msk [vmem:[%s2465_s2 + $0xc4] sm:$0xf] %vm1251_vm3, %v1508_v3  ;;  %v928_v14 = vsel %vm661_vm4, %v831_v2, 0.0  ;;  %v731_v16 = vsel %vm661_vm4, %v1888_v10, 0.0  ;;  %v833_v18 = vmul.f32 %v1922_v36, %v1922_v36 }
 0x11e   :  { %v724_v42 = vadd.f32 %v723_v39, %v722_v31  ;;  %v921_v43 = vadd.f32 %v920_v37, %v919_v33  ;;  %v1511_v21 = vpack.c.bf16 %v2098_v7, %v2098_v7  ;;  %v1514_v24 = vpack.c.bf16 %v2108_v20, %v2108_v20  ;;  %v2265_v37 = vpop.f32.mrf.mxu1 }
 0x11f   :  { %1306 = vst.msk [vmem:[%s2465_s2 + $0xd8] sm:$0xf] %vm1251_vm3, %v1513_v9  ;;  %v930_v26 = vsel %vm661_vm4, %v832_v6, 0.0  ;;  %v733_v10 = vsel %vm661_vm4, %v1922_v36, 0.0  ;;  %v834_v29 = vmul.f32 %v1944_v53, %v1944_v53  ;;  %v1512_v30 = vpack.c.bf16 %v2120_v32, %v2120_v32 }
 0x120   :  { %v923_v54 = vadd.f32 %v922_v46, %v921_v43  ;;  %v726_v55 = vadd.f32 %v725_v49, %v724_v42  ;;  %1304 = vst.msk [vmem:[%s2465_s2 + $0xd0] sm:$0xf] %vm1251_vm3, %v1511_v21  ;;  %1307 = vst.msk [vmem:[%s2465_s2 + $0xdc] sm:$0xf] %vm1251_vm3, %v1514_v24  ;;  %v835_v36 = vmul.f32 %v1910_v28, %v1910_v28  ;;  %v932_v39 = vsel %vm661_vm4, %v833_v18, 0.0 }
 0x121   :  { %v735_v40 = vsel %vm661_vm4, %v1944_v53, 0.0  ;;  %1305 = vst.msk [vmem:[%s2465_s2 + $0xd4] sm:$0xf] %vm1251_vm3, %v1512_v30  ;;  %v1517_v41 = vpack.c.bf16 %v2134_v50, %v2134_v50  ;;  %v1515_v45 = vpack.c.bf16 %v2154_v12, %v2154_v12  ;;  %v737_v46 = vsel %vm661_vm4, %v1910_v28, 0.0  ;;  %v2295_v28 = vpop.f32.mrf.mxu1 }
 0x122   :  { %v728_v0 = vadd.f32 %v727_v61, %v726_v55  ;;  %v925_v1 = vadd.f32 %v924_v59, %v923_v54  ;;  %v836_v49 = vmul.f32 %v1932_v44, %v1932_v44  ;;  %v934_v53 = vsel %vm661_vm4, %v834_v29, 0.0 }
 0x123   :  { %1310 = vst.msk [vmem:[%s2465_s2 + $0xe8] sm:$0xf] %vm1251_vm3, %v1517_v41  ;;  %v1518_v51 = vpack.c.bf16 %v2176_v34, %v2176_v34  ;;  %1308 = vst.msk [vmem:[%s2465_s2 + $0xe0] sm:$0xf] %vm1251_vm3, %v1515_v45  ;;  %v936_v55 = vsel %vm661_vm4, %v835_v36, 0.0  ;;  %v739_v2 = vsel %vm661_vm4, %v1932_v44, 0.0  ;;  %v837_v59 = vmul.f32 %v1966_v8, %v1966_v8 }
 0x124   :  { %v730_v11 = vadd.f32 %v729_v5, %v728_v0  ;;  %v927_v13 = vadd.f32 %v926_v19, %v925_v1  ;;  %v1516_v61 = vpack.c.bf16 %v2205_v57, %v2205_v57  ;;  %v1521_v1 = vpack.c.bf16 %v2235_v58, %v2235_v58 }
 0x125   :  { %1311 = vst.msk [vmem:[%s2465_s2 + $0xec] sm:$0xf] %vm1251_vm3, %v1518_v51  ;;  %v938_v3 = vsel %vm661_vm4, %v836_v49, 0.0  ;;  %v741_v44 = vsel %vm661_vm4, %v1966_v8, 0.0  ;;  %v838_v5 = vmul.f32 %v1988_v27, %v1988_v27  ;;  %v1519_v6 = vpack.c.bf16 %v2265_v37, %v2265_v37 }
 0x126   :  { %v929_v22 = vadd.f32 %v928_v14, %v927_v13  ;;  %v732_v23 = vadd.f32 %v731_v16, %v730_v11  ;;  %1309 = vst.msk [vmem:[%s2465_s2 + $0xe4] sm:$0xf] %vm1251_vm3, %v1516_v61  ;;  %1314 = vst.msk [vmem:[%s2465_s2 + $0xf8] sm:$0xf] %vm1251_vm3, %v1521_v1  ;;  %v2325_v11 = vpop.f32.mrf.mxu1  ;;  %v839_v8 = vmul.f32 %v1954_v63, %v1954_v63  ;;  %v940_v13 = vsel %vm661_vm4, %v837_v59, 0.0 }
 0x127   :  { %v743_v14 = vsel %vm661_vm4, %v1988_v27, 0.0  ;;  %1312 = vst.msk [vmem:[%s2465_s2 + $0xf0] sm:$0xf] %vm1251_vm3, %v1519_v6  ;;  %v1522_v16 = vpack.c.bf16 %v2295_v28, %v2295_v28  ;;  %v942_v24 = vsel %vm661_vm4, %v838_v5, 0.0  ;;  %v1520_v27 = vpack.c.bf16 %v2325_v11, %v2325_v11 }
 0x128   :  { %v734_v31 = vadd.f32 %v733_v10, %v732_v23  ;;  %v931_v33 = vadd.f32 %v930_v26, %v929_v22  ;;  %v745_v22 = vsel %vm661_vm4, %v1954_v63, 0.0  ;;  %v840_v23 = vmul.f32 %v1976_v17, %v1976_v17 }
 0x129   :  { %1315 = vst.msk [vmem:[%s2465_s2 + $0xfc] sm:$0xf] %vm1251_vm3, %v1522_v16  ;;  %v944_v29 = vsel %vm661_vm4, %v839_v8, 0.0  ;;  %v747_v63 = vsel %vm661_vm4, %v1976_v17, 0.0  ;;  %v841_v30 = vmul.f32 %v2010_v47, %v2010_v47  ;;  %1313 = vst.msk [vmem:[%s2465_s2 + $0xf4] sm:$0xf] %vm1251_vm3, %v1520_v27 }
 0x12a   :  { %v933_v42 = vadd.f32 %v932_v39, %v931_v33  ;;  %v736_v43 = vadd.f32 %v735_v40, %v734_v31  ;;  %v946_v36 = vsel %vm661_vm4, %v840_v23, 0.0  ;;  %v749_v39 = vsel %vm661_vm4, %v2010_v47, 0.0 }
 0x12b   :  { %v842_v40 = vmul.f32 %v2032_v4, %v2032_v4  ;;  %v751_v45 = vsel %vm661_vm4, %v2032_v4, 0.0  ;;  %v844_v47 = vmul.f32 %v2020_v56, %v2020_v56  ;;  %v845_v4 = vmul.f32 %v2054_v25, %v2054_v25 }
 0x12c   :  { %v738_v52 = vadd.f32 %v737_v46, %v736_v43  ;;  %v935_v54 = vadd.f32 %v934_v53, %v933_v42  ;;  %v843_v42 = vmul.f32 %v1998_v38, %v1998_v38  ;;  %v948_v43 = vsel %vm661_vm4, %v841_v30, 0.0 }
 0x12d   :  { %v753_v53 = vsel %vm661_vm4, %v1998_v38, 0.0  ;;  %v950_v51 = vsel %vm661_vm4, %v842_v40, 0.0  ;;  %v757_v38 = vsel %vm661_vm4, %v2054_v25, 0.0  ;;  %v759_v5 = vsel %vm661_vm4, %v2076_v48, 0.0 }
 0x12e   :  { %v937_v62 = vadd.f32 %v936_v55, %v935_v54  ;;  %v740_v0 = vadd.f32 %v739_v2, %v738_v52  ;;  %v952_v55 = vsel %vm661_vm4, %v843_v42, 0.0  ;;  %v755_v2 = vsel %vm661_vm4, %v2020_v56, 0.0 }
 0x12f   :  { %v956_v56 = vsel %vm661_vm4, %v845_v4, 0.0  ;;  %v848_v25 = vmul.f32 %v2064_v35, %v2064_v35 }
 0x130   :  { %v742_v19 = vadd.f32 %v741_v44, %v740_v0  ;;  %v939_v9 = vadd.f32 %v938_v3, %v937_v62  ;;  %v954_v62 = vsel %vm661_vm4, %v844_v47, 0.0  ;;  %v846_v0 = vmul.f32 %v2076_v48, %v2076_v48 }
 0x131   :  { %v847_v44 = vmul.f32 %v2042_v15, %v2042_v15  ;;  %v849_v48 = vmul.f32 %v2098_v7, %v2098_v7  ;;  %v962_v23 = vsel %vm661_vm4, %v848_v25, 0.0  ;;  %v775_v47 = vsel %vm661_vm4, %v2205_v57, 0.0 }
 0x132   :  { %v941_v18 = vadd.f32 %v940_v13, %v939_v9  ;;  %v744_v21 = vadd.f32 %v743_v14, %v742_v19  ;;  %v761_v9 = vsel %vm661_vm4, %v2042_v15, 0.0  ;;  %v958_v8 = vsel %vm661_vm4, %v846_v0, 0.0 }
 0x133   :  { %v960_v16 = vsel %vm661_vm4, %v847_v44, 0.0  ;;  %v765_v15 = vsel %vm661_vm4, %v2098_v7, 0.0  ;;  %v852_v7 = vmul.f32 %v2108_v20, %v2108_v20 }
 0x134   :  { %v746_v26 = vadd.f32 %v745_v22, %v744_v21  ;;  %v943_v10 = vadd.f32 %v942_v24, %v941_v18  ;;  %v763_v18 = vsel %vm661_vm4, %v2064_v35, 0.0  ;;  %v850_v24 = vmul.f32 %v2120_v32, %v2120_v32 }
 0x135   :  { %v964_v35 = vsel %vm661_vm4, %v849_v48, 0.0 }
 0x136   :  { %v945_v31 = vadd.f32 %v944_v29, %v943_v10  ;;  %v748_v33 = vadd.f32 %v747_v63, %v746_v26  ;;  %v851_v10 = vmul.f32 %v2086_v60, %v2086_v60  ;;  %v767_v29 = vsel %vm661_vm4, %v2120_v32, 0.0 }
 0x137   :  { %v853_v32 = vmul.f32 %v2154_v12, %v2154_v12 }
 0x138   :  { %v750_v41 = vadd.f32 %v749_v39, %v748_v33  ;;  %v947_v17 = vadd.f32 %v946_v36, %v945_v31  ;;  %v769_v31 = vsel %vm661_vm4, %v2086_v60, 0.0  ;;  %v966_v33 = vsel %vm661_vm4, %v850_v24, 0.0 }
 0x139   :  { %v968_v40 = vsel %vm661_vm4, %v851_v10, 0.0  ;;  %v773_v60 = vsel %vm661_vm4, %v2154_v12, 0.0  ;;  %v856_v12 = vmul.f32 %v2176_v34, %v2176_v34 }
 0x13a   :  { %v949_v46 = vadd.f32 %v948_v43, %v947_v17  ;;  %v752_v49 = vadd.f32 %v751_v45, %v750_v41  ;;  %v771_v41 = vsel %vm661_vm4, %v2108_v20, 0.0  ;;  %v970_v43 = vsel %vm661_vm4, %v852_v7, 0.0 }
 0x13b   :  { %v854_v45 = vmul.f32 %v2205_v57, %v2205_v57  ;;  %v972_v20 = vsel %vm661_vm4, %v853_v32, 0.0  ;;  %v857_v57 = vmul.f32 %v2265_v37, %v2265_v37  ;;  %v978_v0 = vsel %vm661_vm4, %v856_v12, 0.0 }
 0x13c   :  { %v754_v52 = vadd.f32 %v753_v53, %v752_v49  ;;  %v951_v54 = vadd.f32 %v950_v51, %v949_v46  ;;  %v855_v53 = vmul.f32 %v2134_v50, %v2134_v50 }
 0x13e   :  { %v953_v59 = vadd.f32 %v952_v55, %v951_v54  ;;  %v756_v61 = vadd.f32 %v755_v2, %v754_v52  ;;  %v777_v54 = vsel %vm661_vm4, %v2134_v50, 0.0  ;;  %v974_v55 = vsel %vm661_vm4, %v854_v45, 0.0 }
 0x13f   :  { %v781_v50 = vsel %vm661_vm4, %v2265_v37, 0.0  ;;  %v860_v37 = vmul.f32 %v2295_v28, %v2295_v28 }
 0x140   :  { %v758_v1 = vadd.f32 %v757_v38, %v756_v61  ;;  %v955_v3 = vadd.f32 %v954_v62, %v953_v59  ;;  %v976_v59 = vsel %vm661_vm4, %v855_v53, 0.0  ;;  %v779_v61 = vsel %vm661_vm4, %v2176_v34, 0.0 }
 0x141   :  { %v980_v34 = vsel %vm661_vm4, %v857_v57, 0.0 }
 0x142   :  { %v957_v6 = vadd.f32 %v956_v56, %v955_v3  ;;  %v760_v19 = vadd.f32 %v759_v5, %v758_v1  ;;  %v858_v1 = vmul.f32 %v2325_v11, %v2325_v11  ;;  %v859_v56 = vmul.f32 %v2235_v58, %v2235_v58 }
 0x143   :  { %v783_v5 = vsel %vm661_vm4, %v2325_v11, 0.0  ;;  %v986_v11 = vsel %vm661_vm4, %v860_v37, 0.0 }
 0x144   :  { %v762_v13 = vadd.f32 %v761_v9, %v760_v19  ;;  %v959_v14 = vadd.f32 %v958_v8, %v957_v6  ;;  %v785_v9 = vsel %vm661_vm4, %v2235_v58, 0.0  ;;  %v982_v25 = vsel %vm661_vm4, %v858_v1, 0.0 }
 0x146   :  { %v961_v21 = vadd.f32 %v960_v16, %v959_v14  ;;  %v764_v22 = vadd.f32 %v763_v18, %v762_v13  ;;  %v984_v14 = vsel %vm661_vm4, %v859_v56, 0.0  ;;  %v787_v16 = vsel %vm661_vm4, %v2295_v28, 0.0 }
 0x148   :  { %v766_v27 = vadd.f32 %v765_v15, %v764_v22  ;;  %v963_v26 = vadd.f32 %v962_v23, %v961_v21 }
 0x14a   :  { %v965_v63 = vadd.f32 %v964_v35, %v963_v26  ;;  %v768_v30 = vadd.f32 %v767_v29, %v766_v27 }
 0x14c   :  { %v770_v36 = vadd.f32 %v769_v31, %v768_v30  ;;  %v967_v39 = vadd.f32 %v966_v33, %v965_v63 }
 0x14e   :  { %v969_v17 = vadd.f32 %v968_v40, %v967_v39  ;;  %v772_v42 = vadd.f32 %v771_v41, %v770_v36 }
 0x150   :  { %v774_v46 = vadd.f32 %v773_v60, %v772_v42  ;;  %v971_v49 = vadd.f32 %v970_v43, %v969_v17 }
 0x152   :  { %v973_v51 = vadd.f32 %v972_v20, %v971_v49  ;;  %v776_v52 = vadd.f32 %v775_v47, %v774_v46 }
 0x154   :  { %v778_v2 = vadd.f32 %v777_v54, %v776_v52  ;;  %v975_v4 = vadd.f32 %v974_v55, %v973_v51 }
 0x156   :  { %v977_v62 = vadd.f32 %v976_v59, %v975_v4  ;;  %v780_v38 = vadd.f32 %v779_v61, %v778_v2 }
 0x158   :  { %v782_v3 = vadd.f32 %v781_v50, %v780_v38  ;;  %v979_v44 = vadd.f32 %v978_v0, %v977_v62 }
 0x15a   :  { %v981_v6 = vadd.f32 %v980_v34, %v979_v44  ;;  %v784_v19 = vadd.f32 %v783_v5, %v782_v3 }
 0x15c   :  { %v786_v8 = vadd.f32 %v785_v9, %v784_v19  ;;  %v983_v13 = vadd.f32 %v982_v25, %v981_v6 }
 0x15e   :  { %v788_v18 = vadd.f32 %v787_v16, %v786_v8  ;;  %v985_v48 = vadd.f32 %v984_v14, %v983_v13 }
 0x160   :  { %v789_v21 = vrot.slane %v788_v18, 4  ;;  %v987_v22 = vadd.f32 %v986_v11, %v985_v48 }
 0x162   :  { %v790_v23 = vadd.f32 %v789_v21, %v788_v18  ;;  %v988_v58 = vrot.slane %v987_v22, 4 }
 0x164   :  { %v791_v15 = vrot.slane %v790_v23, 2  ;;  %v989_v24 = vadd.f32 %v988_v58, %v987_v22 }
 0x166   :  { %v792_v27 = vadd.f32 %v791_v15, %v790_v23  ;;  %v990_v26 = vrot.slane %v989_v24, 2 }
 0x168   :  { %v793_v10 = vrot.slane %v792_v27, 1  ;;  %v991_v35 = vadd.f32 %v990_v26, %v989_v24 }
 0x16a   :  { %v794_v29 = vadd.f32 %v793_v10, %v792_v27  ;;  %v992_v63 = vrot.slane %v991_v35, 1 }
 0x16c   :  { %796 = vst.msk [vmem:[%s2466_s3] sm:$0x1] %vm795_vm5, %v794_v29  ;;  %v993_v28 = vadd.f32 %v992_v63, %v991_v35 }
 0x16e   :  { %994 = vst.msk [vmem:[%s2467_s4] sm:$0x1] %vm795_vm5, %v993_v28 }
 0x16f   :  { %1328 = vsyncpa [#allocation3], 1 }

// kernel: _lambda_.23
= control target key start
LH: loop header
LB: loop body
LE: loop exit
PB: predicated region body
PF: predicated region fallthrough
CT: control target
= control target key end

     0   :  { %vm87_vm0 = vcmask 261120   ;;  %vm367_vm1 = vcmask 519168   ;;  %vm209_vm2 = vcmask 523264   ;;  %vm247_vm3 = vcmask 516096   ;;  %s704_s1 = inlined_call_operand.vmem [shape: bf16[32,64], index: 1, kind: input, shape index: {}]   ;;  %s705_s0 = inlined_call_operand.vmem [shape: bf16[128,32], index: 0, kind: input, shape index: {}]   ;;  %s706_s2 = inlined_call_operand.vmem [shape: bf16[128,64], index: 2, kind: output, shape index: {0}]   ;;  %s707_s3 = inlined_call_operand.vmem [shape: f32[1,1,64], index: 3, kind: output, shape index: {1}]   ;;  %s708_s4 = inlined_call_operand.vmem [shape: f32[1,1,64], index: 4, kind: output, shape index: {2}]  }
   0x1   :  { %v480_v0 = vld [vmem:[%s704_s1 + $0x8] sm:$0xff]   ;;  %v481_v1 = vld [vmem:[%s704_s1] sm:$0xff]   ;;  %v484_v4 = vld [vmem:[%s705_s0 + $0x10] sm:$0xff]  }
   0x2   :  { %456 = vmatprep.subr.bf16.mxu0 %v480_v0  ;;  %v482_v2 = vld [vmem:[%s705_s0] sm:$0xff]   ;;  %476 = vmatprep.subr.bf16.mxu1 %v480_v0  ;;  %v483_v3 = vld [vmem:[%s705_s0 + $0x8] sm:$0xff]   ;;  %v488_v7 = vld [vmem:[%s705_s0 + $0x30] sm:$0xff]  }
   0x3   :  { %457 = vmatpush3.bf16.msra.mxu0 %v480_v0  ;;  %478 = vmatpush3.bf16.msra.mxu1 %v480_v0  ;;  %v486_v5 = vld [vmem:[%s705_s0 + $0x20] sm:$0xff]   ;;  %v487_v6 = vld [vmem:[%s705_s0 + $0x28] sm:$0xff]   ;;  %v485_v8 = vld [vmem:[%s705_s0 + $0x18] sm:$0xff]  }
   0x4   :  { %458 = vmatprep.subr.bf16.mxu0 %v481_v1  ;;  %460 = vmatprep.mubr.msk.bf16.mxu0 %vm87_vm0, %v482_v2  ;;  %v489_v9 = vld [vmem:[%s705_s0 + $0x38] sm:$0xff]  }
   0x5   :  { %477 = vmatprep.subr.bf16.mxu1 %v481_v1  ;;  %468 = vmatprep.mubr.msk.bf16.mxu1 %vm87_vm0, %v486_v5 }
   0x7   :  { %459 = vmatpush3.bf16.msra.mxu0 %v481_v1  ;;  %479 = vmatpush3.bf16.msra.mxu1 %v481_v1 }
   0xa   :  { %461 = vmatmul.mubr.msk.bf16.vlgmr.msra.gmra.mxu0 %vm87_vm0, %v483_v3  ;;  %469 = vmatmul.mubr.msk.bf16.vlgmr.msra.gmra.mxu1 %vm87_vm0, %v487_v6 }
   0xb   :  { %464 = vmatprep.mubr.msk.bf16.mxu0 %vm87_vm0, %v484_v4  ;;  %472 = vmatprep.mubr.msk.bf16.mxu1 %vm87_vm0, %v488_v7 }
  0x12   :  { %465 = vmatmul.mubr.msk.bf16.gmra.mxu0 %vm87_vm0, %v485_v8  ;;  %473 = vmatmul.mubr.msk.bf16.gmra.mxu1 %vm87_vm0, %v489_v9 }
  0xca   :  { %v462_v10 = vpop.f32.mrf.mxu0  ;;  %v553_v11 = vpop.f32.mrf.mxu1 }
  0xcb   :  { %v432_v12 = vpack.c.bf16 %v462_v10, %v462_v10  ;;  %v440_v14 = vpack.c.bf16 %v553_v11, %v553_v11  ;;  %v251_v22 = vmul.f32 %v462_v10, %v462_v10  ;;  %v213_v30 = vsel %vm209_vm2, %v462_v10, 0.0 }
  0xcc   :  { %v146_v13 = vpop.f32.mrf.mxu0  ;;  %v557_v15 = vpop.f32.mrf.mxu1 }
  0xcd   :  { %370 = vst.msk [vmem:[%s706_s2 + $0x8] sm:$0xf] %vm367_vm1, %v432_v12  ;;  %v430_v16 = vpack.c.bf16 %v146_v13, %v146_v13  ;;  %378 = vst.msk [vmem:[%s706_s2 + $0x28] sm:$0xf] %vm367_vm1, %v440_v14  ;;  %v438_v18 = vpack.c.bf16 %v557_v15, %v557_v15  ;;  %v249_v20 = vmul.f32 %v146_v13, %v146_v13  ;;  %v210_v26 = vsel %vm209_vm2, %v146_v13, 0.0 }
  0xce   :  { %v463_v17 = vpop.f32.mrf.mxu0  ;;  %v569_v19 = vpop.f32.mrf.mxu1  ;;  %v268_v43 = vsel %vm209_vm2, %v251_v22, 0.0  ;;  %v257_v12 = vmul.f32 %v557_v15, %v557_v15 }
  0xcf   :  { %368 = vst.msk [vmem:[%s706_s2] sm:$0xf] %vm367_vm1, %v430_v16  ;;  %v433_v21 = vpack.c.bf16 %v463_v17, %v463_v17  ;;  %376 = vst.msk [vmem:[%s706_s2 + $0x20] sm:$0xf] %vm367_vm1, %v438_v18  ;;  %v441_v24 = vpack.c.bf16 %v569_v19, %v569_v19  ;;  %v265_v34 = vsel %vm209_vm2, %v249_v20, 0.0  ;;  %v252_v35 = vmul.f32 %v463_v17, %v463_v17 }
  0xd0   :  { %v149_v23 = vpop.f32.mrf.mxu0  ;;  %v581_v25 = vpop.f32.mrf.mxu1  ;;  %v215_v44 = vsel %vm209_vm2, %v463_v17, 0.0  ;;  %v225_v18 = vsel %vm209_vm2, %v557_v15, 0.0 }
  0xd1   :  { %371 = vst.msk [vmem:[%s706_s2 + $0xc] sm:$0xf] %vm367_vm1, %v433_v21  ;;  %v211_v27 = vsel %vm209_vm2, %v149_v23, 0.0  ;;  %v250_v28 = vmul.f32 %v149_v23, %v149_v23  ;;  %v431_v29 = vpack.c.bf16 %v149_v23, %v149_v23  ;;  %379 = vst.msk [vmem:[%s706_s2 + $0x2c] sm:$0xf] %vm367_vm1, %v441_v24  ;;  %v439_v41 = vpack.c.bf16 %v581_v25, %v581_v25 }
  0xd2   :  { %v212_v31 = vadd.f32 %v211_v27, %v210_v26  ;;  %v466_v32 = vpop.f32.mrf.mxu0  ;;  %v594_v33 = vpop.f32.mrf.mxu1  ;;  %v270_v51 = vsel %vm209_vm2, %v252_v35, 0.0  ;;  %v258_v20 = vmul.f32 %v581_v25, %v581_v25  ;;  %v259_v23 = vmul.f32 %v553_v11, %v553_v11 }
  0xd3   :  { %v266_v36 = vsel %vm209_vm2, %v250_v28, 0.0  ;;  %369 = vst.msk [vmem:[%s706_s2 + $0x4] sm:$0xf] %vm367_vm1, %v431_v29  ;;  %v436_v37 = vpack.c.bf16 %v466_v32, %v466_v32  ;;  %377 = vst.msk [vmem:[%s706_s2 + $0x24] sm:$0xf] %vm367_vm1, %v439_v41  ;;  %v255_v54 = vmul.f32 %v466_v32, %v466_v32  ;;  %v444_v58 = vpack.c.bf16 %v594_v33, %v594_v33 }
  0xd4   :  { %v214_v38 = vadd.f32 %v213_v30, %v212_v31  ;;  %v267_v39 = vadd.f32 %v266_v36, %v265_v34  ;;  %v162_v40 = vpop.f32.mrf.mxu0  ;;  %v604_v42 = vpop.f32.mrf.mxu1  ;;  %v221_v2 = vsel %vm209_vm2, %v466_v32, 0.0  ;;  %v280_v24 = vsel %vm209_vm2, %v257_v12, 0.0 }
  0xd5   :  { %374 = vst.msk [vmem:[%s706_s2 + $0x18] sm:$0xf] %vm367_vm1, %v436_v37  ;;  %v253_v45 = vmul.f32 %v162_v40, %v162_v40  ;;  %v434_v46 = vpack.c.bf16 %v162_v40, %v162_v40  ;;  %v217_v52 = vsel %vm209_vm2, %v162_v40, 0.0  ;;  %382 = vst.msk [vmem:[%s706_s2 + $0x38] sm:$0xf] %vm367_vm1, %v444_v58  ;;  %v442_v5 = vpack.c.bf16 %v604_v42, %v604_v42 }
  0xd6   :  { %v269_v47 = vadd.f32 %v268_v43, %v267_v39  ;;  %v216_v48 = vadd.f32 %v215_v44, %v214_v38  ;;  %v467_v49 = vpop.f32.mrf.mxu0  ;;  %v616_v50 = vpop.f32.mrf.mxu1  ;;  %v276_v9 = vsel %vm209_vm2, %v255_v54, 0.0  ;;  %v227_v26 = vsel %vm209_vm2, %v581_v25, 0.0 }
  0xd7   :  { %372 = vst.msk [vmem:[%s706_s2 + $0x10] sm:$0xf] %vm367_vm1, %v434_v46  ;;  %v437_v53 = vpack.c.bf16 %v467_v49, %v467_v49  ;;  %v272_v59 = vsel %vm209_vm2, %v253_v45, 0.0  ;;  %v256_v3 = vmul.f32 %v467_v49, %v467_v49  ;;  %v445_v8 = vpack.c.bf16 %v616_v50, %v616_v50  ;;  %380 = vst.msk [vmem:[%s706_s2 + $0x30] sm:$0xf] %vm367_vm1, %v442_v5 }
  0xd8   :  { %v218_v55 = vadd.f32 %v217_v52, %v216_v48  ;;  %v271_v56 = vadd.f32 %v270_v51, %v269_v47  ;;  %v165_v57 = vpop.f32.mrf.mxu0  ;;  %v197_v1 = vpop.f32.mrf.mxu1  ;;  %v223_v10 = vsel %vm209_vm2, %v467_v49, 0.0  ;;  %v229_v28 = vsel %vm209_vm2, %v553_v11, 0.0 }
  0xd9   :  { %375 = vst.msk [vmem:[%s706_s2 + $0x1c] sm:$0xf] %vm367_vm1, %v437_v53  ;;  %v219_v60 = vsel %vm209_vm2, %v165_v57, 0.0  ;;  %v254_v61 = vmul.f32 %v165_v57, %v165_v57  ;;  %v435_v62 = vpack.c.bf16 %v165_v57, %v165_v57  ;;  %v443_v13 = vpack.c.bf16 %v197_v1, %v197_v1  ;;  %383 = vst.msk [vmem:[%s706_s2 + $0x3c] sm:$0xf] %vm367_vm1, %v445_v8 }
  0xda   :  { %v273_v63 = vadd.f32 %v272_v59, %v271_v56  ;;  %v220_v0 = vadd.f32 %v219_v60, %v218_v55  ;;  %v278_v17 = vsel %vm209_vm2, %v256_v3, 0.0  ;;  %v260_v29 = vmul.f32 %v569_v19, %v569_v19 }
  0xdb   :  { %v274_v4 = vsel %vm209_vm2, %v254_v61, 0.0  ;;  %373 = vst.msk [vmem:[%s706_s2 + $0x14] sm:$0xf] %vm367_vm1, %v435_v62  ;;  %381 = vst.msk [vmem:[%s706_s2 + $0x34] sm:$0xf] %vm367_vm1, %v443_v13  ;;  %v282_v30 = vsel %vm209_vm2, %v258_v20, 0.0  ;;  %v261_v25 = vmul.f32 %v604_v42, %v604_v42  ;;  %v262_v39 = vmul.f32 %v197_v1, %v197_v1 }
  0xdc   :  { %v222_v6 = vadd.f32 %v221_v2, %v220_v0  ;;  %v275_v7 = vadd.f32 %v274_v4, %v273_v63  ;;  %v284_v34 = vsel %vm209_vm2, %v259_v23, 0.0  ;;  %v231_v35 = vsel %vm209_vm2, %v569_v19, 0.0 }
  0xdd   :  { %v286_v38 = vsel %vm209_vm2, %v260_v29, 0.0  ;;  %v233_v11 = vsel %vm209_vm2, %v604_v42, 0.0  ;;  %v263_v43 = vmul.f32 %v594_v33, %v594_v33  ;;  %v288_v44 = vsel %vm209_vm2, %v261_v25, 0.0 }
  0xde   :  { %v224_v14 = vadd.f32 %v223_v10, %v222_v6  ;;  %v277_v16 = vadd.f32 %v276_v9, %v275_v7  ;;  %v235_v19 = vsel %vm209_vm2, %v197_v1, 0.0  ;;  %v237_v47 = vsel %vm209_vm2, %v594_v33, 0.0 }
  0xdf   :  { %v264_v48 = vmul.f32 %v616_v50, %v616_v50  ;;  %v290_v42 = vsel %vm209_vm2, %v262_v39, 0.0  ;;  %v292_v52 = vsel %vm209_vm2, %v263_v43, 0.0  ;;  %v239_v53 = vsel %vm209_vm2, %v616_v50, 0.0 }
  0xe0   :  { %v279_v21 = vadd.f32 %v278_v17, %v277_v16  ;;  %v226_v22 = vadd.f32 %v225_v18, %v224_v14 }
  0xe1   :  { %v294_v56 = vsel %vm209_vm2, %v264_v48, 0.0 }
  0xe2   :  { %v228_v27 = vadd.f32 %v227_v26, %v226_v22  ;;  %v281_v15 = vadd.f32 %v280_v24, %v279_v21 }
  0xe4   :  { %v230_v31 = vadd.f32 %v229_v28, %v228_v27  ;;  %v283_v32 = vadd.f32 %v282_v30, %v281_v15 }
  0xe6   :  { %v285_v36 = vadd.f32 %v284_v34, %v283_v32  ;;  %v232_v37 = vadd.f32 %v231_v35, %v230_v31 }
  0xe8   :  { %v234_v40 = vadd.f32 %v233_v11, %v232_v37  ;;  %v287_v41 = vadd.f32 %v286_v38, %v285_v36 }
  0xea   :  { %v289_v45 = vadd.f32 %v288_v44, %v287_v41  ;;  %v236_v46 = vadd.f32 %v235_v19, %v234_v40 }
  0xec   :  { %v238_v49 = vadd.f32 %v237_v47, %v236_v46  ;;  %v291_v51 = vadd.f32 %v290_v42, %v289_v45 }
  0xee   :  { %v240_v54 = vadd.f32 %v239_v53, %v238_v49  ;;  %v293_v55 = vadd.f32 %v292_v52, %v291_v51 }
  0xf0   :  { %v241_v57 = vrot.slane %v240_v54, 4  ;;  %v295_v58 = vadd.f32 %v294_v56, %v293_v55 }
  0xf2   :  { %v242_v59 = vadd.f32 %v241_v57, %v240_v54  ;;  %v296_v33 = vrot.slane %v295_v58, 4 }
  0xf4   :  { %v243_v60 = vrot.slane %v242_v59, 2  ;;  %v297_v61 = vadd.f32 %v296_v33, %v295_v58 }
  0xf6   :  { %v244_v62 = vadd.f32 %v243_v60, %v242_v59  ;;  %v298_v63 = vrot.slane %v297_v61, 2 }
  0xf8   :  { %v245_v0 = vrot.slane %v244_v62, 1  ;;  %v299_v1 = vadd.f32 %v298_v63, %v297_v61 }
  0xfa   :  { %v246_v2 = vadd.f32 %v245_v0, %v244_v62  ;;  %v300_v3 = vrot.slane %v299_v1, 1 }
  0xfc   :  { %248 = vst.msk [vmem:[%s707_s3] sm:$0x1] %vm247_vm3, %v246_v2  ;;  %v301_v50 = vadd.f32 %v300_v3, %v299_v1 }
  0xfe   :  { %302 = vst.msk [vmem:[%s708_s4] sm:$0x1] %vm247_vm3, %v301_v50 }

// kernel: _lambda_.24
= control target key start
LH: loop header
LB: loop body
LE: loop exit
PB: predicated region body
PF: predicated region fallthrough
CT: control target
= control target key end

     0   :  { %s357_s12 = smov 0   ;;  %s380_s0 = inlined_call_operand.vmem [shape: bf16[64,128], index: 0, kind: input, shape index: {}]   ;;  %s381_s1 = inlined_call_operand.vmem [shape: f32[1,128], index: 1, kind: input, shape index: {}]   ;;  %s382_s2 = inlined_call_operand.vmem [shape: f32[1,128], index: 2, kind: input, shape index: {}]   ;;  %s383_s3 = inlined_call_operand.vmem [shape: bf16[64,128], index: 3, kind: output, shape index: {}]  }
   0x1 LB: > { %s280_s13 = sadd.s32 4294967295, %s335_s12   ;;  %p284_p0 = scmp.ge.s32.totalorder %s335_s12, 1  ;;  %s335_s12 = sphi %s357_s12, %s13_s12  }
   0x2   : > { %p138_p1 = scmp.lt.s32.totalorder %s335_s12, 3 }
   0x4   : > { %p139_p2 = pnand %p284_p0, %p138_p1 }
   0x5   : > { %s285_s14 = sshll.u32 (!%p139_p2), %s280_s13, 2 }
   0x6   : > { %142 = sbr.rel (%p139_p2) target bundleno = 24 (0x18), region = 32  ;;  %p163_p3 = scmp.lt.s32.totalorder (!%p139_p2), %s285_s14, 7 }
   0xb   : > { %s385_s14 = smov (!%p163_p3, %s285_s14), 7  ;;  %v289_v2 = vld [vmem:[%s381_s1] ss:$0 sm:$0xff] }
   0xc   : > { %s286_s15 = sshll.u32 %s385_s14, 2  ;;  %v290_v7 = vld [vmem:[%s382_s2] ss:$0 sm:$0xff] }
   0xd   : > { %s166_s18 = scalar_lea.vmem %s380_s0, %s286_s15  ;;  %s172_s25 = scalar_lea.vmem %s383_s3, %s286_s15 }
   0xe   : > { %v302_v0 = vld [vmem:[%s166_s18] sm:$0xff]   ;;  %v319_v1 = vld [vmem:[%s166_s18 + $0x8] sm:$0xff]  }
   0xf   : > { %v303_v3 = vunpack.c.l.bf16 %v302_v0  ;;  %v304_v4 = vunpack.c.h.bf16 %v302_v0  ;;  %v307_v5 = vunpack.c.l.bf16 %v319_v1  ;;  %v308_v6 = vunpack.c.h.bf16 %v319_v1 }
  0x11   : > { %v189_v8 = vmul.f32 %v303_v3, %v289_v2  ;;  %v190_v9 = vmul.f32 %v304_v4, %v289_v2  ;;  %v191_v10 = vmul.f32 %v307_v5, %v289_v2  ;;  %v192_v11 = vmul.f32 %v308_v6, %v289_v2 }
  0x13   : > { %v200_v12 = vadd.f32 %v290_v7, %v189_v8  ;;  %v201_v13 = vadd.f32 %v290_v7, %v190_v9  ;;  %v202_v14 = vadd.f32 %v290_v7, %v191_v10  ;;  %v203_v15 = vadd.f32 %v290_v7, %v192_v11 }
  0x15   : > { %v312_v16 = vpack.c.bf16 %v201_v13, %v200_v12  ;;  %v317_v17 = vpack.c.bf16 %v203_v15, %v202_v14 }
  0x17   : > { %313 = vst [vmem:[%s172_s25] sm:$0xff] %v312_v16   ;;  %320 = vst [vmem:[%s172_s25 + $0x8] sm:$0xff] %v317_v17  }
  0x18 PF: > { %s13_s12 = sadd.s32 1, %s335_s12  }
  0x19   : > { %p10_p4 = scmp.ge.s32.totalorder %s13_s12, 4  }
  0x1b   :  { %12 = sbr.rel (!%p10_p4) target bundleno = 1 (0x1), region = 62 }

// kernel: _lambda_.26
= control target key start
LH: loop header
LB: loop body
LE: loop exit
PB: predicated region body
PF: predicated region fallthrough
CT: control target
= control target key end

     0   :  { %s361_s12 = smov 0   ;;  %s384_s0 = inlined_call_operand.vmem [shape: bf16[64,128], index: 0, kind: input, shape index: {}]   ;;  %s385_s1 = inlined_call_operand.vmem [shape: f32[1,128], index: 1, kind: input, shape index: {}]   ;;  %s386_s2 = inlined_call_operand.vmem [shape: f32[1,128], index: 2, kind: input, shape index: {}]   ;;  %s387_s3 = inlined_call_operand.vmem [shape: bf16[64,128], index: 3, kind: output, shape index: {}]  }
   0x1 LB: > { %s284_s13 = sadd.s32 4294967295, %s339_s12   ;;  %p288_p0 = scmp.ge.s32.totalorder %s339_s12, 1  ;;  %s339_s12 = sphi %s361_s12, %s13_s12  }
   0x2   : > { %p138_p1 = scmp.lt.s32.totalorder %s339_s12, 3 }
   0x4   : > { %p139_p2 = pnand %p288_p0, %p138_p1 }
   0x5   : > { %s289_s14 = sshll.u32 (!%p139_p2), %s284_s13, 2 }
   0x6   : > { %142 = sbr.rel (%p139_p2) target bundleno = 26 (0x1a), region = 32  ;;  %p163_p3 = scmp.lt.s32.totalorder (!%p139_p2), %s289_s14, 7 }
   0xb   : > { %s389_s14 = smov (!%p163_p3, %s289_s14), 7  ;;  %v293_v2 = vld [vmem:[%s385_s1] ss:$0 sm:$0xff] }
   0xc   : > { %s290_s15 = sshll.u32 %s389_s14, 2  ;;  %v294_v7 = vld [vmem:[%s386_s2] ss:$0 sm:$0xff] }
   0xd   : > { %s166_s18 = scalar_lea.vmem %s384_s0, %s290_s15  ;;  %s172_s25 = scalar_lea.vmem %s387_s3, %s290_s15 }
   0xe   : > { %v306_v0 = vld [vmem:[%s166_s18] sm:$0xff]   ;;  %v323_v1 = vld [vmem:[%s166_s18 + $0x8] sm:$0xff]  }
   0xf   : > { %v307_v3 = vunpack.c.l.bf16 %v306_v0  ;;  %v308_v4 = vunpack.c.h.bf16 %v306_v0  ;;  %v311_v5 = vunpack.c.l.bf16 %v323_v1  ;;  %v312_v6 = vunpack.c.h.bf16 %v323_v1 }
  0x11   : > { %v189_v8 = vmul.f32 %v307_v3, %v293_v2  ;;  %v190_v9 = vmul.f32 %v308_v4, %v293_v2  ;;  %v191_v10 = vmul.f32 %v311_v5, %v293_v2  ;;  %v192_v11 = vmul.f32 %v312_v6, %v293_v2 }
  0x13   : > { %v200_v12 = vadd.f32 %v294_v7, %v189_v8  ;;  %v201_v13 = vadd.f32 %v294_v7, %v190_v9  ;;  %v202_v14 = vadd.f32 %v294_v7, %v191_v10  ;;  %v203_v15 = vadd.f32 %v294_v7, %v192_v11 }
  0x15   : > { %v204_v16 = vmax.f32 %v200_v12, 0.0  ;;  %v205_v17 = vmax.f32 %v201_v13, 0.0  ;;  %v206_v18 = vmax.f32 %v202_v14, 0.0  ;;  %v207_v19 = vmax.f32 %v203_v15, 0.0 }
  0x17   : > { %v316_v20 = vpack.c.bf16 %v205_v17, %v204_v16  ;;  %v321_v21 = vpack.c.bf16 %v207_v19, %v206_v18 }
  0x19   : > { %317 = vst [vmem:[%s172_s25] sm:$0xff] %v316_v20   ;;  %324 = vst [vmem:[%s172_s25 + $0x8] sm:$0xff] %v321_v21  }
  0x1a PF: > { %s13_s12 = sadd.s32 1, %s339_s12  }
  0x1b   : > { %p10_p4 = scmp.ge.s32.totalorder %s13_s12, 4  }
  0x1d   :  { %12 = sbr.rel (!%p10_p4) target bundleno = 1 (0x1), region = 62 }

// kernel: _lambda_.28
= control target key start
LH: loop header
LB: loop body
LE: loop exit
PB: predicated region body
PF: predicated region fallthrough
CT: control target
= control target key end

     0   :  { %s450_s15 = smov 0   ;;  %s481_s0 = inlined_call_operand.vmem [shape: bf16[64,128], index: 0, kind: input, shape index: {}]   ;;  %s482_s1 = inlined_call_operand.vmem [shape: bf16[64,128], index: 1, kind: input, shape index: {}]   ;;  %s483_s2 = inlined_call_operand.vmem [shape: f32[1,128], index: 2, kind: input, shape index: {}]   ;;  %s484_s3 = inlined_call_operand.vmem [shape: f32[1,128], index: 3, kind: input, shape index: {}]   ;;  %s485_s4 = inlined_call_operand.vmem [shape: bf16[64,128], index: 4, kind: output, shape index: {}]  }
   0x1 LB: > { %s357_s16 = sadd.s32 4294967295, %s423_s15   ;;  %p361_p0 = scmp.ge.s32.totalorder %s423_s15, 1  ;;  %s423_s15 = sphi %s450_s15, %s14_s15  }
   0x2   : > { %p174_p1 = scmp.lt.s32.totalorder %s423_s15, 3 }
   0x4   : > { %p175_p2 = pnand %p361_p0, %p174_p1 }
   0x5   : > { %s362_s17 = sshll.u32 (!%p175_p2), %s357_s16, 2 }
   0x6   : > { %178 = sbr.rel (%p175_p2) target bundleno = 28 (0x1c), region = 36  ;;  %p206_p3 = scmp.lt.s32.totalorder (!%p175_p2), %s362_s17, 7 }
   0xb   : > { %s487_s17 = smov (!%p206_p3, %s362_s17), 7  ;;  %v368_v0 = vld [vmem:[%s483_s2] ss:$0 sm:$0xff] }
   0xc   : > { %s458_s18 = sshll.u32 %s487_s17, 2  ;;  %v369_v9 = vld [vmem:[%s484_s3] ss:$0 sm:$0xff] }
   0xd   : > { %s209_s21 = scalar_lea.vmem %s481_s0, %s458_s18  ;;  %s215_s24 = scalar_lea.vmem %s482_s1, %s458_s18 }
   0xe   : > { %v381_v1 = vld [vmem:[%s209_s21] sm:$0xff]   ;;  %v406_v2 = vld [vmem:[%s209_s21 + $0x8] sm:$0xff]   ;;  %s221_s5 = scalar_lea.vmem %s485_s4, %s458_s18 }
   0xf   : > { %v389_v3 = vld [vmem:[%s215_s24] sm:$0xff]   ;;  %v382_v4 = vunpack.c.l.bf16 %v381_v1  ;;  %v383_v5 = vunpack.c.h.bf16 %v381_v1  ;;  %v386_v6 = vunpack.c.l.bf16 %v406_v2  ;;  %v387_v7 = vunpack.c.h.bf16 %v406_v2  ;;  %v407_v8 = vld [vmem:[%s215_s24 + $0x8] sm:$0xff]  }
  0x10   : > { %v390_v10 = vunpack.c.l.bf16 %v389_v3  ;;  %v391_v11 = vunpack.c.h.bf16 %v389_v3  ;;  %v394_v12 = vunpack.c.l.bf16 %v407_v8  ;;  %v395_v13 = vunpack.c.h.bf16 %v407_v8 }
  0x11   : > { %v238_v14 = vmul.f32 %v382_v4, %v368_v0  ;;  %v239_v15 = vmul.f32 %v383_v5, %v368_v0  ;;  %v240_v16 = vmul.f32 %v386_v6, %v368_v0  ;;  %v241_v17 = vmul.f32 %v387_v7, %v368_v0 }
  0x13   : > { %v249_v18 = vadd.f32 %v369_v9, %v238_v14  ;;  %v250_v19 = vadd.f32 %v369_v9, %v239_v15  ;;  %v251_v20 = vadd.f32 %v369_v9, %v240_v16  ;;  %v252_v21 = vadd.f32 %v369_v9, %v241_v17 }
  0x15   : > { %v261_v22 = vadd.f32 %v390_v10, %v249_v18  ;;  %v262_v23 = vadd.f32 %v391_v11, %v250_v19  ;;  %v263_v24 = vadd.f32 %v394_v12, %v251_v20  ;;  %v264_v25 = vadd.f32 %v395_v13, %v252_v21 }
  0x17   : > { %v265_v26 = vmax.f32 %v261_v22, 0.0  ;;  %v266_v27 = vmax.f32 %v262_v23, 0.0  ;;  %v267_v28 = vmax.f32 %v263_v24, 0.0  ;;  %v268_v29 = vmax.f32 %v264_v25, 0.0 }
  0x19   : > { %v399_v30 = vpack.c.bf16 %v266_v27, %v265_v26  ;;  %v404_v31 = vpack.c.bf16 %v268_v29, %v267_v28 }
  0x1b   : > { %400 = vst [vmem:[%s221_s5] sm:$0xff] %v399_v30   ;;  %408 = vst [vmem:[%s221_s5 + $0x8] sm:$0xff] %v404_v31  }
  0x1c PF: > { %s14_s15 = sadd.s32 1, %s423_s15  }
  0x1d   : > { %p11_p4 = scmp.ge.s32.totalorder %s14_s15, 4  }
  0x1f   :  { %13 = sbr.rel (!%p11_p4) target bundleno = 1 (0x1), region = 69 }

// kernel: _lambda_.25
= control target key start
LH: loop header
LB: loop body
LE: loop exit
PB: predicated region body
PF: predicated region fallthrough
CT: control target
= control target key end

     0   :  { %s2385_s15 = smov 0   ;;  %s2715_s0 = inlined_call_operand.vmem [shape: bf16[2,4,9,9,32], index: 0, kind: input, shape index: {}]   ;;  %s2716_s1 = inlined_call_operand.vmem [shape: bf16[9,32,64], index: 1, kind: input, shape index: {}]   ;;  %s2717_s2 = inlined_call_operand.vmem [shape: bf16[2,64,64], index: 2, kind: output, shape index: {0}]   ;;  %s2718_s3 = inlined_call_operand.vmem [shape: f32[2,1,64], index: 3, kind: output, shape index: {1}]   ;;  %s2719_s4 = inlined_call_operand.vmem [shape: f32[2,1,64], index: 4, kind: output, shape index: {2}]  }
   0x1 LB: > { %s1914_s16 = sadd.s32 4294967295, %s2358_s15   ;;  %p1918_p0 = scmp.ge.s32.totalorder %s2358_s15, 1  ;;  %s2358_s15 = sphi %s2385_s15, %s15_s15  }
   0x2   : > { %p167_p1 = scmp.lt.s32.totalorder %s2358_s15, 3 }
   0x4   : > { %p168_p2 = pnand %p1918_p0, %p167_p1 }
   0x5   : > { %p199_p3 = scmp.lt.s32.totalorder (!%p168_p2), %s1914_s16, 1 }
   0x6   : > { %171 = sbr.rel (%p168_p2) target bundleno = 315 (0x13b), region = 28 }
   0xb   : > { %v2310_v0 = vld [vmem:[%s2716_s1 + $0x18] sm:$0xff]   ;;  %v2311_v1 = vld [vmem:[%s2716_s1 + $0x10] sm:$0xff]   ;;  %s2723_s16 = smov (!%p199_p3, %s1914_s16), 1  ;;  %v2316_v2 = vld [vmem:[%s2716_s1 + $0x8] sm:$0xff]   ;;  %vm274_vm0 = vcmask 261120   ;;  %vm1800_vm4 = vcmask 519168  }
   0xc   : > { %2189 = vmatprep.subr.bf16.mxu0 %v2310_v0  ;;  %2297 = vmatprep.subr.bf16.mxu1 %v2310_v0  ;;  %s2301_s23 = smul.u32 288, %s2723_s16  ;;  %v2317_v3 = vld [vmem:[%s2716_s1 + $0x28] sm:$0xff]   ;;  %v2319_v5 = vld [vmem:[%s2716_s1 + $0x20] sm:$0xff]   ;;  %vm477_vm1 = vsmask.f32 3328  ;;  %v2322_v22 = vld [vmem:[%s2716_s1 + $0x38] sm:$0xff]   ;;  %s211_s13 = scalar_lea.vmem %s2718_s3, %s2723_s16 }
   0xd   : > { %2190 = vmatpush3.bf16.msra.mxu0 %v2310_v0  ;;  %2299 = vmatpush3.bf16.msra.mxu1 %v2310_v0  ;;  %v2318_v7 = vld [vmem:[%s2716_s1] sm:$0xff]   ;;  %vm478_vm2 = vsmask.f32 7440  ;;  %v2440_v23 = vld [vmem:[%s2716_s1 + $0x48] sm:$0xff]   ;;  %v2326_v38 = vld [vmem:[%s2716_s1 + $0x30] sm:$0xff]   ;;  %vm1714_vm5 = vcmask 523264   ;;  %s214_s18 = scalar_lea.vmem %s2719_s4, %s2723_s16 }
   0xe   : > { %2191 = vmatprep.subr.bf16.mxu0 %v2311_v1  ;;  %2298 = vmatprep.subr.bf16.mxu1 %v2311_v1  ;;  %s2411_s28 = scalar_lea.vmem %s2715_s0, %s2301_s23  ;;  %vm2452_vm3 = vmor %vm477_vm1, %vm478_vm2  ;;  %vm1736_vm6 = vcmask 516096  }
   0xf   : > { %v2312_v4 = vld [vmem:[%s2411_s28 + $0x48] ss:$8 sps:$4 sm:$0xff]   ;;  %v2314_v8 = vld [vmem:[%s2411_s28 + $0x58] ss:$8 sps:$4 sm:$0xff]   ;;  %v462_v12 = vld [vmem:[%s2411_s28 + $0x4] sm:$0x1] }
  0x10   : > { %v2313_v6 = vld [vmem:[%s2411_s28 + $0x68] ss:$8 sps:$4 sm:$0xff]   ;;  %2193 = vmatprep.mubr.msk.bf16.mxu0 %vm274_vm0, %v2312_v4  ;;  %v2315_v9 = vld [vmem:[%s2411_s28 + $0x78] ss:$8 sps:$4 sm:$0xff]   ;;  %v464_v15 = vld [vmem:[%s2411_s28 + $0xc] sm:$0x1] }
  0x11   : > { %2192 = vmatpush3.bf16.msra.mxu0 %v2311_v1  ;;  %2300 = vmatpush3.bf16.msra.mxu1 %v2311_v1  ;;  %v2320_v10 = vld [vmem:[%s2411_s28] ss:$8 sps:$4 sm:$0xff]   ;;  %v2321_v14 = vld [vmem:[%s2411_s28 + $0x10] ss:$8 sps:$4 sm:$0xff]   ;;  %v490_v18 = vshll.u32 %v462_v12, 16  ;;  %v504_v21 = vshll.u32 %v464_v15, 16 }
  0x12   : > { %2201 = vmatprep.subr.bf16.mxu1 %v2316_v2  ;;  %2213 = vmatprep.subr.bf16.mxu0 %v2317_v3  ;;  %v461_v11 = vld [vmem:[%s2411_s28] sm:$0xf]  ;;  %v463_v13 = vld [vmem:[%s2411_s28 + $0x8] sm:$0xf]  ;;  %v465_v28 = vld [vmem:[%s2411_s28 + $0x10] sm:$0xf] }
  0x13   : > { %2197 = vmatprep.mubr.msk.bf16.mxu1 %vm274_vm0, %v2313_v6  ;;  %v481_v16 = vshrl.u32 %v461_v11, 16  ;;  %v484_v17 = vshll.u32 %v461_v11, 16  ;;  %v495_v19 = vshrl.u32 %v463_v13, 16  ;;  %v498_v20 = vshll.u32 %v463_v13, 16  ;;  %v466_v31 = vld [vmem:[%s2411_s28 + $0x14] sm:$0x1] }
  0x14   : > { %2194 = vmatmul.mubr.msk.bf16.vlgmr.msra.gmra.mxu0 %vm274_vm0, %v2314_v8  ;;  %2198 = vmatmul.mubr.msk.bf16.vlgmr.msra.gmra.mxu1 %vm274_vm0, %v2315_v9  ;;  %v492_v26 = vrot.slane %v490_v18, 5  ;;  %v506_v30 = vrot.slane %v504_v21, 5  ;;  %v467_v32 = vld [vmem:[%s2411_s28 + $0x18] sm:$0xf]  ;;  %v468_v34 = vld [vmem:[%s2411_s28 + $0x1c] sm:$0x1] }
  0x15   : > { %2214 = vmatpush3.bf16.msra.mxu0 %v2317_v3  ;;  %2202 = vmatpush3.bf16.msra.mxu1 %v2316_v2  ;;  %v483_v24 = vrot.slane %v481_v16, 4  ;;  %v486_v25 = vrot.slane %v484_v17, 5  ;;  %v497_v27 = vrot.slane %v495_v19, 4  ;;  %v500_v29 = vrot.slane %v498_v20, 5  ;;  %v2324_v54 = vld [vmem:[%s2411_s28 + $0x20] ss:$8 sps:$4 sm:$0xff]  }
  0x16   : > { %2215 = vmatprep.subr.bf16.mxu0 %v2319_v5  ;;  %2203 = vmatprep.subr.bf16.mxu1 %v2318_v7  ;;  %v509_v35 = vshrl.u32 %v465_v28, 16  ;;  %v512_v36 = vshll.u32 %v465_v28, 16  ;;  %v518_v37 = vshll.u32 %v466_v31, 16  ;;  %v523_v41 = vshrl.u32 %v467_v32, 16  ;;  %v2325_v57 = vld [vmem:[%s2411_s28 + $0x30] ss:$8 sps:$4 sm:$0xff]  }
  0x17   : > { %2205 = vmatprep.mubr.msk.bf16.mxu1 %vm274_vm0, %v2320_v10  ;;  %v487_v33 = vor.u32 %v486_v25, %v483_v24  ;;  %v501_v40 = vor.u32 %v500_v29, %v497_v27  ;;  %v526_v42 = vshll.u32 %v467_v32, 16  ;;  %v532_v43 = vshll.u32 %v468_v34, 16  ;;  %v469_v58 = vld [vmem:[%s2411_s28 + $0x20] sm:$0xf]  ;;  %v470_v61 = vld [vmem:[%s2411_s28 + $0x24] sm:$0x1] }
  0x18   : > { %v511_v45 = vrot.slane %v509_v35, 4  ;;  %v514_v46 = vrot.slane %v512_v36, 5  ;;  %v520_v47 = vrot.slane %v518_v37, 5  ;;  %v525_v49 = vrot.slane %v523_v41, 4  ;;  %v471_v62 = vld [vmem:[%s2411_s28 + $0x28] sm:$0xf] }
  0x19   : > { %2216 = vmatpush3.bf16.msra.mxu0 %v2319_v5  ;;  %2204 = vmatpush3.bf16.msra.mxu1 %v2318_v7  ;;  %v488_v44 = vrot.slane %v487_v33, 4  ;;  %v502_v48 = vrot.slane %v501_v40, 4  ;;  %v528_v50 = vrot.slane %v526_v42, 5  ;;  %v534_v51 = vrot.slane %v532_v43, 5  ;;  %v472_v1 = vld [vmem:[%s2411_s28 + $0x2c] sm:$0x1] }
  0x1a   : > { %2237 = vmatprep.subr.bf16.mxu0 %v2440_v23  ;;  %2225 = vmatprep.subr.bf16.mxu1 %v2322_v22  ;;  %v515_v53 = vor.u32 %v514_v46, %v511_v45  ;;  %v537_v63 = vshrl.u32 %v469_v58, 16  ;;  %v540_v2 = vshll.u32 %v469_v58, 16  ;;  %v546_v3 = vshll.u32 %v470_v61, 16  ;;  %v2331_v9 = vld [vmem:[%s2716_s1 + $0x58] sm:$0xff]   ;;  %v473_v18 = vld [vmem:[%s2411_s28 + $0x30] sm:$0xf] }
  0x1b   : > { %v493_v52 = vsel %vm2452_vm3, %v488_v44, %v492_v26  ;;  %v507_v55 = vsel %vm2452_vm3, %v502_v48, %v506_v30  ;;  %v529_v56 = vor.u32 %v528_v50, %v525_v49  ;;  %v551_v4 = vshrl.u32 %v471_v62, 16  ;;  %v474_v19 = vld [vmem:[%s2411_s28 + $0x34] sm:$0x1]  ;;  %v475_v21 = vld [vmem:[%s2411_s28 + $0x38] sm:$0xf]  ;;  %v2488_v30 = vld [vmem:[%s2716_s1 + $0x68] sm:$0xff]  }
  0x1c   : > { %2206 = vmatmul.mubr.msk.bf16.vlgmr.msra.gmra.mxu1 %vm274_vm0, %v2321_v14  ;;  %v1958_v59 = vcombine.low %v493_v52, %v507_v55  ;;  %v516_v60 = vrot.slane %v515_v53, 4  ;;  %v539_v6 = vrot.slane %v537_v63, 4  ;;  %v554_v7 = vshll.u32 %v471_v62, 16  ;;  %v2327_v14 = vld [vmem:[%s2716_s1 + $0x40] sm:$0xff]   ;;  %v2334_v55 = vld [vmem:[%s2411_s28 + $0xb0] ss:$8 sps:$4 sm:$0xff]  }
  0x1d   : > { %2226 = vmatpush3.bf16.msra.mxu1 %v2322_v22  ;;  %2209 = vmatprep.mubr.msk.bf16.mxu1 %vm274_vm0, %v2324_v54  ;;  %v530_v0 = vrot.slane %v529_v56, 4  ;;  %v560_v8 = vshll.u32 %v472_v1, 16  ;;  %v542_v11 = vrot.slane %v540_v2, 5  ;;  %v548_v12 = vrot.slane %v546_v3, 5  ;;  %v476_v22 = vld [vmem:[%s2411_s28 + $0x3c] sm:$0x1] }
  0x1e   : > { %2227 = vmatprep.subr.bf16.mxu1 %v2326_v38  ;;  %2217 = vmatprep.mubr.msk.bf16.mxu0 %vm274_vm0, %v1958_v59  ;;  %v521_v5 = vsel %vm2452_vm3, %v516_v60, %v520_v47  ;;  %v553_v13 = vrot.slane %v551_v4, 4  ;;  %v556_v16 = vrot.slane %v554_v7, 5  ;;  %v565_v24 = vshrl.u32 %v473_v18, 16  ;;  %v2329_v46 = vld [vmem:[%s2411_s28 + $0xa0] ss:$8 sps:$4 sm:$0xff]  }
  0x1f   : > { %v535_v10 = vsel %vm2452_vm3, %v530_v0, %v534_v51  ;;  %v562_v17 = vrot.slane %v560_v8, 5  ;;  %v543_v20 = vor.u32 %v542_v11, %v539_v6  ;;  %v568_v25 = vshll.u32 %v473_v18, 16  ;;  %v2509_v51 = vld [vmem:[%s2716_s1 + $0x78] sm:$0xff]   ;;  %v2335_v56 = vld [vmem:[%s2411_s28 + $0xc0] ss:$8 sps:$4 sm:$0xff]  }
  0x20   : > { %v1959_v15 = vcombine.low %v521_v5, %v535_v10  ;;  %v557_v26 = vor.u32 %v556_v16, %v553_v13  ;;  %v574_v27 = vshll.u32 %v474_v19, 16  ;;  %v579_v28 = vshrl.u32 %v475_v21, 16  ;;  %v2330_v53 = vld [vmem:[%s2411_s28 + $0xd8] ss:$8 sps:$4 sm:$0xff]   ;;  %v2012_v59 = vld [vmem:[%s2411_s28 + $0x90] sm:$0xf] }
  0x21   : > { %2228 = vmatpush3.bf16.msra.mxu1 %v2326_v38  ;;  %v582_v29 = vshll.u32 %v475_v21, 16  ;;  %v544_v31 = vrot.slane %v543_v20, 4  ;;  %v567_v32 = vrot.slane %v565_v24, 4  ;;  %v570_v33 = vrot.slane %v568_v25, 5  ;;  %v2337_v38 = vld [vmem:[%s2716_s1 + $0x50] sm:$0xff]   ;;  %v2339_v61 = vld [vmem:[%s2716_s1 + $0x60] sm:$0xff]  }
  0x22   : > { %2249 = vmatprep.subr.bf16.mxu1 %v2331_v9  ;;  %2218 = vmatmul.mubr.msk.bf16.vlgmr.msra.gmra.mxu0 %vm274_vm0, %v1959_v15  ;;  %v588_v34 = vshll.u32 %v476_v22, 16  ;;  %v558_v35 = vrot.slane %v557_v26, 4  ;;  %v581_v36 = vrot.slane %v579_v28, 4  ;;  %v576_v42 = vrot.slane %v574_v27, 5  ;;  %v2336_v58 = vld [vmem:[%s2411_s28 + $0xf8] ss:$8 sps:$4 sm:$0xff]  }
  0x23   : > { %2238 = vmatpush3.bf16.msra.mxu0 %v2440_v23  ;;  %v584_v37 = vrot.slane %v582_v29, 5  ;;  %v549_v40 = vsel %vm2452_vm3, %v544_v31, %v548_v12  ;;  %v571_v41 = vor.u32 %v570_v33, %v567_v32  ;;  %v2328_v23 = vld [vmem:[%s2411_s28 + $0x90] ss:$8 sps:$4 sm:$0xff]   ;;  %v2013_v60 = vld [vmem:[%s2411_s28 + $0x94] sm:$0x1]  ;;  %v985_v0 = vshrl.u32 %v2012_v59, 16 }
  0x24   : > { %2210 = vmatmul.mubr.msk.bf16.gmra.mxu1 %vm274_vm0, %v2325_v57  ;;  %2239 = vmatprep.subr.bf16.mxu0 %v2327_v14  ;;  %v590_v43 = vrot.slane %v588_v34, 5  ;;  %v563_v44 = vsel %vm2452_vm3, %v558_v35, %v562_v17  ;;  %v2332_v57 = vld [vmem:[%s2411_s28 + $0xe8] ss:$8 sps:$4 sm:$0xff]   ;;  %v2014_v62 = vld [vmem:[%s2411_s28 + $0x98] sm:$0xf]  ;;  %v988_v1 = vshll.u32 %v2012_v59, 16 }
  0x25   : > { %v585_v45 = vor.u32 %v584_v37, %v581_v36  ;;  %v1960_v47 = vcombine.low %v549_v40, %v563_v44  ;;  %v572_v48 = vrot.slane %v571_v41, 4  ;;  %2229 = vmatprep.mubr.msk.bf16.mxu1 %vm274_vm0, %v2328_v23  ;;  %v2015_v63 = vld [vmem:[%s2411_s28 + $0x9c] sm:$0x1]  ;;  %v994_v2 = vshll.u32 %v2013_v60, 16  ;;  %v2016_v6 = vld [vmem:[%s2411_s28 + $0xa0] sm:$0xf] }
  0x26   : > { %v999_v3 = vshrl.u32 %v2014_v62, 16  ;;  %v1002_v4 = vshll.u32 %v2014_v62, 16  ;;  %v1008_v5 = vshll.u32 %v2015_v63, 16  ;;  %v987_v7 = vrot.slane %v985_v0, 4  ;;  %v2018_v10 = vld [vmem:[%s2411_s28 + $0xa8] sm:$0xf] }
  0x27   : > { %2240 = vmatpush3.bf16.msra.mxu0 %v2327_v14  ;;  %v586_v49 = vrot.slane %v585_v45, 4  ;;  %2221 = vmatprep.mubr.msk.bf16.mxu0 %vm274_vm0, %v1960_v47  ;;  %v577_v50 = vsel %vm2452_vm3, %v572_v48, %v576_v42  ;;  %v990_v8 = vrot.slane %v988_v1, 5  ;;  %v996_v11 = vrot.slane %v994_v2, 5  ;;  %v2019_v15 = vld [vmem:[%s2411_s28 + $0xac] sm:$0x1]  ;;  %v2345_v1 = vld [vmem:[%s2716_s1 + $0x70] sm:$0xff]  }
  0x28   : > { %2261 = vmatprep.subr.bf16.mxu0 %v2488_v30  ;;  %v1001_v12 = vrot.slane %v999_v3, 4  ;;  %v1004_v13 = vrot.slane %v1002_v4, 5  ;;  %v1010_v14 = vrot.slane %v1008_v5, 5  ;;  %v1013_v17 = vshrl.u32 %v2016_v6, 16  ;;  %v2338_v25 = vld [vmem:[%s2411_s28 + $0x108] ss:$8 sps:$4 sm:$0xff]  }
  0x29   : > { %v591_v52 = vsel %vm2452_vm3, %v586_v49, %v590_v43  ;;  %v991_v16 = vor.u32 %v990_v8, %v987_v7  ;;  %v1016_v18 = vshll.u32 %v2016_v6, 16  ;;  %v1027_v21 = vshrl.u32 %v2018_v10, 16  ;;  %v2541_v29 = vld [vmem:[%s2716_s1 + $0x88] sm:$0xff]   ;;  %v2020_v43 = vld [vmem:[%s2411_s28 + $0xb0] sm:$0xf] }
  0x2a   : > { %v1961_v54 = vcombine.low %v577_v50, %v591_v52  ;;  %v1005_v20 = vor.u32 %v1004_v13, %v1001_v12  ;;  %v1030_v22 = vshll.u32 %v2018_v10, 16  ;;  %v1036_v24 = vshll.u32 %v2019_v15, 16  ;;  %v2340_v34 = vld [vmem:[%s2411_s28 + $0x8] ss:$8 sps:$4 sm:$0xff]   ;;  %v2021_v23 = vld [vmem:[%s2411_s28 + $0xb4] sm:$0x1] }
  0x2b   : > { %v992_v26 = vrot.slane %v991_v16, 4  ;;  %v1015_v27 = vrot.slane %v1013_v17, 4  ;;  %v1018_v28 = vrot.slane %v1016_v18, 5  ;;  %v1029_v32 = vrot.slane %v1027_v21, 4  ;;  %v2022_v45 = vld [vmem:[%s2411_s28 + $0xb8] sm:$0xf] }
  0x2c   : > { %2230 = vmatmul.mubr.msk.bf16.vlgmr.msra.gmra.mxu1 %vm274_vm0, %v2329_v46  ;;  %2222 = vmatmul.mubr.msk.bf16.gmra.mxu0 %vm274_vm0, %v1961_v54  ;;  %v1032_v33 = vrot.slane %v1030_v22, 5  ;;  %v1038_v40 = vrot.slane %v1036_v24, 5  ;;  %v2023_v46 = vld [vmem:[%s2411_s28 + $0xbc] sm:$0x1]  ;;  %v1041_v47 = vshrl.u32 %v2020_v43, 16  ;;  %v1044_v49 = vshll.u32 %v2020_v43, 16 }
  0x2d   : > { %2250 = vmatpush3.bf16.msra.mxu1 %v2331_v9  ;;  %2233 = vmatprep.mubr.msk.bf16.mxu1 %vm274_vm0, %v2334_v55  ;;  %v2017_v9 = vld [vmem:[%s2411_s28 + $0xa4] sm:$0x1]  ;;  %v997_v35 = vsel %vm2452_vm3, %v992_v26, %v996_v11  ;;  %v1019_v36 = vor.u32 %v1018_v28, %v1015_v27  ;;  %v1050_v50 = vshll.u32 %v2021_v23, 16  ;;  %v1055_v52 = vshrl.u32 %v2022_v45, 16  ;;  %v2342_v60 = vld [vmem:[%s2411_s28 + $0x18] ss:$8 sps:$4 sm:$0xff]  }
  0x2e   : > { %2251 = vmatprep.subr.bf16.mxu1 %v2337_v38  ;;  %2241 = vmatprep.mubr.msk.bf16.mxu0 %vm274_vm0, %v2330_v53  ;;  %v1022_v19 = vshll.u32 %v2017_v9, 16  ;;  %v2024_v53 = vld [vmem:[%s2411_s28 + $0xc0] sm:$0xf]  ;;  %v1043_v55 = vrot.slane %v1041_v47, 4  ;;  %v2026_v0 = vld [vmem:[%s2411_s28 + $0xc8] sm:$0xf] }
  0x2f   : > { %v1020_v42 = vrot.slane %v1019_v36, 4  ;;  %v1052_v62 = vrot.slane %v1050_v50, 5  ;;  %v1057_v63 = vrot.slane %v1055_v52, 4  ;;  %v2027_v4 = vld [vmem:[%s2411_s28 + $0xcc] sm:$0x1]  ;;  %v1069_v5 = vshrl.u32 %v2024_v53, 16 }
  0x30   : > { %v1024_v31 = vrot.slane %v1022_v19, 5  ;;  %v1072_v6 = vshll.u32 %v2024_v53, 16  ;;  %v1083_v9 = vshrl.u32 %v2026_v0, 16  ;;  %v1086_v10 = vshll.u32 %v2026_v0, 16  ;;  %v2344_v18 = vld [vmem:[%s2411_s28 + $0x28] ss:$8 sps:$4 sm:$0xff]  }
  0x31   : > { %2252 = vmatpush3.bf16.msra.mxu1 %v2337_v38  ;;  %v1033_v38 = vor.u32 %v1032_v33, %v1029_v32  ;;  %v1071_v12 = vrot.slane %v1069_v5, 4  ;;  %v2347_v19 = vld [vmem:[%s2716_s1 + $0x80] sm:$0xff]   ;;  %v2348_v33 = vld [vmem:[%s2411_s28 + $0x50] ss:$8 sps:$4 sm:$0xff]  }
  0x32   : > { %2273 = vmatprep.subr.bf16.mxu1 %v2509_v51  ;;  %v1025_v48 = vsel %vm2452_vm3, %v1020_v42, %v1024_v31  ;;  %v1074_v13 = vrot.slane %v1072_v6, 5  ;;  %v1085_v16 = vrot.slane %v1083_v9, 4  ;;  %v1088_v17 = vrot.slane %v1086_v10, 5  ;;  %v2346_v32 = vld [vmem:[%s2411_s28 + $0x38] ss:$8 sps:$4 sm:$0xff]  }
  0x33   : > { %v1034_v44 = vrot.slane %v1033_v38, 4  ;;  %v2089_v38 = vld [vmem:[%s2411_s28 + $0x14] sm:$0x1] }
  0x34   : > { %2234 = vmatmul.mubr.msk.bf16.gmra.mxu1 %vm274_vm0, %v2335_v56  ;;  %2242 = vmatmul.mubr.msk.bf16.vlgmr.msra.gmra.mxu0 %vm274_vm0, %v2332_v57  ;;  %v1058_v56 = vshll.u32 %v2022_v45, 16  ;;  %v1064_v57 = vshll.u32 %v2023_v46, 16  ;;  %v1075_v21 = vor.u32 %v1074_v13, %v1071_v12  ;;  %v1089_v24 = vor.u32 %v1088_v17, %v1085_v16  ;;  %v2090_v45 = vld [vmem:[%s2411_s28 + $0x18] sm:$0xf]  ;;  %v2094_v12 = vld [vmem:[%s2411_s28 + $0x28] sm:$0xf] }
  0x35   : > { %2262 = vmatpush3.bf16.msra.mxu0 %v2488_v30  ;;  %2245 = vmatprep.mubr.msk.bf16.mxu0 %vm274_vm0, %v2336_v58  ;;  %v1006_v30 = vrot.slane %v1005_v20, 4  ;;  %v1039_v54 = vsel %vm2452_vm3, %v1034_v44, %v1038_v40  ;;  %v2025_v58 = vld [vmem:[%s2411_s28 + $0xc4] sm:$0x1]  ;;  %v1512_v44 = vshll.u32 %v2089_v38, 16  ;;  %v2096_v16 = vld [vmem:[%s2411_s28 + $0x30] sm:$0xf] }
  0x36   : > { %2263 = vmatprep.subr.bf16.mxu0 %v2339_v61  ;;  %v2033_v59 = vcombine.low %v1025_v48, %v1039_v54  ;;  %v1060_v2 = vrot.slane %v1058_v56, 5  ;;  %v1066_v3 = vrot.slane %v1064_v57, 5  ;;  %v1078_v8 = vshll.u32 %v2025_v58, 16  ;;  %v2091_v48 = vld [vmem:[%s2411_s28 + $0x1c] sm:$0x1] }
  0x37   : > { %v1011_v37 = vsel %vm2452_vm3, %v1006_v30, %v1010_v14  ;;  %v1092_v14 = vshll.u32 %v2027_v4, 16  ;;  %v1076_v27 = vrot.slane %v1075_v21, 4  ;;  %v1090_v30 = vrot.slane %v1089_v24, 4  ;;  %v2349_v56 = vld [vmem:[%s2411_s28 + $0x60] ss:$8 sps:$4 sm:$0xff]  }
  0x38   : > { %v2032_v41 = vcombine.low %v997_v35, %v1011_v37  ;;  %v1061_v11 = vor.u32 %v1060_v2, %v1057_v63  ;;  %v1080_v22 = vrot.slane %v1078_v8, 5  ;;  %v2087_v35 = vld [vmem:[%s2411_s28 + $0xc] sm:$0x1]  ;;  %v2088_v37 = vld [vmem:[%s2411_s28 + $0x10] sm:$0xf]  ;;  %v1514_v54 = vrot.slane %v1512_v44, 5 }
  0x39   : > { %2264 = vmatpush3.bf16.msra.mxu0 %v2339_v61  ;;  %v1046_v61 = vrot.slane %v1044_v49, 5  ;;  %v1498_v42 = vshll.u32 %v2087_v35, 16  ;;  %v1503_v43 = vshrl.u32 %v2088_v37, 16  ;;  %v1506_v23 = vshll.u32 %v2088_v37, 16  ;;  %v2092_v49 = vld [vmem:[%s2411_s28 + $0x20] sm:$0xf] }
  0x3a   : > { %2285 = vmatprep.subr.bf16.mxu0 %v2541_v29  ;;  %2253 = vmatprep.mubr.msk.bf16.mxu1 %vm274_vm0, %v2032_v41  ;;  %v1062_v20 = vrot.slane %v1061_v11, 4  ;;  %v1081_v31 = vsel %vm2452_vm3, %v1076_v27, %v1080_v22  ;;  %v1517_v58 = vshrl.u32 %v2090_v45, 16  ;;  %v1534_v63 = vshll.u32 %v2092_v49, 16  ;;  %v2350_v4 = vld [vmem:[%s2411_s28 + $0x70] ss:$8 sps:$4 sm:$0xff]  }
  0x3b   : > { %v1047_v7 = vor.u32 %v1046_v61, %v1043_v55  ;;  %v1500_v50 = vrot.slane %v1498_v42, 5  ;;  %v1505_v52 = vrot.slane %v1503_v43, 4  ;;  %v1508_v53 = vrot.slane %v1506_v23, 5  ;;  %v2093_v55 = vld [vmem:[%s2411_s28 + $0x24] sm:$0x1] }
  0x3c   : > { %2246 = vmatmul.mubr.msk.bf16.gmra.mxu0 %vm274_vm0, %v2338_v25  ;;  %2254 = vmatmul.mubr.msk.bf16.vlgmr.msra.gmra.mxu1 %vm274_vm0, %v2033_v59  ;;  %v1094_v25 = vrot.slane %v1092_v14, 5  ;;  %v1067_v26 = vsel %vm2452_vm3, %v1062_v20, %v1066_v3  ;;  %v1520_v59 = vshll.u32 %v2090_v45, 16  ;;  %v1540_v0 = vshll.u32 %v2093_v55, 16  ;;  %v2097_v17 = vld [vmem:[%s2411_s28 + $0x34] sm:$0x1] }
  0x3d   : > { %2265 = vmatprep.mubr.msk.bf16.mxu0 %vm274_vm0, %v2340_v34  ;;  %2274 = vmatpush3.bf16.msra.mxu1 %v2509_v51  ;;  %v1048_v15 = vrot.slane %v1047_v7, 4  ;;  %v2086_v34 = vld [vmem:[%s2411_s28 + $0x8] sm:$0xf]  ;;  %v1509_v61 = vor.u32 %v1508_v53, %v1505_v52  ;;  %v1519_v2 = vrot.slane %v1517_v58, 4  ;;  %v1536_v7 = vrot.slane %v1534_v63, 5 }
  0x3e   : > { %2275 = vmatprep.subr.bf16.mxu1 %v2345_v1  ;;  %v1489_v40 = vshrl.u32 %v2086_v34, 16  ;;  %v1492_v41 = vshll.u32 %v2086_v34, 16  ;;  %v1522_v3 = vrot.slane %v1520_v59, 5  ;;  %v1542_v11 = vrot.slane %v1540_v0, 5  ;;  %v2098_v22 = vld [vmem:[%s2411_s28 + $0x38] sm:$0xf] }
  0x3f   : > { %v1053_v51 = vsel %vm2452_vm3, %v1048_v15, %v1052_v62  ;;  %v1531_v62 = vshrl.u32 %v2092_v49, 16  ;;  %v1510_v5 = vrot.slane %v1509_v61, 4  ;;  %v2095_v15 = vld [vmem:[%s2411_s28 + $0x2c] sm:$0x1]  ;;  %v1545_v20 = vshrl.u32 %v2094_v12, 16 }
  0x40   : > { %v2034_v28 = vcombine.low %v1053_v51, %v1067_v26  ;;  %v1491_v46 = vrot.slane %v1489_v40, 4  ;;  %v1494_v47 = vrot.slane %v1492_v41, 5  ;;  %v1523_v9 = vor.u32 %v1522_v3, %v1519_v2  ;;  %v2099_v27 = vld [vmem:[%s2411_s28 + $0x3c] sm:$0x1]  ;;  %v2101_v37 = vld [vmem:[%s2411_s28 + $0x44] sm:$0x1] }
  0x41   : > { %2276 = vmatpush3.bf16.msra.mxu1 %v2345_v1  ;;  %v1533_v6 = vrot.slane %v1531_v62, 4  ;;  %v1515_v13 = vsel %vm2452_vm3, %v1510_v5, %v1514_v54  ;;  %v1548_v21 = vshll.u32 %v2094_v12, 16  ;;  %v1554_v24 = vshll.u32 %v2095_v15, 16  ;;  %v2351_v40 = vld [vmem:[%s2411_s28 + $0x80] ss:$8 sps:$4 sm:$0xff]  }
  0x42   : > { %2257 = vmatprep.mubr.msk.bf16.mxu1 %vm274_vm0, %v2034_v28  ;;  %v1495_v57 = vor.u32 %v1494_v47, %v1491_v46  ;;  %v1562_v26 = vshll.u32 %v2096_v16, 16  ;;  %v1573_v43 = vshrl.u32 %v2098_v22, 16  ;;  %v1576_v44 = vshll.u32 %v2098_v22, 16 }
  0x43   : > { %v1537_v14 = vor.u32 %v1536_v7, %v1533_v6  ;;  %v1556_v34 = vrot.slane %v1554_v24, 5  ;;  %v1582_v45 = vshll.u32 %v2099_v27, 16 }
  0x44   : > { %2266 = vmatmul.mubr.msk.bf16.vlgmr.msra.gmra.mxu0 %vm274_vm0, %v2342_v60  ;;  %v1526_v60 = vshll.u32 %v2091_v48, 16  ;;  %v1496_v1 = vrot.slane %v1495_v57, 4  ;;  %v1575_v48 = vrot.slane %v1573_v43, 4  ;;  %v1578_v53 = vrot.slane %v1576_v44, 5 }
  0x45   : > { %2286 = vmatpush3.bf16.msra.mxu0 %v2541_v29  ;;  %2269 = vmatprep.mubr.msk.bf16.mxu0 %vm274_vm0, %v2344_v18  ;;  %v1095_v29 = vsel %vm2452_vm3, %v1090_v30, %v1094_v25  ;;  %v1538_v51 = vrot.slane %v1537_v14, 4  ;;  %v1559_v25 = vshrl.u32 %v2096_v16, 16  ;;  %v1547_v30 = vrot.slane %v1545_v20, 4 }
  0x46   : > { %2287 = vmatprep.subr.bf16.mxu0 %v2347_v19  ;;  %v2035_v36 = vcombine.low %v1081_v31, %v1095_v29  ;;  %v1501_v8 = vsel %vm2452_vm3, %v1496_v1, %v1500_v50  ;;  %v1528_v10 = vrot.slane %v1526_v60, 5  ;;  %v1550_v31 = vrot.slane %v1548_v21, 5  ;;  %v2100_v29 = vld [vmem:[%s2411_s28 + $0x40] sm:$0xf]  ;;  %s2126_s28 = sshll.u32 %s2723_s16, 5 }
  0x47   : > { %v2106_v18 = vcombine.low %v1501_v8, %v1515_v13  ;;  %v1561_v35 = vrot.slane %v1559_v25, 4  ;;  %v1587_v46 = vshrl.u32 %v2100_v29, 16  ;;  %v1590_v49 = vshll.u32 %v2100_v29, 16  ;;  %s2666_s10 = scalar_lea.vmem %s2717_s2, %s2126_s28 }
  0x48   : > { %2258 = vmatmul.mubr.msk.bf16.gmra.mxu1 %vm274_vm0, %v2035_v36  ;;  %v1564_v36 = vrot.slane %v1562_v26, 5  ;;  %v1551_v41 = vor.u32 %v1550_v31, %v1547_v30  ;;  %v1596_v50 = vshll.u32 %v2101_v37, 16  ;;  %v1579_v58 = vor.u32 %v1578_v53, %v1575_v48 }
  0x49   : > { %2288 = vmatpush3.bf16.msra.mxu0 %v2347_v19  ;;  %2277 = vmatprep.mubr.msk.bf16.mxu1 %vm274_vm0, %v2348_v33  ;;  %v1524_v19 = vrot.slane %v1523_v9, 4  ;;  %v1543_v33 = vsel %vm2452_vm3, %v1538_v51, %v1542_v11  ;;  %v1589_v54 = vrot.slane %v1587_v46, 4  ;;  %v1584_v59 = vrot.slane %v1582_v45, 5 }
  0x4a   : > { %v1565_v23 = vor.u32 %v1564_v36, %v1561_v35  ;;  %v1552_v47 = vrot.slane %v1551_v41, 4  ;;  %v1598_v62 = vrot.slane %v1596_v50, 5  ;;  %v1580_v63 = vrot.slane %v1579_v58, 4 }
  0x4b   : > { %v1529_v28 = vsel %vm2452_vm3, %v1524_v19, %v1528_v10 }
  0x4c   : > { %2270 = vmatmul.mubr.msk.bf16.gmra.mxu0 %vm274_vm0, %v2346_v32  ;;  %v1568_v32 = vshll.u32 %v2097_v17, 16  ;;  %v2107_v38 = vcombine.low %v1529_v28, %v1543_v33  ;;  %v1566_v52 = vrot.slane %v1565_v23, 4  ;;  %v1557_v55 = vsel %vm2452_vm3, %v1552_v47, %v1556_v34 }
  0x4d   : > { %2289 = vmatprep.mubr.msk.bf16.mxu0 %vm274_vm0, %v2106_v18  ;;  %v1585_v1 = vsel %vm2452_vm3, %v1580_v63, %v1584_v59 }
  0x4e   : > { %v1570_v42 = vrot.slane %v1568_v32, 5 }
  0x50   : > { %2278 = vmatmul.mubr.msk.bf16.vlgmr.msra.gmra.mxu1 %vm274_vm0, %v2349_v56  ;;  %v1592_v56 = vrot.slane %v1590_v49, 5  ;;  %v1571_v57 = vsel %vm2452_vm3, %v1566_v52, %v1570_v42 }
  0x51   : > { %2281 = vmatprep.mubr.msk.bf16.mxu1 %vm274_vm0, %v2350_v4  ;;  %v2108_v60 = vcombine.low %v1557_v55, %v1571_v57 }
  0x52   : > { %v1593_v61 = vor.u32 %v1592_v56, %v1589_v54 }
  0x54   : > { %2290 = vmatmul.mubr.msk.bf16.vlgmr.msra.gmra.mxu0 %vm274_vm0, %v2107_v38  ;;  %v1594_v0 = vrot.slane %v1593_v61, 4 }
  0x55   : > { %2293 = vmatprep.mubr.msk.bf16.mxu0 %vm274_vm0, %v2108_v60 }
  0x56   : > { %v1599_v2 = vsel %vm2452_vm3, %v1594_v0, %v1598_v62 }
  0x57   : > { %v2109_v3 = vcombine.low %v1585_v1, %v1599_v2 }
  0x58   : > { %2282 = vmatmul.mubr.msk.bf16.gmra.mxu1 %vm274_vm0, %v2351_v40 }
  0x5c   : > { %2294 = vmatmul.mubr.msk.bf16.gmra.mxu0 %vm274_vm0, %v2109_v3 }
  0xd4   : > { %v2633_v4 = vpop.f32.mrf.mxu1  ;;  %v2195_v6 = vpop.f32.mrf.mxu0 }
  0xd6   : > { %v2635_v5 = vpop.f32.mrf.mxu1  ;;  %v321_v9 = vpop.f32.mrf.mxu0 }
  0xd8   : > { %v2637_v7 = vpop.f32.mrf.mxu1  ;;  %v2196_v12 = vpop.f32.mrf.mxu0 }
  0xda   : > { %v2639_v8 = vpop.f32.mrf.mxu1  ;;  %v324_v39 = vpop.f32.mrf.mxu0 }
  0xdc   : > { %v2207_v10 = vpop.f32.mrf.mxu1 }
  0xdd   : > { %v439_v45 = vadd.f32 %v2207_v10, %v2195_v6 }
  0xde   : > { %v430_v11 = vpop.f32.mrf.mxu1 }
  0xdf   : > { %v431_v48 = vadd.f32 %v430_v11, %v321_v9 }
  0xe0   : > { %v2208_v13 = vpop.f32.mrf.mxu1 }
  0xe1   : > { %v442_v54 = vadd.f32 %v2208_v13, %v2196_v12 }
  0xe2   : > { %v433_v14 = vpop.f32.mrf.mxu1  ;;  %v2219_v16 = vpop.f32.mrf.mxu0 }
  0xe3   : > { %v700_v52 = vadd.f32 %v2219_v16, %v439_v45  ;;  %v434_v56 = vadd.f32 %v433_v14, %v324_v39 }
  0xe4   : > { %v2211_v15 = vpop.f32.mrf.mxu1  ;;  %v667_v18 = vpop.f32.mrf.mxu0 }
  0xe5   : > { %v698_v55 = vadd.f32 %v667_v18, %v431_v48  ;;  %v455_v3 = vadd.f32 %v2211_v15, %v2633_v4 }
  0xe6   : > { %v446_v17 = vpop.f32.mrf.mxu1  ;;  %v2220_v20 = vpop.f32.mrf.mxu0 }
  0xe7   : > { %v701_v62 = vadd.f32 %v2220_v20, %v442_v54  ;;  %v447_v10 = vadd.f32 %v446_v17, %v2635_v5 }
  0xe8   : > { %v2212_v19 = vpop.f32.mrf.mxu1  ;;  %v670_v51 = vpop.f32.mrf.mxu0 }
  0xe9   : > { %v699_v0 = vadd.f32 %v670_v51, %v434_v56  ;;  %v458_v20 = vadd.f32 %v2212_v19, %v2637_v7 }
  0xea   : > { %v449_v21 = vpop.f32.mrf.mxu1 }
  0xeb   : > { %v450_v15 = vadd.f32 %v449_v21, %v2639_v8 }
  0xec   : > { %v2231_v22 = vpop.f32.mrf.mxu1  ;;  %v2223_v26 = vpop.f32.mrf.mxu0 }
  0xed   : > { %v831_v57 = vadd.f32 %v2231_v22, %v700_v52  ;;  %v704_v18 = vadd.f32 %v2223_v26, %v455_v3 }
  0xee   : > { %v798_v24 = vpop.f32.mrf.mxu1  ;;  %v683_v28 = vpop.f32.mrf.mxu0 }
  0xef   : > { %v829_v60 = vadd.f32 %v798_v24, %v698_v55  ;;  %v702_v24 = vadd.f32 %v683_v28, %v447_v10 }
  0xf0   : > { %v2232_v25 = vpop.f32.mrf.mxu1  ;;  %v2641_v30 = vpop.f32.mrf.mxu0 }
  0xf1   : > { %v832_v6 = vadd.f32 %v2232_v25, %v701_v62  ;;  %v705_v26 = vadd.f32 %v2641_v30, %v458_v20 }
  0xf2   : > { %v801_v27 = vpop.f32.mrf.mxu1  ;;  %v2643_v32 = vpop.f32.mrf.mxu0 }
  0xf3   : > { %v830_v12 = vadd.f32 %v801_v27, %v699_v0  ;;  %v703_v28 = vadd.f32 %v2643_v32, %v450_v15 }
  0xf4   : > { %v2235_v31 = vpop.f32.mrf.mxu1  ;;  %v2243_v29 = vpop.f32.mrf.mxu0 }
  0xf5   : > { %v962_v1 = vadd.f32 %v2243_v29, %v831_v57  ;;  %v835_v25 = vadd.f32 %v2235_v31, %v704_v18 }
  0xf6   : > { %v814_v33 = vpop.f32.mrf.mxu1  ;;  %v929_v34 = vpop.f32.mrf.mxu0 }
  0xf7   : > { %v960_v11 = vadd.f32 %v929_v34, %v829_v60  ;;  %v833_v34 = vadd.f32 %v814_v33, %v702_v24 }
  0xf8   : > { %v2244_v35 = vpop.f32.mrf.mxu0  ;;  %v2236_v36 = vpop.f32.mrf.mxu1 }
  0xf9   : > { %v963_v22 = vadd.f32 %v2244_v35, %v832_v6 }
  0xfa   : > { %v932_v37 = vpop.f32.mrf.mxu0  ;;  %v2645_v40 = vpop.f32.mrf.mxu1 }
  0xfb   : > { %v961_v29 = vadd.f32 %v932_v37, %v830_v12  ;;  %v836_v37 = vadd.f32 %v2236_v36, %v705_v26  ;;  %v834_v33 = vadd.f32 %v2645_v40, %v703_v28 }
  0xfc   : > { %v2247_v38 = vpop.f32.mrf.mxu0  ;;  %v2255_v43 = vpop.f32.mrf.mxu1 }
  0xfd   : > { %v1204_v13 = vadd.f32 %v2255_v43, %v962_v1  ;;  %v966_v35 = vadd.f32 %v2247_v38, %v835_v25 }
  0xfe   : > { %v945_v41 = vpop.f32.mrf.mxu0  ;;  %v1171_v44 = vpop.f32.mrf.mxu1 }
  0xff   : > { %v1202_v16 = vadd.f32 %v1171_v44, %v960_v11  ;;  %v964_v31 = vadd.f32 %v945_v41, %v833_v34 }
 0x100   : > { %v2647_v42 = vpop.f32.mrf.mxu0  ;;  %v2256_v47 = vpop.f32.mrf.mxu1 }
 0x101   : > { %v1205_v5 = vadd.f32 %v2256_v47, %v963_v22 }
 0x102   : > { %v2649_v23 = vpop.f32.mrf.mxu0  ;;  %v1174_v50 = vpop.f32.mrf.mxu1 }
 0x103   : > { %v1203_v45 = vadd.f32 %v1174_v50, %v961_v29  ;;  %v965_v56 = vadd.f32 %v2649_v23, %v834_v33 }
 0x104   : > { %v2267_v46 = vpop.f32.mrf.mxu0 }
 0x105   : > { %v1335_v4 = vadd.f32 %v2267_v46, %v1204_v13 }
 0x106   : > { %v1302_v49 = vpop.f32.mrf.mxu0 }
 0x107   : > { %v1333_v43 = vadd.f32 %v1302_v49, %v1202_v16 }
 0x108   : > { %v2268_v53 = vpop.f32.mrf.mxu0  ;;  %v2259_v59 = vpop.f32.mrf.mxu1 }
 0x109   : > { %v1336_v46 = vadd.f32 %v2268_v53, %v1205_v5  ;;  %v1208_v49 = vadd.f32 %v2259_v59, %v966_v35  ;;  %v967_v53 = vadd.f32 %v2647_v42, %v836_v37 }
 0x10a   : > { %v1305_v58 = vpop.f32.mrf.mxu0  ;;  %v1187_v63 = vpop.f32.mrf.mxu1 }
 0x10b   : > { %v1334_v47 = vadd.f32 %v1305_v58, %v1203_v45  ;;  %v1206_v36 = vadd.f32 %v1187_v63, %v964_v31 }
 0x10c   : > { %v2271_v61 = vpop.f32.mrf.mxu0  ;;  %v2260_v9 = vpop.f32.mrf.mxu1 }
 0x10d   : > { %v1339_v57 = vadd.f32 %v2271_v61, %v1208_v49  ;;  %v1209_v58 = vadd.f32 %v2260_v9, %v967_v53 }
 0x10e   : > { %v1318_v2 = vpop.f32.mrf.mxu0  ;;  %v1190_v39 = vpop.f32.mrf.mxu1 }
 0x10f   : > { %v1337_v62 = vadd.f32 %v1318_v2, %v1206_v36  ;;  %v1207_v1 = vadd.f32 %v1190_v39, %v965_v56 }
 0x110   : > { %v2653_v14 = vpop.f32.mrf.mxu0  ;;  %v2279_v51 = vpop.f32.mrf.mxu1 }
 0x111   : > { %v1466_v44 = vadd.f32 %v2279_v51, %v1335_v4  ;;  %v1340_v2 = vadd.f32 %v2653_v14, %v1209_v58 }
 0x112   : > { %v2657_v17 = vpop.f32.mrf.mxu0  ;;  %v1433_v27 = vpop.f32.mrf.mxu1 }
 0x113   : > { %v1464_v19 = vadd.f32 %v1433_v27, %v1333_v43  ;;  %v1338_v15 = vadd.f32 %v2657_v17, %v1207_v1 }
 0x114   : > { %v2280_v7 = vpop.f32.mrf.mxu1  ;;  %v2291_v8 = vpop.f32.mrf.mxu0 }
 0x115   : > { %v1708_v48 = vadd.f32 %v2291_v8, %v1466_v44  ;;  %v1467_v32 = vadd.f32 %v2280_v7, %v1336_v46 }
 0x116   : > { %v1436_v21 = vpop.f32.mrf.mxu1  ;;  %v1675_v30 = vpop.f32.mrf.mxu0 }
 0x117   : > { %v2129_v50 = vpack.c.bf16 %v1708_v48, %v1708_v48  ;;  %v1706_v52 = vadd.f32 %v1675_v30, %v1464_v19  ;;  %v1465_v41 = vadd.f32 %v1436_v21, %v1334_v47  ;;  %v1740_v42 = vmul.f32 %v1708_v48, %v1708_v48 }
 0x118   : > { %v2283_v38 = vpop.f32.mrf.mxu1  ;;  %v2292_v54 = vpop.f32.mrf.mxu0  ;;  %v1718_v12 = vsel %vm1714_vm5, %v1708_v48, 0.0 }
 0x119   : > { %1803 = vst.msk [vmem:[%s2666_s10 + $0x8] sm:$0xf] %vm1800_vm4, %v2129_v50  ;;  %v2127_v55 = vpack.c.bf16 %v1706_v52, %v1706_v52  ;;  %v1709_v59 = vadd.f32 %v2292_v54, %v1467_v32  ;;  %v1738_v63 = vmul.f32 %v1706_v52, %v1706_v52  ;;  %v1470_v6 = vadd.f32 %v2283_v38, %v1339_v57 }
 0x11a   : > { %v1449_v40 = vpop.f32.mrf.mxu1  ;;  %v1678_v60 = vpop.f32.mrf.mxu0  ;;  %v1715_v11 = vsel %vm1714_vm5, %v1706_v52, 0.0  ;;  %v1749_v25 = vsel %vm1714_vm5, %v1740_v42, 0.0 }
 0x11b   : > { %1801 = vst.msk [vmem:[%s2666_s10] sm:$0xf] %vm1800_vm4, %v2127_v55  ;;  %v1707_v0 = vadd.f32 %v1678_v60, %v1465_v41  ;;  %v2130_v3 = vpack.c.bf16 %v1709_v59, %v1709_v59  ;;  %v1746_v39 = vsel %vm1714_vm5, %v1738_v63, 0.0  ;;  %v1741_v16 = vmul.f32 %v1709_v59, %v1709_v59 }
 0x11c   : > { %v2284_v10 = vpop.f32.mrf.mxu1  ;;  %v2295_v20 = vpop.f32.mrf.mxu0  ;;  %v1468_v22 = vadd.f32 %v1449_v40, %v1337_v62  ;;  %v1720_v27 = vsel %vm1714_vm5, %v1709_v59, 0.0 }
 0x11d   : > { %v1716_v23 = vsel %vm1714_vm5, %v1707_v0, 0.0  ;;  %v1739_v61 = vmul.f32 %v1707_v0, %v1707_v0  ;;  %v2128_v9 = vpack.c.bf16 %v1707_v0, %v1707_v0  ;;  %1804 = vst.msk [vmem:[%s2666_s10 + $0xc] sm:$0xf] %vm1800_vm4, %v2130_v3  ;;  %v1712_v29 = vadd.f32 %v2295_v20, %v1470_v6 }
 0x11e   : > { %v1717_v13 = vadd.f32 %v1716_v23, %v1715_v11  ;;  %v1471_v4 = vadd.f32 %v2284_v10, %v1340_v2  ;;  %v1452_v14 = vpop.f32.mrf.mxu1  ;;  %v1691_v5 = vpop.f32.mrf.mxu0  ;;  %v1751_v45 = vsel %vm1714_vm5, %v1741_v16, 0.0 }
 0x11f   : > { %v1747_v18 = vsel %vm1714_vm5, %v1739_v61, 0.0  ;;  %1802 = vst.msk [vmem:[%s2666_s10 + $0x4] sm:$0xf] %vm1800_vm4, %v2128_v9  ;;  %v2133_v43 = vpack.c.bf16 %v1712_v29, %v1712_v29  ;;  %v1710_v44 = vadd.f32 %v1691_v5, %v1468_v22  ;;  %v1469_v19 = vadd.f32 %v1452_v14, %v1338_v15 }
 0x120   : > { %v1719_v51 = vadd.f32 %v1718_v12, %v1717_v13  ;;  %v1748_v24 = vadd.f32 %v1747_v18, %v1746_v39  ;;  %v2296_v7 = vpop.f32.mrf.mxu0  ;;  %v1744_v49 = vmul.f32 %v1712_v29, %v1712_v29  ;;  %v1726_v50 = vsel %vm1714_vm5, %v1712_v29, 0.0 }
 0x121   : > { %1807 = vst.msk [vmem:[%s2666_s10 + $0x18] sm:$0xf] %vm1800_vm4, %v2133_v43  ;;  %v1713_v35 = vadd.f32 %v2296_v7, %v1471_v4  ;;  %v1722_v17 = vsel %vm1714_vm5, %v1710_v44, 0.0  ;;  %v1742_v37 = vmul.f32 %v1710_v44, %v1710_v44  ;;  %v2131_v46 = vpack.c.bf16 %v1710_v44, %v1710_v44 }
 0x122   : > { %v1750_v34 = vadd.f32 %v1749_v25, %v1748_v24  ;;  %v1721_v26 = vadd.f32 %v1720_v27, %v1719_v51  ;;  %v1694_v8 = vpop.f32.mrf.mxu0  ;;  %v1757_v40 = vsel %vm1714_vm5, %v1744_v49, 0.0 }
 0x123   : > { %v2134_v31 = vpack.c.bf16 %v1713_v35, %v1713_v35  ;;  %v1753_v47 = vsel %vm1714_vm5, %v1742_v37, 0.0  ;;  %1805 = vst.msk [vmem:[%s2666_s10 + $0x10] sm:$0xf] %vm1800_vm4, %v2131_v46  ;;  %v1711_v48 = vadd.f32 %v1694_v8, %v1469_v19  ;;  %v1745_v52 = vmul.f32 %v1713_v35, %v1713_v35 }
 0x124   : > { %v1752_v28 = vadd.f32 %v1751_v45, %v1750_v34  ;;  %v1723_v21 = vadd.f32 %v1722_v17, %v1721_v26  ;;  %v1728_v55 = vsel %vm1714_vm5, %v1713_v35, 0.0 }
 0x125   : > { %1808 = vst.msk [vmem:[%s2666_s10 + $0x1c] sm:$0xf] %vm1800_vm4, %v2134_v31  ;;  %v1724_v30 = vsel %vm1714_vm5, %v1711_v48, 0.0  ;;  %v1743_v32 = vmul.f32 %v1711_v48, %v1711_v48  ;;  %v2132_v38 = vpack.c.bf16 %v1711_v48, %v1711_v48  ;;  %v1759_v58 = vsel %vm1714_vm5, %v1745_v52, 0.0 }
 0x126   : > { %v1754_v33 = vadd.f32 %v1753_v47, %v1752_v28  ;;  %v1725_v36 = vadd.f32 %v1724_v30, %v1723_v21 }
 0x127   : > { %v1755_v41 = vsel %vm1714_vm5, %v1743_v32, 0.0  ;;  %1806 = vst.msk [vmem:[%s2666_s10 + $0x14] sm:$0xf] %vm1800_vm4, %v2132_v38 }
 0x128   : > { %v1727_v53 = vadd.f32 %v1726_v50, %v1725_v36  ;;  %v1756_v54 = vadd.f32 %v1755_v41, %v1754_v33 }
 0x12a   : > { %v1729_v56 = vadd.f32 %v1728_v55, %v1727_v53  ;;  %v1758_v57 = vadd.f32 %v1757_v40, %v1756_v54 }
 0x12c   : > { %v1730_v59 = vrot.slane %v1729_v56, 4  ;;  %v1760_v60 = vadd.f32 %v1759_v58, %v1758_v57 }
 0x12e   : > { %v1731_v62 = vadd.f32 %v1730_v59, %v1729_v56  ;;  %v1761_v63 = vrot.slane %v1760_v60, 4 }
 0x130   : > { %v1732_v0 = vrot.slane %v1731_v62, 2  ;;  %v1762_v1 = vadd.f32 %v1761_v63, %v1760_v60 }
 0x132   : > { %v1733_v42 = vadd.f32 %v1732_v0, %v1731_v62  ;;  %v1763_v3 = vrot.slane %v1762_v1, 2 }
 0x134   : > { %v1734_v6 = vrot.slane %v1733_v42, 1  ;;  %v1764_v10 = vadd.f32 %v1763_v3, %v1762_v1 }
 0x136   : > { %v1735_v11 = vadd.f32 %v1734_v6, %v1733_v42  ;;  %v1765_v23 = vrot.slane %v1764_v10, 1 }
 0x138   : > { %1737 = vst.msk [vmem:[%s211_s13] sm:$0x1] %vm1736_vm6, %v1735_v11  ;;  %v1766_v61 = vadd.f32 %v1765_v23, %v1764_v10 }
 0x13a   : > { %1767 = vst.msk [vmem:[%s214_s18] sm:$0x1] %vm1736_vm6, %v1766_v61 }
 0x13b PF: > { %s15_s15 = sadd.s32 1, %s2358_s15  }
 0x13c   : > { %p12_p4 = scmp.ge.s32.totalorder %s15_s15, 4  }
 0x13e   :  { %14 = sbr.rel (!%p12_p4) target bundleno = 1 (0x1), region = 95 }

// kernel: _lambda_.29
= control target key start
LH: loop header
LB: loop body
LE: loop exit
PB: predicated region body
PF: predicated region fallthrough
CT: control target
= control target key end

     0   :  { %vm61_vm0 = vcmask 523264   ;;  %s279_s1 = inlined_call_operand.vmem [shape: bf16[64,128], index: 1, kind: input, shape index: {}]   ;;  %s280_s0 = inlined_call_operand.vmem [shape: bf16[32,64], index: 0, kind: input, shape index: {}]   ;;  %s281_s2 = inlined_call_operand.vmem [shape: bf16[32,128], index: 2, kind: output, shape index: {0}]   ;;  %s282_s3 = inlined_call_operand.vmem [shape: f32[1,1,128], index: 3, kind: output, shape index: {1}]   ;;  %s283_s4 = inlined_call_operand.vmem [shape: f32[1,1,128], index: 4, kind: output, shape index: {2}]  }
   0x1   :  { %v218_v0 = vld [vmem:[%s279_s1 + $0x18] sm:$0xff]   ;;  %v219_v1 = vld [vmem:[%s279_s1 + $0x10] sm:$0xff]   ;;  %v220_v2 = vld [vmem:[%s279_s1 + $0x8] sm:$0xff]  }
   0x2   :  { %206 = vmatprep.subr.bf16.mxu0 %v218_v0  ;;  %v222_v3 = vld [vmem:[%s280_s0] sm:$0xff]   ;;  %v223_v5 = vld [vmem:[%s280_s0 + $0x8] sm:$0xff]  }
   0x3   :  { %207 = vmatpush3.bf16.msra.mxu0 %v218_v0  ;;  %214 = vmatprep.mubr.msk.bf16.mxu0 %vm61_vm0, %v222_v3  ;;  %v221_v4 = vld [vmem:[%s279_s1] sm:$0xff]  }
   0x4   :  { %208 = vmatprep.subr.bf16.mxu0 %v219_v1 }
   0x7   :  { %209 = vmatpush3.bf16.msra.mxu0 %v219_v1 }
   0x8   :  { %210 = vmatprep.subr.bf16.mxu0 %v220_v2 }
   0xb   :  { %211 = vmatpush3.bf16.msra.mxu0 %v220_v2 }
   0xc   :  { %212 = vmatprep.subr.bf16.mxu0 %v221_v4 }
   0xf   :  { %213 = vmatpush3.bf16.msra.mxu0 %v221_v4 }
  0x12   :  { %215 = vmatmul.mubr.msk.bf16.vlgmr.msra.gmra.mxu0 %vm61_vm0, %v223_v5 }
  0xd2   :  { %v216_v6 = vpop.f32.mrf.mxu0 }
  0xd3   :  { %v129_v15 = vmul.f32 %v216_v6, %v216_v6 }
  0xd4   :  { %v102_v7 = vpop.f32.mrf.mxu0 }
  0xd5   :  { %v127_v11 = vmul.f32 %v102_v7, %v102_v7 }
  0xd6   :  { %v217_v8 = vpop.f32.mrf.mxu0 }
  0xd7   :  { %v197_v9 = vpack.c.bf16 %v217_v8, %v216_v6  ;;  %v130_v18 = vmul.f32 %v217_v8, %v217_v8 }
  0xd8   :  { %v105_v10 = vpop.f32.mrf.mxu0 }
  0xd9   :  { %v117_v12 = vadd.f32 %v105_v10, %v102_v7  ;;  %v128_v13 = vmul.f32 %v105_v10, %v105_v10  ;;  %v192_v14 = vpack.c.bf16 %v105_v10, %v102_v7  ;;  %199 = vst [vmem:[%s281_s2 + $0x8] sm:$0xff] %v197_v9  }
  0xdb   :  { %v118_v16 = vadd.f32 %v216_v6, %v117_v12  ;;  %v131_v17 = vadd.f32 %v128_v13, %v127_v11  ;;  %193 = vst [vmem:[%s281_s2] sm:$0xff] %v192_v14  }
  0xdd   :  { %v119_v19 = vadd.f32 %v217_v8, %v118_v16  ;;  %v132_v20 = vadd.f32 %v131_v17, %v129_v15 }
  0xdf   :  { %v120_v21 = vrot.slane %v119_v19, 4  ;;  %v133_v22 = vadd.f32 %v132_v20, %v130_v18 }
  0xe1   :  { %v121_v23 = vadd.f32 %v120_v21, %v119_v19  ;;  %v134_v24 = vrot.slane %v133_v22, 4 }
  0xe3   :  { %v122_v25 = vrot.slane %v121_v23, 2  ;;  %v135_v26 = vadd.f32 %v134_v24, %v133_v22 }
  0xe5   :  { %v123_v27 = vadd.f32 %v122_v25, %v121_v23  ;;  %v136_v28 = vrot.slane %v135_v26, 2 }
  0xe7   :  { %v124_v29 = vrot.slane %v123_v27, 1  ;;  %v137_v30 = vadd.f32 %v136_v28, %v135_v26 }
  0xe9   :  { %v125_v31 = vadd.f32 %v124_v29, %v123_v27  ;;  %v138_v32 = vrot.slane %v137_v30, 1 }
  0xeb   :  { %126 = vst [vmem:[%s282_s3] sm:$0x1] %v125_v31  ;;  %v139_v33 = vadd.f32 %v138_v32, %v137_v30 }
  0xed   :  { %140 = vst [vmem:[%s283_s4] sm:$0x1] %v139_v33 }

// kernel: _lambda_.30
= control target key start
LH: loop header
LB: loop body
LE: loop exit
PB: predicated region body
PF: predicated region fallthrough
CT: control target
= control target key end

     0   :  { %s324_s12 = smov 0   ;;  %s341_s0 = inlined_call_operand.vmem [shape: bf16[32,128], index: 0, kind: input, shape index: {}]   ;;  %s342_s1 = inlined_call_operand.vmem [shape: f32[1,128], index: 1, kind: input, shape index: {}]   ;;  %s343_s2 = inlined_call_operand.vmem [shape: f32[1,128], index: 2, kind: input, shape index: {}]   ;;  %s344_s3 = inlined_call_operand.vmem [shape: bf16[32,128], index: 3, kind: output, shape index: {}]  }
   0x1 LB: > { %s262_s13 = sadd.s32 4294967295, %s302_s12   ;;  %p266_p0 = scmp.ge.s32.totalorder %s302_s12, 1  ;;  %s302_s12 = sphi %s324_s12, %s13_s12  }
   0x2   : > { %p138_p1 = scmp.lt.s32.totalorder %s302_s12, 3 }
   0x4   : > { %p139_p2 = pnand %p266_p0, %p138_p1 }
   0x5   : > { %s267_s14 = sshll.u32 (!%p139_p2), %s262_s13, 1 }
   0x6   : > { %142 = sbr.rel (%p139_p2) target bundleno = 24 (0x18), region = 32  ;;  %p163_p3 = scmp.lt.s32.totalorder (!%p139_p2), %s267_s14, 3 }
   0xb   : > { %s346_s14 = smov (!%p163_p3, %s267_s14), 3  ;;  %v271_v1 = vld [vmem:[%s342_s1] ss:$0 sm:$0xff] }
   0xc   : > { %s268_s15 = sshll.u32 %s346_s14, 2  ;;  %v272_v4 = vld [vmem:[%s343_s2] ss:$0 sm:$0xff] }
   0xd   : > { %s166_s18 = scalar_lea.vmem %s341_s0, %s268_s15  ;;  %s172_s25 = scalar_lea.vmem %s344_s3, %s268_s15 }
   0xe   : > { %v280_v0 = vld [vmem:[%s166_s18] sm:$0xff]  }
   0xf   : > { %v281_v2 = vunpack.c.l.bf16 %v280_v0  ;;  %v282_v3 = vunpack.c.h.bf16 %v280_v0 }
  0x11   : > { %v185_v5 = vmul.f32 %v281_v2, %v271_v1  ;;  %v186_v6 = vmul.f32 %v282_v3, %v271_v1 }
  0x13   : > { %v194_v7 = vadd.f32 %v272_v4, %v185_v5  ;;  %v195_v8 = vadd.f32 %v272_v4, %v186_v6 }
  0x15   : > { %v286_v9 = vpack.c.bf16 %v195_v8, %v194_v7 }
  0x17   : > { %287 = vst [vmem:[%s172_s25] sm:$0xff] %v286_v9  }
  0x18 PF: > { %s13_s12 = sadd.s32 1, %s302_s12  }
  0x19   : > { %p10_p4 = scmp.ge.s32.totalorder %s13_s12, 4  }
  0x1b   :  { %12 = sbr.rel (!%p10_p4) target bundleno = 1 (0x1), region = 62 }

// kernel: _lambda_.27
= control target key start
LH: loop header
LB: loop body
LE: loop exit
PB: predicated region body
PF: predicated region fallthrough
CT: control target
= control target key end

     0   :  { %s2770_s15 = smov 0   ;;  %s3272_s0 = inlined_call_operand.vmem [shape: bf16[2,1,10,10,64], index: 0, kind: input, shape index: {}]   ;;  %s3273_s1 = inlined_call_operand.vmem [shape: bf16[9,64,64], index: 1, kind: input, shape index: {}]   ;;  %s3274_s2 = inlined_call_operand.vmem [shape: bf16[2,64,64], index: 2, kind: output, shape index: {0}]   ;;  %s3275_s3 = inlined_call_operand.vmem [shape: f32[2,1,64], index: 3, kind: output, shape index: {1}]   ;;  %s3276_s4 = inlined_call_operand.vmem [shape: f32[2,1,64], index: 4, kind: output, shape index: {2}]  }
   0x1 LB: > { %s2169_s16 = sadd.s32 4294967295, %s2743_s15   ;;  %p2173_p0 = scmp.ge.s32.totalorder %s2743_s15, 1  ;;  %s2743_s15 = sphi %s2770_s15, %s15_s15  }
   0x2   : > { %p167_p1 = scmp.lt.s32.totalorder %s2743_s15, 3 }
   0x4   : > { %p168_p2 = pnand %p2173_p0, %p167_p1 }
   0x6   : > { %171 = sbr.rel (%p168_p2) target bundleno = 335 (0x14f), region = 28 }
   0xb   : > { %v2689_v0 = vld [vmem:[%s3273_s1 + $0x38] sm:$0xff]   ;;  %p199_p3 = scmp.lt.s32.totalorder %s2169_s16, 1  ;;  %v2691_v2 = vld [vmem:[%s3273_s1 + $0x30] sm:$0xff]   ;;  %v2693_v4 = vld [vmem:[%s3273_s1 + $0x28] sm:$0xff]   ;;  %vm400_vm0 = vcmask 523264   ;;  %vm623_vm4 = vcmask 1042432  }
   0xc   : > { %v2690_v1 = vld [vmem:[%s3273_s1 + $0x18] sm:$0xff]   ;;  %2528 = vmatprep.subr.bf16.mxu0 %v2689_v0  ;;  %v2692_v3 = vld [vmem:[%s3273_s1 + $0x10] sm:$0xff]   ;;  %v2694_v5 = vld [vmem:[%s3273_s1 + $0x8] sm:$0xff]   ;;  %vm240_vm1 = vsmask.f32 3328  ;;  %vm624_vm5 = vcmask 1046532  }
   0xd   : > { %s3288_s16 = smov (!%p199_p3, %s2169_s16), 1  ;;  %2544 = vmatprep.subr.bf16.mxu1 %v2690_v1  ;;  %2529 = vmatpush3.bf16.msra.mxu0 %v2689_v0  ;;  %v2695_v6 = vld [vmem:[%s3273_s1 + $0x20] sm:$0xff]   ;;  %vm241_vm2 = vsmask.f32 7440  ;;  %v2822_v18 = vld [vmem:[%s3273_s1 + $0x58] sm:$0xff]   ;;  %v2702_v58 = vld [vmem:[%s3273_s1 + $0x70] sm:$0xff]  }
   0xe   : > { %2545 = vmatpush3.bf16.msra.mxu1 %v2690_v1  ;;  %2530 = vmatprep.subr.bf16.mxu0 %v2691_v2  ;;  %s2680_s27 = smul.u32 80, %s3288_s16  ;;  %v2696_v7 = vld [vmem:[%s3273_s1] sm:$0xff]   ;;  %vm2832_vm3 = vmor %vm240_vm1, %vm241_vm2  ;;  %v2700_v38 = vld [vmem:[%s3273_s1 + $0x78] sm:$0xff]   ;;  %vm2055_vm7 = vcmask 519168   ;;  %s211_s28 = scalar_lea.vmem %s3275_s3, %s3288_s16  ;;  %vm1991_vm8 = vcmask 516096  }
   0xf   : > { %2546 = vmatprep.subr.bf16.mxu1 %v2692_v3  ;;  %vm2908_vm6 = vmor %vm623_vm4, %vm624_vm5  ;;  %s214_s5 = scalar_lea.vmem %s3276_s4, %s3288_s16 }
  0x10   : > { %s2805_s8 = scalar_lea.vmem %s3272_s0, %s2680_s27 }
  0x11   : > { %2531 = vmatpush3.bf16.msra.mxu0 %v2691_v2  ;;  %v216_v8 = vld [vmem:[%s2805_s8] sm:$0xf]  ;;  %v217_v9 = vld [vmem:[%s2805_s8 + $0x8] sm:$0xf]  ;;  %v2813_v10 = vld [vmem:[%s2805_s8 + $0x4] sm:$0x1] }
  0x12   : > { %2547 = vmatpush3.bf16.msra.mxu1 %v2692_v3  ;;  %2532 = vmatprep.subr.bf16.mxu0 %v2693_v4  ;;  %v244_v11 = vshrl.u32 %v216_v8, 16  ;;  %v247_v12 = vshll.u32 %v216_v8, 16  ;;  %v258_v13 = vshrl.u32 %v217_v9, 16  ;;  %v261_v14 = vshll.u32 %v217_v9, 16  ;;  %v2816_v15 = vld [vmem:[%s2805_s8 + $0xc] sm:$0x1] }
  0x13   : > { %2548 = vmatprep.subr.bf16.mxu1 %v2694_v5  ;;  %v2197_v16 = vcombine.low %v216_v8, %v217_v9  ;;  %v253_v17 = vshll.u32 %v2813_v10, 16  ;;  %v218_v23 = vld [vmem:[%s2805_s8 + $0x10] sm:$0xf]  ;;  %v267_v25 = vshll.u32 %v2816_v15, 16  ;;  %v628_v26 = vrot.slane %v2813_v10, 5 }
  0x14   : > { %v246_v19 = vrot.slane %v244_v11, 4  ;;  %v249_v20 = vrot.slane %v247_v12, 5  ;;  %v260_v21 = vrot.slane %v258_v13, 4  ;;  %v263_v22 = vrot.slane %v261_v14, 5  ;;  %v219_v28 = vld [vmem:[%s2805_s8 + $0x18] sm:$0xf] }
  0x15   : > { %2533 = vmatpush3.bf16.msra.mxu0 %v2693_v4  ;;  %v255_v24 = vrot.slane %v253_v17, 5  ;;  %v632_v27 = vrot.slane %v2816_v15, 5  ;;  %2552 = vmatprep.mubr.msk.bf16.mxu1 %vm400_vm0, %v2197_v16  ;;  %v272_v31 = vshrl.u32 %v218_v23, 16  ;;  %v275_v32 = vshll.u32 %v218_v23, 16  ;;  %v2841_v45 = vld [vmem:[%s2805_s8 + $0x14] sm:$0x1] }
  0x16   : > { %2549 = vmatpush3.bf16.msra.mxu1 %v2694_v5  ;;  %2534 = vmatprep.subr.bf16.mxu0 %v2695_v6  ;;  %v250_v29 = vor.u32 %v249_v20, %v246_v19  ;;  %v264_v30 = vor.u32 %v263_v22, %v260_v21  ;;  %v269_v34 = vrot.slane %v267_v25, 5  ;;  %v286_v35 = vshrl.u32 %v219_v28, 16  ;;  %v2844_v46 = vld [vmem:[%s2805_s8 + $0x1c] sm:$0x1]  ;;  %v220_v59 = vld [vmem:[%s2805_s8 + $0x20] sm:$0xf] }
  0x17   : > { %2550 = vmatprep.subr.bf16.mxu1 %v2696_v7  ;;  %v289_v36 = vshll.u32 %v219_v28, 16  ;;  %v2198_v37 = vcombine.low %v218_v23, %v219_v28  ;;  %v274_v41 = vrot.slane %v272_v31, 4  ;;  %v277_v42 = vrot.slane %v275_v32, 5  ;;  %v221_v62 = vld [vmem:[%s2805_s8 + $0x28] sm:$0xf]  ;;  %v2701_v8 = vld [vmem:[%s3273_s1 + $0x50] sm:$0xff]  }
  0x18   : > { %v251_v39 = vrot.slane %v250_v29, 4  ;;  %v265_v40 = vrot.slane %v264_v30, 4  ;;  %v288_v43 = vrot.slane %v286_v35, 4  ;;  %v281_v50 = vshll.u32 %v2841_v45, 16  ;;  %v2864_v5 = vld [vmem:[%s2805_s8 + $0x24] sm:$0x1] }
  0x19   : > { %2535 = vmatpush3.bf16.msra.mxu0 %v2695_v6  ;;  %v291_v44 = vrot.slane %v289_v36, 5  ;;  %v278_v49 = vor.u32 %v277_v42, %v274_v41  ;;  %v295_v53 = vshll.u32 %v2844_v46, 16  ;;  %v636_v54 = vrot.slane %v2841_v45, 5  ;;  %v2867_v6 = vld [vmem:[%s2805_s8 + $0x2c] sm:$0x1] }
  0x1a   : > { %2551 = vmatpush3.bf16.msra.mxu1 %v2696_v7  ;;  %2560 = vmatprep.subr.bf16.mxu0 %v2822_v18  ;;  %v256_v47 = vsel %vm2832_vm3, %v251_v39, %v255_v24  ;;  %v270_v48 = vsel %vm2832_vm3, %v265_v40, %v269_v34  ;;  %v283_v56 = vrot.slane %v281_v50, 5  ;;  %v640_v57 = vrot.slane %v2844_v46, 5  ;;  %v222_v13 = vld [vmem:[%s2805_s8 + $0x30] sm:$0xf]  ;;  %v223_v20 = vld [vmem:[%s2805_s8 + $0x38] sm:$0xf] }
  0x1b   : > { %2576 = vmatprep.subr.bf16.mxu1 %v2700_v38  ;;  %v2185_v51 = vcombine.low %v256_v47, %v270_v48  ;;  %v292_v52 = vor.u32 %v291_v44, %v288_v43  ;;  %v279_v55 = vrot.slane %v278_v49, 4  ;;  %v297_v61 = vrot.slane %v295_v53, 5  ;;  %v2706_v21 = vld [vmem:[%s3273_s1 + $0x68] sm:$0xff]   ;;  %v2897_v43 = vld [vmem:[%s2805_s8 + $0x3c] sm:$0x1]  ;;  %v2707_v53 = vld [vmem:[%s3273_s1 + $0x40] sm:$0xff]  }
  0x1c   : > { %v300_v63 = vshrl.u32 %v220_v59, 16  ;;  %v303_v0 = vshll.u32 %v220_v59, 16  ;;  %v314_v2 = vshrl.u32 %v221_v62, 16  ;;  %v317_v3 = vshll.u32 %v221_v62, 16  ;;  %v2705_v41 = vld [vmem:[%s3273_s1 + $0x48] sm:$0xff]   ;;  %v2713_v46 = vld [vmem:[%s3273_s1 + $0x90] sm:$0xff]  }
  0x1d   : > { %2553 = vmatmul.mubr.msk.bf16.vlgmr.msra.gmra.mxu1 %vm400_vm0, %v2198_v37  ;;  %2536 = vmatprep.mubr.msk.bf16.mxu0 %vm400_vm0, %v2185_v51  ;;  %v293_v60 = vrot.slane %v292_v52, 4  ;;  %v284_v1 = vsel %vm2832_vm3, %v279_v55, %v283_v56  ;;  %v2199_v4 = vcombine.low %v220_v59, %v221_v62  ;;  %v309_v12 = vshll.u32 %v2864_v5, 16  ;;  %v2708_v37 = vld [vmem:[%s3273_s1 + $0x60] sm:$0xff]  }
  0x1e   : > { %2577 = vmatpush3.bf16.msra.mxu1 %v2700_v38  ;;  %v302_v9 = vrot.slane %v300_v63, 4  ;;  %v305_v11 = vrot.slane %v303_v0, 5  ;;  %v316_v16 = vrot.slane %v314_v2, 4  ;;  %v319_v17 = vrot.slane %v317_v3, 5  ;;  %v599_v62 = vld [vmem:[%s2805_s8] sm:$0xe] }
  0x1f   : > { %2578 = vmatprep.subr.bf16.mxu1 %v2702_v58  ;;  %v298_v7 = vsel %vm2832_vm3, %v293_v60, %v297_v61  ;;  %2556 = vmatprep.mubr.msk.bf16.mxu1 %vm400_vm0, %v2199_v4  ;;  %v323_v19 = vshll.u32 %v2867_v6, 16  ;;  %v311_v23 = vrot.slane %v309_v12, 5  ;;  %v328_v24 = vshrl.u32 %v222_v13, 16  ;;  %v2712_v60 = vld [vmem:[%s3273_s1 + $0xb8] sm:$0xff]   ;;  %v2709_v61 = vld [vmem:[%s2805_s8 + $0x8] ss:$8 sps:$4 sm:$0xff]  }
  0x20   : > { %v2186_v14 = vcombine.low %v284_v1, %v298_v7  ;;  %v306_v22 = vor.u32 %v305_v11, %v302_v9  ;;  %v331_v25 = vshll.u32 %v222_v13, 16  ;;  %v320_v28 = vor.u32 %v319_v17, %v316_v16  ;;  %v600_v63 = vld [vmem:[%s2805_s8 + $0x8] sm:$0xe]  ;;  %v2711_v4 = vld [vmem:[%s3273_s1 + $0x98] sm:$0xff]   ;;  %v2714_v7 = vld [vmem:[%s3273_s1 + $0xb0] sm:$0xff]  }
  0x21   : > { %v325_v29 = vrot.slane %v323_v19, 5  ;;  %v342_v30 = vshrl.u32 %v223_v20, 16  ;;  %v345_v31 = vshll.u32 %v223_v20, 16  ;;  %v330_v34 = vrot.slane %v328_v24, 4  ;;  %v2710_v9 = vld [vmem:[%s2805_s8 + $0x18] ss:$8 sps:$4 sm:$0xff]  }
  0x22   : > { %2579 = vmatpush3.bf16.msra.mxu1 %v2702_v58  ;;  %2537 = vmatmul.mubr.msk.bf16.vlgmr.msra.gmra.mxu0 %vm400_vm0, %v2186_v14  ;;  %v307_v32 = vrot.slane %v306_v22, 4  ;;  %v333_v35 = vrot.slane %v331_v25, 5  ;;  %v2200_v36 = vcombine.low %v222_v13, %v223_v20  ;;  %v321_v38 = vrot.slane %v320_v28, 4  ;;  %v601_v13 = vld [vmem:[%s2805_s8 + $0x10] sm:$0xe]  ;;  %v2718_v28 = vld [vmem:[%s3273_s1 + $0xa8] sm:$0xff]  }
  0x23   : > { %2580 = vmatprep.subr.bf16.mxu1 %v2706_v21  ;;  %2561 = vmatpush3.bf16.msra.mxu0 %v2822_v18  ;;  %v344_v39 = vrot.slane %v342_v30, 4  ;;  %v347_v40 = vrot.slane %v345_v31, 5  ;;  %v2894_v18 = vld [vmem:[%s2805_s8 + $0x34] sm:$0x1]  ;;  %v351_v50 = vshll.u32 %v2897_v43, 16  ;;  %v2209_v2 = vrot.slane %v599_v62, 9 }
  0x24   : > { %2562 = vmatprep.subr.bf16.mxu0 %v2701_v8  ;;  %v312_v42 = vsel %vm2832_vm3, %v307_v32, %v311_v23  ;;  %v334_v44 = vor.u32 %v333_v35, %v330_v34  ;;  %v326_v47 = vsel %vm2832_vm3, %v321_v38, %v325_v29  ;;  %v337_v48 = vshll.u32 %v2894_v18, 16  ;;  %v602_v16 = vld [vmem:[%s2805_s8 + $0x18] sm:$0xe]  ;;  %v603_v20 = vld [vmem:[%s2805_s8 + $0x20] sm:$0xe]  ;;  %v2717_v35 = vld [vmem:[%s3273_s1 + $0x88] sm:$0xff]  }
  0x25   : > { %2557 = vmatmul.mubr.msk.bf16.gmra.mxu1 %vm400_vm0, %v2200_v36  ;;  %v348_v49 = vor.u32 %v347_v40, %v344_v39  ;;  %v2187_v51 = vcombine.low %v312_v42, %v326_v47  ;;  %v353_v58 = vrot.slane %v351_v50, 5  ;;  %v2210_v3 = vrot.slane %v600_v63, 9  ;;  %v2716_v45 = vld [vmem:[%s2805_s8 + $0x38] ss:$8 sps:$4 sm:$0xff]   ;;  %v605_v29 = vld [vmem:[%s2805_s8 + $0x30] sm:$0xe] }
  0x26   : > { %2581 = vmatpush3.bf16.msra.mxu1 %v2706_v21  ;;  %v335_v52 = vrot.slane %v334_v44, 4  ;;  %v339_v55 = vrot.slane %v337_v48, 5  ;;  %2584 = vmatprep.mubr.msk.bf16.mxu1 %vm400_vm0, %v2709_v61  ;;  %v629_v11 = vsel %vm2908_vm6, %v2209_v2, %v628_v26  ;;  %v2211_v10 = vrot.slane %v601_v13, 9  ;;  %v606_v30 = vld [vmem:[%s2805_s8 + $0x38] sm:$0xe]  ;;  %v2720_v38 = vld [vmem:[%s3273_s1 + $0xa0] sm:$0xff]  }
  0x27   : > { %2563 = vmatpush3.bf16.msra.mxu0 %v2701_v8  ;;  %2582 = vmatprep.subr.bf16.mxu1 %v2708_v37  ;;  %v349_v56 = vrot.slane %v348_v49, 4  ;;  %v633_v12 = vsel %vm2908_vm6, %v2210_v3, %v632_v27  ;;  %v644_v17 = vrot.slane %v2864_v5, 5  ;;  %v2212_v26 = vrot.slane %v602_v16, 9  ;;  %v2715_v5 = vld [vmem:[%s2805_s8 + $0x28] ss:$8 sps:$4 sm:$0xff]   ;;  %v2719_v47 = vld [vmem:[%s3273_s1 + $0x80] sm:$0xff]  }
  0x28   : > { %2564 = vmatprep.subr.bf16.mxu0 %v2705_v41  ;;  %2540 = vmatprep.mubr.msk.bf16.mxu0 %vm400_vm0, %v2187_v51  ;;  %v340_v0 = vsel %vm2832_vm3, %v335_v52, %v339_v55  ;;  %v2225_v14 = vcombine.low %v629_v11, %v633_v12  ;;  %v648_v15 = vrot.slane %v2867_v6, 5  ;;  %v637_v27 = vsel %vm2908_vm6, %v2211_v10, %v636_v54  ;;  %v604_v6 = vld [vmem:[%s2805_s8 + $0x28] sm:$0xe]  ;;  %v2266_v39 = vld [vmem:[%s2805_s8 + $0xc] sm:$0x1] }
  0x29   : > { %v354_v1 = vsel %vm2832_vm3, %v349_v56, %v353_v58  ;;  %v641_v19 = vsel %vm2908_vm6, %v2212_v26, %v640_v57  ;;  %v2213_v22 = vrot.slane %v603_v20, 9  ;;  %v2214_v23 = vrot.slane %v604_v6, 9  ;;  %v2268_v40 = vld [vmem:[%s2805_s8 + $0x14] sm:$0x1]  ;;  %v2302_v42 = vld [vmem:[%s2805_s8 + $0x10] sm:$0xe] }
  0x2a   : > { %2583 = vmatpush3.bf16.msra.mxu1 %v2708_v37  ;;  %v2188_v8 = vcombine.low %v340_v0, %v354_v1  ;;  %v2226_v21 = vcombine.low %v637_v27, %v641_v19  ;;  %v652_v24 = vrot.slane %v2894_v18, 5  ;;  %v656_v31 = vrot.slane %v2897_v43, 5  ;;  %v2265_v50 = vld [vmem:[%s2805_s8 + $0x8] sm:$0xf]  ;;  %v2267_v51 = vld [vmem:[%s2805_s8 + $0x10] sm:$0xf] }
  0x2b   : > { %2565 = vmatpush3.bf16.msra.mxu0 %v2705_v41  ;;  %2608 = vmatprep.subr.bf16.mxu1 %v2712_v60  ;;  %v645_v54 = vsel %vm2908_vm6, %v2213_v22, %v644_v17  ;;  %v649_v57 = vsel %vm2908_vm6, %v2214_v23, %v648_v15  ;;  %v2215_v32 = vrot.slane %v605_v29, 9  ;;  %v2216_v34 = vrot.slane %v606_v30, 9  ;;  %v2301_v41 = vld [vmem:[%s2805_s8 + $0x8] sm:$0xe]  ;;  %v2270_v58 = vld [vmem:[%s2805_s8 + $0x1c] sm:$0x1] }
  0x2c   : > { %2566 = vmatprep.subr.bf16.mxu0 %v2707_v53  ;;  %2541 = vmatmul.mubr.msk.bf16.gmra.mxu0 %vm400_vm0, %v2188_v8  ;;  %v2227_v25 = vcombine.low %v645_v54, %v649_v57  ;;  %v1219_v18 = vrot.slane %v2266_v39, 5  ;;  %v1223_v43 = vrot.slane %v2268_v40, 5  ;;  %v2309_v48 = vrot.slane %v2301_v41, 9  ;;  %v2272_v0 = vld [vmem:[%s2805_s8 + $0x24] sm:$0x1]  ;;  %v2722_v15 = vld [vmem:[%s3273_s1 + $0xf8] sm:$0xff]  }
  0x2d   : > { %2585 = vmatmul.mubr.msk.bf16.vlgmr.msra.gmra.mxu1 %vm400_vm0, %v2710_v9  ;;  %2568 = vmatprep.mubr.msk.bf16.mxu0 %vm400_vm0, %v2225_v14  ;;  %v653_v36 = vsel %vm2908_vm6, %v2215_v32, %v652_v24  ;;  %v657_v37 = vsel %vm2908_vm6, %v2216_v34, %v656_v31  ;;  %v2310_v49 = vrot.slane %v2302_v42, 9  ;;  %v952_v52 = vshrl.u32 %v2265_v50, 16  ;;  %v2303_v1 = vld [vmem:[%s2805_s8 + $0x18] sm:$0xe]  ;;  %v2304_v8 = vld [vmem:[%s2805_s8 + $0x20] sm:$0xe] }
  0x2e   : > { %2609 = vmatpush3.bf16.msra.mxu1 %v2712_v60  ;;  %2588 = vmatprep.mubr.msk.bf16.mxu1 %vm400_vm0, %v2715_v5  ;;  %v2228_v44 = vcombine.low %v653_v36, %v657_v37  ;;  %v961_v55 = vshll.u32 %v2266_v39, 16  ;;  %v966_v56 = vshrl.u32 %v2267_v51, 16  ;;  %v1220_v60 = vsel %vm2908_vm6, %v2309_v48, %v1219_v18  ;;  %v3007_v14 = vld [vmem:[%s3273_s1 + $0xd8] sm:$0xff]   ;;  %v2724_v29 = vld [vmem:[%s3273_s1 + $0xf0] sm:$0xff]   ;;  %v2305_v42 = vld [vmem:[%s2805_s8 + $0x28] sm:$0xe] }
  0x2f   : > { %2567 = vmatpush3.bf16.msra.mxu0 %v2707_v53  ;;  %2610 = vmatprep.subr.bf16.mxu1 %v2714_v7  ;;  %v955_v53 = vshll.u32 %v2265_v50, 16  ;;  %v1224_v61 = vsel %vm2908_vm6, %v2310_v49, %v1223_v43  ;;  %v969_v62 = vshll.u32 %v2267_v51, 16  ;;  %v975_v63 = vshll.u32 %v2268_v40, 16  ;;  %v2269_v19 = vld [vmem:[%s2805_s8 + $0x18] sm:$0xf]  ;;  %v2726_v51 = vld [vmem:[%s3273_s1 + $0xe8] sm:$0xff]  }
  0x30   : > { %2592 = vmatprep.subr.bf16.mxu0 %v2711_v4  ;;  %v2325_v2 = vcombine.low %v1220_v60, %v1224_v61  ;;  %v954_v3 = vrot.slane %v952_v52, 4  ;;  %v968_v9 = vrot.slane %v966_v56, 4  ;;  %v2311_v13 = vrot.slane %v2303_v1, 9  ;;  %v2276_v39 = vld [vmem:[%s2805_s8 + $0x34] sm:$0x1] }
  0x31   : > { %v971_v11 = vrot.slane %v969_v62, 5  ;;  %v977_v12 = vrot.slane %v975_v63, 5  ;;  %v1227_v10 = vrot.slane %v2270_v58, 5  ;;  %v2312_v17 = vrot.slane %v2304_v8, 9  ;;  %v2306_v18 = vld [vmem:[%s2805_s8 + $0x30] sm:$0xe] }
  0x32   : > { %2611 = vmatpush3.bf16.msra.mxu1 %v2714_v7  ;;  %v963_v7 = vrot.slane %v961_v55, 5  ;;  %v1231_v26 = vrot.slane %v2272_v0, 5  ;;  %v980_v22 = vshrl.u32 %v2269_v19, 16  ;;  %v989_v54 = vshll.u32 %v2270_v58, 16  ;;  %v2273_v50 = vld [vmem:[%s2805_s8 + $0x28] sm:$0xf] }
  0x33   : > { %2612 = vmatprep.subr.bf16.mxu1 %v2718_v28  ;;  %v972_v27 = vor.u32 %v971_v11, %v968_v9  ;;  %v1228_v20 = vsel %vm2908_vm6, %v2311_v13, %v1227_v10  ;;  %v1003_v34 = vshll.u32 %v2272_v0, 16  ;;  %v2314_v48 = vrot.slane %v2306_v18, 9  ;;  %v2278_v0 = vld [vmem:[%s2805_s8 + $0x3c] sm:$0x1]  ;;  %v3044_v1 = vld [vmem:[%s2805_s8 + $0x44] sm:$0x1] }
  0x34   : > { %2569 = vmatmul.mubr.msk.bf16.vlgmr.msra.gmra.mxu0 %vm400_vm0, %v2226_v21  ;;  %v1232_v6 = vsel %vm2908_vm6, %v2312_v17, %v1231_v26  ;;  %v2271_v21 = vld [vmem:[%s2805_s8 + $0x20] sm:$0xf]  ;;  %v982_v24 = vrot.slane %v980_v22, 4  ;;  %v991_v32 = vrot.slane %v989_v54, 5  ;;  %v1239_v49 = vrot.slane %v2276_v39, 5 }
  0x35   : > { %2589 = vmatmul.mubr.msk.bf16.gmra.mxu1 %vm400_vm0, %v2716_v45  ;;  %2593 = vmatpush3.bf16.msra.mxu0 %v2711_v4  ;;  %v957_v4 = vrot.slane %v955_v53, 5  ;;  %v973_v23 = vrot.slane %v972_v27, 4  ;;  %v2326_v45 = vcombine.low %v1228_v20, %v1232_v6  ;;  %v1005_v41 = vrot.slane %v1003_v34, 5  ;;  %v2275_v53 = vld [vmem:[%s2805_s8 + $0x30] sm:$0xf] }
  0x36   : > { %2572 = vmatprep.mubr.msk.bf16.mxu0 %vm400_vm0, %v2227_v25  ;;  %2594 = vmatprep.subr.bf16.mxu0 %v2713_v46  ;;  %v994_v25 = vshrl.u32 %v2271_v21, 16  ;;  %v1008_v55 = vshrl.u32 %v2273_v50, 16  ;;  %v1011_v56 = vshll.u32 %v2273_v50, 16  ;;  %v1240_v62 = vsel %vm2908_vm6, %v2314_v48, %v1239_v49  ;;  %v2307_v8 = vld [vmem:[%s2805_s8 + $0x38] sm:$0xe] }
  0x37   : > { %2613 = vmatpush3.bf16.msra.mxu1 %v2718_v28  ;;  %2616 = vmatprep.mubr.msk.bf16.mxu1 %vm400_vm0, %v2325_v2  ;;  %v958_v16 = vor.u32 %v957_v4, %v954_v3  ;;  %v997_v28 = vshll.u32 %v2271_v21, 16  ;;  %v978_v30 = vsel %vm2832_vm3, %v973_v23, %v977_v12  ;;  %v1022_v63 = vshrl.u32 %v2275_v53, 16  ;;  %v2308_v9 = vld [vmem:[%s2805_s8 + $0x40] sm:$0xe]  ;;  %v2723_v12 = vld [vmem:[%s3273_s1 + $0xd0] sm:$0xff]   ;;  %v2725_v23 = vld [vmem:[%s3273_s1 + $0xc8] sm:$0xff]  }
  0x38   : > { %2614 = vmatprep.subr.bf16.mxu1 %v2720_v38  ;;  %v996_v36 = vrot.slane %v994_v25, 4  ;;  %v1010_v4 = vrot.slane %v1008_v55, 4  ;;  %v1025_v10 = vshll.u32 %v2275_v53, 16  ;;  %v2315_v27 = vrot.slane %v2307_v8, 9  ;;  %v2367_v48 = vld [vmem:[%s2805_s8 + $0x18] sm:$0xf] }
  0x39   : > { %2595 = vmatpush3.bf16.msra.mxu0 %v2713_v46  ;;  %v959_v5 = vrot.slane %v958_v16, 4  ;;  %v983_v46 = vshll.u32 %v2269_v19, 16  ;;  %v999_v37 = vrot.slane %v997_v28, 5  ;;  %v1024_v16 = vrot.slane %v1022_v63, 4  ;;  %v2728_v28 = vld [vmem:[%s3273_s1 + $0xe0] sm:$0xff]  }
  0x3a   : > { %2596 = vmatprep.subr.bf16.mxu0 %v2717_v35  ;;  %v1027_v19 = vrot.slane %v1025_v10, 5  ;;  %v2316_v20 = vrot.slane %v2308_v9, 9  ;;  %v1247_v6 = vrot.slane %v3044_v1, 5  ;;  %v3086_v49 = vld [vmem:[%s2805_s8 + $0x1c] sm:$0x1]  ;;  %v1560_v63 = vshll.u32 %v2367_v48, 16 }
  0x3b   : > { %2615 = vmatpush3.bf16.msra.mxu1 %v2720_v38  ;;  %v964_v57 = vsel %vm2832_vm3, %v959_v5, %v963_v7  ;;  %v985_v31 = vrot.slane %v983_v46, 5  ;;  %v2274_v38 = vld [vmem:[%s2805_s8 + $0x2c] sm:$0x1]  ;;  %v1013_v7 = vrot.slane %v1011_v56, 5  ;;  %v1243_v5 = vrot.slane %v2278_v0, 5 }
  0x3c   : > { %2573 = vmatmul.mubr.msk.bf16.gmra.mxu0 %vm400_vm0, %v2228_v44  ;;  %2640 = vmatprep.subr.bf16.mxu1 %v2722_v15  ;;  %v1235_v43 = vrot.slane %v2274_v38, 5  ;;  %v1000_v44 = vor.u32 %v999_v37, %v996_v36  ;;  %v1017_v58 = vshll.u32 %v2274_v38, 16  ;;  %v2279_v46 = vld [vmem:[%s2805_s8 + $0x40] sm:$0xf]  ;;  %v1028_v54 = vor.u32 %v1027_v19, %v1024_v16  ;;  %v2365_v37 = vld [vmem:[%s2805_s8 + $0x10] sm:$0xf] }
  0x3d   : > { %2597 = vmatpush3.bf16.msra.mxu0 %v2717_v35  ;;  %v2289_v35 = vcombine.low %v964_v57, %v978_v30  ;;  %v986_v40 = vor.u32 %v985_v31, %v982_v24  ;;  %v1014_v26 = vor.u32 %v1013_v7, %v1010_v4  ;;  %v1244_v57 = vsel %vm2908_vm6, %v2315_v27, %v1243_v5  ;;  %v2729_v8 = vld [vmem:[%s2805_s8 + $0x10] ss:$8 sps:$4 sm:$0xff]   ;;  %v3099_v9 = vld [vmem:[%s2805_s8 + $0x24] sm:$0x1]  ;;  %v2371_v16 = vld [vmem:[%s2805_s8 + $0x28] sm:$0xf] }
  0x3e   : > { %2598 = vmatprep.subr.bf16.mxu0 %v2719_v47  ;;  %2617 = vmatmul.mubr.msk.bf16.vlgmr.msra.gmra.mxu1 %vm400_vm0, %v2326_v45  ;;  %v1001_v60 = vrot.slane %v1000_v44, 4  ;;  %v1019_v13 = vrot.slane %v1017_v58, 5  ;;  %v2277_v45 = vld [vmem:[%s2805_s8 + $0x38] sm:$0xf]  ;;  %v1248_v24 = vsel %vm2908_vm6, %v2316_v20, %v1247_v6  ;;  %v1045_v31 = vshll.u32 %v2278_v0, 16 }
  0x3f   : > { %2641 = vmatpush3.bf16.msra.mxu1 %v2722_v15  ;;  %2600 = vmatprep.mubr.msk.bf16.mxu0 %vm400_vm0, %v2289_v35  ;;  %v987_v52 = vrot.slane %v986_v40, 4  ;;  %v1031_v15 = vshll.u32 %v2276_v39, 16  ;;  %v1015_v21 = vrot.slane %v1014_v26, 4  ;;  %v1036_v25 = vshrl.u32 %v2277_v45, 16  ;;  %v3106_v10 = vld [vmem:[%s2805_s8 + $0x2c] sm:$0x1] }
  0x40   : > { %2642 = vmatprep.subr.bf16.mxu1 %v2724_v29  ;;  %v1006_v11 = vsel %vm2832_vm3, %v1001_v60, %v1005_v41  ;;  %v2328_v30 = vcombine.low %v1244_v57, %v1248_v24  ;;  %v1050_v35 = vshrl.u32 %v2279_v46, 16  ;;  %v1053_v36 = vshll.u32 %v2279_v46, 16  ;;  %v2727_v41 = vld [vmem:[%s3273_s1 + $0xc0] sm:$0xff]  }
  0x41   : > { %2599 = vmatpush3.bf16.msra.mxu0 %v2719_v47  ;;  %v2313_v47 = vrot.slane %v2305_v42, 9  ;;  %v992_v2 = vsel %vm2832_vm3, %v987_v52, %v991_v32  ;;  %v1033_v22 = vrot.slane %v1031_v15, 5  ;;  %v1029_v32 = vrot.slane %v1028_v54, 4  ;;  %v3080_v42 = vld [vmem:[%s2805_s8 + $0x14] sm:$0x1] }
  0x42   : > { %2624 = vmatprep.subr.bf16.mxu0 %v3007_v14  ;;  %v2290_v17 = vcombine.low %v992_v2, %v1006_v11  ;;  %v1038_v34 = vrot.slane %v1036_v25, 4  ;;  %v1047_v39 = vrot.slane %v1045_v31, 5  ;;  %v1059_v40 = vshll.u32 %v3044_v1, 16  ;;  %v2369_v1 = vld [vmem:[%s2805_s8 + $0x20] sm:$0xf] }
  0x43   : > { %2643 = vmatpush3.bf16.msra.mxu1 %v2724_v29  ;;  %v1236_v61 = vsel %vm2908_vm6, %v2313_v47, %v1235_v43  ;;  %v1020_v29 = vsel %vm2832_vm3, %v1015_v21, %v1019_v13  ;;  %v1543_v18 = vshrl.u32 %v2365_v37, 16  ;;  %v1034_v43 = vsel %vm2832_vm3, %v1029_v32, %v1033_v22  ;;  %v2731_v32 = vld [vmem:[%s2805_s8 + $0x20] ss:$8 sps:$4 sm:$0xff]  }
  0x44   : > { %v2327_v3 = vcombine.low %v1236_v61, %v1240_v62  ;;  %2644 = vmatprep.subr.bf16.mxu1 %v2726_v51  ;;  %2601 = vmatmul.mubr.msk.bf16.vlgmr.msra.gmra.mxu0 %vm400_vm0, %v2290_v17  ;;  %v1052_v44 = vrot.slane %v1050_v35, 4  ;;  %v1055_v47 = vrot.slane %v1053_v36, 5  ;;  %v2291_v50 = vcombine.low %v1020_v29, %v1034_v43  ;;  %v3092_v61 = vld [vmem:[%s3273_s1 + $0x118] sm:$0xff]  }
  0x45   : > { %2625 = vmatpush3.bf16.msra.mxu0 %v3007_v14  ;;  %v1039_v14 = vshll.u32 %v2277_v45, 16  ;;  %v1061_v52 = vrot.slane %v1059_v40, 5  ;;  %v1545_v53 = vrot.slane %v1543_v18, 4  ;;  %v1546_v56 = vshll.u32 %v2365_v37, 16  ;;  %v2375_v35 = vld [vmem:[%s2805_s8 + $0x38] sm:$0xf] }
  0x46   : > { %2620 = vmatprep.mubr.msk.bf16.mxu1 %vm400_vm0, %v2327_v3  ;;  %2626 = vmatprep.subr.bf16.mxu0 %v2723_v12  ;;  %v1056_v55 = vor.u32 %v1055_v47, %v1052_v44  ;;  %v1552_v58 = vshll.u32 %v3080_v42, 16  ;;  %v1557_v60 = vshrl.u32 %v2367_v48, 16  ;;  %v1566_v0 = vshll.u32 %v3086_v49, 16  ;;  %v3126_v40 = vld [vmem:[%s2805_s8 + $0x3c] sm:$0x1] }
  0x47   : > { %2645 = vmatpush3.bf16.msra.mxu1 %v2726_v51  ;;  %v1041_v38 = vrot.slane %v1039_v14, 5  ;;  %2604 = vmatprep.mubr.msk.bf16.mxu0 %vm400_vm0, %v2291_v50  ;;  %v1548_v3 = vrot.slane %v1546_v56, 5  ;;  %v1571_v15 = vshrl.u32 %v2369_v1, 16  ;;  %v1574_v27 = vshll.u32 %v2369_v1, 16 }
  0x48   : > { %2646 = vmatprep.subr.bf16.mxu1 %v2728_v28  ;;  %2621 = vmatmul.mubr.msk.bf16.gmra.mxu1 %vm400_vm0, %v2328_v30  ;;  %v1057_v2 = vrot.slane %v1056_v55, 4  ;;  %v1554_v4 = vrot.slane %v1552_v58, 5  ;;  %v1559_v7 = vrot.slane %v1557_v60, 4  ;;  %v1568_v13 = vrot.slane %v1566_v0, 5  ;;  %v2373_v30 = vld [vmem:[%s2805_s8 + $0x30] sm:$0xf] }
  0x49   : > { %2627 = vmatpush3.bf16.msra.mxu0 %v2723_v12  ;;  %v1042_v51 = vor.u32 %v1041_v38, %v1038_v34  ;;  %v1562_v12 = vrot.slane %v1560_v63, 5  ;;  %v1549_v26 = vor.u32 %v1548_v3, %v1545_v53  ;;  %v1580_v20 = vshll.u32 %v3099_v9, 16  ;;  %v3122_v34 = vld [vmem:[%s2805_s8 + $0x34] sm:$0x1]  ;;  %v2733_v53 = vld [vmem:[%s2805_s8 + $0x30] ss:$8 sps:$4 sm:$0xff]  }
  0x4a   : > { %2628 = vmatprep.subr.bf16.mxu0 %v2725_v23  ;;  %v1062_v17 = vsel %vm2832_vm3, %v1057_v2, %v1061_v52  ;;  %v1585_v6 = vshrl.u32 %v2371_v16, 16  ;;  %v1573_v22 = vrot.slane %v1571_v15, 4  ;;  %v1588_v45 = vshll.u32 %v2371_v16, 16  ;;  %v2732_v55 = vld [vmem:[%s3273_s1 + $0x110] sm:$0xff]   ;;  %v3142_v3 = vld [vmem:[%s2805_s8 + $0x44] sm:$0x1] }
  0x4b   : > { %2647 = vmatpush3.bf16.msra.mxu1 %v2728_v28  ;;  %v1043_v62 = vrot.slane %v1042_v51, 4  ;;  %v1563_v5 = vor.u32 %v1562_v12, %v1559_v7  ;;  %v1550_v21 = vrot.slane %v1549_v26, 4  ;;  %v1594_v57 = vshll.u32 %v3106_v10, 16  ;;  %v3147_v12 = vld [vmem:[%s2805_s8 + $0x4c] sm:$0x1] }
  0x4c   : > { %2672 = vmatprep.subr.bf16.mxu1 %v3092_v61  ;;  %v1587_v54 = vrot.slane %v1585_v6, 4  ;;  %v1582_v28 = vrot.slane %v1580_v20, 5  ;;  %v1590_v29 = vrot.slane %v1588_v45, 5  ;;  %v1599_v36 = vshrl.u32 %v2373_v30, 16 }
  0x4d   : > { %2629 = vmatpush3.bf16.msra.mxu0 %v2725_v23  ;;  %v1048_v11 = vsel %vm2832_vm3, %v1043_v62, %v1047_v39  ;;  %v1576_v23 = vrot.slane %v1574_v27, 5  ;;  %v1564_v46 = vrot.slane %v1563_v5, 4  ;;  %v1555_v24 = vsel %vm2832_vm3, %v1550_v21, %v1554_v4  ;;  %v2377_v62 = vld [vmem:[%s2805_s8 + $0x40] sm:$0xf]  ;;  %v2379_v4 = vld [vmem:[%s2805_s8 + $0x48] sm:$0xf] }
  0x4e   : > { %2630 = vmatprep.subr.bf16.mxu0 %v2727_v41  ;;  %v2292_v19 = vcombine.low %v1048_v11, %v1062_v17  ;;  %v1596_v31 = vrot.slane %v1594_v57, 5  ;;  %v1591_v39 = vor.u32 %v1590_v29, %v1587_v54  ;;  %v1601_v18 = vrot.slane %v1599_v36, 4  ;;  %v2401_v36 = vld [vmem:[%s2805_s8 + $0x10] sm:$0xe] }
  0x4f   : > { %v1577_v25 = vor.u32 %v1576_v23, %v1573_v22  ;;  %v1569_v14 = vsel %vm2832_vm3, %v1564_v46, %v1568_v13  ;;  %v1608_v43 = vshll.u32 %v3122_v34, 16  ;;  %v1613_v44 = vshrl.u32 %v2375_v35, 16  ;;  %v2734_v46 = vld [vmem:[%s3273_s1 + $0x108] sm:$0xff]  }
  0x50   : > { %2605 = vmatmul.mubr.msk.bf16.gmra.mxu0 %vm400_vm0, %v2292_v19  ;;  %v2389_v37 = vcombine.low %v1555_v24, %v1569_v14  ;;  %v1616_v47 = vshll.u32 %v2375_v35, 16  ;;  %v1592_v50 = vrot.slane %v1591_v39, 4  ;;  %v1622_v52 = vshll.u32 %v3126_v40, 16  ;;  %v2406_v14 = vld [vmem:[%s2805_s8 + $0x38] sm:$0xe] }
  0x51   : > { %2631 = vmatpush3.bf16.msra.mxu0 %v2727_v41  ;;  %2632 = vmatprep.mubr.msk.bf16.mxu0 %vm400_vm0, %v2729_v8  ;;  %v1578_v38 = vrot.slane %v1577_v25, 4  ;;  %v1602_v41 = vshll.u32 %v2373_v30, 16  ;;  %v1610_v56 = vrot.slane %v1608_v43, 5  ;;  %v1615_v58 = vrot.slane %v1613_v44, 4  ;;  %v2735_v25 = vld [vmem:[%s2805_s8 + $0x40] ss:$8 sps:$4 sm:$0xff]  }
  0x52   : > { %2656 = vmatprep.subr.bf16.mxu0 %v3092_v61  ;;  %2648 = vmatprep.mubr.msk.bf16.mxu1 %vm400_vm0, %v2389_v37  ;;  %v1618_v60 = vrot.slane %v1616_v47, 5  ;;  %v1826_v63 = vrot.slane %v3122_v34, 5  ;;  %v1597_v0 = vsel %vm2832_vm3, %v1592_v50, %v1596_v31  ;;  %v1624_v2 = vrot.slane %v1622_v52, 5  ;;  %v2405_v30 = vld [vmem:[%s2805_s8 + $0x30] sm:$0xe] }
  0x53   : > { %v1583_v48 = vsel %vm2832_vm3, %v1578_v38, %v1582_v28  ;;  %v1604_v51 = vrot.slane %v1602_v41, 5  ;;  %v1627_v7 = vshrl.u32 %v2377_v62, 16  ;;  %v1630_v13 = vshll.u32 %v2377_v62, 16  ;;  %v2402_v38 = vld [vmem:[%s2805_s8 + $0x18] sm:$0xe] }
  0x54   : > { %v2390_v8 = vcombine.low %v1583_v48, %v1597_v0  ;;  %v1619_v11 = vor.u32 %v1618_v60, %v1615_v58  ;;  %v1636_v16 = vshll.u32 %v3142_v3, 16  ;;  %v1641_v15 = vshrl.u32 %v2379_v4, 16  ;;  %v2407_v48 = vld [vmem:[%s2805_s8 + $0x40] sm:$0xe] }
  0x55   : > { %v1605_v1 = vor.u32 %v1604_v51, %v1601_v18  ;;  %v1629_v26 = vrot.slane %v1627_v7, 4  ;;  %v1644_v27 = vshll.u32 %v2379_v4, 16  ;;  %v1632_v5 = vrot.slane %v1630_v13, 5 }
  0x56   : > { %2649 = vmatmul.mubr.msk.bf16.vlgmr.msra.gmra.mxu1 %vm400_vm0, %v2390_v8  ;;  %v1620_v19 = vrot.slane %v1619_v11, 4  ;;  %v1638_v20 = vrot.slane %v1636_v16, 5  ;;  %v1650_v6 = vshll.u32 %v3147_v12, 16  ;;  %v1643_v22 = vrot.slane %v1641_v15, 4 }
  0x57   : > { %v1606_v17 = vrot.slane %v1605_v1, 4  ;;  %2676 = vmatpush3.bf16.msra.mxu1 %v3092_v61  ;;  %v1646_v23 = vrot.slane %v1644_v27, 5  ;;  %v1834_v45 = vrot.slane %v3142_v3, 5  ;;  %v1633_v57 = vor.u32 %v1632_v5, %v1629_v26 }
  0x58   : > { %2633 = vmatmul.mubr.msk.bf16.vlgmr.msra.gmra.mxu0 %vm400_vm0, %v2731_v32  ;;  %2673 = vmatprep.subr.bf16.mxu1 %v2732_v55  ;;  %v1625_v54 = vsel %vm2832_vm3, %v1620_v19, %v1624_v2  ;;  %v1652_v24 = vrot.slane %v1650_v6, 5  ;;  %v2413_v32 = vrot.slane %v2405_v30, 9  ;;  %v2414_v34 = vrot.slane %v2406_v14, 9 }
  0x59   : > { %2657 = vmatpush3.bf16.msra.mxu0 %v3092_v61  ;;  %2636 = vmatprep.mubr.msk.bf16.mxu0 %vm400_vm0, %v2733_v53  ;;  %v1611_v21 = vsel %vm2832_vm3, %v1606_v17, %v1610_v56  ;;  %v1838_v61 = vrot.slane %v3147_v12, 5  ;;  %v1647_v29 = vor.u32 %v1646_v23, %v1643_v22  ;;  %v1634_v31 = vrot.slane %v1633_v57, 4  ;;  %v2404_v56 = vld [vmem:[%s2805_s8 + $0x28] sm:$0xe] }
  0x5a   : > { %2658 = vmatprep.subr.bf16.mxu0 %v2732_v55  ;;  %v2391_v28 = vcombine.low %v1611_v21, %v1625_v54  ;;  %v1830_v35 = vrot.slane %v3126_v40, 5  ;;  %v2409_v39 = vrot.slane %v2401_v36, 9  ;;  %v1810_v41 = vrot.slane %v3080_v42, 5  ;;  %v2736_v40 = vld [vmem:[%s3273_s1 + $0x100] sm:$0xff]  }
  0x5b   : > { %2677 = vmatpush3.bf16.msra.mxu1 %v2732_v55  ;;  %v1648_v37 = vrot.slane %v1647_v29, 4  ;;  %v1814_v18 = vrot.slane %v3086_v49, 5  ;;  %v1639_v43 = vsel %vm2832_vm3, %v1634_v31, %v1638_v20  ;;  %v1827_v44 = vsel %vm2908_vm6, %v2413_v32, %v1826_v63  ;;  %v2408_v49 = vld [vmem:[%s2805_s8 + $0x48] sm:$0xe] }
  0x5c   : > { %2652 = vmatprep.mubr.msk.bf16.mxu1 %vm400_vm0, %v2391_v28  ;;  %2674 = vmatprep.subr.bf16.mxu1 %v2734_v46  ;;  %v1831_v42 = vsel %vm2908_vm6, %v2414_v34, %v1830_v35  ;;  %v2410_v47 = vrot.slane %v2402_v38, 9  ;;  %v1811_v52 = vsel %vm2908_vm6, %v2409_v39, %v1810_v41  ;;  %v2415_v53 = vrot.slane %v2407_v48, 9 }
  0x5d   : > { %2659 = vmatpush3.bf16.msra.mxu0 %v2732_v55  ;;  %v1653_v50 = vsel %vm2832_vm3, %v1648_v37, %v1652_v24  ;;  %v2427_v51 = vcombine.low %v1827_v44, %v1831_v42  ;;  %v2403_v55 = vld [vmem:[%s2805_s8 + $0x20] sm:$0xe]  ;;  %v2416_v62 = vrot.slane %v2408_v49, 9  ;;  %v1818_v33 = vrot.slane %v3099_v9, 5  ;;  %s2447_s8 = sshll.u32 %s3288_s16, 5 }
  0x5e   : > { %2660 = vmatprep.subr.bf16.mxu0 %v2734_v46  ;;  %v2392_v58 = vcombine.low %v1639_v43, %v1653_v50  ;;  %v1815_v60 = vsel %vm2908_vm6, %v2410_v47, %v1814_v18  ;;  %v2411_v63 = vrot.slane %v2403_v55, 9  ;;  %v2412_v1 = vrot.slane %v2404_v56, 9  ;;  %s3227_s25 = scalar_lea.vmem %s3274_s2, %s2447_s8 }
  0x5f   : > { %2678 = vmatpush3.bf16.msra.mxu1 %v2734_v46  ;;  %v2425_v0 = vcombine.low %v1811_v52, %v1815_v60  ;;  %v1822_v2 = vrot.slane %v3106_v10, 5  ;;  %v1835_v3 = vsel %vm2908_vm6, %v2415_v53, %v1834_v45  ;;  %v1839_v4 = vsel %vm2908_vm6, %v2416_v62, %v1838_v61 }
  0x60   : > { %2637 = vmatmul.mubr.msk.bf16.gmra.mxu0 %vm400_vm0, %v2735_v25  ;;  %2653 = vmatmul.mubr.msk.bf16.gmra.mxu1 %vm400_vm0, %v2392_v58  ;;  %v1819_v7 = vsel %vm2908_vm6, %v2411_v63, %v1818_v33  ;;  %v2428_v10 = vcombine.low %v1835_v3, %v1839_v4 }
  0x61   : > { %2661 = vmatpush3.bf16.msra.mxu0 %v2734_v46  ;;  %2675 = vmatprep.subr.bf16.mxu1 %v2736_v40  ;;  %v1823_v9 = vsel %vm2908_vm6, %v2412_v1, %v1822_v2 }
  0x62   : > { %2662 = vmatprep.subr.bf16.mxu0 %v2736_v40  ;;  %2668 = vmatprep.mubr.msk.bf16.mxu1 %vm400_vm0, %v2427_v51  ;;  %v2426_v8 = vcombine.low %v1819_v7, %v1823_v9 }
  0x63   : > { %2664 = vmatprep.mubr.msk.bf16.mxu0 %vm400_vm0, %v2425_v0  ;;  %2679 = vmatpush3.bf16.msra.mxu1 %v2736_v40 }
  0x65   : > { %2663 = vmatpush3.bf16.msra.mxu0 %v2736_v40 }
  0x68   : > { %2665 = vmatmul.mubr.msk.bf16.vlgmr.msra.gmra.mxu0 %vm400_vm0, %v2426_v8  ;;  %2669 = vmatmul.mubr.msk.bf16.vlgmr.msra.gmra.mxu1 %vm400_vm0, %v2428_v10 }
  0xdd   : > { %v2554_v11 = vpop.f32.mrf.mxu1 }
  0xdf   : > { %v568_v12 = vpop.f32.mrf.mxu1 }
  0xe1   : > { %v2555_v13 = vpop.f32.mrf.mxu1 }
  0xe2   : > { %v2538_v16 = vpop.f32.mrf.mxu0 }
  0xe3   : > { %v571_v17 = vpop.f32.mrf.mxu1  ;;  %v577_v52 = vadd.f32 %v2554_v11, %v2538_v16 }
  0xe4   : > { %v447_v26 = vpop.f32.mrf.mxu0 }
  0xe5   : > { %v2558_v15 = vpop.f32.mrf.mxu1  ;;  %v569_v56 = vadd.f32 %v568_v12, %v447_v26 }
  0xe6   : > { %v2539_v27 = vpop.f32.mrf.mxu0 }
  0xe7   : > { %v584_v19 = vpop.f32.mrf.mxu1  ;;  %v580_v3 = vadd.f32 %v2555_v13, %v2539_v27 }
  0xe8   : > { %v450_v5 = vpop.f32.mrf.mxu0 }
  0xe9   : > { %v2559_v20 = vpop.f32.mrf.mxu1  ;;  %v572_v4 = vadd.f32 %v571_v17, %v450_v5 }
  0xeb   : > { %v587_v59 = vpop.f32.mrf.mxu1 }
  0xec   : > { %v2542_v6 = vpop.f32.mrf.mxu0 }
  0xed   : > { %v2586_v21 = vpop.f32.mrf.mxu1  ;;  %v593_v62 = vadd.f32 %v2558_v15, %v2542_v6 }
  0xee   : > { %v463_v22 = vpop.f32.mrf.mxu0 }
  0xef   : > { %v896_v23 = vpop.f32.mrf.mxu1  ;;  %v585_v1 = vadd.f32 %v584_v19, %v463_v22 }
  0xf0   : > { %v2543_v45 = vpop.f32.mrf.mxu0 }
  0xf1   : > { %v3208_v46 = vpop.f32.mrf.mxu1  ;;  %v596_v10 = vadd.f32 %v2559_v20, %v2543_v45 }
  0xf2   : > { %v466_v54 = vpop.f32.mrf.mxu0 }
  0xf3   : > { %v899_v57 = vpop.f32.mrf.mxu1 }
  0xf4   : > { %v2570_v24 = vpop.f32.mrf.mxu0 }
  0xf5   : > { %v2590_v61 = vpop.f32.mrf.mxu1  ;;  %v782_v58 = vadd.f32 %v2570_v24, %v577_v52  ;;  %v588_v24 = vadd.f32 %v587_v59, %v466_v54 }
  0xf6   : > { %v749_v25 = vpop.f32.mrf.mxu0 }
  0xf7   : > { %v912_v29 = vpop.f32.mrf.mxu1  ;;  %v780_v63 = vadd.f32 %v749_v25, %v569_v56  ;;  %v929_v7 = vadd.f32 %v2586_v21, %v782_v58 }
  0xf8   : > { %v2571_v28 = vpop.f32.mrf.mxu0 }
  0xf9   : > { %v2591_v31 = vpop.f32.mrf.mxu1  ;;  %v783_v11 = vadd.f32 %v2571_v28, %v580_v3 }
  0xfa   : > { %v752_v30 = vpop.f32.mrf.mxu0 }
  0xfb   : > { %v3210_v34 = vpop.f32.mrf.mxu1  ;;  %v781_v16 = vadd.f32 %v752_v30, %v572_v4  ;;  %v930_v27 = vadd.f32 %v3208_v46, %v783_v11 }
  0xfc   : > { %v2574_v14 = vpop.f32.mrf.mxu0 }
  0xfd   : > { %v786_v2 = vadd.f32 %v2574_v14, %v593_v62  ;;  %v928_v5 = vadd.f32 %v899_v57, %v781_v16 }
  0xfe   : > { %v765_v32 = vpop.f32.mrf.mxu0  ;;  %v2618_v36 = vpop.f32.mrf.mxu1 }
  0xff   : > { %v933_v6 = vadd.f32 %v2590_v61, %v786_v2 }
 0x100   : > { %v2575_v35 = vpop.f32.mrf.mxu0  ;;  %v1340_v38 = vpop.f32.mrf.mxu1 }
 0x101   : > { %v787_v15 = vadd.f32 %v2575_v35, %v596_v10 }
 0x102   : > { %v768_v37 = vpop.f32.mrf.mxu0  ;;  %v3212_v41 = vpop.f32.mrf.mxu1 }
 0x103   : > { %3281 = vst [vmem:[#allocation2_spill] sm:$0xff] %v3212_v41  ;;  %v927_v41 = vadd.f32 %v896_v23, %v780_v63  ;;  %v785_v22 = vadd.f32 %v768_v37, %v588_v24  ;;  %v934_v28 = vadd.f32 %v2591_v31, %v787_v15 }
 0x104   : > { %v2602_v39 = vpop.f32.mrf.mxu0  ;;  %v3214_v43 = vpop.f32.mrf.mxu1 }
 0x105   : > { %3282 = vst [vmem:[#allocation3_spill] sm:$0xff] %v3214_v43  ;;  %v784_v43 = vadd.f32 %v765_v32, %v585_v1  ;;  %v932_v35 = vadd.f32 %v3210_v34, %v785_v22 }
 0x106   : > { %v1154_v18 = vpop.f32.mrf.mxu0 }
 0x107   : > { %v1185_v25 = vadd.f32 %v1154_v18, %v927_v41  ;;  %v931_v17 = vadd.f32 %v912_v29, %v784_v43 }
 0x108   : > { %v2603_v40 = vpop.f32.mrf.mxu0  ;;  %v2622_v44 = vpop.f32.mrf.mxu1 }
 0x109   : > { %v1188_v30 = vadd.f32 %v2603_v40, %v930_v27  ;;  %v1371_v32 = vadd.f32 %v1340_v38, %v1185_v25 }
 0x10a   : > { %v1157_v42 = vpop.f32.mrf.mxu0  ;;  %v1356_v47 = vpop.f32.mrf.mxu1  ;;  %v3284_v18 = vld [vmem:[#allocation2_spill] sm:$0xff] }
 0x10b   : > { %v1186_v23 = vadd.f32 %v1157_v42, %v928_v5  ;;  %v1374_v43 = vadd.f32 %v3284_v18, %v1188_v30 }
 0x10c   : > { %v2623_v50 = vpop.f32.mrf.mxu1  ;;  %v3285_v31 = vld [vmem:[#allocation3_spill] sm:$0xff] }
 0x10d   : > { %v1372_v40 = vadd.f32 %v3285_v31, %v1186_v23 }
 0x10e   : > { %v3216_v53 = vpop.f32.mrf.mxu1 }
 0x10f   : > { %3283 = vst [vmem:[#allocation4_spill] sm:$0xff] %v3216_v53  ;;  %v1187_v53 = vadd.f32 %v2602_v39, %v929_v7 }
 0x110   : > { %v2606_v48 = vpop.f32.mrf.mxu0 }
 0x111   : > { %v1191_v13 = vadd.f32 %v2606_v48, %v933_v6  ;;  %v1373_v20 = vadd.f32 %v2618_v36, %v1187_v53 }
 0x112   : > { %v1170_v49 = vpop.f32.mrf.mxu0 }
 0x113   : > { %v1189_v45 = vadd.f32 %v1170_v49, %v931_v17  ;;  %v1377_v39 = vadd.f32 %v2622_v44, %v1191_v13 }
 0x114   : > { %v2607_v51 = vpop.f32.mrf.mxu0 }
 0x115   : > { %v1192_v61 = vadd.f32 %v2607_v51, %v934_v28  ;;  %v1375_v36 = vadd.f32 %v1356_v47, %v1189_v45 }
 0x116   : > { %v1173_v55 = vpop.f32.mrf.mxu0  ;;  %v2650_v0 = vpop.f32.mrf.mxu1 }
 0x117   : > { %v1190_v46 = vadd.f32 %v1173_v55, %v932_v35  ;;  %v1378_v49 = vadd.f32 %v2623_v50, %v1192_v61 }
 0x118   : > { %v2634_v60 = vpop.f32.mrf.mxu0  ;;  %v1745_v9 = vpop.f32.mrf.mxu1 }
 0x119   : > { %v1520_v14 = vadd.f32 %v2634_v60, %v1373_v20  ;;  %v3286_v60 = vld [vmem:[#allocation4_spill] sm:$0xff] }
 0x11a   : > { %v1487_v33 = vpop.f32.mrf.mxu0  ;;  %v2651_v12 = vpop.f32.mrf.mxu1  ;;  %v1376_v62 = vadd.f32 %v3286_v60, %v1190_v46 }
 0x11b   : > { %v1518_v37 = vadd.f32 %v1487_v33, %v1371_v32  ;;  %v1778_v48 = vadd.f32 %v2650_v0, %v1520_v14 }
 0x11c   : > { %v2635_v8 = vpop.f32.mrf.mxu0  ;;  %v1748_v52 = vpop.f32.mrf.mxu1 }
 0x11d   : > { %v1521_v51 = vadd.f32 %v2635_v8, %v1374_v43  ;;  %v1776_v58 = vadd.f32 %v1745_v9, %v1518_v37 }
 0x11e   : > { %v1490_v26 = vpop.f32.mrf.mxu0 }
 0x11f   : > { %v1519_v56 = vadd.f32 %v1490_v26, %v1372_v40  ;;  %v1779_v8 = vadd.f32 %v2651_v12, %v1521_v51 }
 0x120   : > { %v2638_v19 = vpop.f32.mrf.mxu0  ;;  %v2654_v59 = vpop.f32.mrf.mxu1 }
 0x121   : > { %v1524_v57 = vadd.f32 %v2638_v19, %v1377_v39  ;;  %v1777_v10 = vadd.f32 %v1748_v52, %v1519_v56 }
 0x122   : > { %v1503_v21 = vpop.f32.mrf.mxu0  ;;  %v1761_v29 = vpop.f32.mrf.mxu1 }
 0x123   : > { %v1522_v38 = vadd.f32 %v1503_v21, %v1375_v36  ;;  %v1782_v55 = vadd.f32 %v2654_v59, %v1524_v57 }
 0x124   : > { %v2639_v54 = vpop.f32.mrf.mxu0  ;;  %v2655_v42 = vpop.f32.mrf.mxu1 }
 0x125   : > { %v1525_v47 = vadd.f32 %v2639_v54, %v1378_v49  ;;  %v1780_v0 = vadd.f32 %v1761_v29, %v1522_v38 }
 0x126   : > { %v1506_v41 = vpop.f32.mrf.mxu0  ;;  %v1764_v34 = vpop.f32.mrf.mxu1 }
 0x127   : > { %v1523_v3 = vadd.f32 %v1506_v41, %v1376_v62  ;;  %v1783_v24 = vadd.f32 %v2655_v42, %v1525_v47 }
 0x128   : > { %v2666_v53 = vpop.f32.mrf.mxu0  ;;  %v2670_v33 = vpop.f32.mrf.mxu1 }
 0x129   : > { %v1964_v44 = vadd.f32 %v2666_v53, %v1778_v48  ;;  %v1968_v50 = vadd.f32 %v2670_v33, %v1782_v55  ;;  %v1781_v22 = vadd.f32 %v1764_v34, %v1523_v3 }
 0x12a   : > { %v1931_v63 = vpop.f32.mrf.mxu0  ;;  %v1947_v7 = vpop.f32.mrf.mxu1 }
 0x12b   : > { %v2450_v1 = vpack.c.bf16 %v1964_v44, %v1964_v44  ;;  %v1962_v2 = vadd.f32 %v1931_v63, %v1776_v58  ;;  %v2454_v11 = vpack.c.bf16 %v1968_v50, %v1968_v50  ;;  %v1966_v16 = vadd.f32 %v1947_v7, %v1780_v0 }
 0x12c   : > { %v2667_v4 = vpop.f32.mrf.mxu0  ;;  %v2671_v15 = vpop.f32.mrf.mxu1  ;;  %v1995_v21 = vmul.f32 %v1964_v44, %v1964_v44  ;;  %v1973_v30 = vsel %vm400_vm0, %v1964_v44, 0.0  ;;  %v1999_v42 = vmul.f32 %v1968_v50, %v1968_v50  ;;  %v1981_v51 = vsel %vm400_vm0, %v1968_v50, 0.0 }
 0x12d   : > { %2058 = vst.msk [vmem:[%s3227_s25 + $0x8] sm:$0xf] %vm2055_vm7, %v2450_v1  ;;  %v2448_v9 = vpack.c.bf16 %v1962_v2, %v1962_v2  ;;  %v1965_v6 = vadd.f32 %v2667_v4, %v1779_v8  ;;  %2062 = vst.msk [vmem:[%s3227_s25 + $0x18] sm:$0xf] %vm2055_vm7, %v2454_v11  ;;  %v2452_v19 = vpack.c.bf16 %v1966_v16, %v1966_v16  ;;  %v1970_v45 = vsel %vm400_vm0, %v1962_v2, 0.0 }
 0x12e   : > { %v1934_v26 = vpop.f32.mrf.mxu0  ;;  %v1993_v13 = vmul.f32 %v1962_v2, %v1962_v2  ;;  %v1969_v17 = vadd.f32 %v2671_v15, %v1783_v24  ;;  %v1950_v52 = vpop.f32.mrf.mxu1  ;;  %v2004_v37 = vsel %vm400_vm0, %v1995_v21, 0.0  ;;  %v1997_v29 = vmul.f32 %v1966_v16, %v1966_v16 }
 0x12f   : > { %2056 = vst.msk [vmem:[%s3227_s25] sm:$0xf] %vm2055_vm7, %v2448_v9  ;;  %v1963_v25 = vadd.f32 %v1934_v26, %v1777_v10  ;;  %v2451_v12 = vpack.c.bf16 %v1965_v6, %v1965_v6  ;;  %2060 = vst.msk [vmem:[%s3227_s25 + $0x10] sm:$0xf] %vm2055_vm7, %v2452_v19  ;;  %v1967_v27 = vadd.f32 %v1950_v52, %v1781_v22  ;;  %v1975_v41 = vsel %vm400_vm0, %v1965_v6, 0.0 }
 0x130   : > { %v2455_v28 = vpack.c.bf16 %v1969_v17, %v1969_v17  ;;  %v2001_v32 = vsel %vm400_vm0, %v1993_v13, 0.0  ;;  %v1996_v59 = vmul.f32 %v1965_v6, %v1965_v6  ;;  %v1977_v36 = vsel %vm400_vm0, %v1966_v16, 0.0 }
 0x131   : > { %v1971_v5 = vsel %vm400_vm0, %v1963_v25, 0.0  ;;  %v1994_v20 = vmul.f32 %v1963_v25, %v1963_v25  ;;  %2059 = vst.msk [vmem:[%s3227_s25 + $0xc] sm:$0xf] %vm2055_vm7, %v2451_v12  ;;  %v2453_v23 = vpack.c.bf16 %v1967_v27, %v1967_v27  ;;  %v2449_v61 = vpack.c.bf16 %v1963_v25, %v1963_v25 }
 0x132   : > { %v1972_v14 = vadd.f32 %v1971_v5, %v1970_v45  ;;  %2063 = vst.msk [vmem:[%s3227_s25 + $0x1c] sm:$0xf] %vm2055_vm7, %v2455_v28  ;;  %v2006_v18 = vsel %vm400_vm0, %v1996_v59, 0.0  ;;  %v1998_v43 = vmul.f32 %v1967_v27, %v1967_v27  ;;  %v2008_v48 = vsel %vm400_vm0, %v1997_v29, 0.0 }
 0x133   : > { %v2002_v54 = vsel %vm400_vm0, %v1994_v20, 0.0  ;;  %2061 = vst.msk [vmem:[%s3227_s25 + $0x14] sm:$0xf] %vm2055_vm7, %v2453_v23  ;;  %2057 = vst.msk [vmem:[%s3227_s25 + $0x4] sm:$0xf] %vm2055_vm7, %v2449_v61  ;;  %v1979_v38 = vsel %vm400_vm0, %v1967_v27, 0.0  ;;  %v2000_v56 = vmul.f32 %v1969_v17, %v1969_v17 }
 0x134   : > { %v1974_v35 = vadd.f32 %v1973_v30, %v1972_v14  ;;  %v2003_v39 = vadd.f32 %v2002_v54, %v2001_v32  ;;  %v2010_v34 = vsel %vm400_vm0, %v1998_v43, 0.0  ;;  %v2012_v60 = vsel %vm400_vm0, %v1999_v42, 0.0 }
 0x135   : > { %v1983_v62 = vsel %vm400_vm0, %v1969_v17, 0.0  ;;  %v2014_v47 = vsel %vm400_vm0, %v2000_v56, 0.0 }
 0x136   : > { %v1976_v46 = vadd.f32 %v1975_v41, %v1974_v35  ;;  %v2005_v57 = vadd.f32 %v2004_v37, %v2003_v39 }
 0x138   : > { %v1978_v31 = vadd.f32 %v1977_v36, %v1976_v46  ;;  %v2007_v40 = vadd.f32 %v2006_v18, %v2005_v57 }
 0x13a   : > { %v1980_v49 = vadd.f32 %v1979_v38, %v1978_v31  ;;  %v2009_v53 = vadd.f32 %v2008_v48, %v2007_v40 }
 0x13c   : > { %v1982_v44 = vadd.f32 %v1981_v51, %v1980_v49  ;;  %v2011_v58 = vadd.f32 %v2010_v34, %v2009_v53 }
 0x13e   : > { %v1984_v55 = vadd.f32 %v1983_v62, %v1982_v44  ;;  %v2013_v63 = vadd.f32 %v2012_v60, %v2011_v58 }
 0x140   : > { %v1985_v33 = vrot.slane %v1984_v55, 4  ;;  %v2015_v1 = vadd.f32 %v2014_v47, %v2013_v63 }
 0x142   : > { %v1986_v2 = vadd.f32 %v1985_v33, %v1984_v55  ;;  %v2016_v3 = vrot.slane %v2015_v1, 4 }
 0x144   : > { %v1987_v50 = vrot.slane %v1986_v2, 2  ;;  %v2017_v0 = vadd.f32 %v2016_v3, %v2015_v1 }
 0x146   : > { %v1988_v4 = vadd.f32 %v1987_v50, %v1986_v2  ;;  %v2018_v7 = vrot.slane %v2017_v0, 2 }
 0x148   : > { %v1989_v9 = vrot.slane %v1988_v4, 1  ;;  %v2019_v8 = vadd.f32 %v2018_v7, %v2017_v0 }
 0x14a   : > { %v1990_v10 = vadd.f32 %v1989_v9, %v1988_v4  ;;  %v2020_v11 = vrot.slane %v2019_v8, 1 }
 0x14c   : > { %1992 = vst.msk [vmem:[%s211_s28] sm:$0x1] %vm1991_vm8, %v1990_v10  ;;  %v2021_v16 = vadd.f32 %v2020_v11, %v2019_v8 }
 0x14e   : > { %2022 = vst.msk [vmem:[%s214_s5] sm:$0x1] %vm1991_vm8, %v2021_v16 }
 0x14f PF: > { %s15_s15 = sadd.s32 1, %s2743_s15  }
 0x150   : > { %p12_p4 = scmp.ge.s32.totalorder %s15_s15, 4  }
 0x152   :  { %14 = sbr.rel (!%p12_p4) target bundleno = 1 (0x1), region = 92 }

// kernel: _lambda_.32
= control target key start
LH: loop header
LB: loop body
LE: loop exit
PB: predicated region body
PF: predicated region fallthrough
CT: control target
= control target key end

     0   :  { %s326_s12 = smov 0   ;;  %s343_s0 = inlined_call_operand.vmem [shape: bf16[32,128], index: 0, kind: input, shape index: {}]   ;;  %s344_s1 = inlined_call_operand.vmem [shape: f32[1,128], index: 1, kind: input, shape index: {}]   ;;  %s345_s2 = inlined_call_operand.vmem [shape: f32[1,128], index: 2, kind: input, shape index: {}]   ;;  %s346_s3 = inlined_call_operand.vmem [shape: bf16[32,128], index: 3, kind: output, shape index: {}]  }
   0x1 LB: > { %s264_s13 = sadd.s32 4294967295, %s304_s12   ;;  %p268_p0 = scmp.ge.s32.totalorder %s304_s12, 1  ;;  %s304_s12 = sphi %s326_s12, %s13_s12  }
   0x2   : > { %p138_p1 = scmp.lt.s32.totalorder %s304_s12, 3 }
   0x4   : > { %p139_p2 = pnand %p268_p0, %p138_p1 }
   0x5   : > { %s269_s14 = sshll.u32 (!%p139_p2), %s264_s13, 1 }
   0x6   : > { %142 = sbr.rel (%p139_p2) target bundleno = 26 (0x1a), region = 32  ;;  %p163_p3 = scmp.lt.s32.totalorder (!%p139_p2), %s269_s14, 3 }
   0xb   : > { %s348_s14 = smov (!%p163_p3, %s269_s14), 3  ;;  %v273_v1 = vld [vmem:[%s344_s1] ss:$0 sm:$0xff] }
   0xc   : > { %s270_s15 = sshll.u32 %s348_s14, 2  ;;  %v274_v4 = vld [vmem:[%s345_s2] ss:$0 sm:$0xff] }
   0xd   : > { %s166_s18 = scalar_lea.vmem %s343_s0, %s270_s15  ;;  %s172_s25 = scalar_lea.vmem %s346_s3, %s270_s15 }
   0xe   : > { %v282_v0 = vld [vmem:[%s166_s18] sm:$0xff]  }
   0xf   : > { %v283_v2 = vunpack.c.l.bf16 %v282_v0  ;;  %v284_v3 = vunpack.c.h.bf16 %v282_v0 }
  0x11   : > { %v185_v5 = vmul.f32 %v283_v2, %v273_v1  ;;  %v186_v6 = vmul.f32 %v284_v3, %v273_v1 }
  0x13   : > { %v194_v7 = vadd.f32 %v274_v4, %v185_v5  ;;  %v195_v8 = vadd.f32 %v274_v4, %v186_v6 }
  0x15   : > { %v196_v9 = vmax.f32 %v194_v7, 0.0  ;;  %v197_v10 = vmax.f32 %v195_v8, 0.0 }
  0x17   : > { %v288_v11 = vpack.c.bf16 %v197_v10, %v196_v9 }
  0x19   : > { %289 = vst [vmem:[%s172_s25] sm:$0xff] %v288_v11  }
  0x1a PF: > { %s13_s12 = sadd.s32 1, %s304_s12  }
  0x1b   : > { %p10_p4 = scmp.ge.s32.totalorder %s13_s12, 4  }
  0x1d   :  { %12 = sbr.rel (!%p10_p4) target bundleno = 1 (0x1), region = 62 }

// kernel: _lambda_.31
= control target key start
LH: loop header
LB: loop body
LE: loop exit
PB: predicated region body
PF: predicated region fallthrough
CT: control target
= control target key end

     0   :  { %vm365_vm0 = vcmask 523264   ;;  %s941_s1 = inlined_call_operand.vmem [shape: bf16[576,128], index: 1, kind: input, shape index: {}]   ;;  %s942_s0 = inlined_call_operand.vmem [shape: bf16[32,576], index: 0, kind: input, shape index: {}]   ;;  %s943_s2 = inlined_call_operand.vmem [shape: bf16[32,128], index: 2, kind: output, shape index: {0}]   ;;  %s944_s3 = inlined_call_operand.vmem [shape: f32[1,1,128], index: 3, kind: output, shape index: {1}]   ;;  %s945_s4 = inlined_call_operand.vmem [shape: f32[1,1,128], index: 4, kind: output, shape index: {2}]  }
   0x1   :  { %v716_v0 = vld [vmem:[%s941_s1 + $0x78] sm:$0xff]   ;;  %v720_v4 = vld [vmem:[%s941_s1 + $0x70] sm:$0xff]   ;;  %v724_v8 = vld [vmem:[%s941_s1 + $0x68] sm:$0xff]  }
   0x2   :  { %v717_v1 = vld [vmem:[%s941_s1 + $0xf8] sm:$0xff]   ;;  %642 = vmatprep.subr.bf16.mxu0 %v716_v0  ;;  %v721_v5 = vld [vmem:[%s941_s1 + $0xf0] sm:$0xff]   ;;  %v725_v9 = vld [vmem:[%s941_s1 + $0xe8] sm:$0xff]  }
   0x3   :  { %v718_v2 = vld [vmem:[%s941_s1 + $0x38] sm:$0xff]   ;;  %670 = vmatprep.subr.bf16.mxu1 %v717_v1  ;;  %v722_v6 = vld [vmem:[%s941_s1 + $0x30] sm:$0xff]   ;;  %v726_v10 = vld [vmem:[%s941_s1 + $0x28] sm:$0xff]  }
   0x4   :  { %v719_v3 = vld [vmem:[%s941_s1 + $0xb8] sm:$0xff]   ;;  %643 = vmatpush3.bf16.msra.mxu0 %v718_v2  ;;  %v723_v7 = vld [vmem:[%s941_s1 + $0xb0] sm:$0xff]   ;;  %v727_v11 = vld [vmem:[%s941_s1 + $0xa8] sm:$0xff]  }
   0x5   :  { %671 = vmatpush3.bf16.msra.mxu1 %v719_v3  ;;  %644 = vmatprep.subr.bf16.mxu0 %v720_v4  ;;  %v728_v12 = vld [vmem:[%s941_s1 + $0x60] sm:$0xff]   ;;  %v732_v16 = vld [vmem:[%s941_s1 + $0x58] sm:$0xff]   ;;  %v736_v20 = vld [vmem:[%s941_s1 + $0x50] sm:$0xff]  }
   0x6   :  { %672 = vmatprep.subr.bf16.mxu1 %v721_v5  ;;  %v729_v13 = vld [vmem:[%s941_s1 + $0xe0] sm:$0xff]   ;;  %v733_v17 = vld [vmem:[%s941_s1 + $0xd8] sm:$0xff]   ;;  %v737_v21 = vld [vmem:[%s941_s1 + $0xd0] sm:$0xff]  }
   0x7   :  { %v730_v14 = vld [vmem:[%s941_s1 + $0x20] sm:$0xff]   ;;  %v734_v18 = vld [vmem:[%s941_s1 + $0x18] sm:$0xff]   ;;  %v738_v22 = vld [vmem:[%s941_s1 + $0x10] sm:$0xff]  }
   0x8   :  { %645 = vmatpush3.bf16.msra.mxu0 %v722_v6  ;;  %v731_v15 = vld [vmem:[%s941_s1 + $0xa0] sm:$0xff]   ;;  %v735_v19 = vld [vmem:[%s941_s1 + $0x98] sm:$0xff]   ;;  %v739_v23 = vld [vmem:[%s941_s1 + $0x90] sm:$0xff]  }
   0x9   :  { %673 = vmatpush3.bf16.msra.mxu1 %v723_v7  ;;  %646 = vmatprep.subr.bf16.mxu0 %v724_v8  ;;  %v740_v24 = vld [vmem:[%s941_s1 + $0x48] sm:$0xff]   ;;  %v744_v28 = vld [vmem:[%s941_s1 + $0x40] sm:$0xff]   ;;  %v754_v36 = vld [vmem:[%s941_s1 + $0x118] sm:$0xff]  }
   0xa   :  { %674 = vmatprep.subr.bf16.mxu1 %v725_v9  ;;  %v741_v25 = vld [vmem:[%s941_s1 + $0xc8] sm:$0xff]   ;;  %v745_v29 = vld [vmem:[%s941_s1 + $0xc0] sm:$0xff]   ;;  %v755_v37 = vld [vmem:[%s941_s1 + $0x110] sm:$0xff]  }
   0xb   :  { %v742_v26 = vld [vmem:[%s941_s1 + $0x8] sm:$0xff]   ;;  %v746_v30 = vld [vmem:[%s941_s1] sm:$0xff]  }
   0xc   :  { %647 = vmatpush3.bf16.msra.mxu0 %v726_v10  ;;  %v743_v27 = vld [vmem:[%s941_s1 + $0x88] sm:$0xff]   ;;  %v747_v31 = vld [vmem:[%s941_s1 + $0x80] sm:$0xff]  }
   0xd   :  { %675 = vmatpush3.bf16.msra.mxu1 %v727_v11  ;;  %648 = vmatprep.subr.bf16.mxu0 %v728_v12  ;;  %v748_v32 = vld [vmem:[%s942_s0] ss:$20 sps:$4 sm:$0xff]   ;;  %v750_v33 = vld [vmem:[%s942_s0 + $0x4] ss:$20 sps:$4 sm:$0xff]   ;;  %v751_v34 = vld [vmem:[%s942_s0 + $0x8] ss:$20 sps:$4 sm:$0xff]  }
   0xe   :  { %676 = vmatprep.subr.bf16.mxu1 %v729_v13  ;;  %v753_v35 = vld [vmem:[%s942_s0 + $0xc] ss:$20 sps:$4 sm:$0xff]   ;;  %404 = vmatprep.mubr.bf16.mxu0 %v750_v33  ;;  %v758_v39 = vld [vmem:[%s942_s0 + $0x34] ss:$20 sps:$4 sm:$0xff]   ;;  %v761_v42 = vld [vmem:[%s942_s0 + $0x30] ss:$20 sps:$4 sm:$0xff]  }
   0xf   :  { %453 = vmatprep.mubr.bf16.mxu1 %v753_v35  ;;  %v756_v38 = vld [vmem:[%s942_s0 + $0x2c] ss:$20 sps:$4 sm:$0xff]   ;;  %v760_v40 = vld [vmem:[%s942_s0 + $0x28] ss:$20 sps:$4 sm:$0xff]   ;;  %v764_v43 = vld [vmem:[%s942_s0 + $0x10] ss:$20 sps:$4 sm:$0xff]  }
  0x10   :  { %649 = vmatpush3.bf16.msra.mxu0 %v730_v14  ;;  %v762_v41 = vld [vmem:[%s941_s1 + $0x108] sm:$0xff]   ;;  %v763_v44 = vld [vmem:[%s941_s1 + $0x100] sm:$0xff]  }
  0x11   :  { %677 = vmatpush3.bf16.msra.mxu1 %v731_v15  ;;  %650 = vmatprep.subr.bf16.mxu0 %v732_v16  ;;  %v765_v45 = vld [vmem:[%s942_s0 + $0x38] ss:$20 sps:$4 sm:$0xff]  }
  0x12   :  { %678 = vmatprep.subr.bf16.mxu1 %v733_v17 }
  0x14   :  { %651 = vmatpush3.bf16.msra.mxu0 %v734_v18 }
  0x15   :  { %679 = vmatpush3.bf16.msra.mxu1 %v735_v19  ;;  %652 = vmatprep.subr.bf16.mxu0 %v736_v20 }
  0x16   :  { %680 = vmatprep.subr.bf16.mxu1 %v737_v21 }
  0x18   :  { %653 = vmatpush3.bf16.msra.mxu0 %v738_v22 }
  0x19   :  { %681 = vmatpush3.bf16.msra.mxu1 %v739_v23  ;;  %654 = vmatprep.subr.bf16.mxu0 %v740_v24 }
  0x1a   :  { %682 = vmatprep.subr.bf16.mxu1 %v741_v25 }
  0x1c   :  { %655 = vmatpush3.bf16.msra.mxu0 %v742_v26 }
  0x1d   :  { %683 = vmatpush3.bf16.msra.mxu1 %v743_v27  ;;  %656 = vmatprep.subr.bf16.mxu0 %v744_v28 }
  0x1e   :  { %684 = vmatprep.subr.bf16.mxu1 %v745_v29 }
  0x20   :  { %657 = vmatpush3.bf16.msra.mxu0 %v746_v30 }
  0x21   :  { %685 = vmatpush3.bf16.msra.mxu1 %v747_v31  ;;  %704 = vmatprep.subr.bf16.mxu0 %v754_v36 }
  0x23   :  { %405 = vmatmul.mubr.bf16.vlgmr.msra.gmra.mxu0 %v748_v32 }
  0x24   :  { %454 = vmatmul.mubr.bf16.vlgmr.msra.gmra.mxu1 %v751_v34  ;;  %705 = vmatpush3.bf16.msra.mxu0 %v754_v36 }
  0x25   :  { %706 = vmatprep.subr.bf16.mxu0 %v755_v37  ;;  %412 = vmatprep.mubr.bf16.mxu0 %v756_v38 }
  0x26   :  { %461 = vmatprep.mubr.bf16.mxu1 %v758_v39 }
  0x28   :  { %707 = vmatpush3.bf16.msra.mxu0 %v755_v37 }
  0x29   :  { %708 = vmatprep.subr.bf16.mxu0 %v762_v41 }
  0x2b   :  { %413 = vmatmul.mubr.bf16.gmra.mxu0 %v760_v40 }
  0x2c   :  { %462 = vmatmul.mubr.bf16.gmra.mxu1 %v761_v42  ;;  %712 = vmatprep.mubr.msk.bf16.mxu0 %vm365_vm0, %v764_v43 }
  0x2d   :  { %709 = vmatpush3.bf16.msra.mxu0 %v762_v41 }
  0x2e   :  { %710 = vmatprep.subr.bf16.mxu0 %v763_v44 }
  0x31   :  { %711 = vmatpush3.bf16.msra.mxu0 %v763_v44 }
  0x34   :  { %713 = vmatmul.mubr.msk.bf16.vlgmr.msra.gmra.mxu0 %vm365_vm0, %v765_v45 }
  0xe3   :  { %v658_v46 = vpop.f32.mrf.mxu0 }
  0xe4   :  { %v686_v47 = vpop.f32.mrf.mxu1 }
  0xe5   :  { %v659_v48 = vpop.f32.mrf.mxu0 }
  0xe6   :  { %v687_v49 = vpop.f32.mrf.mxu1  ;;  %v660_v61 = vadd.f32 %v659_v48, %v658_v46 }
  0xe7   :  { %v661_v50 = vpop.f32.mrf.mxu0  ;;  %v688_v62 = vadd.f32 %v687_v49, %v686_v47 }
  0xe8   :  { %v689_v51 = vpop.f32.mrf.mxu1 }
  0xe9   :  { %v662_v52 = vpop.f32.mrf.mxu0  ;;  %v456_v9 = vadd.f32 %v688_v62, %v660_v61 }
  0xea   :  { %v690_v53 = vpop.f32.mrf.mxu1  ;;  %v663_v5 = vadd.f32 %v662_v52, %v661_v50 }
  0xeb   :  { %v664_v54 = vpop.f32.mrf.mxu0  ;;  %v691_v6 = vadd.f32 %v690_v53, %v689_v51 }
  0xec   :  { %v692_v55 = vpop.f32.mrf.mxu1 }
  0xed   :  { %v665_v56 = vpop.f32.mrf.mxu0  ;;  %v459_v15 = vadd.f32 %v691_v6, %v663_v5 }
  0xee   :  { %v693_v57 = vpop.f32.mrf.mxu1  ;;  %v666_v0 = vadd.f32 %v665_v56, %v664_v54 }
  0xef   :  { %v667_v58 = vpop.f32.mrf.mxu0  ;;  %v694_v1 = vadd.f32 %v693_v57, %v692_v55 }
  0xf0   :  { %v695_v59 = vpop.f32.mrf.mxu1 }
  0xf1   :  { %v668_v60 = vpop.f32.mrf.mxu0  ;;  %v464_v8 = vadd.f32 %v694_v1, %v666_v0 }
  0xf2   :  { %v696_v63 = vpop.f32.mrf.mxu1  ;;  %v669_v2 = vadd.f32 %v668_v60, %v667_v58 }
  0xf3   :  { %v697_v3 = vadd.f32 %v696_v63, %v695_v59 }
  0xf4   :  { %v714_v4 = vpop.f32.mrf.mxu0 }
  0xf5   :  { %v467_v10 = vadd.f32 %v697_v3, %v669_v2  ;;  %v513_v12 = vadd.f32 %v714_v4, %v464_v8 }
  0xf6   :  { %v504_v7 = vpop.f32.mrf.mxu0 }
  0xf7   :  { %v505_v13 = vadd.f32 %v504_v7, %v456_v9  ;;  %v531_v23 = vmul.f32 %v513_v12, %v513_v12 }
  0xf8   :  { %v715_v11 = vpop.f32.mrf.mxu0 }
  0xf9   :  { %v516_v14 = vadd.f32 %v715_v11, %v467_v10  ;;  %v529_v19 = vmul.f32 %v505_v13, %v505_v13 }
  0xfa   :  { %v507_v16 = vpop.f32.mrf.mxu0 }
  0xfb   :  { %v639_v17 = vpack.c.bf16 %v516_v14, %v513_v12  ;;  %v508_v18 = vadd.f32 %v507_v16, %v459_v15  ;;  %v532_v26 = vmul.f32 %v516_v14, %v516_v14 }
  0xfd   :  { %641 = vst [vmem:[%s943_s2 + $0x8] sm:$0xff] %v639_v17   ;;  %v519_v20 = vadd.f32 %v508_v18, %v505_v13  ;;  %v530_v21 = vmul.f32 %v508_v18, %v508_v18  ;;  %v634_v22 = vpack.c.bf16 %v508_v18, %v505_v13 }
  0xff   :  { %v520_v24 = vadd.f32 %v519_v20, %v513_v12  ;;  %v533_v25 = vadd.f32 %v530_v21, %v529_v19  ;;  %635 = vst [vmem:[%s943_s2] sm:$0xff] %v634_v22  }
 0x101   :  { %v521_v27 = vadd.f32 %v520_v24, %v516_v14  ;;  %v534_v28 = vadd.f32 %v533_v25, %v531_v23 }
 0x103   :  { %v522_v29 = vrot.slane %v521_v27, 4  ;;  %v535_v30 = vadd.f32 %v534_v28, %v532_v26 }
 0x105   :  { %v523_v31 = vadd.f32 %v522_v29, %v521_v27  ;;  %v536_v32 = vrot.slane %v535_v30, 4 }
 0x107   :  { %v524_v33 = vrot.slane %v523_v31, 2  ;;  %v537_v34 = vadd.f32 %v536_v32, %v535_v30 }
 0x109   :  { %v525_v35 = vadd.f32 %v524_v33, %v523_v31  ;;  %v538_v36 = vrot.slane %v537_v34, 2 }
 0x10b   :  { %v526_v37 = vrot.slane %v525_v35, 1  ;;  %v539_v38 = vadd.f32 %v538_v36, %v537_v34 }
 0x10d   :  { %v527_v39 = vadd.f32 %v526_v37, %v525_v35  ;;  %v540_v40 = vrot.slane %v539_v38, 1 }
 0x10f   :  { %528 = vst [vmem:[%s944_s3] sm:$0x1] %v527_v39  ;;  %v541_v41 = vadd.f32 %v540_v40, %v539_v38 }
 0x111   :  { %542 = vst [vmem:[%s945_s4] sm:$0x1] %v541_v41 }

// kernel: _lambda_.34
= control target key start
LH: loop header
LB: loop body
LE: loop exit
PB: predicated region body
PF: predicated region fallthrough
CT: control target
= control target key end

     0   :  { %s404_s15 = smov 0   ;;  %s430_s0 = inlined_call_operand.vmem [shape: bf16[32,128], index: 0, kind: input, shape index: {}]   ;;  %s431_s1 = inlined_call_operand.vmem [shape: bf16[32,128], index: 1, kind: input, shape index: {}]   ;;  %s432_s2 = inlined_call_operand.vmem [shape: f32[1,128], index: 2, kind: input, shape index: {}]   ;;  %s433_s3 = inlined_call_operand.vmem [shape: f32[1,128], index: 3, kind: input, shape index: {}]   ;;  %s434_s4 = inlined_call_operand.vmem [shape: bf16[32,128], index: 4, kind: output, shape index: {}]  }
   0x1 LB: > { %s331_s16 = sadd.s32 4294967295, %s377_s15   ;;  %p335_p0 = scmp.ge.s32.totalorder %s377_s15, 1  ;;  %s377_s15 = sphi %s404_s15, %s14_s15  }
   0x2   : > { %p174_p1 = scmp.lt.s32.totalorder %s377_s15, 3 }
   0x4   : > { %p175_p2 = pnand %p335_p0, %p174_p1 }
   0x5   : > { %s336_s17 = sshll.u32 (!%p175_p2), %s331_s16, 1 }
   0x6   : > { %178 = sbr.rel (%p175_p2) target bundleno = 28 (0x1c), region = 36  ;;  %p206_p3 = scmp.lt.s32.totalorder (!%p175_p2), %s336_s17, 3 }
   0xb   : > { %s436_s17 = smov (!%p206_p3, %s336_s17), 3  ;;  %v342_v1 = vld [vmem:[%s432_s2] ss:$0 sm:$0xff] }
   0xc   : > { %s337_s18 = sshll.u32 %s436_s17, 2  ;;  %v343_v5 = vld [vmem:[%s433_s3] ss:$0 sm:$0xff] }
   0xd   : > { %s209_s21 = scalar_lea.vmem %s430_s0, %s337_s18  ;;  %s215_s24 = scalar_lea.vmem %s431_s1, %s337_s18 }
   0xe   : > { %v351_v0 = vld [vmem:[%s209_s21] sm:$0xff]   ;;  %s221_s5 = scalar_lea.vmem %s434_s4, %s337_s18 }
   0xf   : > { %v355_v2 = vld [vmem:[%s215_s24] sm:$0xff]   ;;  %v352_v3 = vunpack.c.l.bf16 %v351_v0  ;;  %v353_v4 = vunpack.c.h.bf16 %v351_v0 }
  0x10   : > { %v356_v8 = vunpack.c.l.bf16 %v355_v2  ;;  %v357_v9 = vunpack.c.h.bf16 %v355_v2 }
  0x11   : > { %v234_v6 = vmul.f32 %v352_v3, %v342_v1  ;;  %v235_v7 = vmul.f32 %v353_v4, %v342_v1 }
  0x13   : > { %v243_v10 = vadd.f32 %v343_v5, %v234_v6  ;;  %v244_v11 = vadd.f32 %v343_v5, %v235_v7 }
  0x15   : > { %v249_v12 = vadd.f32 %v356_v8, %v243_v10  ;;  %v250_v13 = vadd.f32 %v357_v9, %v244_v11 }
  0x17   : > { %v251_v14 = vmax.f32 %v249_v12, 0.0  ;;  %v252_v15 = vmax.f32 %v250_v13, 0.0 }
  0x19   : > { %v361_v16 = vpack.c.bf16 %v252_v15, %v251_v14 }
  0x1b   : > { %362 = vst [vmem:[%s221_s5] sm:$0xff] %v361_v16  }
  0x1c PF: > { %s14_s15 = sadd.s32 1, %s377_s15  }
  0x1d   : > { %p11_p4 = scmp.ge.s32.totalorder %s14_s15, 4  }
  0x1f   :  { %13 = sbr.rel (!%p11_p4) target bundleno = 1 (0x1), region = 69 }

// kernel: _lambda_.36
= control target key start
LH: loop header
LB: loop body
LE: loop exit
PB: predicated region body
PF: predicated region fallthrough
CT: control target
= control target key end

     0   :  { %v19_v0 = vlaneseq  ;;  %s92_s0 = inlined_call_operand.vmem [shape: bf16[8,256], index: 0, kind: input, shape index: {}]   ;;  %s93_s1 = inlined_call_operand.vmem [shape: f32[1,256], index: 1, kind: input, shape index: {}]   ;;  %s94_s2 = inlined_call_operand.vmem [shape: f32[1,256], index: 2, kind: input, shape index: {}]   ;;  %s95_s3 = inlined_call_operand.vmem [shape: bf16[8,256], index: 3, kind: output, shape index: {}]  }
   0x1   :  { %v14_v1 = vld [vmem:[%s92_s0] sm:$0xff] }
   0x2   :  { %v20_v2 = vshrl.u32 %v19_v0, 7  ;;  %v17_v3 = vld [vmem:[%s93_s1] sm:$0x3]  ;;  %v15_v5 = vunpack.c.l.bf16 %v14_v1  ;;  %v16_v6 = vunpack.c.h.bf16 %v14_v1 }
   0x3   :  { %v31_v4 = vld [vmem:[%s94_s2] sm:$0x3] }
   0x4   :  { %v21_v7 = vsub.s32 0, %v20_v2  ;;  %v25_v8 = vsub.s32 1, %v20_v2 }
   0x6   :  { %v22_v9 = vrot.slane %v17_v3, %v21_v7  ;;  %v26_v10 = vrot.slane %v17_v3, %v25_v8  ;;  %v36_v11 = vrot.slane %v31_v4, %v21_v7  ;;  %v40_v12 = vrot.slane %v31_v4, %v25_v8 }
   0x8   :  { %v29_v13 = vmul.f32 %v22_v9, %v15_v5  ;;  %v30_v14 = vmul.f32 %v26_v10, %v16_v6 }
   0xa   :  { %v43_v15 = vadd.f32 %v36_v11, %v29_v13  ;;  %v44_v16 = vadd.f32 %v40_v12, %v30_v14 }
   0xc   :  { %v59_v17 = vpack.c.bf16 %v44_v16, %v43_v15 }
   0xe   :  { %53 = vst [vmem:[%s95_s3] sm:$0xff] %v59_v17 }

// kernel: _lambda_.35
= control target key start
LH: loop header
LB: loop body
LE: loop exit
PB: predicated region body
PF: predicated region fallthrough
CT: control target
= control target key end

     0   :  { %v286_v1 = vmov 0   ;;  %v287_v26 = vmov 1966171168   ;;  %v171_v28 = vlaneseq  ;;  %s373_s1 = inlined_call_operand.vmem [shape: bf16[128,256], index: 1, kind: input, shape index: {}]   ;;  %s374_s0 = inlined_call_operand.vmem [shape: bf16[8,128], index: 0, kind: input, shape index: {}]   ;;  %s375_s2 = inlined_call_operand.vmem [shape: bf16[8,256], index: 2, kind: output, shape index: {0}]   ;;  %s376_s3 = inlined_call_operand.vmem [shape: f32[1,1,256], index: 3, kind: output, shape index: {1}]   ;;  %s377_s4 = inlined_call_operand.vmem [shape: f32[1,1,256], index: 4, kind: output, shape index: {2}]  }
   0x1   :  { %v262_v0 = vld [vmem:[%s373_s1 + $0x74] ss:$8 sps:$4 sm:$0xff]   ;;  %144 = vmatprep.mubr.bf16.mxu0 %v286_v1  ;;  %v264_v2 = vld [vmem:[%s373_s1 + $0x70] ss:$8 sps:$4 sm:$0xff]   ;;  %v265_v3 = vld [vmem:[%s373_s1 + $0x64] ss:$8 sps:$4 sm:$0xff]   ;;  %v169_v27 = vunpack.c.l.s4 %v287_v26 }
   0x2   :  { %112 = vmatprep.subr.bf16.mxu0 %v262_v0  ;;  %v267_v4 = vld [vmem:[%s373_s1 + $0x60] ss:$8 sps:$4 sm:$0xff]   ;;  %v268_v5 = vld [vmem:[%s373_s1 + $0x54] ss:$8 sps:$4 sm:$0xff]   ;;  %v270_v6 = vld [vmem:[%s373_s1 + $0x50] ss:$8 sps:$4 sm:$0xff]  }
   0x3   :  { %113 = vmatpush1.bf16.msra.mxu0 %v264_v2  ;;  %v271_v7 = vld [vmem:[%s373_s1 + $0x44] ss:$8 sps:$4 sm:$0xff]   ;;  %v273_v8 = vld [vmem:[%s373_s1 + $0x40] ss:$8 sps:$4 sm:$0xff]   ;;  %v274_v9 = vld [vmem:[%s373_s1 + $0x34] ss:$8 sps:$4 sm:$0xff]   ;;  %v170_v40 = vunpack.c.0.s8 %v169_v27 }
   0x4   :  { %114 = vmatprep.subr.bf16.mxu0 %v265_v3  ;;  %v276_v10 = vld [vmem:[%s373_s1 + $0x30] ss:$8 sps:$4 sm:$0xff]   ;;  %v277_v11 = vld [vmem:[%s373_s1 + $0x24] ss:$8 sps:$4 sm:$0xff]   ;;  %v279_v12 = vld [vmem:[%s373_s1 + $0x20] ss:$8 sps:$4 sm:$0xff]  }
   0x5   :  { %v280_v13 = vld [vmem:[%s373_s1 + $0x14] ss:$8 sps:$4 sm:$0xff]   ;;  %v282_v14 = vld [vmem:[%s373_s1 + $0x10] ss:$8 sps:$4 sm:$0xff]   ;;  %v283_v15 = vld [vmem:[%s373_s1 + $0x4] ss:$8 sps:$4 sm:$0xff]  }
   0x6   :  { %v285_v16 = vld [vmem:[%s373_s1] ss:$8 sps:$4 sm:$0xff]   ;;  %v172_v41 = vshrl.u32 %v171_v28, 7  ;;  %vm185_vm0 = vcmp.lt.s32.totalorder %v171_v28, 256 }
   0x7   :  { %115 = vmatpush1.bf16.msra.mxu0 %v267_v4  ;;  %v15_v17 = vld [vmem:[%s374_s0] sm:$0xf] }
   0x8   :  { %116 = vmatprep.subr.bf16.mxu0 %v268_v5  ;;  %v173_v51 = vsub.s32 %v170_v40, %v172_v41 }
   0xb   :  { %117 = vmatpush1.bf16.msra.mxu0 %v270_v6 }
   0xc   :  { %118 = vmatprep.subr.bf16.mxu0 %v271_v7 }
   0xf   :  { %119 = vmatpush1.bf16.msra.mxu0 %v273_v8 }
  0x10   :  { %120 = vmatprep.subr.bf16.mxu0 %v274_v9 }
  0x13   :  { %121 = vmatpush1.bf16.msra.mxu0 %v276_v10 }
  0x14   :  { %122 = vmatprep.subr.bf16.mxu0 %v277_v11 }
  0x17   :  { %123 = vmatpush1.bf16.msra.mxu0 %v279_v12 }
  0x18   :  { %124 = vmatprep.subr.bf16.mxu0 %v280_v13 }
  0x1b   :  { %125 = vmatpush1.bf16.msra.mxu0 %v282_v14 }
  0x1c   :  { %126 = vmatprep.subr.bf16.mxu0 %v283_v15 }
  0x1f   :  { %127 = vmatpush1.bf16.msra.mxu0 %v285_v16 }
  0x22   :  { %145 = vmatmul.mubr.bf16.vlgmr.msra.gmra.mxu0 %v15_v17 }
  0xe2   :  { %v146_v18 = vpop.f32.mrf.mxu0 }
  0xe3   :  { %v153_v19 = vrot.slane %v146_v18, 4  ;;  %v188_v20 = vmul.f32 %v146_v18, %v146_v18 }
  0xe4   :  { %v148_v21 = vpop.f32.mrf.mxu0 }
  0xe5   :  { %v154_v22 = vadd.f32 %v153_v19, %v146_v18  ;;  %v190_v23 = vrot.slane %v188_v20, 4  ;;  %v159_v24 = vrot.slane %v148_v21, 4  ;;  %v189_v25 = vmul.f32 %v148_v21, %v148_v21 }
  0xe6   :  { %v259_v29 = vpack.c.bf16 %v148_v21, %v146_v18  ;;  %v150_v30 = vpop.f32.mrf.mxu0 }
  0xe7   :  { %v155_v31 = vrot.slane %v154_v22, 2  ;;  %v191_v32 = vadd.f32 %v190_v23, %v188_v20  ;;  %v160_v33 = vadd.f32 %v159_v24, %v148_v21  ;;  %v196_v34 = vrot.slane %v189_v25, 4 }
  0xe8   :  { %229 = vst [vmem:[%s375_s2] sm:$0xff] %v259_v29  ;;  %v151_v35 = vpop.f32.mrf.mxu0 }
  0xe9   :  { %v156_v36 = vadd.f32 %v155_v31, %v154_v22  ;;  %v192_v37 = vrot.slane %v191_v32, 2  ;;  %v161_v38 = vrot.slane %v160_v33, 2  ;;  %v197_v39 = vadd.f32 %v196_v34, %v189_v25 }
  0xeb   :  { %v157_v42 = vrot.slane %v156_v36, 1  ;;  %v193_v43 = vadd.f32 %v192_v37, %v191_v32  ;;  %v162_v44 = vadd.f32 %v161_v38, %v160_v33  ;;  %v198_v45 = vrot.slane %v197_v39, 2 }
  0xed   :  { %v194_v46 = vrot.slane %v193_v43, 1  ;;  %v163_v47 = vrot.slane %v162_v44, 1  ;;  %v199_v48 = vadd.f32 %v198_v45, %v197_v39  ;;  %v158_v49 = vadd.f32 %v157_v42, %v156_v36 }
  0xef   :  { %v164_v50 = vadd.f32 %v163_v47, %v162_v44  ;;  %v200_v52 = vrot.slane %v199_v48, 1  ;;  %v195_v53 = vadd.f32 %v194_v46, %v193_v43 }
  0xf1   :  { %v167_v54 = vcombine.low %v158_v49, %v164_v50  ;;  %v201_v55 = vadd.f32 %v200_v52, %v199_v48 }
  0xf3   :  { %v174_v56 = vrot.slane %v167_v54, %v173_v51  ;;  %v204_v57 = vcombine.low %v195_v53, %v201_v55 }
  0xf5   :  { %v181_v58 = vrot.slane %v174_v56, %v173_v51  ;;  %v211_v59 = vrot.slane %v204_v57, %v173_v51 }
  0xf7   :  { %187 = vst.msk [vmem:[%s376_s3] sm:$0x3] %vm185_vm0, %v181_v58  ;;  %v218_v60 = vrot.slane %v211_v59, %v173_v51 }
  0xf9   :  { %220 = vst.msk [vmem:[%s377_s4] sm:$0x3] %vm185_vm0, %v218_v60 }

// kernel: _lambda_.33
= control target key start
LH: loop header
LB: loop body
LE: loop exit
PB: predicated region body
PF: predicated region fallthrough
CT: control target
= control target key end

     0   :  { %s1660_s1 = inlined_call_operand.vmem [shape: bf16[1152,128], index: 1, kind: input, shape index: {}]   ;;  %s1661_s0 = inlined_call_operand.vmem [shape: bf16[32,1152], index: 0, kind: input, shape index: {}]   ;;  %s1662_s2 = inlined_call_operand.vmem [shape: bf16[32,128], index: 2, kind: output, shape index: {0}]   ;;  %s1663_s3 = inlined_call_operand.vmem [shape: f32[1,1,128], index: 3, kind: output, shape index: {1}]   ;;  %s1664_s4 = inlined_call_operand.vmem [shape: f32[1,1,128], index: 4, kind: output, shape index: {2}]  }
   0x1   :  { %v1255_v0 = vld [vmem:[%s1660_s1 + $0x78] sm:$0xff]   ;;  %v1259_v4 = vld [vmem:[%s1660_s1 + $0x70] sm:$0xff]   ;;  %v1263_v8 = vld [vmem:[%s1660_s1 + $0x68] sm:$0xff]  }
   0x2   :  { %v1256_v1 = vld [vmem:[%s1660_s1 + $0xf8] sm:$0xff]   ;;  %1113 = vmatprep.subr.bf16.mxu0 %v1255_v0  ;;  %v1260_v5 = vld [vmem:[%s1660_s1 + $0xf0] sm:$0xff]   ;;  %v1264_v9 = vld [vmem:[%s1660_s1 + $0xe8] sm:$0xff]  }
   0x3   :  { %v1257_v2 = vld [vmem:[%s1660_s1 + $0x38] sm:$0xff]   ;;  %1141 = vmatprep.subr.bf16.mxu1 %v1256_v1  ;;  %v1261_v6 = vld [vmem:[%s1660_s1 + $0x30] sm:$0xff]   ;;  %v1265_v10 = vld [vmem:[%s1660_s1 + $0x28] sm:$0xff]  }
   0x4   :  { %v1258_v3 = vld [vmem:[%s1660_s1 + $0xb8] sm:$0xff]   ;;  %1114 = vmatpush3.bf16.msra.mxu0 %v1257_v2  ;;  %v1262_v7 = vld [vmem:[%s1660_s1 + $0xb0] sm:$0xff]   ;;  %v1266_v11 = vld [vmem:[%s1660_s1 + $0xa8] sm:$0xff]  }
   0x5   :  { %1142 = vmatpush3.bf16.msra.mxu1 %v1258_v3  ;;  %1115 = vmatprep.subr.bf16.mxu0 %v1259_v4  ;;  %v1267_v12 = vld [vmem:[%s1660_s1 + $0x60] sm:$0xff]   ;;  %v1271_v16 = vld [vmem:[%s1660_s1 + $0x58] sm:$0xff]   ;;  %v1275_v20 = vld [vmem:[%s1660_s1 + $0x50] sm:$0xff]  }
   0x6   :  { %1143 = vmatprep.subr.bf16.mxu1 %v1260_v5  ;;  %v1268_v13 = vld [vmem:[%s1660_s1 + $0xe0] sm:$0xff]   ;;  %v1272_v17 = vld [vmem:[%s1660_s1 + $0xd8] sm:$0xff]   ;;  %v1276_v21 = vld [vmem:[%s1660_s1 + $0xd0] sm:$0xff]  }
   0x7   :  { %v1269_v14 = vld [vmem:[%s1660_s1 + $0x20] sm:$0xff]   ;;  %v1273_v18 = vld [vmem:[%s1660_s1 + $0x18] sm:$0xff]   ;;  %v1277_v22 = vld [vmem:[%s1660_s1 + $0x10] sm:$0xff]  }
   0x8   :  { %1116 = vmatpush3.bf16.msra.mxu0 %v1261_v6  ;;  %v1270_v15 = vld [vmem:[%s1660_s1 + $0xa0] sm:$0xff]   ;;  %v1274_v19 = vld [vmem:[%s1660_s1 + $0x98] sm:$0xff]   ;;  %v1278_v23 = vld [vmem:[%s1660_s1 + $0x90] sm:$0xff]  }
   0x9   :  { %1144 = vmatpush3.bf16.msra.mxu1 %v1262_v7  ;;  %1117 = vmatprep.subr.bf16.mxu0 %v1263_v8  ;;  %v1279_v24 = vld [vmem:[%s1660_s1 + $0x48] sm:$0xff]   ;;  %v1283_v28 = vld [vmem:[%s1660_s1 + $0x40] sm:$0xff]   ;;  %v1293_v36 = vld [vmem:[%s1660_s1 + $0x178] sm:$0xff]  }
   0xa   :  { %1145 = vmatprep.subr.bf16.mxu1 %v1264_v9  ;;  %v1280_v25 = vld [vmem:[%s1660_s1 + $0xc8] sm:$0xff]   ;;  %v1284_v29 = vld [vmem:[%s1660_s1 + $0xc0] sm:$0xff]   ;;  %v1294_v37 = vld [vmem:[%s1660_s1 + $0x138] sm:$0xff]  }
   0xb   :  { %v1281_v26 = vld [vmem:[%s1660_s1 + $0x8] sm:$0xff]   ;;  %v1285_v30 = vld [vmem:[%s1660_s1] sm:$0xff]   ;;  %v1295_v38 = vld [vmem:[%s1660_s1 + $0x1f8] sm:$0xff]  }
   0xc   :  { %1118 = vmatpush3.bf16.msra.mxu0 %v1265_v10  ;;  %v1282_v27 = vld [vmem:[%s1660_s1 + $0x88] sm:$0xff]   ;;  %v1286_v31 = vld [vmem:[%s1660_s1 + $0x80] sm:$0xff]   ;;  %v1296_v39 = vld [vmem:[%s1660_s1 + $0x1b8] sm:$0xff]  }
   0xd   :  { %1146 = vmatpush3.bf16.msra.mxu1 %v1266_v11  ;;  %1119 = vmatprep.subr.bf16.mxu0 %v1267_v12  ;;  %v1287_v32 = vld [vmem:[%s1661_s0] ss:$36 sps:$4 sm:$0xff]   ;;  %v1290_v34 = vld [vmem:[%s1661_s0 + $0x8] ss:$36 sps:$4 sm:$0xff]   ;;  %v1297_v40 = vld [vmem:[%s1660_s1 + $0x170] sm:$0xff]  }
   0xe   :  { %1147 = vmatprep.subr.bf16.mxu1 %v1268_v13  ;;  %v1289_v33 = vld [vmem:[%s1661_s0 + $0x4] ss:$36 sps:$4 sm:$0xff]   ;;  %v1292_v35 = vld [vmem:[%s1661_s0 + $0xc] ss:$36 sps:$4 sm:$0xff]   ;;  %v1309_v52 = vld [vmem:[%s1660_s1 + $0x158] sm:$0xff]  }
   0xf   :  { %735 = vmatprep.mubr.bf16.mxu0 %v1289_v33  ;;  %784 = vmatprep.mubr.bf16.mxu1 %v1292_v35  ;;  %v1298_v41 = vld [vmem:[%s1660_s1 + $0x130] sm:$0xff]   ;;  %v1301_v44 = vld [vmem:[%s1660_s1 + $0x168] sm:$0xff]   ;;  %v1305_v48 = vld [vmem:[%s1660_s1 + $0x160] sm:$0xff]  }
  0x10   :  { %1120 = vmatpush3.bf16.msra.mxu0 %v1269_v14  ;;  %v1299_v42 = vld [vmem:[%s1660_s1 + $0x1f0] sm:$0xff]   ;;  %v1302_v45 = vld [vmem:[%s1660_s1 + $0x128] sm:$0xff]   ;;  %v1306_v49 = vld [vmem:[%s1660_s1 + $0x120] sm:$0xff]  }
  0x11   :  { %1148 = vmatpush3.bf16.msra.mxu1 %v1270_v15  ;;  %1121 = vmatprep.subr.bf16.mxu0 %v1271_v16  ;;  %v1300_v43 = vld [vmem:[%s1660_s1 + $0x1b0] sm:$0xff]   ;;  %v1303_v46 = vld [vmem:[%s1660_s1 + $0x1e8] sm:$0xff]   ;;  %v1307_v50 = vld [vmem:[%s1660_s1 + $0x1e0] sm:$0xff]  }
  0x12   :  { %1149 = vmatprep.subr.bf16.mxu1 %v1272_v17  ;;  %v1304_v47 = vld [vmem:[%s1660_s1 + $0x1a8] sm:$0xff]   ;;  %v1308_v51 = vld [vmem:[%s1660_s1 + $0x1a0] sm:$0xff]   ;;  %v1310_v53 = vld [vmem:[%s1660_s1 + $0x118] sm:$0xff]  }
  0x13   :  { %v1311_v54 = vld [vmem:[%s1661_s0 + $0x4c] ss:$36 sps:$4 sm:$0xff]   ;;  %v1313_v55 = vld [vmem:[%s1661_s0 + $0x54] ss:$36 sps:$4 sm:$0xff]   ;;  %v1327_v4 = vld [vmem:[%s1660_s1 + $0x140] sm:$0xff]  }
  0x14   :  { %1122 = vmatpush3.bf16.msra.mxu0 %v1273_v18  ;;  %v1315_v56 = vld [vmem:[%s1660_s1 + $0x1d8] sm:$0xff]   ;;  %v1316_v57 = vld [vmem:[%s1661_s0 + $0x48] ss:$36 sps:$4 sm:$0xff]   ;;  %v1317_v58 = vld [vmem:[%s1661_s0 + $0x50] ss:$36 sps:$4 sm:$0xff]  }
  0x15   :  { %1150 = vmatpush3.bf16.msra.mxu1 %v1274_v19  ;;  %1123 = vmatprep.subr.bf16.mxu0 %v1275_v20  ;;  %v1318_v59 = vld [vmem:[%s1660_s1 + $0x198] sm:$0xff]   ;;  %v1319_v60 = vld [vmem:[%s1660_s1 + $0x150] sm:$0xff]   ;;  %v1323_v0 = vld [vmem:[%s1660_s1 + $0x148] sm:$0xff]  }
  0x16   :  { %1151 = vmatprep.subr.bf16.mxu1 %v1276_v21  ;;  %v1320_v61 = vld [vmem:[%s1660_s1 + $0x110] sm:$0xff]   ;;  %v1324_v1 = vld [vmem:[%s1660_s1 + $0x108] sm:$0xff]   ;;  %v1328_v5 = vld [vmem:[%s1660_s1 + $0x100] sm:$0xff]  }
  0x17   :  { %v1321_v62 = vld [vmem:[%s1660_s1 + $0x1d0] sm:$0xff]   ;;  %v1325_v2 = vld [vmem:[%s1660_s1 + $0x1c8] sm:$0xff]   ;;  %v1329_v6 = vld [vmem:[%s1660_s1 + $0x1c0] sm:$0xff]  }
  0x18   :  { %1124 = vmatpush3.bf16.msra.mxu0 %v1277_v22  ;;  %v1322_v63 = vld [vmem:[%s1660_s1 + $0x190] sm:$0xff]   ;;  %v1326_v3 = vld [vmem:[%s1660_s1 + $0x188] sm:$0xff]   ;;  %v1333_v9 = vld [vmem:[%s1660_s1 + $0x180] sm:$0xff]  }
  0x19   :  { %1152 = vmatpush3.bf16.msra.mxu1 %v1278_v23  ;;  %1125 = vmatprep.subr.bf16.mxu0 %v1279_v24  ;;  %v1330_v7 = vld [vmem:[%s1661_s0 + $0x10] ss:$36 sps:$4 sm:$0xff]   ;;  %v1334_v10 = vld [vmem:[%s1660_s1 + $0x238] sm:$0xff]   ;;  %v1342_v16 = vld [vmem:[%s1660_s1 + $0x228] sm:$0xff]  }
  0x1a   :  { %1153 = vmatprep.subr.bf16.mxu1 %v1280_v25  ;;  %v1332_v8 = vld [vmem:[%s1661_s0 + $0x14] ss:$36 sps:$4 sm:$0xff]   ;;  %v1337_v12 = vld [vmem:[%s1661_s0 + $0x1c] ss:$36 sps:$4 sm:$0xff]   ;;  %v1343_v17 = vld [vmem:[%s1661_s0 + $0x64] ss:$36 sps:$4 sm:$0xff]  }
  0x1b   :  { %v1335_v11 = vld [vmem:[%s1661_s0 + $0x18] ss:$36 sps:$4 sm:$0xff]   ;;  %v1338_v13 = vld [vmem:[%s1660_s1 + $0x230] sm:$0xff]   ;;  %v1345_v18 = vld [vmem:[%s1661_s0 + $0x60] ss:$36 sps:$4 sm:$0xff]  }
  0x1c   :  { %1126 = vmatpush3.bf16.msra.mxu0 %v1281_v26  ;;  %v1339_v14 = vld [vmem:[%s1661_s0 + $0x5c] ss:$36 sps:$4 sm:$0xff]   ;;  %v1348_v22 = vld [vmem:[%s1660_s1 + $0x210] sm:$0xff]   ;;  %v1349_v23 = vld [vmem:[%s1660_s1 + $0x208] sm:$0xff]  }
  0x1d   :  { %1154 = vmatpush3.bf16.msra.mxu1 %v1282_v27  ;;  %1127 = vmatprep.subr.bf16.mxu0 %v1283_v28  ;;  %v1341_v15 = vld [vmem:[%s1661_s0 + $0x58] ss:$36 sps:$4 sm:$0xff]   ;;  %v1346_v19 = vld [vmem:[%s1660_s1 + $0x220] sm:$0xff]   ;;  %v1352_v25 = vld [vmem:[%s1661_s0 + $0x68] ss:$36 sps:$4 sm:$0xff]  }
  0x1e   :  { %1155 = vmatprep.subr.bf16.mxu1 %v1284_v29  ;;  %v1347_v20 = vld [vmem:[%s1660_s1 + $0x218] sm:$0xff]   ;;  %v1351_v21 = vld [vmem:[%s1661_s0 + $0x20] ss:$36 sps:$4 sm:$0xff]  }
  0x1f   :  { %v1350_v24 = vld [vmem:[%s1660_s1 + $0x200] sm:$0xff]  }
  0x20   :  { %1128 = vmatpush3.bf16.msra.mxu0 %v1285_v30 }
  0x21   :  { %1156 = vmatpush3.bf16.msra.mxu1 %v1286_v31  ;;  %1169 = vmatprep.subr.bf16.mxu0 %v1293_v36 }
  0x22   :  { %1197 = vmatprep.subr.bf16.mxu1 %v1295_v38 }
  0x23   :  { %736 = vmatmul.mubr.bf16.vlgmr.msra.gmra.mxu0 %v1287_v32 }
  0x24   :  { %785 = vmatmul.mubr.bf16.vlgmr.msra.gmra.mxu1 %v1290_v34  ;;  %1170 = vmatpush3.bf16.msra.mxu0 %v1294_v37 }
  0x25   :  { %1198 = vmatpush3.bf16.msra.mxu1 %v1296_v39  ;;  %1171 = vmatprep.subr.bf16.mxu0 %v1297_v40 }
  0x26   :  { %1199 = vmatprep.subr.bf16.mxu1 %v1299_v42  ;;  %743 = vmatprep.mubr.bf16.mxu0 %v1311_v54 }
  0x27   :  { %792 = vmatprep.mubr.bf16.mxu1 %v1313_v55 }
  0x28   :  { %1172 = vmatpush3.bf16.msra.mxu0 %v1298_v41 }
  0x29   :  { %1200 = vmatpush3.bf16.msra.mxu1 %v1300_v43  ;;  %1173 = vmatprep.subr.bf16.mxu0 %v1301_v44 }
  0x2a   :  { %1201 = vmatprep.subr.bf16.mxu1 %v1303_v46 }
  0x2b   :  { %744 = vmatmul.mubr.bf16.gmra.mxu0 %v1316_v57 }
  0x2c   :  { %1174 = vmatpush3.bf16.msra.mxu0 %v1302_v45  ;;  %793 = vmatmul.mubr.bf16.gmra.mxu1 %v1317_v58 }
  0x2d   :  { %1202 = vmatpush3.bf16.msra.mxu1 %v1304_v47  ;;  %1175 = vmatprep.subr.bf16.mxu0 %v1305_v48 }
  0x2e   :  { %1203 = vmatprep.subr.bf16.mxu1 %v1307_v50  ;;  %833 = vmatprep.mubr.bf16.mxu0 %v1332_v8 }
  0x2f   :  { %882 = vmatprep.mubr.bf16.mxu1 %v1337_v12 }
  0x30   :  { %1176 = vmatpush3.bf16.msra.mxu0 %v1306_v49 }
  0x31   :  { %1204 = vmatpush3.bf16.msra.mxu1 %v1308_v51  ;;  %1177 = vmatprep.subr.bf16.mxu0 %v1309_v52 }
  0x32   :  { %1205 = vmatprep.subr.bf16.mxu1 %v1315_v56 }
  0x34   :  { %1178 = vmatpush3.bf16.msra.mxu0 %v1310_v53 }
  0x35   :  { %1206 = vmatpush3.bf16.msra.mxu1 %v1318_v59  ;;  %1179 = vmatprep.subr.bf16.mxu0 %v1319_v60 }
  0x36   :  { %1207 = vmatprep.subr.bf16.mxu1 %v1321_v62 }
  0x38   :  { %1180 = vmatpush3.bf16.msra.mxu0 %v1320_v61 }
  0x39   :  { %1208 = vmatpush3.bf16.msra.mxu1 %v1322_v63  ;;  %1181 = vmatprep.subr.bf16.mxu0 %v1323_v0 }
  0x3a   :  { %1209 = vmatprep.subr.bf16.mxu1 %v1325_v2 }
  0x3c   :  { %1182 = vmatpush3.bf16.msra.mxu0 %v1324_v1 }
  0x3d   :  { %1210 = vmatpush3.bf16.msra.mxu1 %v1326_v3  ;;  %1183 = vmatprep.subr.bf16.mxu0 %v1327_v4 }
  0x3e   :  { %1211 = vmatprep.subr.bf16.mxu1 %v1329_v6 }
  0x40   :  { %1184 = vmatpush3.bf16.msra.mxu0 %v1328_v5 }
  0x41   :  { %1212 = vmatpush3.bf16.msra.mxu1 %v1333_v9  ;;  %1235 = vmatprep.subr.bf16.mxu0 %v1334_v10 }
  0x43   :  { %834 = vmatmul.mubr.bf16.vlgmr.msra.gmra.mxu0 %v1330_v7 }
  0x44   :  { %1236 = vmatpush3.bf16.msra.mxu0 %v1334_v10  ;;  %883 = vmatmul.mubr.bf16.vlgmr.msra.gmra.mxu1 %v1335_v11 }
  0x45   :  { %1237 = vmatprep.subr.bf16.mxu0 %v1338_v13  ;;  %841 = vmatprep.mubr.bf16.mxu0 %v1339_v14 }
  0x46   :  { %890 = vmatprep.mubr.bf16.mxu1 %v1343_v17 }
  0x48   :  { %1238 = vmatpush3.bf16.msra.mxu0 %v1338_v13 }
  0x49   :  { %1239 = vmatprep.subr.bf16.mxu0 %v1342_v16 }
  0x4b   :  { %842 = vmatmul.mubr.bf16.gmra.mxu0 %v1341_v15 }
  0x4c   :  { %1240 = vmatpush3.bf16.msra.mxu0 %v1342_v16  ;;  %891 = vmatmul.mubr.bf16.gmra.mxu1 %v1345_v18 }
  0x4d   :  { %1241 = vmatprep.subr.bf16.mxu0 %v1346_v19  ;;  %1251 = vmatprep.mubr.bf16.mxu0 %v1351_v21 }
  0x50   :  { %1242 = vmatpush3.bf16.msra.mxu0 %v1346_v19 }
  0x51   :  { %1243 = vmatprep.subr.bf16.mxu0 %v1347_v20 }
  0x54   :  { %1244 = vmatpush3.bf16.msra.mxu0 %v1347_v20 }
  0x55   :  { %1245 = vmatprep.subr.bf16.mxu0 %v1348_v22 }
  0x58   :  { %1246 = vmatpush3.bf16.msra.mxu0 %v1348_v22 }
  0x59   :  { %1247 = vmatprep.subr.bf16.mxu0 %v1349_v23 }
  0x5c   :  { %1248 = vmatpush3.bf16.msra.mxu0 %v1349_v23 }
  0x5d   :  { %1249 = vmatprep.subr.bf16.mxu0 %v1350_v24 }
  0x60   :  { %1250 = vmatpush3.bf16.msra.mxu0 %v1350_v24 }
  0x63   :  { %1252 = vmatmul.mubr.bf16.vlgmr.msra.gmra.mxu0 %v1352_v25 }
  0xe3   :  { %v1129_v26 = vpop.f32.mrf.mxu0 }
  0xe4   :  { %v1157_v27 = vpop.f32.mrf.mxu1 }
  0xe5   :  { %v1130_v28 = vpop.f32.mrf.mxu0 }
  0xe6   :  { %v1158_v29 = vpop.f32.mrf.mxu1  ;;  %v1131_v55 = vadd.f32 %v1130_v28, %v1129_v26 }
  0xe7   :  { %v1132_v30 = vpop.f32.mrf.mxu0  ;;  %v1159_v56 = vadd.f32 %v1158_v29, %v1157_v27 }
  0xe8   :  { %v1160_v31 = vpop.f32.mrf.mxu1 }
  0xe9   :  { %v1133_v32 = vpop.f32.mrf.mxu0  ;;  %v787_v4 = vadd.f32 %v1159_v56, %v1131_v55 }
  0xea   :  { %v1161_v34 = vpop.f32.mrf.mxu1  ;;  %v1134_v63 = vadd.f32 %v1133_v32, %v1132_v30 }
  0xeb   :  { %v1135_v33 = vpop.f32.mrf.mxu0  ;;  %v1162_v0 = vadd.f32 %v1161_v34, %v1160_v31 }
  0xec   :  { %v1163_v35 = vpop.f32.mrf.mxu1 }
  0xed   :  { %v1136_v36 = vpop.f32.mrf.mxu0  ;;  %v790_v9 = vadd.f32 %v1162_v0, %v1134_v63 }
  0xee   :  { %v1164_v37 = vpop.f32.mrf.mxu1  ;;  %v1137_v59 = vadd.f32 %v1136_v36, %v1135_v33 }
  0xef   :  { %v1138_v38 = vpop.f32.mrf.mxu0  ;;  %v1165_v60 = vadd.f32 %v1164_v37, %v1163_v35 }
  0xf0   :  { %v1166_v39 = vpop.f32.mrf.mxu1 }
  0xf1   :  { %v1139_v40 = vpop.f32.mrf.mxu0  ;;  %v795_v6 = vadd.f32 %v1165_v60, %v1137_v59 }
  0xf2   :  { %v1167_v42 = vpop.f32.mrf.mxu1  ;;  %v1140_v61 = vadd.f32 %v1139_v40, %v1138_v38 }
  0xf3   :  { %v1168_v62 = vadd.f32 %v1167_v42, %v1166_v39 }
  0xf5   :  { %v798_v7 = vadd.f32 %v1168_v62, %v1140_v61 }
 0x103   :  { %v1185_v41 = vpop.f32.mrf.mxu0 }
 0x104   :  { %v1213_v44 = vpop.f32.mrf.mxu1 }
 0x105   :  { %v1186_v43 = vpop.f32.mrf.mxu0 }
 0x106   :  { %v1214_v46 = vpop.f32.mrf.mxu1  ;;  %v1187_v1 = vadd.f32 %v1186_v43, %v1185_v41 }
 0x107   :  { %v1188_v45 = vpop.f32.mrf.mxu0  ;;  %v1215_v11 = vadd.f32 %v1214_v46, %v1213_v44 }
 0x108   :  { %v1216_v48 = vpop.f32.mrf.mxu1  ;;  %v836_v10 = vadd.f32 %v1187_v1, %v787_v4 }
 0x109   :  { %v1189_v47 = vpop.f32.mrf.mxu0 }
 0x10a   :  { %v1217_v50 = vpop.f32.mrf.mxu1  ;;  %v1190_v8 = vadd.f32 %v1189_v47, %v1188_v45  ;;  %v885_v21 = vadd.f32 %v1215_v11, %v836_v10 }
 0x10b   :  { %v1191_v49 = vpop.f32.mrf.mxu0  ;;  %v1218_v18 = vadd.f32 %v1217_v50, %v1216_v48 }
 0x10c   :  { %v1219_v52 = vpop.f32.mrf.mxu1  ;;  %v839_v17 = vadd.f32 %v1190_v8, %v790_v9 }
 0x10d   :  { %v1192_v51 = vpop.f32.mrf.mxu0 }
 0x10e   :  { %v1220_v54 = vpop.f32.mrf.mxu1  ;;  %v1193_v2 = vadd.f32 %v1192_v51, %v1191_v49  ;;  %v888_v27 = vadd.f32 %v1218_v18, %v839_v17 }
 0x10f   :  { %v1194_v53 = vpop.f32.mrf.mxu0  ;;  %v1221_v13 = vadd.f32 %v1220_v54, %v1219_v52 }
 0x110   :  { %v1222_v58 = vpop.f32.mrf.mxu1  ;;  %v844_v12 = vadd.f32 %v1193_v2, %v795_v6 }
 0x111   :  { %v1195_v57 = vpop.f32.mrf.mxu0 }
 0x112   :  { %v1196_v3 = vadd.f32 %v1195_v57, %v1194_v53  ;;  %v1223_v5 = vpop.f32.mrf.mxu1  ;;  %v893_v20 = vadd.f32 %v1221_v13, %v844_v12 }
 0x113   :  { %v1224_v15 = vadd.f32 %v1223_v5, %v1222_v58 }
 0x114   :  { %v847_v14 = vadd.f32 %v1196_v3, %v798_v7 }
 0x116   :  { %v896_v22 = vadd.f32 %v1224_v15, %v847_v14 }
 0x123   :  { %v1253_v16 = vpop.f32.mrf.mxu0 }
 0x124   :  { %v942_v24 = vadd.f32 %v1253_v16, %v893_v20 }
 0x125   :  { %v933_v19 = vpop.f32.mrf.mxu0 }
 0x126   :  { %v934_v25 = vadd.f32 %v933_v19, %v885_v21  ;;  %v960_v35 = vmul.f32 %v942_v24, %v942_v24 }
 0x127   :  { %v1254_v23 = vpop.f32.mrf.mxu0 }
 0x128   :  { %v945_v26 = vadd.f32 %v1254_v23, %v896_v22  ;;  %v958_v31 = vmul.f32 %v934_v25, %v934_v25 }
 0x129   :  { %v936_v28 = vpop.f32.mrf.mxu0 }
 0x12a   :  { %v1110_v29 = vpack.c.bf16 %v945_v26, %v942_v24  ;;  %v937_v30 = vadd.f32 %v936_v28, %v888_v27  ;;  %v961_v38 = vmul.f32 %v945_v26, %v945_v26 }
 0x12c   :  { %1112 = vst [vmem:[%s1662_s2 + $0x8] sm:$0xff] %v1110_v29   ;;  %v948_v32 = vadd.f32 %v937_v30, %v934_v25  ;;  %v959_v33 = vmul.f32 %v937_v30, %v937_v30  ;;  %v1105_v34 = vpack.c.bf16 %v937_v30, %v934_v25 }
 0x12e   :  { %v949_v36 = vadd.f32 %v948_v32, %v942_v24  ;;  %v962_v37 = vadd.f32 %v959_v33, %v958_v31  ;;  %1106 = vst [vmem:[%s1662_s2] sm:$0xff] %v1105_v34  }
 0x130   :  { %v950_v39 = vadd.f32 %v949_v36, %v945_v26  ;;  %v963_v40 = vadd.f32 %v962_v37, %v960_v35 }
 0x132   :  { %v951_v41 = vrot.slane %v950_v39, 4  ;;  %v964_v42 = vadd.f32 %v963_v40, %v961_v38 }
 0x134   :  { %v952_v43 = vadd.f32 %v951_v41, %v950_v39  ;;  %v965_v44 = vrot.slane %v964_v42, 4 }
 0x136   :  { %v953_v45 = vrot.slane %v952_v43, 2  ;;  %v966_v46 = vadd.f32 %v965_v44, %v964_v42 }
 0x138   :  { %v954_v47 = vadd.f32 %v953_v45, %v952_v43  ;;  %v967_v48 = vrot.slane %v966_v46, 2 }
 0x13a   :  { %v955_v49 = vrot.slane %v954_v47, 1  ;;  %v968_v50 = vadd.f32 %v967_v48, %v966_v46 }
 0x13c   :  { %v956_v51 = vadd.f32 %v955_v49, %v954_v47  ;;  %v969_v52 = vrot.slane %v968_v50, 1 }
 0x13e   :  { %957 = vst [vmem:[%s1663_s3] sm:$0x1] %v956_v51  ;;  %v970_v53 = vadd.f32 %v969_v52, %v968_v50 }
 0x140   :  { %971 = vst [vmem:[%s1664_s4] sm:$0x1] %v970_v53 }

// kernel: _lambda_.38
= control target key start
LH: loop header
LB: loop body
LE: loop exit
PB: predicated region body
PF: predicated region fallthrough
CT: control target
= control target key end

     0   :  { %v19_v0 = vlaneseq  ;;  %s94_s0 = inlined_call_operand.vmem [shape: bf16[8,256], index: 0, kind: input, shape index: {}]   ;;  %s95_s1 = inlined_call_operand.vmem [shape: f32[1,256], index: 1, kind: input, shape index: {}]   ;;  %s96_s2 = inlined_call_operand.vmem [shape: f32[1,256], index: 2, kind: input, shape index: {}]   ;;  %s97_s3 = inlined_call_operand.vmem [shape: bf16[8,256], index: 3, kind: output, shape index: {}]  }
   0x1   :  { %v14_v1 = vld [vmem:[%s94_s0] sm:$0xff] }
   0x2   :  { %v20_v2 = vshrl.u32 %v19_v0, 7  ;;  %v17_v3 = vld [vmem:[%s95_s1] sm:$0x3]  ;;  %v15_v5 = vunpack.c.l.bf16 %v14_v1  ;;  %v16_v6 = vunpack.c.h.bf16 %v14_v1 }
   0x3   :  { %v31_v4 = vld [vmem:[%s96_s2] sm:$0x3] }
   0x4   :  { %v21_v7 = vsub.s32 0, %v20_v2  ;;  %v25_v8 = vsub.s32 1, %v20_v2 }
   0x6   :  { %v22_v9 = vrot.slane %v17_v3, %v21_v7  ;;  %v26_v10 = vrot.slane %v17_v3, %v25_v8  ;;  %v36_v11 = vrot.slane %v31_v4, %v21_v7  ;;  %v40_v12 = vrot.slane %v31_v4, %v25_v8 }
   0x8   :  { %v29_v13 = vmul.f32 %v22_v9, %v15_v5  ;;  %v30_v14 = vmul.f32 %v26_v10, %v16_v6 }
   0xa   :  { %v43_v15 = vadd.f32 %v36_v11, %v29_v13  ;;  %v44_v16 = vadd.f32 %v40_v12, %v30_v14 }
   0xc   :  { %v45_v17 = vmax.f32 %v43_v15, 0.0  ;;  %v46_v18 = vmax.f32 %v44_v16, 0.0 }
   0xe   :  { %v61_v19 = vpack.c.bf16 %v46_v18, %v45_v17 }
  0x10   :  { %55 = vst [vmem:[%s97_s3] sm:$0xff] %v61_v19 }

// kernel: _lambda_.40
= control target key start
LH: loop header
LB: loop body
LE: loop exit
PB: predicated region body
PF: predicated region fallthrough
CT: control target
= control target key end

     0   :  { %v22_v0 = vlaneseq  ;;  %s110_s0 = inlined_call_operand.vmem [shape: bf16[8,256], index: 0, kind: input, shape index: {}]   ;;  %s111_s2 = inlined_call_operand.vmem [shape: f32[1,256], index: 2, kind: input, shape index: {}]   ;;  %s112_s3 = inlined_call_operand.vmem [shape: f32[1,256], index: 3, kind: input, shape index: {}]   ;;  %s113_s1 = inlined_call_operand.vmem [shape: bf16[8,256], index: 1, kind: input, shape index: {}]   ;;  %s114_s4 = inlined_call_operand.vmem [shape: bf16[8,256], index: 4, kind: output, shape index: {}]  }
   0x1   :  { %v17_v1 = vld [vmem:[%s110_s0] sm:$0xff] }
   0x2   :  { %v23_v2 = vshrl.u32 %v22_v0, 7  ;;  %v20_v3 = vld [vmem:[%s111_s2] sm:$0x3]  ;;  %v18_v5 = vunpack.c.l.bf16 %v17_v1  ;;  %v19_v6 = vunpack.c.h.bf16 %v17_v1 }
   0x3   :  { %v34_v4 = vld [vmem:[%s112_s3] sm:$0x3] }
   0x4   :  { %v24_v7 = vsub.s32 0, %v23_v2  ;;  %v28_v8 = vsub.s32 1, %v23_v2  ;;  %v48_v9 = vld [vmem:[%s113_s1] sm:$0xff] }
   0x5   :  { %v49_v16 = vunpack.c.l.bf16 %v48_v9  ;;  %v50_v17 = vunpack.c.h.bf16 %v48_v9 }
   0x6   :  { %v25_v10 = vrot.slane %v20_v3, %v24_v7  ;;  %v29_v11 = vrot.slane %v20_v3, %v28_v8  ;;  %v39_v12 = vrot.slane %v34_v4, %v24_v7  ;;  %v43_v13 = vrot.slane %v34_v4, %v28_v8 }
   0x8   :  { %v32_v14 = vmul.f32 %v25_v10, %v18_v5  ;;  %v33_v15 = vmul.f32 %v29_v11, %v19_v6 }
   0xa   :  { %v46_v18 = vadd.f32 %v39_v12, %v32_v14  ;;  %v47_v19 = vadd.f32 %v43_v13, %v33_v15 }
   0xc   :  { %v51_v20 = vadd.f32 %v49_v16, %v46_v18  ;;  %v52_v21 = vadd.f32 %v50_v17, %v47_v19 }
   0xe   :  { %v53_v22 = vmax.f32 %v51_v20, 0.0  ;;  %v54_v23 = vmax.f32 %v52_v21, 0.0 }
  0x10   :  { %v69_v24 = vpack.c.bf16 %v54_v23, %v53_v22 }
  0x12   :  { %63 = vst [vmem:[%s114_s4] sm:$0xff] %v69_v24 }

// kernel: _lambda_.41
= control target key start
LH: loop header
LB: loop body
LE: loop exit
PB: predicated region body
PF: predicated region fallthrough
CT: control target
= control target key end

     0   :  { %v19_v0 = vlaneseq  ;;  %s88_s0 = inlined_call_operand.vmem [shape: bf16[8,256], index: 0, kind: input, shape index: {}]   ;;  %s89_s1 = inlined_call_operand.vmem [shape: f32[1,256], index: 1, kind: input, shape index: {}]   ;;  %s90_s2 = inlined_call_operand.vmem [shape: f32[1,256], index: 2, kind: input, shape index: {}]   ;;  %s91_s3 = inlined_call_operand.vmem [shape: f32[8,256], index: 3, kind: output, shape index: {}]  }
   0x1   :  { %v14_v1 = vld [vmem:[%s88_s0] sm:$0xff] }
   0x2   :  { %v20_v2 = vshrl.u32 %v19_v0, 7  ;;  %v17_v3 = vld [vmem:[%s89_s1] sm:$0x3]  ;;  %v15_v5 = vunpack.c.l.bf16 %v14_v1  ;;  %v16_v7 = vunpack.c.h.bf16 %v14_v1 }
   0x3   :  { %v31_v4 = vld [vmem:[%s90_s2] sm:$0x3] }
   0x4   :  { %v21_v6 = vsub.s32 0, %v20_v2  ;;  %v25_v8 = vsub.s32 1, %v20_v2 }
   0x6   :  { %v22_v9 = vrot.slane %v17_v3, %v21_v6  ;;  %v36_v10 = vrot.slane %v31_v4, %v21_v6  ;;  %v26_v11 = vrot.slane %v17_v3, %v25_v8  ;;  %v40_v12 = vrot.slane %v31_v4, %v25_v8 }
   0x8   :  { %v29_v13 = vmul.f32 %v22_v9, %v15_v5  ;;  %v30_v14 = vmul.f32 %v26_v11, %v16_v7 }
   0xa   :  { %v43_v15 = vadd.f32 %v36_v10, %v29_v13  ;;  %v44_v16 = vadd.f32 %v40_v12, %v30_v14 }
   0xc   :  { %v45_v17 = vmax.f32 %v43_v15, 0.0  ;;  %v46_v18 = vmax.f32 %v44_v16, 0.0 }
   0xe   :  { %47 = vst [vmem:[%s91_s3] sm:$0xff] %v45_v17  ;;  %48 = vst [vmem:[%s91_s3 + $0x8] sm:$0xff] %v46_v18 }

// kernel: _lambda_.37
= control target key start
LH: loop header
LB: loop body
LE: loop exit
PB: predicated region body
PF: predicated region fallthrough
CT: control target
= control target key end

     0   :  { %s2087_s1 = inlined_call_operand.vmem [shape: bf16[1152,256], index: 1, kind: input, shape index: {}]   ;;  %s2088_s0 = inlined_call_operand.vmem [shape: bf16[8,1152], index: 0, kind: input, shape index: {}]   ;;  %s2089_s2 = inlined_call_operand.vmem [shape: bf16[8,256], index: 2, kind: output, shape index: {0}]   ;;  %s2090_s3 = inlined_call_operand.vmem [shape: f32[1,1,256], index: 3, kind: output, shape index: {1}]   ;;  %s2091_s4 = inlined_call_operand.vmem [shape: f32[1,1,256], index: 4, kind: output, shape index: {2}]  }
   0x1   :  { %v1367_v0 = vld [vmem:[%s2087_s1 + $0x74] ss:$8 sps:$4 sm:$0xff]   ;;  %v1371_v2 = vld [vmem:[%s2087_s1 + $0x70] ss:$8 sps:$4 sm:$0xff]   ;;  %v1373_v4 = vld [vmem:[%s2087_s1 + $0x64] ss:$8 sps:$4 sm:$0xff]  }
   0x2   :  { %v1369_v1 = vld [vmem:[%s2087_s1 + $0x174] ss:$8 sps:$4 sm:$0xff]   ;;  %916 = vmatprep.subr.bf16.mxu0 %v1367_v0  ;;  %v1372_v3 = vld [vmem:[%s2087_s1 + $0x170] ss:$8 sps:$4 sm:$0xff]   ;;  %v1375_v5 = vld [vmem:[%s2087_s1 + $0x164] ss:$8 sps:$4 sm:$0xff]  }
   0x3   :  { %957 = vmatprep.subr.bf16.mxu1 %v1369_v1  ;;  %917 = vmatpush1.bf16.msra.mxu0 %v1371_v2  ;;  %v1377_v6 = vld [vmem:[%s2087_s1 + $0x60] ss:$8 sps:$4 sm:$0xff]   ;;  %v1379_v8 = vld [vmem:[%s2087_s1 + $0x54] ss:$8 sps:$4 sm:$0xff]   ;;  %v1383_v10 = vld [vmem:[%s2087_s1 + $0x50] ss:$8 sps:$4 sm:$0xff]  }
   0x4   :  { %958 = vmatpush1.bf16.msra.mxu1 %v1372_v3  ;;  %918 = vmatprep.subr.bf16.mxu0 %v1373_v4  ;;  %v1378_v7 = vld [vmem:[%s2087_s1 + $0x160] ss:$8 sps:$4 sm:$0xff]   ;;  %v1381_v9 = vld [vmem:[%s2087_s1 + $0x154] ss:$8 sps:$4 sm:$0xff]   ;;  %v1384_v11 = vld [vmem:[%s2087_s1 + $0x150] ss:$8 sps:$4 sm:$0xff]  }
   0x5   :  { %959 = vmatprep.subr.bf16.mxu1 %v1375_v5  ;;  %v1385_v12 = vld [vmem:[%s2087_s1 + $0x44] ss:$8 sps:$4 sm:$0xff]   ;;  %v1389_v14 = vld [vmem:[%s2087_s1 + $0x40] ss:$8 sps:$4 sm:$0xff]   ;;  %v1391_v16 = vld [vmem:[%s2087_s1 + $0x34] ss:$8 sps:$4 sm:$0xff]  }
   0x6   :  { %v1387_v13 = vld [vmem:[%s2087_s1 + $0x144] ss:$8 sps:$4 sm:$0xff]   ;;  %v1390_v15 = vld [vmem:[%s2087_s1 + $0x140] ss:$8 sps:$4 sm:$0xff]   ;;  %v1393_v17 = vld [vmem:[%s2087_s1 + $0x134] ss:$8 sps:$4 sm:$0xff]  }
   0x7   :  { %919 = vmatpush1.bf16.msra.mxu0 %v1377_v6  ;;  %v1395_v18 = vld [vmem:[%s2087_s1 + $0x30] ss:$8 sps:$4 sm:$0xff]   ;;  %v1397_v20 = vld [vmem:[%s2087_s1 + $0x24] ss:$8 sps:$4 sm:$0xff]   ;;  %v1401_v22 = vld [vmem:[%s2087_s1 + $0x20] ss:$8 sps:$4 sm:$0xff]  }
   0x8   :  { %960 = vmatpush1.bf16.msra.mxu1 %v1378_v7  ;;  %920 = vmatprep.subr.bf16.mxu0 %v1379_v8  ;;  %v1396_v19 = vld [vmem:[%s2087_s1 + $0x130] ss:$8 sps:$4 sm:$0xff]   ;;  %v1399_v21 = vld [vmem:[%s2087_s1 + $0x124] ss:$8 sps:$4 sm:$0xff]   ;;  %v1402_v23 = vld [vmem:[%s2087_s1 + $0x120] ss:$8 sps:$4 sm:$0xff]  }
   0x9   :  { %961 = vmatprep.subr.bf16.mxu1 %v1381_v9  ;;  %v1403_v24 = vld [vmem:[%s2087_s1 + $0x14] ss:$8 sps:$4 sm:$0xff]   ;;  %v1407_v26 = vld [vmem:[%s2087_s1 + $0x10] ss:$8 sps:$4 sm:$0xff]   ;;  %v1409_v28 = vld [vmem:[%s2087_s1 + $0x4] ss:$8 sps:$4 sm:$0xff]  }
   0xa   :  { %v1405_v25 = vld [vmem:[%s2087_s1 + $0x114] ss:$8 sps:$4 sm:$0xff]   ;;  %v1408_v27 = vld [vmem:[%s2087_s1 + $0x110] ss:$8 sps:$4 sm:$0xff]   ;;  %v1411_v29 = vld [vmem:[%s2087_s1 + $0x104] ss:$8 sps:$4 sm:$0xff]  }
   0xb   :  { %921 = vmatpush1.bf16.msra.mxu0 %v1383_v10  ;;  %v1413_v30 = vld [vmem:[%s2087_s1] ss:$8 sps:$4 sm:$0xff]   ;;  %v1415_v32 = vld [vmem:[%s2087_s1 + $0xf4] ss:$8 sps:$4 sm:$0xff]   ;;  %v1419_v34 = vld [vmem:[%s2087_s1 + $0xf0] ss:$8 sps:$4 sm:$0xff]  }
   0xc   :  { %962 = vmatpush1.bf16.msra.mxu1 %v1384_v11  ;;  %922 = vmatprep.subr.bf16.mxu0 %v1385_v12  ;;  %v1414_v31 = vld [vmem:[%s2087_s1 + $0x100] ss:$8 sps:$4 sm:$0xff]   ;;  %v1417_v33 = vld [vmem:[%s2087_s1 + $0x1f4] ss:$8 sps:$4 sm:$0xff]   ;;  %v1420_v35 = vld [vmem:[%s2087_s1 + $0x1f0] ss:$8 sps:$4 sm:$0xff]  }
   0xd   :  { %963 = vmatprep.subr.bf16.mxu1 %v1387_v13  ;;  %v1421_v36 = vld [vmem:[%s2087_s1 + $0xe4] ss:$8 sps:$4 sm:$0xff]   ;;  %v1425_v38 = vld [vmem:[%s2087_s1 + $0xe0] ss:$8 sps:$4 sm:$0xff]   ;;  %v1427_v40 = vld [vmem:[%s2087_s1 + $0xd4] ss:$8 sps:$4 sm:$0xff]  }
   0xe   :  { %v1423_v37 = vld [vmem:[%s2087_s1 + $0x1e4] ss:$8 sps:$4 sm:$0xff]   ;;  %v1426_v39 = vld [vmem:[%s2087_s1 + $0x1e0] ss:$8 sps:$4 sm:$0xff]   ;;  %v1429_v41 = vld [vmem:[%s2087_s1 + $0x1d4] ss:$8 sps:$4 sm:$0xff]  }
   0xf   :  { %923 = vmatpush1.bf16.msra.mxu0 %v1389_v14  ;;  %v1431_v42 = vld [vmem:[%s2087_s1 + $0xd0] ss:$8 sps:$4 sm:$0xff]   ;;  %v1433_v44 = vld [vmem:[%s2087_s1 + $0xc4] ss:$8 sps:$4 sm:$0xff]   ;;  %v1437_v49 = vld [vmem:[%s2087_s1 + $0xc0] ss:$8 sps:$4 sm:$0xff]  }
  0x10   :  { %964 = vmatpush1.bf16.msra.mxu1 %v1390_v15  ;;  %924 = vmatprep.subr.bf16.mxu0 %v1391_v16  ;;  %v1432_v43 = vld [vmem:[%s2087_s1 + $0x1d0] ss:$8 sps:$4 sm:$0xff]   ;;  %v1435_v45 = vld [vmem:[%s2087_s1 + $0x1c4] ss:$8 sps:$4 sm:$0xff]   ;;  %v1438_v50 = vld [vmem:[%s2087_s1 + $0x1c0] ss:$8 sps:$4 sm:$0xff]  }
  0x11   :  { %965 = vmatprep.subr.bf16.mxu1 %v1393_v17  ;;  %v15_v46 = vld [vmem:[%s2088_s0] sm:$0xff]  ;;  %v16_v48 = vld [vmem:[%s2088_s0 + $0x8] sm:$0xff]  ;;  %v1439_v52 = vld [vmem:[%s2087_s1 + $0xb4] ss:$8 sps:$4 sm:$0xff]  }
  0x12   :  { %v1211_v47 = vcombine.high %v15_v46, %v15_v46  ;;  %v1213_v51 = vcombine.high %v16_v48, %v16_v48  ;;  %v1441_v53 = vld [vmem:[%s2087_s1 + $0x1b4] ss:$8 sps:$4 sm:$0xff]   ;;  %v1443_v54 = vld [vmem:[%s2087_s1 + $0xb0] ss:$8 sps:$4 sm:$0xff]   ;;  %v1445_v56 = vld [vmem:[%s2087_s1 + $0xa4] ss:$8 sps:$4 sm:$0xff]   ;;  %v1210_v6 = vcombine.low %v15_v46, %v15_v46  ;;  %v1212_v7 = vcombine.low %v16_v48, %v16_v48 }
  0x13   :  { %925 = vmatpush1.bf16.msra.mxu0 %v1395_v18  ;;  %v1444_v55 = vld [vmem:[%s2087_s1 + $0x1b0] ss:$8 sps:$4 sm:$0xff]   ;;  %v1447_v57 = vld [vmem:[%s2087_s1 + $0x1a4] ss:$8 sps:$4 sm:$0xff]   ;;  %v1449_v58 = vld [vmem:[%s2087_s1 + $0xa0] ss:$8 sps:$4 sm:$0xff]  }
  0x14   :  { %966 = vmatpush1.bf16.msra.mxu1 %v1396_v19  ;;  %926 = vmatprep.subr.bf16.mxu0 %v1397_v20  ;;  %v1450_v59 = vld [vmem:[%s2087_s1 + $0x1a0] ss:$8 sps:$4 sm:$0xff]   ;;  %v1451_v60 = vld [vmem:[%s2087_s1 + $0x94] ss:$8 sps:$4 sm:$0xff]   ;;  %v1455_v62 = vld [vmem:[%s2087_s1 + $0x90] ss:$8 sps:$4 sm:$0xff]  }
  0x15   :  { %967 = vmatprep.subr.bf16.mxu1 %v1399_v21  ;;  %948 = vmatprep.mubr.bf16.mxu0 %v1211_v47  ;;  %v1453_v61 = vld [vmem:[%s2087_s1 + $0x194] ss:$8 sps:$4 sm:$0xff]   ;;  %v1456_v63 = vld [vmem:[%s2087_s1 + $0x190] ss:$8 sps:$4 sm:$0xff]   ;;  %v1457_v0 = vld [vmem:[%s2087_s1 + $0x84] ss:$8 sps:$4 sm:$0xff]  }
  0x16   :  { %989 = vmatprep.mubr.bf16.mxu1 %v1213_v51  ;;  %v1459_v1 = vld [vmem:[%s2087_s1 + $0x184] ss:$8 sps:$4 sm:$0xff]   ;;  %v1461_v2 = vld [vmem:[%s2087_s1 + $0x80] ss:$8 sps:$4 sm:$0xff]   ;;  %v1469_v4 = vld [vmem:[%s2087_s1 + $0x274] ss:$8 sps:$4 sm:$0xff]  }
  0x17   :  { %927 = vmatpush1.bf16.msra.mxu0 %v1401_v22  ;;  %v1462_v3 = vld [vmem:[%s2087_s1 + $0x180] ss:$8 sps:$4 sm:$0xff]   ;;  %v1472_v5 = vld [vmem:[%s2087_s1 + $0x374] ss:$8 sps:$4 sm:$0xff]   ;;  %v1467_v8 = vld [vmem:[%s2087_s1 + $0x270] ss:$8 sps:$4 sm:$0xff]  }
  0x18   :  { %968 = vmatpush1.bf16.msra.mxu1 %v1402_v23  ;;  %928 = vmatprep.subr.bf16.mxu0 %v1403_v24  ;;  %v1470_v9 = vld [vmem:[%s2087_s1 + $0x370] ss:$8 sps:$4 sm:$0xff]   ;;  %v1475_v10 = vld [vmem:[%s2087_s1 + $0x264] ss:$8 sps:$4 sm:$0xff]   ;;  %v1473_v12 = vld [vmem:[%s2087_s1 + $0x260] ss:$8 sps:$4 sm:$0xff]  }
  0x19   :  { %969 = vmatprep.subr.bf16.mxu1 %v1405_v25  ;;  %v1478_v11 = vld [vmem:[%s2087_s1 + $0x364] ss:$8 sps:$4 sm:$0xff]   ;;  %v1476_v13 = vld [vmem:[%s2087_s1 + $0x360] ss:$8 sps:$4 sm:$0xff]   ;;  %v1481_v14 = vld [vmem:[%s2087_s1 + $0x254] ss:$8 sps:$4 sm:$0xff]  }
  0x1a   :  { %v1484_v15 = vld [vmem:[%s2087_s1 + $0x354] ss:$8 sps:$4 sm:$0xff]   ;;  %v1479_v16 = vld [vmem:[%s2087_s1 + $0x250] ss:$8 sps:$4 sm:$0xff]   ;;  %v1487_v18 = vld [vmem:[%s2087_s1 + $0x244] ss:$8 sps:$4 sm:$0xff]  }
  0x1b   :  { %929 = vmatpush1.bf16.msra.mxu0 %v1407_v26  ;;  %v1482_v17 = vld [vmem:[%s2087_s1 + $0x350] ss:$8 sps:$4 sm:$0xff]   ;;  %v1490_v19 = vld [vmem:[%s2087_s1 + $0x344] ss:$8 sps:$4 sm:$0xff]   ;;  %v1485_v20 = vld [vmem:[%s2087_s1 + $0x240] ss:$8 sps:$4 sm:$0xff]  }
  0x1c   :  { %970 = vmatpush1.bf16.msra.mxu1 %v1408_v27  ;;  %930 = vmatprep.subr.bf16.mxu0 %v1409_v28  ;;  %v1488_v21 = vld [vmem:[%s2087_s1 + $0x340] ss:$8 sps:$4 sm:$0xff]   ;;  %v1493_v22 = vld [vmem:[%s2087_s1 + $0x234] ss:$8 sps:$4 sm:$0xff]   ;;  %v1491_v24 = vld [vmem:[%s2087_s1 + $0x230] ss:$8 sps:$4 sm:$0xff]  }
  0x1d   :  { %971 = vmatprep.subr.bf16.mxu1 %v1411_v29  ;;  %v1496_v23 = vld [vmem:[%s2087_s1 + $0x334] ss:$8 sps:$4 sm:$0xff]   ;;  %v1494_v25 = vld [vmem:[%s2087_s1 + $0x330] ss:$8 sps:$4 sm:$0xff]   ;;  %v1499_v26 = vld [vmem:[%s2087_s1 + $0x224] ss:$8 sps:$4 sm:$0xff]  }
  0x1e   :  { %v1502_v27 = vld [vmem:[%s2087_s1 + $0x324] ss:$8 sps:$4 sm:$0xff]   ;;  %v1497_v28 = vld [vmem:[%s2087_s1 + $0x220] ss:$8 sps:$4 sm:$0xff]   ;;  %v1532_v51 = vld [vmem:[%s2087_s1 + $0x3d4] ss:$8 sps:$4 sm:$0xff]  }
  0x1f   :  { %931 = vmatpush1.bf16.msra.mxu0 %v1413_v30  ;;  %v1500_v29 = vld [vmem:[%s2087_s1 + $0x320] ss:$8 sps:$4 sm:$0xff]   ;;  %v1505_v30 = vld [vmem:[%s2087_s1 + $0x214] ss:$8 sps:$4 sm:$0xff]   ;;  %v1523_v46 = vld [vmem:[%s2087_s1 + $0x2e4] ss:$8 sps:$4 sm:$0xff]  }
  0x20   :  { %972 = vmatpush1.bf16.msra.mxu1 %v1414_v31  ;;  %932 = vmatprep.subr.bf16.mxu0 %v1415_v32  ;;  %v1508_v31 = vld [vmem:[%s2087_s1 + $0x314] ss:$8 sps:$4 sm:$0xff]   ;;  %v1526_v47 = vld [vmem:[%s2087_s1 + $0x3e4] ss:$8 sps:$4 sm:$0xff]   ;;  %v1521_v48 = vld [vmem:[%s2087_s1 + $0x2e0] ss:$8 sps:$4 sm:$0xff]  }
  0x21   :  { %973 = vmatprep.subr.bf16.mxu1 %v1417_v33  ;;  %v1898_v32 = vld [vmem:[%s2088_s0 + $0x10] sm:$0xff] }
  0x22   :  { %v1503_v33 = vld [vmem:[%s2087_s1 + $0x210] ss:$8 sps:$4 sm:$0xff]  }
  0x23   :  { %933 = vmatpush2.bf16.msra.mxu0 %v1419_v34  ;;  %v1506_v34 = vld [vmem:[%s2087_s1 + $0x310] ss:$8 sps:$4 sm:$0xff]  }
  0x24   :  { %974 = vmatpush2.bf16.msra.mxu1 %v1420_v35  ;;  %934 = vmatprep.subr.bf16.mxu0 %v1421_v36  ;;  %v1215_v35 = vcombine.high %v1898_v32, %v1898_v32  ;;  %v1911_v36 = vld [vmem:[%s2088_s0 + $0x18] sm:$0xff] }
  0x25   :  { %975 = vmatprep.subr.bf16.mxu1 %v1423_v37  ;;  %v1511_v37 = vld [vmem:[%s2087_s1 + $0x204] ss:$8 sps:$4 sm:$0xff]  }
  0x27   :  { %935 = vmatpush2.bf16.msra.mxu0 %v1425_v38  ;;  %v1217_v38 = vcombine.high %v1911_v36, %v1911_v36 }
  0x28   :  { %976 = vmatpush2.bf16.msra.mxu1 %v1426_v39  ;;  %936 = vmatprep.subr.bf16.mxu0 %v1427_v40  ;;  %v1514_v39 = vld [vmem:[%s2087_s1 + $0x304] ss:$8 sps:$4 sm:$0xff]   ;;  %v1509_v40 = vld [vmem:[%s2087_s1 + $0x200] ss:$8 sps:$4 sm:$0xff]  }
  0x29   :  { %977 = vmatprep.subr.bf16.mxu1 %v1429_v41  ;;  %v1512_v41 = vld [vmem:[%s2087_s1 + $0x300] ss:$8 sps:$4 sm:$0xff]  }
  0x2b   :  { %937 = vmatpush2.bf16.msra.mxu0 %v1431_v42  ;;  %v1517_v42 = vld [vmem:[%s2087_s1 + $0x2f4] ss:$8 sps:$4 sm:$0xff]  }
  0x2c   :  { %978 = vmatpush2.bf16.msra.mxu1 %v1432_v43  ;;  %938 = vmatprep.subr.bf16.mxu0 %v1433_v44  ;;  %v1520_v43 = vld [vmem:[%s2087_s1 + $0x3f4] ss:$8 sps:$4 sm:$0xff]   ;;  %v1515_v44 = vld [vmem:[%s2087_s1 + $0x2f0] ss:$8 sps:$4 sm:$0xff]  }
  0x2d   :  { %979 = vmatprep.subr.bf16.mxu1 %v1435_v45  ;;  %v1518_v45 = vld [vmem:[%s2087_s1 + $0x3f0] ss:$8 sps:$4 sm:$0xff]  }
  0x2f   :  { %939 = vmatpush2.bf16.msra.mxu0 %v1437_v49  ;;  %v1524_v49 = vld [vmem:[%s2087_s1 + $0x3e0] ss:$8 sps:$4 sm:$0xff]  }
  0x30   :  { %980 = vmatpush2.bf16.msra.mxu1 %v1438_v50  ;;  %940 = vmatprep.subr.bf16.mxu0 %v1439_v52  ;;  %v1529_v50 = vld [vmem:[%s2087_s1 + $0x2d4] ss:$8 sps:$4 sm:$0xff]   ;;  %v1527_v52 = vld [vmem:[%s2087_s1 + $0x2d0] ss:$8 sps:$4 sm:$0xff]  }
  0x31   :  { %981 = vmatprep.subr.bf16.mxu1 %v1441_v53  ;;  %v1530_v53 = vld [vmem:[%s2087_s1 + $0x3d0] ss:$8 sps:$4 sm:$0xff]  }
  0x33   :  { %941 = vmatpush2.bf16.msra.mxu0 %v1443_v54  ;;  %v1535_v54 = vld [vmem:[%s2087_s1 + $0x2c4] ss:$8 sps:$4 sm:$0xff]  }
  0x34   :  { %982 = vmatpush2.bf16.msra.mxu1 %v1444_v55  ;;  %942 = vmatprep.subr.bf16.mxu0 %v1445_v56  ;;  %v1538_v55 = vld [vmem:[%s2087_s1 + $0x3c4] ss:$8 sps:$4 sm:$0xff]   ;;  %v1533_v56 = vld [vmem:[%s2087_s1 + $0x2c0] ss:$8 sps:$4 sm:$0xff]  }
  0x35   :  { %983 = vmatprep.subr.bf16.mxu1 %v1447_v57  ;;  %v1536_v57 = vld [vmem:[%s2087_s1 + $0x3c0] ss:$8 sps:$4 sm:$0xff]  }
  0x37   :  { %943 = vmatpush2.bf16.msra.mxu0 %v1449_v58  ;;  %v1541_v58 = vld [vmem:[%s2087_s1 + $0x2b4] ss:$8 sps:$4 sm:$0xff]  }
  0x38   :  { %984 = vmatpush2.bf16.msra.mxu1 %v1450_v59  ;;  %944 = vmatprep.subr.bf16.mxu0 %v1451_v60  ;;  %v1544_v59 = vld [vmem:[%s2087_s1 + $0x3b4] ss:$8 sps:$4 sm:$0xff]   ;;  %v1539_v60 = vld [vmem:[%s2087_s1 + $0x2b0] ss:$8 sps:$4 sm:$0xff]  }
  0x39   :  { %985 = vmatprep.subr.bf16.mxu1 %v1453_v61  ;;  %v1542_v61 = vld [vmem:[%s2087_s1 + $0x3b0] ss:$8 sps:$4 sm:$0xff]  }
  0x3b   :  { %945 = vmatpush2.bf16.msra.mxu0 %v1455_v62  ;;  %v1547_v62 = vld [vmem:[%s2087_s1 + $0x2a4] ss:$8 sps:$4 sm:$0xff]  }
  0x3c   :  { %986 = vmatpush2.bf16.msra.mxu1 %v1456_v63  ;;  %946 = vmatprep.subr.bf16.mxu0 %v1457_v0  ;;  %v1550_v63 = vld [vmem:[%s2087_s1 + $0x3a4] ss:$8 sps:$4 sm:$0xff]   ;;  %v1545_v0 = vld [vmem:[%s2087_s1 + $0x2a0] ss:$8 sps:$4 sm:$0xff]  }
  0x3d   :  { %987 = vmatprep.subr.bf16.mxu1 %v1459_v1  ;;  %v1548_v1 = vld [vmem:[%s2087_s1 + $0x3a0] ss:$8 sps:$4 sm:$0xff]  }
  0x3f   :  { %947 = vmatpush2.bf16.msra.mxu0 %v1461_v2  ;;  %v1553_v2 = vld [vmem:[%s2087_s1 + $0x294] ss:$8 sps:$4 sm:$0xff]  }
  0x40   :  { %988 = vmatpush2.bf16.msra.mxu1 %v1462_v3  ;;  %998 = vmatprep.subr.bf16.mxu0 %v1469_v4  ;;  %v1556_v3 = vld [vmem:[%s2087_s1 + $0x394] ss:$8 sps:$4 sm:$0xff]   ;;  %v1551_v4 = vld [vmem:[%s2087_s1 + $0x290] ss:$8 sps:$4 sm:$0xff]  }
  0x41   :  { %1039 = vmatprep.subr.bf16.mxu1 %v1472_v5  ;;  %v1554_v5 = vld [vmem:[%s2087_s1 + $0x390] ss:$8 sps:$4 sm:$0xff]  }
  0x42   :  { %949 = vmatmul.mubr.bf16.vlgmr.msra.gmra.mxu0 %v1210_v6  ;;  %v1559_v6 = vld [vmem:[%s2087_s1 + $0x284] ss:$8 sps:$4 sm:$0xff]  }
  0x43   :  { %990 = vmatmul.mubr.bf16.vlgmr.msra.gmra.mxu1 %v1212_v7  ;;  %999 = vmatpush1.bf16.msra.mxu0 %v1467_v8  ;;  %v1562_v7 = vld [vmem:[%s2087_s1 + $0x384] ss:$8 sps:$4 sm:$0xff]   ;;  %v1557_v8 = vld [vmem:[%s2087_s1 + $0x280] ss:$8 sps:$4 sm:$0xff]  }
  0x44   :  { %1040 = vmatpush1.bf16.msra.mxu1 %v1470_v9  ;;  %1000 = vmatprep.subr.bf16.mxu0 %v1475_v10  ;;  %v1560_v9 = vld [vmem:[%s2087_s1 + $0x380] ss:$8 sps:$4 sm:$0xff]   ;;  %v1567_v10 = vld [vmem:[%s2087_s1 + $0x474] ss:$8 sps:$4 sm:$0xff]  }
  0x45   :  { %1041 = vmatprep.subr.bf16.mxu1 %v1478_v11  ;;  %1030 = vmatprep.mubr.bf16.mxu0 %v1215_v35  ;;  %v1214_v11 = vcombine.low %v1898_v32, %v1898_v32 }
  0x46   :  { %1071 = vmatprep.mubr.bf16.mxu1 %v1217_v38 }
  0x47   :  { %1001 = vmatpush1.bf16.msra.mxu0 %v1473_v12  ;;  %v1216_v12 = vcombine.low %v1911_v36, %v1911_v36 }
  0x48   :  { %1042 = vmatpush1.bf16.msra.mxu1 %v1476_v13  ;;  %1002 = vmatprep.subr.bf16.mxu0 %v1481_v14  ;;  %v1565_v13 = vld [vmem:[%s2087_s1 + $0x470] ss:$8 sps:$4 sm:$0xff]   ;;  %v1572_v14 = vld [vmem:[%s2087_s1 + $0x464] ss:$8 sps:$4 sm:$0xff]  }
  0x49   :  { %1043 = vmatprep.subr.bf16.mxu1 %v1484_v15  ;;  %v1570_v15 = vld [vmem:[%s2087_s1 + $0x460] ss:$8 sps:$4 sm:$0xff]  }
  0x4b   :  { %1003 = vmatpush1.bf16.msra.mxu0 %v1479_v16  ;;  %v1592_v16 = vmov 0  }
  0x4c   :  { %1044 = vmatpush1.bf16.msra.mxu1 %v1482_v17  ;;  %1004 = vmatprep.subr.bf16.mxu0 %v1487_v18  ;;  %v1575_v17 = vld [vmem:[%s2087_s1 + $0x454] ss:$8 sps:$4 sm:$0xff]   ;;  %v1573_v18 = vld [vmem:[%s2087_s1 + $0x450] ss:$8 sps:$4 sm:$0xff]  }
  0x4d   :  { %1045 = vmatprep.subr.bf16.mxu1 %v1490_v19  ;;  %v1578_v19 = vld [vmem:[%s2087_s1 + $0x444] ss:$8 sps:$4 sm:$0xff]  }
  0x4f   :  { %1005 = vmatpush1.bf16.msra.mxu0 %v1485_v20  ;;  %v1576_v20 = vld [vmem:[%s2087_s1 + $0x440] ss:$8 sps:$4 sm:$0xff]  }
  0x50   :  { %1046 = vmatpush1.bf16.msra.mxu1 %v1488_v21  ;;  %1006 = vmatprep.subr.bf16.mxu0 %v1493_v22  ;;  %v1581_v21 = vld [vmem:[%s2087_s1 + $0x434] ss:$8 sps:$4 sm:$0xff]   ;;  %v1579_v22 = vld [vmem:[%s2087_s1 + $0x430] ss:$8 sps:$4 sm:$0xff]  }
  0x51   :  { %1047 = vmatprep.subr.bf16.mxu1 %v1496_v23  ;;  %v1584_v23 = vld [vmem:[%s2087_s1 + $0x424] ss:$8 sps:$4 sm:$0xff]  }
  0x53   :  { %1007 = vmatpush1.bf16.msra.mxu0 %v1491_v24  ;;  %v1582_v24 = vld [vmem:[%s2087_s1 + $0x420] ss:$8 sps:$4 sm:$0xff]  }
  0x54   :  { %1048 = vmatpush1.bf16.msra.mxu1 %v1494_v25  ;;  %1008 = vmatprep.subr.bf16.mxu0 %v1499_v26  ;;  %v1587_v25 = vld [vmem:[%s2087_s1 + $0x414] ss:$8 sps:$4 sm:$0xff]   ;;  %v1585_v26 = vld [vmem:[%s2087_s1 + $0x410] ss:$8 sps:$4 sm:$0xff]  }
  0x55   :  { %1049 = vmatprep.subr.bf16.mxu1 %v1502_v27  ;;  %v1590_v27 = vld [vmem:[%s2087_s1 + $0x404] ss:$8 sps:$4 sm:$0xff]  }
  0x57   :  { %1009 = vmatpush1.bf16.msra.mxu0 %v1497_v28  ;;  %v1588_v28 = vld [vmem:[%s2087_s1 + $0x400] ss:$8 sps:$4 sm:$0xff]  }
  0x58   :  { %1050 = vmatpush1.bf16.msra.mxu1 %v1500_v29  ;;  %1010 = vmatprep.subr.bf16.mxu0 %v1505_v30  ;;  %v1591_v29 = vld [vmem:[%s2088_s0 + $0x20] ss:$0 sps:$4 sm:$0xff]  }
  0x59   :  { %1051 = vmatprep.subr.bf16.mxu1 %v1508_v31 }
  0x5b   :  { %1011 = vmatpush1.bf16.msra.mxu0 %v1503_v33 }
  0x5c   :  { %1052 = vmatpush1.bf16.msra.mxu1 %v1506_v34  ;;  %1012 = vmatprep.subr.bf16.mxu0 %v1511_v37 }
  0x5d   :  { %1053 = vmatprep.subr.bf16.mxu1 %v1514_v39 }
  0x5f   :  { %1013 = vmatpush1.bf16.msra.mxu0 %v1509_v40 }
  0x60   :  { %1054 = vmatpush1.bf16.msra.mxu1 %v1512_v41  ;;  %1014 = vmatprep.subr.bf16.mxu0 %v1517_v42 }
  0x61   :  { %1055 = vmatprep.subr.bf16.mxu1 %v1520_v43 }
  0x63   :  { %1015 = vmatpush2.bf16.msra.mxu0 %v1515_v44 }
  0x64   :  { %1056 = vmatpush2.bf16.msra.mxu1 %v1518_v45  ;;  %1016 = vmatprep.subr.bf16.mxu0 %v1523_v46 }
  0x65   :  { %1057 = vmatprep.subr.bf16.mxu1 %v1526_v47 }
  0x67   :  { %1017 = vmatpush2.bf16.msra.mxu0 %v1521_v48 }
  0x68   :  { %1058 = vmatpush2.bf16.msra.mxu1 %v1524_v49  ;;  %1018 = vmatprep.subr.bf16.mxu0 %v1529_v50 }
  0x69   :  { %1059 = vmatprep.subr.bf16.mxu1 %v1532_v51 }
  0x6b   :  { %1019 = vmatpush2.bf16.msra.mxu0 %v1527_v52 }
  0x6c   :  { %1060 = vmatpush2.bf16.msra.mxu1 %v1530_v53  ;;  %1020 = vmatprep.subr.bf16.mxu0 %v1535_v54 }
  0x6d   :  { %1061 = vmatprep.subr.bf16.mxu1 %v1538_v55 }
  0x6f   :  { %1021 = vmatpush2.bf16.msra.mxu0 %v1533_v56 }
  0x70   :  { %1062 = vmatpush2.bf16.msra.mxu1 %v1536_v57  ;;  %1022 = vmatprep.subr.bf16.mxu0 %v1541_v58 }
  0x71   :  { %1063 = vmatprep.subr.bf16.mxu1 %v1544_v59 }
  0x73   :  { %1023 = vmatpush2.bf16.msra.mxu0 %v1539_v60 }
  0x74   :  { %1064 = vmatpush2.bf16.msra.mxu1 %v1542_v61  ;;  %1024 = vmatprep.subr.bf16.mxu0 %v1547_v62 }
  0x75   :  { %1065 = vmatprep.subr.bf16.mxu1 %v1550_v63  ;;  %v1593_v63 = vmov 1966171168  }
  0x77   :  { %1025 = vmatpush2.bf16.msra.mxu0 %v1545_v0  ;;  %v1137_v0 = vunpack.c.l.s4 %v1593_v63 }
  0x78   :  { %1066 = vmatpush2.bf16.msra.mxu1 %v1548_v1  ;;  %1026 = vmatprep.subr.bf16.mxu0 %v1553_v2  ;;  %v1139_v1 = vlaneseq }
  0x79   :  { %1067 = vmatprep.subr.bf16.mxu1 %v1556_v3 }
  0x7a   :  { %vm1153_vm0 = vcmp.lt.s32.totalorder %v1139_v1, 256 }
  0x7b   :  { %1027 = vmatpush2.bf16.msra.mxu0 %v1551_v4 }
  0x7c   :  { %1068 = vmatpush2.bf16.msra.mxu1 %v1554_v5  ;;  %1028 = vmatprep.subr.bf16.mxu0 %v1559_v6 }
  0x7d   :  { %1069 = vmatprep.subr.bf16.mxu1 %v1562_v7 }
  0x7f   :  { %1029 = vmatpush2.bf16.msra.mxu0 %v1557_v8 }
  0x80   :  { %1070 = vmatpush2.bf16.msra.mxu1 %v1560_v9  ;;  %1080 = vmatprep.subr.bf16.mxu0 %v1567_v10 }
  0x82   :  { %1031 = vmatmul.mubr.bf16.vlgmr.msra.gmra.mxu0 %v1214_v11 }
  0x83   :  { %1072 = vmatmul.mubr.bf16.vlgmr.msra.gmra.mxu1 %v1216_v12  ;;  %1081 = vmatpush1.bf16.msra.mxu0 %v1565_v13  ;;  %v1138_v12 = vunpack.c.0.s8 %v1137_v0  ;;  %v1140_v13 = vshrl.u32 %v1139_v1, 7 }
  0x84   :  { %1112 = vmatprep.mubr.bf16.mxu0 %v1592_v16  ;;  %1082 = vmatprep.subr.bf16.mxu0 %v1572_v14 }
  0x87   :  { %1083 = vmatpush1.bf16.msra.mxu0 %v1570_v15 }
  0x88   :  { %1084 = vmatprep.subr.bf16.mxu0 %v1575_v17 }
  0x8b   :  { %1085 = vmatpush1.bf16.msra.mxu0 %v1573_v18 }
  0x8c   :  { %1086 = vmatprep.subr.bf16.mxu0 %v1578_v19 }
  0x8f   :  { %1087 = vmatpush1.bf16.msra.mxu0 %v1576_v20 }
  0x90   :  { %1088 = vmatprep.subr.bf16.mxu0 %v1581_v21 }
  0x93   :  { %1089 = vmatpush1.bf16.msra.mxu0 %v1579_v22 }
  0x94   :  { %1090 = vmatprep.subr.bf16.mxu0 %v1584_v23  ;;  %v1141_v23 = vsub.s32 %v1138_v12, %v1140_v13 }
  0x97   :  { %1091 = vmatpush1.bf16.msra.mxu0 %v1582_v24 }
  0x98   :  { %1092 = vmatprep.subr.bf16.mxu0 %v1587_v25 }
  0x9b   :  { %1093 = vmatpush1.bf16.msra.mxu0 %v1585_v26 }
  0x9c   :  { %1094 = vmatprep.subr.bf16.mxu0 %v1590_v27 }
  0x9f   :  { %1095 = vmatpush1.bf16.msra.mxu0 %v1588_v28 }
  0xa2   :  { %1113 = vmatmul.mubr.bf16.vlgmr.msra.gmra.mxu0 %v1591_v29 }
 0x102   :  { %v950_v30 = vpop.f32.mrf.mxu0 }
 0x103   :  { %v991_v31 = vpop.f32.mrf.mxu1 }
 0x104   :  { %v992_v32 = vadd.f32 %v991_v31, %v950_v30  ;;  %v952_v33 = vpop.f32.mrf.mxu0 }
 0x105   :  { %v993_v34 = vpop.f32.mrf.mxu1 }
 0x106   :  { %v994_v35 = vadd.f32 %v993_v34, %v952_v33  ;;  %v954_v36 = vpop.f32.mrf.mxu0 }
 0x107   :  { %v995_v37 = vpop.f32.mrf.mxu1 }
 0x108   :  { %v955_v38 = vpop.f32.mrf.mxu0 }
 0x109   :  { %v996_v39 = vpop.f32.mrf.mxu1 }
 0x142   :  { %v1032_v40 = vpop.f32.mrf.mxu0 }
 0x143   :  { %v1073_v41 = vpop.f32.mrf.mxu1  ;;  %v1033_v48 = vadd.f32 %v1032_v40, %v992_v32 }
 0x144   :  { %v1034_v42 = vpop.f32.mrf.mxu0 }
 0x145   :  { %v1075_v43 = vpop.f32.mrf.mxu1  ;;  %v1035_v49 = vadd.f32 %v1034_v42, %v994_v35  ;;  %v1074_v50 = vadd.f32 %v1073_v41, %v1033_v48 }
 0x146   :  { %v1036_v44 = vpop.f32.mrf.mxu0 }
 0x147   :  { %v1077_v45 = vpop.f32.mrf.mxu1  ;;  %v1076_v52 = vadd.f32 %v1075_v43, %v1035_v49 }
 0x148   :  { %v1037_v46 = vpop.f32.mrf.mxu0 }
 0x149   :  { %v1078_v47 = vpop.f32.mrf.mxu1 }
 0x162   :  { %v1114_v51 = vpop.f32.mrf.mxu0 }
 0x163   :  { %v1115_v53 = vadd.f32 %v1114_v51, %v1074_v50 }
 0x164   :  { %v1116_v54 = vpop.f32.mrf.mxu0 }
 0x165   :  { %v1121_v55 = vrot.slane %v1115_v53, 4  ;;  %v1156_v56 = vmul.f32 %v1115_v53, %v1115_v53  ;;  %v1117_v57 = vadd.f32 %v1116_v54, %v1076_v52 }
 0x166   :  { %v1118_v58 = vpop.f32.mrf.mxu0 }
 0x167   :  { %v1122_v59 = vadd.f32 %v1121_v55, %v1115_v53  ;;  %v1158_v60 = vrot.slane %v1156_v56, 4  ;;  %v1127_v61 = vrot.slane %v1117_v57, 4  ;;  %v1157_v62 = vmul.f32 %v1117_v57, %v1117_v57 }
 0x168   :  { %v1364_v2 = vpack.c.bf16 %v1117_v57, %v1115_v53  ;;  %v1119_v3 = vpop.f32.mrf.mxu0 }
 0x169   :  { %v1123_v4 = vrot.slane %v1122_v59, 2  ;;  %v1159_v5 = vadd.f32 %v1158_v60, %v1156_v56  ;;  %v1128_v6 = vadd.f32 %v1127_v61, %v1117_v57  ;;  %v1164_v7 = vrot.slane %v1157_v62, 4 }
 0x16a   :  { %1197 = vst [vmem:[%s2089_s2] sm:$0xff] %v1364_v2 }
 0x16b   :  { %v1124_v8 = vadd.f32 %v1123_v4, %v1122_v59  ;;  %v1160_v9 = vrot.slane %v1159_v5, 2  ;;  %v1129_v10 = vrot.slane %v1128_v6, 2  ;;  %v1165_v11 = vadd.f32 %v1164_v7, %v1157_v62 }
 0x16d   :  { %v1125_v14 = vrot.slane %v1124_v8, 1  ;;  %v1161_v15 = vadd.f32 %v1160_v9, %v1159_v5  ;;  %v1130_v16 = vadd.f32 %v1129_v10, %v1128_v6  ;;  %v1166_v17 = vrot.slane %v1165_v11, 2 }
 0x16f   :  { %v1162_v18 = vrot.slane %v1161_v15, 1  ;;  %v1131_v19 = vrot.slane %v1130_v16, 1  ;;  %v1167_v20 = vadd.f32 %v1166_v17, %v1165_v11  ;;  %v1126_v21 = vadd.f32 %v1125_v14, %v1124_v8 }
 0x171   :  { %v1132_v22 = vadd.f32 %v1131_v19, %v1130_v16  ;;  %v1168_v24 = vrot.slane %v1167_v20, 1  ;;  %v1163_v25 = vadd.f32 %v1162_v18, %v1161_v15 }
 0x173   :  { %v1135_v26 = vcombine.low %v1126_v21, %v1132_v22  ;;  %v1169_v27 = vadd.f32 %v1168_v24, %v1167_v20 }
 0x175   :  { %v1142_v28 = vrot.slane %v1135_v26, %v1141_v23  ;;  %v1172_v29 = vcombine.low %v1163_v25, %v1169_v27 }
 0x177   :  { %v1149_v30 = vrot.slane %v1142_v28, %v1141_v23  ;;  %v1179_v31 = vrot.slane %v1172_v29, %v1141_v23 }
 0x179   :  { %1155 = vst.msk [vmem:[%s2090_s3] sm:$0x3] %vm1153_vm0, %v1149_v30  ;;  %v1186_v32 = vrot.slane %v1179_v31, %v1141_v23 }
 0x17b   :  { %1188 = vst.msk [vmem:[%s2091_s4] sm:$0x3] %vm1153_vm0, %v1186_v32 }

// kernel: _lambda_.39
= control target key start
LH: loop header
LB: loop body
LE: loop exit
PB: predicated region body
PF: predicated region fallthrough
CT: control target
= control target key end

     0   :  { %s4005_s1 = inlined_call_operand.vmem [shape: bf16[2304,256], index: 1, kind: input, shape index: {}]   ;;  %s4006_s0 = inlined_call_operand.vmem [shape: bf16[8,2304], index: 0, kind: input, shape index: {}]   ;;  %s4007_s2 = inlined_call_operand.vmem [shape: bf16[8,256], index: 2, kind: output, shape index: {0}]   ;;  %s4008_s3 = inlined_call_operand.vmem [shape: f32[1,1,256], index: 3, kind: output, shape index: {1}]   ;;  %s4009_s4 = inlined_call_operand.vmem [shape: f32[1,1,256], index: 4, kind: output, shape index: {2}]  }
   0x1   :  { %v2581_v0 = vld [vmem:[%s4005_s1 + $0x74] ss:$8 sps:$4 sm:$0xff]   ;;  %v2585_v2 = vld [vmem:[%s4005_s1 + $0x70] ss:$8 sps:$4 sm:$0xff]   ;;  %v2587_v4 = vld [vmem:[%s4005_s1 + $0x64] ss:$8 sps:$4 sm:$0xff]  }
   0x2   :  { %v2583_v1 = vld [vmem:[%s4005_s1 + $0x174] ss:$8 sps:$4 sm:$0xff]   ;;  %1814 = vmatprep.subr.bf16.mxu0 %v2581_v0  ;;  %v2586_v3 = vld [vmem:[%s4005_s1 + $0x170] ss:$8 sps:$4 sm:$0xff]   ;;  %v2589_v5 = vld [vmem:[%s4005_s1 + $0x164] ss:$8 sps:$4 sm:$0xff]  }
   0x3   :  { %1855 = vmatprep.subr.bf16.mxu1 %v2583_v1  ;;  %1815 = vmatpush1.bf16.msra.mxu0 %v2585_v2  ;;  %v2591_v6 = vld [vmem:[%s4005_s1 + $0x60] ss:$8 sps:$4 sm:$0xff]   ;;  %v2593_v8 = vld [vmem:[%s4005_s1 + $0x54] ss:$8 sps:$4 sm:$0xff]   ;;  %v2597_v10 = vld [vmem:[%s4005_s1 + $0x50] ss:$8 sps:$4 sm:$0xff]  }
   0x4   :  { %1856 = vmatpush1.bf16.msra.mxu1 %v2586_v3  ;;  %1816 = vmatprep.subr.bf16.mxu0 %v2587_v4  ;;  %v2592_v7 = vld [vmem:[%s4005_s1 + $0x160] ss:$8 sps:$4 sm:$0xff]   ;;  %v2595_v9 = vld [vmem:[%s4005_s1 + $0x154] ss:$8 sps:$4 sm:$0xff]   ;;  %v2598_v11 = vld [vmem:[%s4005_s1 + $0x150] ss:$8 sps:$4 sm:$0xff]  }
   0x5   :  { %1857 = vmatprep.subr.bf16.mxu1 %v2589_v5  ;;  %v2599_v12 = vld [vmem:[%s4005_s1 + $0x44] ss:$8 sps:$4 sm:$0xff]   ;;  %v2603_v14 = vld [vmem:[%s4005_s1 + $0x40] ss:$8 sps:$4 sm:$0xff]   ;;  %v2605_v16 = vld [vmem:[%s4005_s1 + $0x34] ss:$8 sps:$4 sm:$0xff]  }
   0x6   :  { %v2601_v13 = vld [vmem:[%s4005_s1 + $0x144] ss:$8 sps:$4 sm:$0xff]   ;;  %v2604_v15 = vld [vmem:[%s4005_s1 + $0x140] ss:$8 sps:$4 sm:$0xff]   ;;  %v2607_v17 = vld [vmem:[%s4005_s1 + $0x134] ss:$8 sps:$4 sm:$0xff]  }
   0x7   :  { %1817 = vmatpush1.bf16.msra.mxu0 %v2591_v6  ;;  %v2609_v18 = vld [vmem:[%s4005_s1 + $0x30] ss:$8 sps:$4 sm:$0xff]   ;;  %v2611_v20 = vld [vmem:[%s4005_s1 + $0x24] ss:$8 sps:$4 sm:$0xff]   ;;  %v2615_v22 = vld [vmem:[%s4005_s1 + $0x20] ss:$8 sps:$4 sm:$0xff]  }
   0x8   :  { %1858 = vmatpush1.bf16.msra.mxu1 %v2592_v7  ;;  %1818 = vmatprep.subr.bf16.mxu0 %v2593_v8  ;;  %v2610_v19 = vld [vmem:[%s4005_s1 + $0x130] ss:$8 sps:$4 sm:$0xff]   ;;  %v2613_v21 = vld [vmem:[%s4005_s1 + $0x124] ss:$8 sps:$4 sm:$0xff]   ;;  %v2616_v23 = vld [vmem:[%s4005_s1 + $0x120] ss:$8 sps:$4 sm:$0xff]  }
   0x9   :  { %1859 = vmatprep.subr.bf16.mxu1 %v2595_v9  ;;  %v2617_v24 = vld [vmem:[%s4005_s1 + $0x14] ss:$8 sps:$4 sm:$0xff]   ;;  %v2621_v26 = vld [vmem:[%s4005_s1 + $0x10] ss:$8 sps:$4 sm:$0xff]   ;;  %v2623_v28 = vld [vmem:[%s4005_s1 + $0x4] ss:$8 sps:$4 sm:$0xff]  }
   0xa   :  { %v2619_v25 = vld [vmem:[%s4005_s1 + $0x114] ss:$8 sps:$4 sm:$0xff]   ;;  %v2622_v27 = vld [vmem:[%s4005_s1 + $0x110] ss:$8 sps:$4 sm:$0xff]   ;;  %v2625_v29 = vld [vmem:[%s4005_s1 + $0x104] ss:$8 sps:$4 sm:$0xff]  }
   0xb   :  { %1819 = vmatpush1.bf16.msra.mxu0 %v2597_v10  ;;  %v2627_v30 = vld [vmem:[%s4005_s1] ss:$8 sps:$4 sm:$0xff]   ;;  %v2629_v32 = vld [vmem:[%s4005_s1 + $0xf4] ss:$8 sps:$4 sm:$0xff]   ;;  %v2633_v34 = vld [vmem:[%s4005_s1 + $0xf0] ss:$8 sps:$4 sm:$0xff]  }
   0xc   :  { %1860 = vmatpush1.bf16.msra.mxu1 %v2598_v11  ;;  %1820 = vmatprep.subr.bf16.mxu0 %v2599_v12  ;;  %v2628_v31 = vld [vmem:[%s4005_s1 + $0x100] ss:$8 sps:$4 sm:$0xff]   ;;  %v2631_v33 = vld [vmem:[%s4005_s1 + $0x1f4] ss:$8 sps:$4 sm:$0xff]   ;;  %v2634_v35 = vld [vmem:[%s4005_s1 + $0x1f0] ss:$8 sps:$4 sm:$0xff]  }
   0xd   :  { %1861 = vmatprep.subr.bf16.mxu1 %v2601_v13  ;;  %v2635_v36 = vld [vmem:[%s4005_s1 + $0xe4] ss:$8 sps:$4 sm:$0xff]   ;;  %v2639_v38 = vld [vmem:[%s4005_s1 + $0xe0] ss:$8 sps:$4 sm:$0xff]   ;;  %v2641_v40 = vld [vmem:[%s4005_s1 + $0xd4] ss:$8 sps:$4 sm:$0xff]  }
   0xe   :  { %v2637_v37 = vld [vmem:[%s4005_s1 + $0x1e4] ss:$8 sps:$4 sm:$0xff]   ;;  %v2640_v39 = vld [vmem:[%s4005_s1 + $0x1e0] ss:$8 sps:$4 sm:$0xff]   ;;  %v2643_v41 = vld [vmem:[%s4005_s1 + $0x1d4] ss:$8 sps:$4 sm:$0xff]  }
   0xf   :  { %1821 = vmatpush1.bf16.msra.mxu0 %v2603_v14  ;;  %v2645_v42 = vld [vmem:[%s4005_s1 + $0xd0] ss:$8 sps:$4 sm:$0xff]   ;;  %v2647_v44 = vld [vmem:[%s4005_s1 + $0xc4] ss:$8 sps:$4 sm:$0xff]   ;;  %v2651_v49 = vld [vmem:[%s4005_s1 + $0xc0] ss:$8 sps:$4 sm:$0xff]  }
  0x10   :  { %1862 = vmatpush1.bf16.msra.mxu1 %v2604_v15  ;;  %1822 = vmatprep.subr.bf16.mxu0 %v2605_v16  ;;  %v2646_v43 = vld [vmem:[%s4005_s1 + $0x1d0] ss:$8 sps:$4 sm:$0xff]   ;;  %v2649_v45 = vld [vmem:[%s4005_s1 + $0x1c4] ss:$8 sps:$4 sm:$0xff]   ;;  %v2652_v50 = vld [vmem:[%s4005_s1 + $0x1c0] ss:$8 sps:$4 sm:$0xff]  }
  0x11   :  { %1863 = vmatprep.subr.bf16.mxu1 %v2607_v17  ;;  %v14_v46 = vld [vmem:[%s4006_s0] sm:$0xff]  ;;  %v15_v48 = vld [vmem:[%s4006_s0 + $0x8] sm:$0xff]  ;;  %v2653_v52 = vld [vmem:[%s4005_s1 + $0xb4] ss:$8 sps:$4 sm:$0xff]  }
  0x12   :  { %v2273_v47 = vcombine.high %v14_v46, %v14_v46  ;;  %v2275_v51 = vcombine.high %v15_v48, %v15_v48  ;;  %v2655_v53 = vld [vmem:[%s4005_s1 + $0x1b4] ss:$8 sps:$4 sm:$0xff]   ;;  %v2657_v54 = vld [vmem:[%s4005_s1 + $0xb0] ss:$8 sps:$4 sm:$0xff]   ;;  %v2659_v56 = vld [vmem:[%s4005_s1 + $0xa4] ss:$8 sps:$4 sm:$0xff]   ;;  %v2272_v6 = vcombine.low %v14_v46, %v14_v46  ;;  %v2274_v7 = vcombine.low %v15_v48, %v15_v48 }
  0x13   :  { %1823 = vmatpush1.bf16.msra.mxu0 %v2609_v18  ;;  %v2658_v55 = vld [vmem:[%s4005_s1 + $0x1b0] ss:$8 sps:$4 sm:$0xff]   ;;  %v2661_v57 = vld [vmem:[%s4005_s1 + $0x1a4] ss:$8 sps:$4 sm:$0xff]   ;;  %v2663_v58 = vld [vmem:[%s4005_s1 + $0xa0] ss:$8 sps:$4 sm:$0xff]  }
  0x14   :  { %1864 = vmatpush1.bf16.msra.mxu1 %v2610_v19  ;;  %1824 = vmatprep.subr.bf16.mxu0 %v2611_v20  ;;  %v2664_v59 = vld [vmem:[%s4005_s1 + $0x1a0] ss:$8 sps:$4 sm:$0xff]   ;;  %v2665_v60 = vld [vmem:[%s4005_s1 + $0x94] ss:$8 sps:$4 sm:$0xff]   ;;  %v2669_v62 = vld [vmem:[%s4005_s1 + $0x90] ss:$8 sps:$4 sm:$0xff]  }
  0x15   :  { %1865 = vmatprep.subr.bf16.mxu1 %v2613_v21  ;;  %1846 = vmatprep.mubr.bf16.mxu0 %v2273_v47  ;;  %v2667_v61 = vld [vmem:[%s4005_s1 + $0x194] ss:$8 sps:$4 sm:$0xff]   ;;  %v2670_v63 = vld [vmem:[%s4005_s1 + $0x190] ss:$8 sps:$4 sm:$0xff]   ;;  %v2671_v0 = vld [vmem:[%s4005_s1 + $0x84] ss:$8 sps:$4 sm:$0xff]  }
  0x16   :  { %1887 = vmatprep.mubr.bf16.mxu1 %v2275_v51  ;;  %v2673_v1 = vld [vmem:[%s4005_s1 + $0x184] ss:$8 sps:$4 sm:$0xff]   ;;  %v2675_v2 = vld [vmem:[%s4005_s1 + $0x80] ss:$8 sps:$4 sm:$0xff]   ;;  %v2683_v4 = vld [vmem:[%s4005_s1 + $0x274] ss:$8 sps:$4 sm:$0xff]  }
  0x17   :  { %1825 = vmatpush1.bf16.msra.mxu0 %v2615_v22  ;;  %v2676_v3 = vld [vmem:[%s4005_s1 + $0x180] ss:$8 sps:$4 sm:$0xff]   ;;  %v2686_v5 = vld [vmem:[%s4005_s1 + $0x374] ss:$8 sps:$4 sm:$0xff]   ;;  %v2681_v8 = vld [vmem:[%s4005_s1 + $0x270] ss:$8 sps:$4 sm:$0xff]  }
  0x18   :  { %1866 = vmatpush1.bf16.msra.mxu1 %v2616_v23  ;;  %1826 = vmatprep.subr.bf16.mxu0 %v2617_v24  ;;  %v2684_v9 = vld [vmem:[%s4005_s1 + $0x370] ss:$8 sps:$4 sm:$0xff]   ;;  %v2689_v10 = vld [vmem:[%s4005_s1 + $0x264] ss:$8 sps:$4 sm:$0xff]   ;;  %v2687_v12 = vld [vmem:[%s4005_s1 + $0x260] ss:$8 sps:$4 sm:$0xff]  }
  0x19   :  { %1867 = vmatprep.subr.bf16.mxu1 %v2619_v25  ;;  %v2692_v11 = vld [vmem:[%s4005_s1 + $0x364] ss:$8 sps:$4 sm:$0xff]   ;;  %v2690_v13 = vld [vmem:[%s4005_s1 + $0x360] ss:$8 sps:$4 sm:$0xff]   ;;  %v2695_v14 = vld [vmem:[%s4005_s1 + $0x254] ss:$8 sps:$4 sm:$0xff]  }
  0x1a   :  { %v2698_v15 = vld [vmem:[%s4005_s1 + $0x354] ss:$8 sps:$4 sm:$0xff]   ;;  %v2693_v16 = vld [vmem:[%s4005_s1 + $0x250] ss:$8 sps:$4 sm:$0xff]   ;;  %v2701_v18 = vld [vmem:[%s4005_s1 + $0x244] ss:$8 sps:$4 sm:$0xff]  }
  0x1b   :  { %1827 = vmatpush1.bf16.msra.mxu0 %v2621_v26  ;;  %v2696_v17 = vld [vmem:[%s4005_s1 + $0x350] ss:$8 sps:$4 sm:$0xff]   ;;  %v2704_v19 = vld [vmem:[%s4005_s1 + $0x344] ss:$8 sps:$4 sm:$0xff]   ;;  %v2699_v20 = vld [vmem:[%s4005_s1 + $0x240] ss:$8 sps:$4 sm:$0xff]  }
  0x1c   :  { %1868 = vmatpush1.bf16.msra.mxu1 %v2622_v27  ;;  %1828 = vmatprep.subr.bf16.mxu0 %v2623_v28  ;;  %v2702_v21 = vld [vmem:[%s4005_s1 + $0x340] ss:$8 sps:$4 sm:$0xff]   ;;  %v2707_v22 = vld [vmem:[%s4005_s1 + $0x234] ss:$8 sps:$4 sm:$0xff]   ;;  %v2705_v24 = vld [vmem:[%s4005_s1 + $0x230] ss:$8 sps:$4 sm:$0xff]  }
  0x1d   :  { %1869 = vmatprep.subr.bf16.mxu1 %v2625_v29  ;;  %v2710_v23 = vld [vmem:[%s4005_s1 + $0x334] ss:$8 sps:$4 sm:$0xff]   ;;  %v2708_v25 = vld [vmem:[%s4005_s1 + $0x330] ss:$8 sps:$4 sm:$0xff]   ;;  %v2713_v26 = vld [vmem:[%s4005_s1 + $0x224] ss:$8 sps:$4 sm:$0xff]  }
  0x1e   :  { %v2716_v27 = vld [vmem:[%s4005_s1 + $0x324] ss:$8 sps:$4 sm:$0xff]   ;;  %v2711_v28 = vld [vmem:[%s4005_s1 + $0x220] ss:$8 sps:$4 sm:$0xff]   ;;  %v2746_v51 = vld [vmem:[%s4005_s1 + $0x3d4] ss:$8 sps:$4 sm:$0xff]  }
  0x1f   :  { %1829 = vmatpush1.bf16.msra.mxu0 %v2627_v30  ;;  %v2714_v29 = vld [vmem:[%s4005_s1 + $0x320] ss:$8 sps:$4 sm:$0xff]   ;;  %v2719_v30 = vld [vmem:[%s4005_s1 + $0x214] ss:$8 sps:$4 sm:$0xff]   ;;  %v2737_v46 = vld [vmem:[%s4005_s1 + $0x2e4] ss:$8 sps:$4 sm:$0xff]  }
  0x20   :  { %1870 = vmatpush1.bf16.msra.mxu1 %v2628_v31  ;;  %1830 = vmatprep.subr.bf16.mxu0 %v2629_v32  ;;  %v2722_v31 = vld [vmem:[%s4005_s1 + $0x314] ss:$8 sps:$4 sm:$0xff]   ;;  %v2740_v47 = vld [vmem:[%s4005_s1 + $0x3e4] ss:$8 sps:$4 sm:$0xff]   ;;  %v2735_v48 = vld [vmem:[%s4005_s1 + $0x2e0] ss:$8 sps:$4 sm:$0xff]  }
  0x21   :  { %1871 = vmatprep.subr.bf16.mxu1 %v2631_v33  ;;  %v3336_v32 = vld [vmem:[%s4006_s0 + $0x10] sm:$0xff] }
  0x22   :  { %v2717_v33 = vld [vmem:[%s4005_s1 + $0x210] ss:$8 sps:$4 sm:$0xff]  }
  0x23   :  { %1831 = vmatpush2.bf16.msra.mxu0 %v2633_v34  ;;  %v2720_v34 = vld [vmem:[%s4005_s1 + $0x310] ss:$8 sps:$4 sm:$0xff]  }
  0x24   :  { %1872 = vmatpush2.bf16.msra.mxu1 %v2634_v35  ;;  %1832 = vmatprep.subr.bf16.mxu0 %v2635_v36  ;;  %v2277_v35 = vcombine.high %v3336_v32, %v3336_v32  ;;  %v3349_v36 = vld [vmem:[%s4006_s0 + $0x18] sm:$0xff] }
  0x25   :  { %1873 = vmatprep.subr.bf16.mxu1 %v2637_v37  ;;  %v2725_v37 = vld [vmem:[%s4005_s1 + $0x204] ss:$8 sps:$4 sm:$0xff]  }
  0x27   :  { %1833 = vmatpush2.bf16.msra.mxu0 %v2639_v38  ;;  %v2279_v38 = vcombine.high %v3349_v36, %v3349_v36 }
  0x28   :  { %1874 = vmatpush2.bf16.msra.mxu1 %v2640_v39  ;;  %1834 = vmatprep.subr.bf16.mxu0 %v2641_v40  ;;  %v2728_v39 = vld [vmem:[%s4005_s1 + $0x304] ss:$8 sps:$4 sm:$0xff]   ;;  %v2723_v40 = vld [vmem:[%s4005_s1 + $0x200] ss:$8 sps:$4 sm:$0xff]  }
  0x29   :  { %1875 = vmatprep.subr.bf16.mxu1 %v2643_v41  ;;  %v2726_v41 = vld [vmem:[%s4005_s1 + $0x300] ss:$8 sps:$4 sm:$0xff]  }
  0x2b   :  { %1835 = vmatpush2.bf16.msra.mxu0 %v2645_v42  ;;  %v2731_v42 = vld [vmem:[%s4005_s1 + $0x2f4] ss:$8 sps:$4 sm:$0xff]  }
  0x2c   :  { %1876 = vmatpush2.bf16.msra.mxu1 %v2646_v43  ;;  %1836 = vmatprep.subr.bf16.mxu0 %v2647_v44  ;;  %v2734_v43 = vld [vmem:[%s4005_s1 + $0x3f4] ss:$8 sps:$4 sm:$0xff]   ;;  %v2729_v44 = vld [vmem:[%s4005_s1 + $0x2f0] ss:$8 sps:$4 sm:$0xff]  }
  0x2d   :  { %1877 = vmatprep.subr.bf16.mxu1 %v2649_v45  ;;  %v2732_v45 = vld [vmem:[%s4005_s1 + $0x3f0] ss:$8 sps:$4 sm:$0xff]  }
  0x2f   :  { %1837 = vmatpush2.bf16.msra.mxu0 %v2651_v49  ;;  %v2738_v49 = vld [vmem:[%s4005_s1 + $0x3e0] ss:$8 sps:$4 sm:$0xff]  }
  0x30   :  { %1878 = vmatpush2.bf16.msra.mxu1 %v2652_v50  ;;  %1838 = vmatprep.subr.bf16.mxu0 %v2653_v52  ;;  %v2743_v50 = vld [vmem:[%s4005_s1 + $0x2d4] ss:$8 sps:$4 sm:$0xff]   ;;  %v2741_v52 = vld [vmem:[%s4005_s1 + $0x2d0] ss:$8 sps:$4 sm:$0xff]  }
  0x31   :  { %1879 = vmatprep.subr.bf16.mxu1 %v2655_v53  ;;  %v2744_v53 = vld [vmem:[%s4005_s1 + $0x3d0] ss:$8 sps:$4 sm:$0xff]  }
  0x33   :  { %1839 = vmatpush2.bf16.msra.mxu0 %v2657_v54  ;;  %v2749_v54 = vld [vmem:[%s4005_s1 + $0x2c4] ss:$8 sps:$4 sm:$0xff]  }
  0x34   :  { %1880 = vmatpush2.bf16.msra.mxu1 %v2658_v55  ;;  %1840 = vmatprep.subr.bf16.mxu0 %v2659_v56  ;;  %v2752_v55 = vld [vmem:[%s4005_s1 + $0x3c4] ss:$8 sps:$4 sm:$0xff]   ;;  %v2747_v56 = vld [vmem:[%s4005_s1 + $0x2c0] ss:$8 sps:$4 sm:$0xff]  }
  0x35   :  { %1881 = vmatprep.subr.bf16.mxu1 %v2661_v57  ;;  %v2750_v57 = vld [vmem:[%s4005_s1 + $0x3c0] ss:$8 sps:$4 sm:$0xff]  }
  0x37   :  { %1841 = vmatpush2.bf16.msra.mxu0 %v2663_v58  ;;  %v2755_v58 = vld [vmem:[%s4005_s1 + $0x2b4] ss:$8 sps:$4 sm:$0xff]  }
  0x38   :  { %1882 = vmatpush2.bf16.msra.mxu1 %v2664_v59  ;;  %1842 = vmatprep.subr.bf16.mxu0 %v2665_v60  ;;  %v2758_v59 = vld [vmem:[%s4005_s1 + $0x3b4] ss:$8 sps:$4 sm:$0xff]   ;;  %v2753_v60 = vld [vmem:[%s4005_s1 + $0x2b0] ss:$8 sps:$4 sm:$0xff]  }
  0x39   :  { %1883 = vmatprep.subr.bf16.mxu1 %v2667_v61  ;;  %v2756_v61 = vld [vmem:[%s4005_s1 + $0x3b0] ss:$8 sps:$4 sm:$0xff]  }
  0x3b   :  { %1843 = vmatpush2.bf16.msra.mxu0 %v2669_v62  ;;  %v2761_v62 = vld [vmem:[%s4005_s1 + $0x2a4] ss:$8 sps:$4 sm:$0xff]  }
  0x3c   :  { %1884 = vmatpush2.bf16.msra.mxu1 %v2670_v63  ;;  %1844 = vmatprep.subr.bf16.mxu0 %v2671_v0  ;;  %v2764_v63 = vld [vmem:[%s4005_s1 + $0x3a4] ss:$8 sps:$4 sm:$0xff]   ;;  %v2759_v0 = vld [vmem:[%s4005_s1 + $0x2a0] ss:$8 sps:$4 sm:$0xff]  }
  0x3d   :  { %1885 = vmatprep.subr.bf16.mxu1 %v2673_v1  ;;  %v2762_v1 = vld [vmem:[%s4005_s1 + $0x3a0] ss:$8 sps:$4 sm:$0xff]  }
  0x3f   :  { %1845 = vmatpush2.bf16.msra.mxu0 %v2675_v2  ;;  %v2767_v2 = vld [vmem:[%s4005_s1 + $0x294] ss:$8 sps:$4 sm:$0xff]  }
  0x40   :  { %1886 = vmatpush2.bf16.msra.mxu1 %v2676_v3  ;;  %1896 = vmatprep.subr.bf16.mxu0 %v2683_v4  ;;  %v2770_v3 = vld [vmem:[%s4005_s1 + $0x394] ss:$8 sps:$4 sm:$0xff]   ;;  %v2765_v4 = vld [vmem:[%s4005_s1 + $0x290] ss:$8 sps:$4 sm:$0xff]  }
  0x41   :  { %1937 = vmatprep.subr.bf16.mxu1 %v2686_v5  ;;  %v2768_v5 = vld [vmem:[%s4005_s1 + $0x390] ss:$8 sps:$4 sm:$0xff]  }
  0x42   :  { %1847 = vmatmul.mubr.bf16.vlgmr.msra.gmra.mxu0 %v2272_v6  ;;  %v2773_v6 = vld [vmem:[%s4005_s1 + $0x284] ss:$8 sps:$4 sm:$0xff]  }
  0x43   :  { %1888 = vmatmul.mubr.bf16.vlgmr.msra.gmra.mxu1 %v2274_v7  ;;  %1897 = vmatpush1.bf16.msra.mxu0 %v2681_v8  ;;  %v2776_v7 = vld [vmem:[%s4005_s1 + $0x384] ss:$8 sps:$4 sm:$0xff]   ;;  %v2771_v8 = vld [vmem:[%s4005_s1 + $0x280] ss:$8 sps:$4 sm:$0xff]  }
  0x44   :  { %1938 = vmatpush1.bf16.msra.mxu1 %v2684_v9  ;;  %1898 = vmatprep.subr.bf16.mxu0 %v2689_v10  ;;  %v2774_v9 = vld [vmem:[%s4005_s1 + $0x380] ss:$8 sps:$4 sm:$0xff]   ;;  %v2781_v10 = vld [vmem:[%s4005_s1 + $0x474] ss:$8 sps:$4 sm:$0xff]  }
  0x45   :  { %1939 = vmatprep.subr.bf16.mxu1 %v2692_v11  ;;  %1928 = vmatprep.mubr.bf16.mxu0 %v2277_v35  ;;  %v2786_v11 = vld [vmem:[%s4005_s1 + $0x574] ss:$8 sps:$4 sm:$0xff]   ;;  %v2808_v35 = vld [vmem:[%s4005_s1 + $0x530] ss:$8 sps:$4 sm:$0xff]  }
  0x46   :  { %1969 = vmatprep.mubr.bf16.mxu1 %v2279_v38  ;;  %v2811_v38 = vld [vmem:[%s4005_s1 + $0x420] ss:$8 sps:$4 sm:$0xff]  }
  0x47   :  { %1899 = vmatpush1.bf16.msra.mxu0 %v2687_v12  ;;  %v2276_v12 = vcombine.low %v3336_v32, %v3336_v32  ;;  %v2807_v32 = vld [vmem:[%s4005_s1 + $0x434] ss:$8 sps:$4 sm:$0xff]  }
  0x48   :  { %1940 = vmatpush1.bf16.msra.mxu1 %v2690_v13  ;;  %1900 = vmatprep.subr.bf16.mxu0 %v2695_v14  ;;  %v2779_v13 = vld [vmem:[%s4005_s1 + $0x470] ss:$8 sps:$4 sm:$0xff]   ;;  %v2278_v14 = vcombine.low %v3349_v36, %v3349_v36  ;;  %v2813_v36 = vld [vmem:[%s4005_s1 + $0x424] ss:$8 sps:$4 sm:$0xff]  }
  0x49   :  { %1941 = vmatprep.subr.bf16.mxu1 %v2698_v15  ;;  %v2784_v15 = vld [vmem:[%s4005_s1 + $0x570] ss:$8 sps:$4 sm:$0xff]  }
  0x4b   :  { %1901 = vmatpush1.bf16.msra.mxu0 %v2693_v16  ;;  %v2789_v16 = vld [vmem:[%s4005_s1 + $0x464] ss:$8 sps:$4 sm:$0xff]  }
  0x4c   :  { %1942 = vmatpush1.bf16.msra.mxu1 %v2696_v17  ;;  %1902 = vmatprep.subr.bf16.mxu0 %v2701_v18  ;;  %v2792_v17 = vld [vmem:[%s4005_s1 + $0x564] ss:$8 sps:$4 sm:$0xff]  }
  0x4d   :  { %1943 = vmatprep.subr.bf16.mxu1 %v2704_v19  ;;  %v3486_v18 = vld [vmem:[%s4006_s0 + $0x20] sm:$0xff] }
  0x4e   :  { %v2281_v19 = vcombine.high %v3486_v18, %v3486_v18 }
  0x4f   :  { %1903 = vmatpush1.bf16.msra.mxu0 %v2699_v20  ;;  %v3493_v20 = vld [vmem:[%s4006_s0 + $0x28] sm:$0xff] }
  0x50   :  { %1944 = vmatpush1.bf16.msra.mxu1 %v2702_v21  ;;  %1904 = vmatprep.subr.bf16.mxu0 %v2707_v22  ;;  %v2787_v21 = vld [vmem:[%s4005_s1 + $0x460] ss:$8 sps:$4 sm:$0xff]  }
  0x51   :  { %1945 = vmatprep.subr.bf16.mxu1 %v2710_v23  ;;  %v2790_v22 = vld [vmem:[%s4005_s1 + $0x560] ss:$8 sps:$4 sm:$0xff]   ;;  %v2283_v23 = vcombine.high %v3493_v20, %v3493_v20 }
  0x53   :  { %1905 = vmatpush1.bf16.msra.mxu0 %v2705_v24  ;;  %v2795_v24 = vld [vmem:[%s4005_s1 + $0x454] ss:$8 sps:$4 sm:$0xff]  }
  0x54   :  { %1946 = vmatpush1.bf16.msra.mxu1 %v2708_v25  ;;  %1906 = vmatprep.subr.bf16.mxu0 %v2713_v26  ;;  %v2798_v25 = vld [vmem:[%s4005_s1 + $0x554] ss:$8 sps:$4 sm:$0xff]   ;;  %v2793_v26 = vld [vmem:[%s4005_s1 + $0x450] ss:$8 sps:$4 sm:$0xff]  }
  0x55   :  { %1947 = vmatprep.subr.bf16.mxu1 %v2716_v27  ;;  %v2796_v27 = vld [vmem:[%s4005_s1 + $0x550] ss:$8 sps:$4 sm:$0xff]  }
  0x57   :  { %1907 = vmatpush1.bf16.msra.mxu0 %v2711_v28  ;;  %v2801_v28 = vld [vmem:[%s4005_s1 + $0x444] ss:$8 sps:$4 sm:$0xff]  }
  0x58   :  { %1948 = vmatpush1.bf16.msra.mxu1 %v2714_v29  ;;  %1908 = vmatprep.subr.bf16.mxu0 %v2719_v30  ;;  %v2804_v29 = vld [vmem:[%s4005_s1 + $0x544] ss:$8 sps:$4 sm:$0xff]   ;;  %v2799_v30 = vld [vmem:[%s4005_s1 + $0x440] ss:$8 sps:$4 sm:$0xff]  }
  0x59   :  { %1949 = vmatprep.subr.bf16.mxu1 %v2722_v31  ;;  %v2802_v31 = vld [vmem:[%s4005_s1 + $0x540] ss:$8 sps:$4 sm:$0xff]  }
  0x5b   :  { %1909 = vmatpush1.bf16.msra.mxu0 %v2717_v33  ;;  %v2810_v33 = vld [vmem:[%s4005_s1 + $0x534] ss:$8 sps:$4 sm:$0xff]  }
  0x5c   :  { %1950 = vmatpush1.bf16.msra.mxu1 %v2720_v34  ;;  %1910 = vmatprep.subr.bf16.mxu0 %v2725_v37  ;;  %v2805_v34 = vld [vmem:[%s4005_s1 + $0x430] ss:$8 sps:$4 sm:$0xff]   ;;  %v2816_v37 = vld [vmem:[%s4005_s1 + $0x524] ss:$8 sps:$4 sm:$0xff]  }
  0x5d   :  { %1951 = vmatprep.subr.bf16.mxu1 %v2728_v39  ;;  %v2814_v39 = vld [vmem:[%s4005_s1 + $0x520] ss:$8 sps:$4 sm:$0xff]  }
  0x5f   :  { %1911 = vmatpush1.bf16.msra.mxu0 %v2723_v40  ;;  %v2819_v40 = vld [vmem:[%s4005_s1 + $0x414] ss:$8 sps:$4 sm:$0xff]  }
  0x60   :  { %1952 = vmatpush1.bf16.msra.mxu1 %v2726_v41  ;;  %1912 = vmatprep.subr.bf16.mxu0 %v2731_v42  ;;  %v2822_v41 = vld [vmem:[%s4005_s1 + $0x514] ss:$8 sps:$4 sm:$0xff]   ;;  %v2817_v42 = vld [vmem:[%s4005_s1 + $0x410] ss:$8 sps:$4 sm:$0xff]  }
  0x61   :  { %1953 = vmatprep.subr.bf16.mxu1 %v2734_v43  ;;  %v2820_v43 = vld [vmem:[%s4005_s1 + $0x510] ss:$8 sps:$4 sm:$0xff]  }
  0x63   :  { %1913 = vmatpush2.bf16.msra.mxu0 %v2729_v44  ;;  %v2825_v44 = vld [vmem:[%s4005_s1 + $0x404] ss:$8 sps:$4 sm:$0xff]  }
  0x64   :  { %1954 = vmatpush2.bf16.msra.mxu1 %v2732_v45  ;;  %1914 = vmatprep.subr.bf16.mxu0 %v2737_v46  ;;  %v2828_v45 = vld [vmem:[%s4005_s1 + $0x504] ss:$8 sps:$4 sm:$0xff]   ;;  %v2823_v46 = vld [vmem:[%s4005_s1 + $0x400] ss:$8 sps:$4 sm:$0xff]  }
  0x65   :  { %1955 = vmatprep.subr.bf16.mxu1 %v2740_v47  ;;  %v2826_v47 = vld [vmem:[%s4005_s1 + $0x500] ss:$8 sps:$4 sm:$0xff]  }
  0x67   :  { %1915 = vmatpush2.bf16.msra.mxu0 %v2735_v48  ;;  %v2831_v48 = vld [vmem:[%s4005_s1 + $0x4f4] ss:$8 sps:$4 sm:$0xff]  }
  0x68   :  { %1956 = vmatpush2.bf16.msra.mxu1 %v2738_v49  ;;  %1916 = vmatprep.subr.bf16.mxu0 %v2743_v50  ;;  %v2834_v49 = vld [vmem:[%s4005_s1 + $0x5f4] ss:$8 sps:$4 sm:$0xff]   ;;  %v2829_v50 = vld [vmem:[%s4005_s1 + $0x4f0] ss:$8 sps:$4 sm:$0xff]  }
  0x69   :  { %1957 = vmatprep.subr.bf16.mxu1 %v2746_v51  ;;  %v2832_v51 = vld [vmem:[%s4005_s1 + $0x5f0] ss:$8 sps:$4 sm:$0xff]  }
  0x6b   :  { %1917 = vmatpush2.bf16.msra.mxu0 %v2741_v52  ;;  %v2837_v52 = vld [vmem:[%s4005_s1 + $0x4e4] ss:$8 sps:$4 sm:$0xff]  }
  0x6c   :  { %1958 = vmatpush2.bf16.msra.mxu1 %v2744_v53  ;;  %1918 = vmatprep.subr.bf16.mxu0 %v2749_v54  ;;  %v2840_v53 = vld [vmem:[%s4005_s1 + $0x5e4] ss:$8 sps:$4 sm:$0xff]   ;;  %v2835_v54 = vld [vmem:[%s4005_s1 + $0x4e0] ss:$8 sps:$4 sm:$0xff]  }
  0x6d   :  { %1959 = vmatprep.subr.bf16.mxu1 %v2752_v55  ;;  %v2838_v55 = vld [vmem:[%s4005_s1 + $0x5e0] ss:$8 sps:$4 sm:$0xff]  }
  0x6f   :  { %1919 = vmatpush2.bf16.msra.mxu0 %v2747_v56  ;;  %v2843_v56 = vld [vmem:[%s4005_s1 + $0x4d4] ss:$8 sps:$4 sm:$0xff]  }
  0x70   :  { %1960 = vmatpush2.bf16.msra.mxu1 %v2750_v57  ;;  %1920 = vmatprep.subr.bf16.mxu0 %v2755_v58  ;;  %v2846_v57 = vld [vmem:[%s4005_s1 + $0x5d4] ss:$8 sps:$4 sm:$0xff]   ;;  %v2841_v58 = vld [vmem:[%s4005_s1 + $0x4d0] ss:$8 sps:$4 sm:$0xff]  }
  0x71   :  { %1961 = vmatprep.subr.bf16.mxu1 %v2758_v59  ;;  %v2844_v59 = vld [vmem:[%s4005_s1 + $0x5d0] ss:$8 sps:$4 sm:$0xff]  }
  0x73   :  { %1921 = vmatpush2.bf16.msra.mxu0 %v2753_v60  ;;  %v2849_v60 = vld [vmem:[%s4005_s1 + $0x4c4] ss:$8 sps:$4 sm:$0xff]  }
  0x74   :  { %1962 = vmatpush2.bf16.msra.mxu1 %v2756_v61  ;;  %1922 = vmatprep.subr.bf16.mxu0 %v2761_v62  ;;  %v2852_v61 = vld [vmem:[%s4005_s1 + $0x5c4] ss:$8 sps:$4 sm:$0xff]   ;;  %v2847_v62 = vld [vmem:[%s4005_s1 + $0x4c0] ss:$8 sps:$4 sm:$0xff]  }
  0x75   :  { %1963 = vmatprep.subr.bf16.mxu1 %v2764_v63  ;;  %v2850_v63 = vld [vmem:[%s4005_s1 + $0x5c0] ss:$8 sps:$4 sm:$0xff]  }
  0x77   :  { %1923 = vmatpush2.bf16.msra.mxu0 %v2759_v0  ;;  %v2855_v0 = vld [vmem:[%s4005_s1 + $0x4b4] ss:$8 sps:$4 sm:$0xff]  }
  0x78   :  { %1964 = vmatpush2.bf16.msra.mxu1 %v2762_v1  ;;  %1924 = vmatprep.subr.bf16.mxu0 %v2767_v2  ;;  %v2858_v1 = vld [vmem:[%s4005_s1 + $0x5b4] ss:$8 sps:$4 sm:$0xff]   ;;  %v2853_v2 = vld [vmem:[%s4005_s1 + $0x4b0] ss:$8 sps:$4 sm:$0xff]  }
  0x79   :  { %1965 = vmatprep.subr.bf16.mxu1 %v2770_v3  ;;  %v2856_v3 = vld [vmem:[%s4005_s1 + $0x5b0] ss:$8 sps:$4 sm:$0xff]  }
  0x7b   :  { %1925 = vmatpush2.bf16.msra.mxu0 %v2765_v4  ;;  %v2861_v4 = vld [vmem:[%s4005_s1 + $0x4a4] ss:$8 sps:$4 sm:$0xff]  }
  0x7c   :  { %1966 = vmatpush2.bf16.msra.mxu1 %v2768_v5  ;;  %1926 = vmatprep.subr.bf16.mxu0 %v2773_v6  ;;  %v2864_v5 = vld [vmem:[%s4005_s1 + $0x5a4] ss:$8 sps:$4 sm:$0xff]   ;;  %v2859_v6 = vld [vmem:[%s4005_s1 + $0x4a0] ss:$8 sps:$4 sm:$0xff]  }
  0x7d   :  { %1967 = vmatprep.subr.bf16.mxu1 %v2776_v7  ;;  %v2862_v7 = vld [vmem:[%s4005_s1 + $0x5a0] ss:$8 sps:$4 sm:$0xff]  }
  0x7f   :  { %1927 = vmatpush2.bf16.msra.mxu0 %v2771_v8  ;;  %v2867_v8 = vld [vmem:[%s4005_s1 + $0x494] ss:$8 sps:$4 sm:$0xff]  }
  0x80   :  { %1968 = vmatpush2.bf16.msra.mxu1 %v2774_v9  ;;  %1978 = vmatprep.subr.bf16.mxu0 %v2781_v10  ;;  %v2870_v9 = vld [vmem:[%s4005_s1 + $0x594] ss:$8 sps:$4 sm:$0xff]   ;;  %v2865_v10 = vld [vmem:[%s4005_s1 + $0x490] ss:$8 sps:$4 sm:$0xff]  }
  0x81   :  { %2019 = vmatprep.subr.bf16.mxu1 %v2786_v11  ;;  %v2868_v11 = vld [vmem:[%s4005_s1 + $0x590] ss:$8 sps:$4 sm:$0xff]  }
  0x82   :  { %1929 = vmatmul.mubr.bf16.vlgmr.msra.gmra.mxu0 %v2276_v12  ;;  %v2873_v12 = vld [vmem:[%s4005_s1 + $0x484] ss:$8 sps:$4 sm:$0xff]  }
  0x83   :  { %1970 = vmatmul.mubr.bf16.vlgmr.msra.gmra.mxu1 %v2278_v14  ;;  %1979 = vmatpush1.bf16.msra.mxu0 %v2779_v13  ;;  %v2876_v13 = vld [vmem:[%s4005_s1 + $0x584] ss:$8 sps:$4 sm:$0xff]   ;;  %v2871_v14 = vld [vmem:[%s4005_s1 + $0x480] ss:$8 sps:$4 sm:$0xff]  }
  0x84   :  { %2020 = vmatpush1.bf16.msra.mxu1 %v2784_v15  ;;  %1980 = vmatprep.subr.bf16.mxu0 %v2789_v16  ;;  %v2874_v15 = vld [vmem:[%s4005_s1 + $0x580] ss:$8 sps:$4 sm:$0xff]   ;;  %v2881_v16 = vld [vmem:[%s4005_s1 + $0x674] ss:$8 sps:$4 sm:$0xff]  }
  0x85   :  { %2021 = vmatprep.subr.bf16.mxu1 %v2792_v17  ;;  %2010 = vmatprep.mubr.bf16.mxu0 %v2281_v19  ;;  %v2886_v17 = vld [vmem:[%s4005_s1 + $0x774] ss:$8 sps:$4 sm:$0xff]   ;;  %v2879_v19 = vld [vmem:[%s4005_s1 + $0x670] ss:$8 sps:$4 sm:$0xff]  }
  0x86   :  { %2051 = vmatprep.mubr.bf16.mxu1 %v2283_v23  ;;  %v2282_v23 = vcombine.low %v3493_v20, %v3493_v20 }
  0x87   :  { %1981 = vmatpush1.bf16.msra.mxu0 %v2787_v21  ;;  %v2884_v21 = vld [vmem:[%s4005_s1 + $0x770] ss:$8 sps:$4 sm:$0xff]  }
  0x88   :  { %2022 = vmatpush1.bf16.msra.mxu1 %v2790_v22  ;;  %1982 = vmatprep.subr.bf16.mxu0 %v2795_v24  ;;  %v2280_v22 = vcombine.low %v3486_v18, %v3486_v18  ;;  %v3690_v24 = vld [vmem:[%s4006_s0 + $0x30] sm:$0xff]  ;;  %v2892_v18 = vld [vmem:[%s4005_s1 + $0x764] ss:$8 sps:$4 sm:$0xff]  }
  0x89   :  { %2023 = vmatprep.subr.bf16.mxu1 %v2798_v25  ;;  %v3695_v25 = vld [vmem:[%s4006_s0 + $0x38] sm:$0xff]  ;;  %v2285_v20 = vcombine.high %v3690_v24, %v3690_v24 }
  0x8b   :  { %1983 = vmatpush1.bf16.msra.mxu0 %v2793_v26  ;;  %v2889_v26 = vld [vmem:[%s4005_s1 + $0x664] ss:$8 sps:$4 sm:$0xff]  }
  0x8c   :  { %2024 = vmatpush1.bf16.msra.mxu1 %v2796_v27  ;;  %1984 = vmatprep.subr.bf16.mxu0 %v2801_v28  ;;  %v2287_v27 = vcombine.high %v3695_v25, %v3695_v25  ;;  %v2887_v28 = vld [vmem:[%s4005_s1 + $0x660] ss:$8 sps:$4 sm:$0xff]  }
  0x8d   :  { %2025 = vmatprep.subr.bf16.mxu1 %v2804_v29  ;;  %v2890_v29 = vld [vmem:[%s4005_s1 + $0x760] ss:$8 sps:$4 sm:$0xff]  }
  0x8f   :  { %1985 = vmatpush1.bf16.msra.mxu0 %v2799_v30  ;;  %v2895_v30 = vld [vmem:[%s4005_s1 + $0x654] ss:$8 sps:$4 sm:$0xff]  }
  0x90   :  { %2026 = vmatpush1.bf16.msra.mxu1 %v2802_v31  ;;  %1986 = vmatprep.subr.bf16.mxu0 %v2807_v32  ;;  %v2898_v31 = vld [vmem:[%s4005_s1 + $0x754] ss:$8 sps:$4 sm:$0xff]   ;;  %v2893_v32 = vld [vmem:[%s4005_s1 + $0x650] ss:$8 sps:$4 sm:$0xff]  }
  0x91   :  { %2027 = vmatprep.subr.bf16.mxu1 %v2810_v33  ;;  %v2896_v33 = vld [vmem:[%s4005_s1 + $0x750] ss:$8 sps:$4 sm:$0xff]  }
  0x93   :  { %1987 = vmatpush1.bf16.msra.mxu0 %v2805_v34  ;;  %v2901_v34 = vld [vmem:[%s4005_s1 + $0x644] ss:$8 sps:$4 sm:$0xff]  }
  0x94   :  { %2028 = vmatpush1.bf16.msra.mxu1 %v2808_v35  ;;  %1988 = vmatprep.subr.bf16.mxu0 %v2813_v36  ;;  %v2904_v35 = vld [vmem:[%s4005_s1 + $0x744] ss:$8 sps:$4 sm:$0xff]   ;;  %v2899_v36 = vld [vmem:[%s4005_s1 + $0x640] ss:$8 sps:$4 sm:$0xff]  }
  0x95   :  { %2029 = vmatprep.subr.bf16.mxu1 %v2816_v37  ;;  %v2902_v37 = vld [vmem:[%s4005_s1 + $0x740] ss:$8 sps:$4 sm:$0xff]  }
  0x97   :  { %1989 = vmatpush1.bf16.msra.mxu0 %v2811_v38  ;;  %v2907_v38 = vld [vmem:[%s4005_s1 + $0x634] ss:$8 sps:$4 sm:$0xff]  }
  0x98   :  { %2030 = vmatpush1.bf16.msra.mxu1 %v2814_v39  ;;  %1990 = vmatprep.subr.bf16.mxu0 %v2819_v40  ;;  %v2910_v39 = vld [vmem:[%s4005_s1 + $0x734] ss:$8 sps:$4 sm:$0xff]   ;;  %v2905_v40 = vld [vmem:[%s4005_s1 + $0x630] ss:$8 sps:$4 sm:$0xff]  }
  0x99   :  { %2031 = vmatprep.subr.bf16.mxu1 %v2822_v41  ;;  %v2908_v41 = vld [vmem:[%s4005_s1 + $0x730] ss:$8 sps:$4 sm:$0xff]  }
  0x9b   :  { %1991 = vmatpush1.bf16.msra.mxu0 %v2817_v42  ;;  %v2913_v42 = vld [vmem:[%s4005_s1 + $0x624] ss:$8 sps:$4 sm:$0xff]  }
  0x9c   :  { %2032 = vmatpush1.bf16.msra.mxu1 %v2820_v43  ;;  %1992 = vmatprep.subr.bf16.mxu0 %v2825_v44  ;;  %v2916_v43 = vld [vmem:[%s4005_s1 + $0x724] ss:$8 sps:$4 sm:$0xff]   ;;  %v2911_v44 = vld [vmem:[%s4005_s1 + $0x620] ss:$8 sps:$4 sm:$0xff]  }
  0x9d   :  { %2033 = vmatprep.subr.bf16.mxu1 %v2828_v45  ;;  %v2914_v45 = vld [vmem:[%s4005_s1 + $0x720] ss:$8 sps:$4 sm:$0xff]  }
  0x9f   :  { %1993 = vmatpush1.bf16.msra.mxu0 %v2823_v46  ;;  %v2919_v46 = vld [vmem:[%s4005_s1 + $0x614] ss:$8 sps:$4 sm:$0xff]  }
  0xa0   :  { %2034 = vmatpush1.bf16.msra.mxu1 %v2826_v47  ;;  %1994 = vmatprep.subr.bf16.mxu0 %v2831_v48  ;;  %v2922_v47 = vld [vmem:[%s4005_s1 + $0x714] ss:$8 sps:$4 sm:$0xff]   ;;  %v2917_v48 = vld [vmem:[%s4005_s1 + $0x610] ss:$8 sps:$4 sm:$0xff]  }
  0xa1   :  { %2035 = vmatprep.subr.bf16.mxu1 %v2834_v49  ;;  %v2920_v49 = vld [vmem:[%s4005_s1 + $0x710] ss:$8 sps:$4 sm:$0xff]  }
  0xa3   :  { %1995 = vmatpush2.bf16.msra.mxu0 %v2829_v50  ;;  %v2925_v50 = vld [vmem:[%s4005_s1 + $0x604] ss:$8 sps:$4 sm:$0xff]  }
  0xa4   :  { %2036 = vmatpush2.bf16.msra.mxu1 %v2832_v51  ;;  %1996 = vmatprep.subr.bf16.mxu0 %v2837_v52  ;;  %v2928_v51 = vld [vmem:[%s4005_s1 + $0x704] ss:$8 sps:$4 sm:$0xff]   ;;  %v2923_v52 = vld [vmem:[%s4005_s1 + $0x600] ss:$8 sps:$4 sm:$0xff]  }
  0xa5   :  { %2037 = vmatprep.subr.bf16.mxu1 %v2840_v53  ;;  %v2926_v53 = vld [vmem:[%s4005_s1 + $0x700] ss:$8 sps:$4 sm:$0xff]  }
  0xa7   :  { %1997 = vmatpush2.bf16.msra.mxu0 %v2835_v54  ;;  %v2931_v54 = vld [vmem:[%s4005_s1 + $0x6f4] ss:$8 sps:$4 sm:$0xff]  }
  0xa8   :  { %2038 = vmatpush2.bf16.msra.mxu1 %v2838_v55  ;;  %1998 = vmatprep.subr.bf16.mxu0 %v2843_v56  ;;  %v2934_v55 = vld [vmem:[%s4005_s1 + $0x7f4] ss:$8 sps:$4 sm:$0xff]   ;;  %v2929_v56 = vld [vmem:[%s4005_s1 + $0x6f0] ss:$8 sps:$4 sm:$0xff]  }
  0xa9   :  { %2039 = vmatprep.subr.bf16.mxu1 %v2846_v57  ;;  %v2932_v57 = vld [vmem:[%s4005_s1 + $0x7f0] ss:$8 sps:$4 sm:$0xff]  }
  0xab   :  { %1999 = vmatpush2.bf16.msra.mxu0 %v2841_v58  ;;  %v2937_v58 = vld [vmem:[%s4005_s1 + $0x6e4] ss:$8 sps:$4 sm:$0xff]  }
  0xac   :  { %2040 = vmatpush2.bf16.msra.mxu1 %v2844_v59  ;;  %2000 = vmatprep.subr.bf16.mxu0 %v2849_v60  ;;  %v2940_v59 = vld [vmem:[%s4005_s1 + $0x7e4] ss:$8 sps:$4 sm:$0xff]   ;;  %v2935_v60 = vld [vmem:[%s4005_s1 + $0x6e0] ss:$8 sps:$4 sm:$0xff]  }
  0xad   :  { %2041 = vmatprep.subr.bf16.mxu1 %v2852_v61  ;;  %v2938_v61 = vld [vmem:[%s4005_s1 + $0x7e0] ss:$8 sps:$4 sm:$0xff]  }
  0xaf   :  { %2001 = vmatpush2.bf16.msra.mxu0 %v2847_v62  ;;  %v2943_v62 = vld [vmem:[%s4005_s1 + $0x6d4] ss:$8 sps:$4 sm:$0xff]  }
  0xb0   :  { %2042 = vmatpush2.bf16.msra.mxu1 %v2850_v63  ;;  %2002 = vmatprep.subr.bf16.mxu0 %v2855_v0  ;;  %v2946_v63 = vld [vmem:[%s4005_s1 + $0x7d4] ss:$8 sps:$4 sm:$0xff]   ;;  %v2941_v0 = vld [vmem:[%s4005_s1 + $0x6d0] ss:$8 sps:$4 sm:$0xff]  }
  0xb1   :  { %2043 = vmatprep.subr.bf16.mxu1 %v2858_v1  ;;  %v2944_v1 = vld [vmem:[%s4005_s1 + $0x7d0] ss:$8 sps:$4 sm:$0xff]  }
  0xb3   :  { %2003 = vmatpush2.bf16.msra.mxu0 %v2853_v2  ;;  %v2949_v2 = vld [vmem:[%s4005_s1 + $0x6c4] ss:$8 sps:$4 sm:$0xff]  }
  0xb4   :  { %2044 = vmatpush2.bf16.msra.mxu1 %v2856_v3  ;;  %2004 = vmatprep.subr.bf16.mxu0 %v2861_v4  ;;  %v2952_v3 = vld [vmem:[%s4005_s1 + $0x7c4] ss:$8 sps:$4 sm:$0xff]   ;;  %v2947_v4 = vld [vmem:[%s4005_s1 + $0x6c0] ss:$8 sps:$4 sm:$0xff]  }
  0xb5   :  { %2045 = vmatprep.subr.bf16.mxu1 %v2864_v5  ;;  %v2950_v5 = vld [vmem:[%s4005_s1 + $0x7c0] ss:$8 sps:$4 sm:$0xff]  }
  0xb7   :  { %2005 = vmatpush2.bf16.msra.mxu0 %v2859_v6  ;;  %v2955_v6 = vld [vmem:[%s4005_s1 + $0x6b4] ss:$8 sps:$4 sm:$0xff]  }
  0xb8   :  { %2046 = vmatpush2.bf16.msra.mxu1 %v2862_v7  ;;  %2006 = vmatprep.subr.bf16.mxu0 %v2867_v8  ;;  %v2958_v7 = vld [vmem:[%s4005_s1 + $0x7b4] ss:$8 sps:$4 sm:$0xff]   ;;  %v2953_v8 = vld [vmem:[%s4005_s1 + $0x6b0] ss:$8 sps:$4 sm:$0xff]  }
  0xb9   :  { %2047 = vmatprep.subr.bf16.mxu1 %v2870_v9  ;;  %v2956_v9 = vld [vmem:[%s4005_s1 + $0x7b0] ss:$8 sps:$4 sm:$0xff]  }
  0xbb   :  { %2007 = vmatpush2.bf16.msra.mxu0 %v2865_v10  ;;  %v2961_v10 = vld [vmem:[%s4005_s1 + $0x6a4] ss:$8 sps:$4 sm:$0xff]  }
  0xbc   :  { %2048 = vmatpush2.bf16.msra.mxu1 %v2868_v11  ;;  %2008 = vmatprep.subr.bf16.mxu0 %v2873_v12  ;;  %v2964_v11 = vld [vmem:[%s4005_s1 + $0x7a4] ss:$8 sps:$4 sm:$0xff]   ;;  %v2959_v12 = vld [vmem:[%s4005_s1 + $0x6a0] ss:$8 sps:$4 sm:$0xff]  }
  0xbd   :  { %2049 = vmatprep.subr.bf16.mxu1 %v2876_v13  ;;  %v2962_v13 = vld [vmem:[%s4005_s1 + $0x7a0] ss:$8 sps:$4 sm:$0xff]  }
  0xbf   :  { %2009 = vmatpush2.bf16.msra.mxu0 %v2871_v14  ;;  %v2967_v14 = vld [vmem:[%s4005_s1 + $0x694] ss:$8 sps:$4 sm:$0xff]  }
  0xc0   :  { %2050 = vmatpush2.bf16.msra.mxu1 %v2874_v15  ;;  %2060 = vmatprep.subr.bf16.mxu0 %v2881_v16  ;;  %v2970_v15 = vld [vmem:[%s4005_s1 + $0x794] ss:$8 sps:$4 sm:$0xff]   ;;  %v2965_v16 = vld [vmem:[%s4005_s1 + $0x690] ss:$8 sps:$4 sm:$0xff]  }
  0xc1   :  { %2101 = vmatprep.subr.bf16.mxu1 %v2886_v17  ;;  %v2968_v17 = vld [vmem:[%s4005_s1 + $0x790] ss:$8 sps:$4 sm:$0xff]  }
  0xc2   :  { %2011 = vmatmul.mubr.bf16.vlgmr.msra.gmra.mxu0 %v2280_v22  ;;  %v2971_v22 = vld [vmem:[%s4005_s1 + $0x680] ss:$8 sps:$4 sm:$0xff]  }
  0xc3   :  { %2052 = vmatmul.mubr.bf16.vlgmr.msra.gmra.mxu1 %v2282_v23  ;;  %2061 = vmatpush1.bf16.msra.mxu0 %v2879_v19  ;;  %v2973_v19 = vld [vmem:[%s4005_s1 + $0x684] ss:$8 sps:$4 sm:$0xff]   ;;  %v2974_v23 = vld [vmem:[%s4005_s1 + $0x780] ss:$8 sps:$4 sm:$0xff]  }
  0xc4   :  { %2102 = vmatpush1.bf16.msra.mxu1 %v2884_v21  ;;  %2062 = vmatprep.subr.bf16.mxu0 %v2889_v26  ;;  %v2976_v21 = vld [vmem:[%s4005_s1 + $0x784] ss:$8 sps:$4 sm:$0xff]   ;;  %v2981_v26 = vld [vmem:[%s4005_s1 + $0x874] ss:$8 sps:$4 sm:$0xff]  }
  0xc5   :  { %2103 = vmatprep.subr.bf16.mxu1 %v2892_v18  ;;  %2092 = vmatprep.mubr.bf16.mxu0 %v2285_v20  ;;  %v3887_v18 = vld [vmem:[%s4006_s0 + $0x40] sm:$0xff]  ;;  %v2284_v20 = vcombine.low %v3690_v24, %v3690_v24 }
  0xc6   :  { %2133 = vmatprep.mubr.bf16.mxu1 %v2287_v27  ;;  %v2286_v27 = vcombine.low %v3695_v25, %v3695_v25  ;;  %v2984_v25 = vld [vmem:[%s4005_s1 + $0x860] ss:$8 sps:$4 sm:$0xff]  }
  0xc7   :  { %2063 = vmatpush1.bf16.msra.mxu0 %v2887_v28  ;;  %v2979_v28 = vld [vmem:[%s4005_s1 + $0x870] ss:$8 sps:$4 sm:$0xff]  }
  0xc8   :  { %2104 = vmatpush1.bf16.msra.mxu1 %v2890_v29  ;;  %2064 = vmatprep.subr.bf16.mxu0 %v2895_v30  ;;  %v2289_v29 = vcombine.high %v3887_v18, %v3887_v18  ;;  %v2986_v30 = vld [vmem:[%s4005_s1 + $0x864] ss:$8 sps:$4 sm:$0xff]  }
  0xc9   :  { %2105 = vmatprep.subr.bf16.mxu1 %v2898_v31 }
  0xcb   :  { %2065 = vmatpush1.bf16.msra.mxu0 %v2893_v32 }
  0xcc   :  { %2106 = vmatpush1.bf16.msra.mxu1 %v2896_v33  ;;  %2066 = vmatprep.subr.bf16.mxu0 %v2901_v34 }
  0xcd   :  { %2107 = vmatprep.subr.bf16.mxu1 %v2904_v35  ;;  %v2989_v35 = vld [vmem:[%s4005_s1 + $0x854] ss:$8 sps:$4 sm:$0xff]  }
  0xcf   :  { %2067 = vmatpush1.bf16.msra.mxu0 %v2899_v36 }
  0xd0   :  { %2108 = vmatpush1.bf16.msra.mxu1 %v2902_v37  ;;  %2068 = vmatprep.subr.bf16.mxu0 %v2907_v38 }
  0xd1   :  { %2109 = vmatprep.subr.bf16.mxu1 %v2910_v39  ;;  %v2987_v39 = vld [vmem:[%s4005_s1 + $0x850] ss:$8 sps:$4 sm:$0xff]  }
  0xd3   :  { %2069 = vmatpush1.bf16.msra.mxu0 %v2905_v40 }
  0xd4   :  { %2110 = vmatpush1.bf16.msra.mxu1 %v2908_v41  ;;  %2070 = vmatprep.subr.bf16.mxu0 %v2913_v42  ;;  %v2992_v41 = vld [vmem:[%s4005_s1 + $0x844] ss:$8 sps:$4 sm:$0xff]  }
  0xd5   :  { %2111 = vmatprep.subr.bf16.mxu1 %v2916_v43  ;;  %v2990_v43 = vld [vmem:[%s4005_s1 + $0x840] ss:$8 sps:$4 sm:$0xff]  }
  0xd7   :  { %2071 = vmatpush1.bf16.msra.mxu0 %v2911_v44  ;;  %v2995_v44 = vld [vmem:[%s4005_s1 + $0x834] ss:$8 sps:$4 sm:$0xff]  }
  0xd8   :  { %2112 = vmatpush1.bf16.msra.mxu1 %v2914_v45  ;;  %2072 = vmatprep.subr.bf16.mxu0 %v2919_v46  ;;  %v2993_v45 = vld [vmem:[%s4005_s1 + $0x830] ss:$8 sps:$4 sm:$0xff]   ;;  %v2998_v46 = vld [vmem:[%s4005_s1 + $0x824] ss:$8 sps:$4 sm:$0xff]  }
  0xd9   :  { %2113 = vmatprep.subr.bf16.mxu1 %v2922_v47  ;;  %v2996_v47 = vld [vmem:[%s4005_s1 + $0x820] ss:$8 sps:$4 sm:$0xff]  }
  0xdb   :  { %2073 = vmatpush1.bf16.msra.mxu0 %v2917_v48  ;;  %v3001_v48 = vld [vmem:[%s4005_s1 + $0x814] ss:$8 sps:$4 sm:$0xff]  }
  0xdc   :  { %2114 = vmatpush1.bf16.msra.mxu1 %v2920_v49  ;;  %2074 = vmatprep.subr.bf16.mxu0 %v2925_v50  ;;  %v2999_v49 = vld [vmem:[%s4005_s1 + $0x810] ss:$8 sps:$4 sm:$0xff]   ;;  %v3004_v50 = vld [vmem:[%s4005_s1 + $0x804] ss:$8 sps:$4 sm:$0xff]  }
  0xdd   :  { %2115 = vmatprep.subr.bf16.mxu1 %v2928_v51  ;;  %v3002_v51 = vld [vmem:[%s4005_s1 + $0x800] ss:$8 sps:$4 sm:$0xff]  }
  0xdf   :  { %2075 = vmatpush1.bf16.msra.mxu0 %v2923_v52  ;;  %v3007_v52 = vld [vmem:[%s4005_s1 + $0x8f4] ss:$8 sps:$4 sm:$0xff]  }
  0xe0   :  { %2116 = vmatpush1.bf16.msra.mxu1 %v2926_v53  ;;  %2076 = vmatprep.subr.bf16.mxu0 %v2931_v54  ;;  %v3005_v53 = vld [vmem:[%s4005_s1 + $0x8f0] ss:$8 sps:$4 sm:$0xff]   ;;  %v3010_v54 = vld [vmem:[%s4005_s1 + $0x8e4] ss:$8 sps:$4 sm:$0xff]  }
  0xe1   :  { %2117 = vmatprep.subr.bf16.mxu1 %v2934_v55  ;;  %v3008_v55 = vld [vmem:[%s4005_s1 + $0x8e0] ss:$8 sps:$4 sm:$0xff]  }
  0xe3   :  { %2077 = vmatpush2.bf16.msra.mxu0 %v2929_v56  ;;  %v3013_v56 = vld [vmem:[%s4005_s1 + $0x8d4] ss:$8 sps:$4 sm:$0xff]  }
  0xe4   :  { %2118 = vmatpush2.bf16.msra.mxu1 %v2932_v57  ;;  %2078 = vmatprep.subr.bf16.mxu0 %v2937_v58  ;;  %v3011_v57 = vld [vmem:[%s4005_s1 + $0x8d0] ss:$8 sps:$4 sm:$0xff]   ;;  %v3016_v58 = vld [vmem:[%s4005_s1 + $0x8c4] ss:$8 sps:$4 sm:$0xff]  }
  0xe5   :  { %2119 = vmatprep.subr.bf16.mxu1 %v2940_v59  ;;  %v3014_v59 = vld [vmem:[%s4005_s1 + $0x8c0] ss:$8 sps:$4 sm:$0xff]  }
  0xe7   :  { %2079 = vmatpush2.bf16.msra.mxu0 %v2935_v60  ;;  %v3019_v60 = vld [vmem:[%s4005_s1 + $0x8b4] ss:$8 sps:$4 sm:$0xff]  }
  0xe8   :  { %2120 = vmatpush2.bf16.msra.mxu1 %v2938_v61  ;;  %2080 = vmatprep.subr.bf16.mxu0 %v2943_v62  ;;  %v3017_v61 = vld [vmem:[%s4005_s1 + $0x8b0] ss:$8 sps:$4 sm:$0xff]   ;;  %v3022_v62 = vld [vmem:[%s4005_s1 + $0x8a4] ss:$8 sps:$4 sm:$0xff]  }
  0xe9   :  { %2121 = vmatprep.subr.bf16.mxu1 %v2946_v63  ;;  %v3020_v63 = vld [vmem:[%s4005_s1 + $0x8a0] ss:$8 sps:$4 sm:$0xff]  }
  0xeb   :  { %2081 = vmatpush2.bf16.msra.mxu0 %v2941_v0  ;;  %v3025_v0 = vld [vmem:[%s4005_s1 + $0x894] ss:$8 sps:$4 sm:$0xff]  }
  0xec   :  { %2122 = vmatpush2.bf16.msra.mxu1 %v2944_v1  ;;  %2082 = vmatprep.subr.bf16.mxu0 %v2949_v2  ;;  %v3023_v1 = vld [vmem:[%s4005_s1 + $0x890] ss:$8 sps:$4 sm:$0xff]   ;;  %v3028_v2 = vld [vmem:[%s4005_s1 + $0x884] ss:$8 sps:$4 sm:$0xff]  }
  0xed   :  { %2123 = vmatprep.subr.bf16.mxu1 %v2952_v3  ;;  %v3026_v3 = vld [vmem:[%s4005_s1 + $0x880] ss:$8 sps:$4 sm:$0xff]  }
  0xef   :  { %2083 = vmatpush2.bf16.msra.mxu0 %v2947_v4  ;;  %v2288_v4 = vcombine.low %v3887_v18, %v3887_v18 }
  0xf0   :  { %2124 = vmatpush2.bf16.msra.mxu1 %v2950_v5  ;;  %2084 = vmatprep.subr.bf16.mxu0 %v2955_v6 }
  0xf1   :  { %2125 = vmatprep.subr.bf16.mxu1 %v2958_v7 }
  0xf3   :  { %2085 = vmatpush2.bf16.msra.mxu0 %v2953_v8 }
  0xf4   :  { %2126 = vmatpush2.bf16.msra.mxu1 %v2956_v9  ;;  %2086 = vmatprep.subr.bf16.mxu0 %v2961_v10 }
  0xf5   :  { %2127 = vmatprep.subr.bf16.mxu1 %v2964_v11 }
  0xf7   :  { %2087 = vmatpush2.bf16.msra.mxu0 %v2959_v12 }
  0xf8   :  { %2128 = vmatpush2.bf16.msra.mxu1 %v2962_v13  ;;  %2088 = vmatprep.subr.bf16.mxu0 %v2967_v14 }
  0xf9   :  { %2129 = vmatprep.subr.bf16.mxu1 %v2970_v15 }
  0xfb   :  { %2089 = vmatpush2.bf16.msra.mxu0 %v2965_v16 }
  0xfc   :  { %2130 = vmatpush2.bf16.msra.mxu1 %v2968_v17  ;;  %2090 = vmatprep.subr.bf16.mxu0 %v2973_v19 }
  0xfd   :  { %2131 = vmatprep.subr.bf16.mxu1 %v2976_v21 }
  0xff   :  { %2091 = vmatpush2.bf16.msra.mxu0 %v2971_v22 }
 0x100   :  { %2132 = vmatpush2.bf16.msra.mxu1 %v2974_v23  ;;  %2142 = vmatprep.subr.bf16.mxu0 %v2981_v26 }
 0x102   :  { %v1848_v31 = vpop.f32.mrf.mxu0  ;;  %2093 = vmatmul.mubr.bf16.vlgmr.msra.gmra.mxu0 %v2284_v20 }
 0x103   :  { %v1889_v32 = vpop.f32.mrf.mxu1  ;;  %2134 = vmatmul.mubr.bf16.vlgmr.msra.gmra.mxu1 %v2286_v27  ;;  %2143 = vmatpush1.bf16.msra.mxu0 %v2979_v28 }
 0x104   :  { %v3901_v24 = vadd.f32 %v1889_v32, %v1848_v31  ;;  %2174 = vmatprep.mubr.bf16.mxu0 %v2289_v29  ;;  %v1850_v33 = vpop.f32.mrf.mxu0  ;;  %2144 = vmatprep.subr.bf16.mxu0 %v2986_v30 }
 0x105   :  { %v1891_v34 = vpop.f32.mrf.mxu1 }
 0x106   :  { %v3909_v36 = vadd.f32 %v1891_v34, %v1850_v33  ;;  %v1852_v37 = vpop.f32.mrf.mxu0 }
 0x107   :  { %v1893_v38 = vpop.f32.mrf.mxu1  ;;  %2145 = vmatpush1.bf16.msra.mxu0 %v2984_v25 }
 0x108   :  { %v1853_v40 = vpop.f32.mrf.mxu0  ;;  %2146 = vmatprep.subr.bf16.mxu0 %v2989_v35 }
 0x109   :  { %v1894_v42 = vpop.f32.mrf.mxu1 }
 0x10b   :  { %2147 = vmatpush1.bf16.msra.mxu0 %v2987_v39 }
 0x10c   :  { %2148 = vmatprep.subr.bf16.mxu0 %v2992_v41 }
 0x10f   :  { %2149 = vmatpush1.bf16.msra.mxu0 %v2990_v43 }
 0x110   :  { %2150 = vmatprep.subr.bf16.mxu0 %v2995_v44 }
 0x113   :  { %2151 = vmatpush1.bf16.msra.mxu0 %v2993_v45 }
 0x114   :  { %2152 = vmatprep.subr.bf16.mxu0 %v2998_v46 }
 0x117   :  { %2153 = vmatpush1.bf16.msra.mxu0 %v2996_v47 }
 0x118   :  { %2154 = vmatprep.subr.bf16.mxu0 %v3001_v48 }
 0x11b   :  { %2155 = vmatpush1.bf16.msra.mxu0 %v2999_v49 }
 0x11c   :  { %2156 = vmatprep.subr.bf16.mxu0 %v3004_v50 }
 0x11f   :  { %2157 = vmatpush1.bf16.msra.mxu0 %v3002_v51 }
 0x120   :  { %2158 = vmatprep.subr.bf16.mxu0 %v3007_v52  ;;  %v3031_v52 = vmov 1966171168  }
 0x123   :  { %2159 = vmatpush2.bf16.msra.mxu0 %v3005_v53  ;;  %v2199_v53 = vunpack.c.l.s4 %v3031_v52 }
 0x124   :  { %2160 = vmatprep.subr.bf16.mxu0 %v3010_v54  ;;  %v2201_v54 = vlaneseq }
 0x126   :  { %vm2215_vm0 = vcmp.lt.s32.totalorder %v2201_v54, 256 }
 0x127   :  { %2161 = vmatpush2.bf16.msra.mxu0 %v3008_v55 }
 0x128   :  { %2162 = vmatprep.subr.bf16.mxu0 %v3013_v56 }
 0x12b   :  { %2163 = vmatpush2.bf16.msra.mxu0 %v3011_v57 }
 0x12c   :  { %2164 = vmatprep.subr.bf16.mxu0 %v3016_v58 }
 0x12f   :  { %2165 = vmatpush2.bf16.msra.mxu0 %v3014_v59 }
 0x130   :  { %2166 = vmatprep.subr.bf16.mxu0 %v3019_v60 }
 0x133   :  { %2167 = vmatpush2.bf16.msra.mxu0 %v3017_v61 }
 0x134   :  { %2168 = vmatprep.subr.bf16.mxu0 %v3022_v62 }
 0x137   :  { %2169 = vmatpush2.bf16.msra.mxu0 %v3020_v63 }
 0x138   :  { %2170 = vmatprep.subr.bf16.mxu0 %v3025_v0 }
 0x13b   :  { %2171 = vmatpush2.bf16.msra.mxu0 %v3023_v1  ;;  %v2200_v1 = vunpack.c.0.s8 %v2199_v53 }
 0x13c   :  { %2172 = vmatprep.subr.bf16.mxu0 %v3028_v2  ;;  %v2202_v2 = vshrl.u32 %v2201_v54, 7 }
 0x13f   :  { %2173 = vmatpush2.bf16.msra.mxu0 %v3026_v3 }
 0x142   :  { %v1930_v5 = vpop.f32.mrf.mxu0  ;;  %2175 = vmatmul.mubr.bf16.vlgmr.msra.gmra.mxu0 %v2288_v4 }
 0x143   :  { %v1971_v6 = vpop.f32.mrf.mxu1  ;;  %v1931_v7 = vadd.f32 %v1930_v5, %v3901_v24 }
 0x144   :  { %v1932_v8 = vpop.f32.mrf.mxu0 }
 0x145   :  { %v1973_v9 = vpop.f32.mrf.mxu1  ;;  %v1933_v10 = vadd.f32 %v1932_v8, %v3909_v36  ;;  %v1972_v11 = vadd.f32 %v1971_v6, %v1931_v7 }
 0x146   :  { %v1934_v12 = vpop.f32.mrf.mxu0 }
 0x147   :  { %v1975_v13 = vpop.f32.mrf.mxu1  ;;  %v1974_v14 = vadd.f32 %v1973_v9, %v1933_v10  ;;  %v2203_v12 = vsub.s32 %v2200_v1, %v2202_v2 }
 0x148   :  { %v1935_v15 = vpop.f32.mrf.mxu0 }
 0x149   :  { %v1976_v16 = vpop.f32.mrf.mxu1 }
 0x182   :  { %v2012_v17 = vpop.f32.mrf.mxu0 }
 0x183   :  { %v2053_v19 = vpop.f32.mrf.mxu1  ;;  %v2013_v21 = vadd.f32 %v2012_v17, %v1972_v11 }
 0x184   :  { %v2014_v22 = vpop.f32.mrf.mxu0 }
 0x185   :  { %v2055_v23 = vpop.f32.mrf.mxu1  ;;  %v2015_v26 = vadd.f32 %v2014_v22, %v1974_v14  ;;  %v2054_v18 = vadd.f32 %v2053_v19, %v2013_v21 }
 0x186   :  { %v2016_v20 = vpop.f32.mrf.mxu0 }
 0x187   :  { %v2057_v27 = vpop.f32.mrf.mxu1  ;;  %v2056_v28 = vadd.f32 %v2055_v23, %v2015_v26 }
 0x188   :  { %v2017_v29 = vpop.f32.mrf.mxu0 }
 0x189   :  { %v2058_v30 = vpop.f32.mrf.mxu1 }
 0x1c2   :  { %v2094_v31 = vpop.f32.mrf.mxu0 }
 0x1c3   :  { %v2135_v32 = vpop.f32.mrf.mxu1  ;;  %v2095_v24 = vadd.f32 %v2094_v31, %v2054_v18 }
 0x1c4   :  { %v2096_v25 = vpop.f32.mrf.mxu0 }
 0x1c5   :  { %v2137_v33 = vpop.f32.mrf.mxu1  ;;  %v2136_v34 = vadd.f32 %v2135_v32, %v2095_v24  ;;  %v2097_v39 = vadd.f32 %v2096_v25, %v2056_v28 }
 0x1c6   :  { %v2098_v35 = vpop.f32.mrf.mxu0 }
 0x1c7   :  { %v2139_v36 = vpop.f32.mrf.mxu1  ;;  %v2138_v41 = vadd.f32 %v2137_v33, %v2097_v39 }
 0x1c8   :  { %v2099_v37 = vpop.f32.mrf.mxu0 }
 0x1c9   :  { %v2140_v38 = vpop.f32.mrf.mxu1 }
 0x202   :  { %v2176_v40 = vpop.f32.mrf.mxu0 }
 0x203   :  { %v2177_v42 = vadd.f32 %v2176_v40, %v2136_v34 }
 0x204   :  { %v2178_v43 = vpop.f32.mrf.mxu0 }
 0x205   :  { %v2183_v44 = vrot.slane %v2177_v42, 4  ;;  %v2218_v45 = vmul.f32 %v2177_v42, %v2177_v42  ;;  %v2179_v46 = vadd.f32 %v2178_v43, %v2138_v41 }
 0x206   :  { %v2180_v47 = vpop.f32.mrf.mxu0 }
 0x207   :  { %v2184_v48 = vadd.f32 %v2183_v44, %v2177_v42  ;;  %v2220_v49 = vrot.slane %v2218_v45, 4  ;;  %v2189_v50 = vrot.slane %v2179_v46, 4  ;;  %v2219_v51 = vmul.f32 %v2179_v46, %v2179_v46 }
 0x208   :  { %v2579_v55 = vpack.c.bf16 %v2179_v46, %v2177_v42  ;;  %v2181_v56 = vpop.f32.mrf.mxu0 }
 0x209   :  { %v2185_v57 = vrot.slane %v2184_v48, 2  ;;  %v2221_v58 = vadd.f32 %v2220_v49, %v2218_v45  ;;  %v2190_v59 = vadd.f32 %v2189_v50, %v2179_v46  ;;  %v2226_v60 = vrot.slane %v2219_v51, 4 }
 0x20a   :  { %2259 = vst [vmem:[%s4007_s2] sm:$0xff] %v2579_v55 }
 0x20b   :  { %v2186_v61 = vadd.f32 %v2185_v57, %v2184_v48  ;;  %v2222_v62 = vrot.slane %v2221_v58, 2  ;;  %v2191_v63 = vrot.slane %v2190_v59, 2  ;;  %v2227_v0 = vadd.f32 %v2226_v60, %v2219_v51 }
 0x20d   :  { %v2187_v3 = vrot.slane %v2186_v61, 1  ;;  %v2223_v4 = vadd.f32 %v2222_v62, %v2221_v58  ;;  %v2192_v5 = vadd.f32 %v2191_v63, %v2190_v59  ;;  %v2228_v6 = vrot.slane %v2227_v0, 2 }
 0x20f   :  { %v2224_v7 = vrot.slane %v2223_v4, 1  ;;  %v2193_v8 = vrot.slane %v2192_v5, 1  ;;  %v2229_v9 = vadd.f32 %v2228_v6, %v2227_v0  ;;  %v2188_v10 = vadd.f32 %v2187_v3, %v2186_v61 }
 0x211   :  { %v2194_v11 = vadd.f32 %v2193_v8, %v2192_v5  ;;  %v2230_v13 = vrot.slane %v2229_v9, 1  ;;  %v2225_v14 = vadd.f32 %v2224_v7, %v2223_v4 }
 0x213   :  { %v2197_v15 = vcombine.low %v2188_v10, %v2194_v11  ;;  %v2231_v16 = vadd.f32 %v2230_v13, %v2229_v9 }
 0x215   :  { %v2204_v17 = vrot.slane %v2197_v15, %v2203_v12  ;;  %v2234_v19 = vcombine.low %v2225_v14, %v2231_v16 }
 0x217   :  { %v2211_v21 = vrot.slane %v2204_v17, %v2203_v12  ;;  %v2241_v22 = vrot.slane %v2234_v19, %v2203_v12 }
 0x219   :  { %2217 = vst.msk [vmem:[%s4008_s3] sm:$0x3] %vm2215_vm0, %v2211_v21  ;;  %v2248_v23 = vrot.slane %v2241_v22, %v2203_v12 }
 0x21b   :  { %2250 = vst.msk [vmem:[%s4009_s4] sm:$0x3] %vm2215_vm0, %v2248_v23 }

</bundles_post_ra>
